<compile_context>
chip_gen: v7x
topology: tpu7x:2x2x1
jax: 0.10.0
libtpu: 0.0.40
codegen_flags: <defaults>
</compile_context>

<pallas_src>
import functools

import jax
import jax.numpy as jnp
from jax.experimental import pallas as pl
from jax.experimental.pallas import tpu as pltpu


def _round_up(x, m):
    return ((x + m - 1) // m) * m


# ----------------------------------------------------------------------------
# Pallas kernels
# ----------------------------------------------------------------------------
def _multi_dilated_conv_kernel(x_ref, w_ref, b_ref, o_ref, *, H, W, Cin, Cout,
                               pad, dils):
    """Per-batch 3x3 (multi-)dilated conv + folded BN + ReLU.

    x_ref: (1, H+2p, W+2p, Cin) f32   (padded input slab, resident in VMEM)
    w_ref: (nb, 9, Cin, Cout)  bf16   (BN scale folded in)
    b_ref: (nb, 1, Cout)       f32    (folded BN bias)
    o_ref: (1, H, W, nb*Cout)
    """
    outs = []
    for bi, d in enumerate(dils):
        acc = jnp.zeros((H * W, Cout), jnp.float32)
        t = 0
        for ki in (-1, 0, 1):
            for kj in (-1, 0, 1):
                patch = x_ref[0, pl.ds(pad + ki * d, H), pl.ds(pad + kj * d, W), :]
                patch = patch.reshape(H * W, Cin).astype(jnp.bfloat16)
                acc = acc + jnp.dot(patch, w_ref[bi, t],
                                    preferred_element_type=jnp.float32)
                t += 1
        outs.append(jnp.maximum(acc + b_ref[bi], 0.0))          # BN bias + ReLU
    out = outs[0] if len(outs) == 1 else jnp.concatenate(outs, axis=-1)
    o_ref[0] = out.reshape(H, W, len(dils) * Cout).astype(o_ref.dtype)


def _matmul_bias_act_kernel(x_ref, w_ref, b_ref, o_ref, *, act):
    """out = act(x @ w + bias) — conv1x1-as-matmul (BN scale folded into w)."""
    acc = jnp.dot(x_ref[...], w_ref[...], preferred_element_type=jnp.float32)
    y = acc + b_ref[...]
    if act == "relu":
        y = jnp.maximum(y, 0.0)
    elif act == "sigmoid":
        y = jax.nn.sigmoid(y)
    elif act == "hswish":
        y = y * (jnp.clip(y + 3.0, 0.0, 6.0) * (1.0 / 6.0))
    o_ref[...] = y.astype(o_ref.dtype)


def _sa_conv7x7_kernel(x_ref, w_ref, o_ref, *, H, W):
    """7x7 single-channel conv + sigmoid on the VPU (weights read from SMEM).

    x_ref: (1, H+6, W+6) f32  padded channel-max map
    w_ref: (7, 7) f32 in SMEM
    o_ref: (1, H, W) f32
    """
    acc = jnp.zeros((H, W), jnp.float32)
    for ki in range(7):
        for kj in range(7):
            acc = acc + w_ref[ki, kj] * x_ref[0, pl.ds(ki, H), pl.ds(kj, W)]
    o_ref[0] = jax.nn.sigmoid(acc)


def _fuse_kernel(xa_ref, oh_ref, ow_ref, sa_ref, xc_ref, o_ref):
    """out = x_all*out_h*out_w + x_all*sa + x_cur  (broadcasts done in-kernel)."""
    xa = xa_ref[0]                                   # (H, W, C)
    o_ref[0] = xa * oh_ref[0] * ow_ref[0] + xa * sa_ref[0] + xc_ref[0]


# ----------------------------------------------------------------------------
# Pallas wrappers
# ----------------------------------------------------------------------------
def multi_dilated_conv(x_nhwc, w_packed, b_packed, dils, pad,
                       out_dtype=jnp.float32):
    """All branches of a 3x3 dilated conv stack in one pallas_call (grid = batch)."""
    N, H, W, Cin = x_nhwc.shape
    nb, _, _, Cout = w_packed.shape
    assert len(dils) == nb
    xp = jnp.pad(x_nhwc, ((0, 0), (pad, pad), (pad, pad), (0, 0))).astype(jnp.float32)
    Hp, Wp = H + 2 * pad, W + 2 * pad
    kernel = functools.partial(_multi_dilated_conv_kernel, H=H, W=W, Cin=Cin,
                               Cout=Cout, pad=pad, dils=tuple(dils))
    return pl.pallas_call(
        kernel,
        out_shape=jax.ShapeDtypeStruct((N, H, W, nb * Cout), out_dtype),
        grid=(N,),
        in_specs=[
            pl.BlockSpec((1, Hp, Wp, Cin), lambda n: (n, 0, 0, 0)),
            pl.BlockSpec((nb, 9, Cin, Cout), lambda n: (0, 0, 0, 0)),
            pl.BlockSpec((nb, 1, Cout), lambda n: (0, 0, 0)),
        ],
        out_specs=pl.BlockSpec((1, H, W, nb * Cout), lambda n: (n, 0, 0, 0)),
        compiler_params=pltpu.CompilerParams(dimension_semantics=("parallel",)),
    )(xp, w_packed, b_packed)


def fused_matmul(x, w, bias, act="none", tile_m=512):
    """Row-tiled (x @ w) + bias + activation; bf16 MXU operands, f32 accumulate."""
    M, K = x.shape
    Kw, Nc = w.shape
    assert K == Kw
    TM = min(tile_m, _round_up(M, 16))       # 16-row multiple (bf16 sublane pack)
    Mp = _round_up(M, TM)
    if Mp != M:
        x = jnp.pad(x, ((0, Mp - M), (0, 0)))
    out = pl.pallas_call(
        functools.partial(_matmul_bias_act_kernel, act=act),
        out_shape=jax.ShapeDtypeStruct((Mp, Nc), jnp.float32),
        grid=(Mp // TM,),
        in_specs=[
            pl.BlockSpec((TM, K), lambda i: (i, 0)),
            pl.BlockSpec((K, Nc), lambda i: (0, 0)),
            pl.BlockSpec((1, Nc), lambda i: (0, 0)),
        ],
        out_specs=pl.BlockSpec((TM, Nc), lambda i: (i, 0)),
        compiler_params=pltpu.CompilerParams(dimension_semantics=("parallel",)),
    )(x.astype(jnp.bfloat16), w.astype(jnp.bfloat16),
      bias.reshape(1, Nc).astype(jnp.float32))
    return out[:M]


def fuse(x_all, out_h, out_w, sa, x_cur):
    """x_all*out_h*out_w + x_all*sa + x_cur, broadcasting out_h/out_w/sa in-kernel."""
    N, H, W, C = x_all.shape
    return pl.pallas_call(
        _fuse_kernel,
        out_shape=jax.ShapeDtypeStruct((N, H, W, C), jnp.float32),
        grid=(N,),
        in_specs=[
            pl.BlockSpec((1, H, W, C), lambda n: (n, 0, 0, 0)),
            pl.BlockSpec((1, H, 1, C), lambda n: (n, 0, 0, 0)),
            pl.BlockSpec((1, 1, W, C), lambda n: (n, 0, 0, 0)),
            pl.BlockSpec((1, H, W, 1), lambda n: (n, 0, 0, 0)),
            pl.BlockSpec((1, H, W, C), lambda n: (n, 0, 0, 0)),
        ],
        out_specs=pl.BlockSpec((1, H, W, C), lambda n: (n, 0, 0, 0)),
        compiler_params=pltpu.CompilerParams(dimension_semantics=("parallel",)),
    )(x_all.astype(jnp.float32), out_h.astype(jnp.float32),
      out_w.astype(jnp.float32), sa.astype(jnp.float32),
      x_cur.astype(jnp.float32))


# ----------------------------------------------------------------------------
# Host-side weight preparation (BN folding)
# ----------------------------------------------------------------------------
def bn_fold(bn, eps=1e-5):
    gamma, beta, mean, var = bn
    scale = gamma / jnp.sqrt(var + eps)
    bias = beta - mean * scale
    return scale, bias


def pack_conv_weights(w_list, bn_list):
    """Torch OIHW 3x3 weights + BN -> (nb, 9, Cin, Cout) bf16, (nb, 1, Cout) f32."""
    mats, biases = [], []
    for w, bn in zip(w_list, bn_list):
        cout, cin = w.shape[0], w.shape[1]
        scale, bias = bn_fold(bn)
        wm = jnp.transpose(w, (2, 3, 1, 0)).reshape(9, cin, cout) * scale  # fold BN
        mats.append(wm)
        biases.append(bias.reshape(1, cout))
    W = jnp.stack(mats).astype(jnp.bfloat16)
    B = jnp.stack(biases).astype(jnp.float32)
    return W, B


# ----------------------------------------------------------------------------
# Submodules
# ----------------------------------------------------------------------------
def coord_attention(x_nhwc, ca):
    N, H, W, C = x_nhwc.shape
    # TODO(synk): tiny adaptive avg-pools stay in plain JAX glue.
    x_h = jnp.mean(x_nhwc, axis=2)                   # (N,H,C) pool over W
    x_w = jnp.mean(x_nhwc, axis=1)                   # (N,W,C) pool over H
    x_cat = jnp.concatenate([x_h, x_w], axis=1)      # (N,H+W,C)

    s1, fb1 = bn_fold(ca["bn1"])
    w1 = ca["w1"][:, :, 0, 0].T * s1[None, :]        # (C, temp_c), BN scale folded
    bias1 = ca["b1"] * s1 + fb1                      # conv bias pushed through BN
    out = fused_matmul(x_cat.reshape(-1, C), w1, bias1, act="hswish")
    tc = out.shape[-1]
    out = out.reshape(N, H + W, tc)

    xh = out[:, :H, :].reshape(-1, tc)
    xw = out[:, H:, :].reshape(-1, tc)
    w2 = ca["w2"][:, :, 0, 0].T                      # (temp_c, C)
    w3 = ca["w3"][:, :, 0, 0].T
    out_h = fused_matmul(xh, w2, ca["b2"], act="sigmoid").reshape(N, H, 1, C)
    out_w = fused_matmul(xw, w3, ca["b3"], act="sigmoid").reshape(N, 1, W, C)
    return out_h, out_w


def spatial_attention(x_pre_nhwc, w7):
    """downsample2 (MaxPool2d 2x2) + SpatialAttention(7) on x_pre."""
    N, H2, W2, _ = x_pre_nhwc.shape
    H, W = H2 // 2, W2 // 2
    # TODO(synk): channel-max + 2x2 max-pool are tiny reductions kept in JAX glue
    # (max over channels commutes with the spatial max-pool).
    mx = jnp.max(x_pre_nhwc, axis=-1)                           # (N, 2H, 2W)
    mp = jnp.max(mx.reshape(N, H, 2, W, 2), axis=(2, 4))        # (N, H, W)
    mpad = jnp.pad(mp, ((0, 0), (3, 3), (3, 3))).astype(jnp.float32)
    sa = pl.pallas_call(
        functools.partial(_sa_conv7x7_kernel, H=H, W=W),
        out_shape=jax.ShapeDtypeStruct((N, H, W), jnp.float32),
        grid=(N,),
        in_specs=[
            pl.BlockSpec((1, H + 6, W + 6), lambda n: (n, 0, 0)),
            pl.BlockSpec(memory_space=pltpu.MemorySpace.SMEM),
        ],
        out_specs=pl.BlockSpec((1, H, W), lambda n: (n, 0, 0)),
        compiler_params=pltpu.CompilerParams(dimension_semantics=("parallel",)),
    )(mpad, w7[0, 0].astype(jnp.float32))
    return sa[..., None]                                        # (N,H,W,1)


# ----------------------------------------------------------------------------
# Parameters (deterministic synthetic init) & forward
# ----------------------------------------------------------------------------
def init_params(key, C):
    temp_c = max(8, C // 32)
    keys = iter(jax.random.split(key, 64))

    def rnd(shape, scale=0.1):
        return jax.random.normal(next(keys), shape, jnp.float32) * scale

    def bn(c):
        gamma = 1.0 + 0.1 * jax.random.normal(next(keys), (c,), jnp.float32)
        beta = 0.1 * jax.random.normal(next(keys), (c,), jnp.float32)
        mean = 0.1 * jax.random.normal(next(keys), (c,), jnp.float32)
        var = jnp.abs(jax.random.normal(next(keys), (c,), jnp.float32)) + 0.5
        return gamma, beta, mean, var

    p = {}
    for name in ("b1", "b2", "b3", "b4"):
        p[name] = dict(w=rnd((C, C, 3, 3)), bn=bn(C))
    p["all"] = dict(w=rnd((C, 4 * C, 3, 3)), bn=bn(C))
    p["ca"] = dict(
        w1=rnd((temp_c, C, 1, 1)), b1=rnd((temp_c,)), bn1=bn(temp_c),
        w2=rnd((C, temp_c, 1, 1)), b2=rnd((C,)),
        w3=rnd((C, temp_c, 1, 1)), b3=rnd((C,)),
    )
    p["sa"] = dict(w=rnd((1, 1, 7, 7)))
    return p


def cscm3_forward(params, x_pre_nchw, x_cur_nchw):
    x_cur = jnp.transpose(x_cur_nchw, (0, 2, 3, 1)).astype(jnp.float32)  # NHWC
    x_pre = jnp.transpose(x_pre_nchw, (0, 2, 3, 1)).astype(jnp.float32)

    # Four dilated 3x3 branches (d=1..4), one pallas_call, concatenated output.
    wb, bb = pack_conv_weights([params[f"b{i}"]["w"] for i in range(1, 5)],
                               [params[f"b{i}"]["bn"] for i in range(1, 5)])
    x_cat = multi_dilated_conv(x_cur, wb, bb, dils=(1, 2, 3, 4), pad=4)

    # Fusion 3x3 conv (4C -> C), dilation 1.
    wa, ba = pack_conv_weights([params["all"]["w"]], [params["all"]["bn"]])
    x_cur_all = multi_dilated_conv(x_cat, wa, ba, dils=(1,), pad=1)

    # Coordinate attention on x_cur_all.
    out_h, out_w = coord_attention(x_cur_all, params["ca"])

    # Spatial attention of the max-pooled previous-level feature.
    sa = spatial_attention(x_pre, params["sa"]["w"])

    # x_LocAndGlo = x_cur_all*out_w*out_h + x_cur_all*sa + x_cur
    out = fuse(x_cur_all, out_h, out_w, sa, x_cur)
    return jnp.transpose(out, (0, 3, 1, 2))                              # NCHW


# ----------------------------------------------------------------------------
if __name__ == "__main__":
    key = jax.random.PRNGKey(0)
    kp, kx, kpre = jax.random.split(key, 3)
    N, C, H, W = 2, 4, 16, 16
    params = init_params(kp, C)
    x_cur = jax.random.normal(kx, (N, C, H, W), jnp.float32)
    x_pre = jax.random.normal(kpre, (N, C, 2 * H, 2 * W), jnp.float32)

    fwd = jax.jit(cscm3_forward)
    out = jax.block_until_ready(fwd(params, x_pre, x_cur))

    assert out.shape == (N, C, H, W), out.shape
    assert bool(jnp.all(jnp.isfinite(out)))
    print("KERNEL_OK")
</pallas_src>

<mosaic_0001>
module attributes {stable_mosaic.version = 11 : i64} {
  func.func @_multi_dilated_conv_kernel(%arg0: i32, %arg1: memref<1x24x24x4xf32, #tpu.memory_space<vmem>>, %arg2: memref<4x9x4x4xbf16, #tpu.memory_space<vmem>>, %arg3: memref<4x1x4xf32, #tpu.memory_space<vmem>>, %arg4: memref<1x16x16x16xf32, #tpu.memory_space<vmem>>) attributes {dimension_semantics = [#tpu.dimension_semantics<parallel>], iteration_bounds = array<i64: 2>, scalar_prefetch = 0 : i64, scratch_operands = 0 : i64, tpu.core_type = #tpu.core_type<tc>, window_params = [{transform_indices = @transform_0, window_bounds = array<i64: 1, 24, 24, 4>}, {pipeline_mode = #tpu.pipeline_mode<synchronous>, transform_indices = @transform_1, window_bounds = array<i64: 4, 9, 4, 4>}, {pipeline_mode = #tpu.pipeline_mode<synchronous>, transform_indices = @transform_2, window_bounds = array<i64: 4, 1, 4>}, {transform_indices = @transform_3, window_bounds = array<i64: 1, 16, 16, 16>}]} {
    %cst = arith.constant 0.000000e+00 : f32
    %0 = vector.broadcast %cst : f32 to vector<256x4xf32>
    %c0 = arith.constant 0 : index
    %c3 = arith.constant 3 : index
    %c3_0 = arith.constant 3 : index
    %c0_1 = arith.constant 0 : index
    %1 = vector.load %arg1[%c0, %c3, %c3_0, %c0_1] : memref<1x24x24x4xf32, #tpu.memory_space<vmem>>, vector<1x16x16x4xf32>
    %2 = vector.shape_cast %1 : vector<1x16x16x4xf32> to vector<16x16x4xf32>
    %3 = vector.shape_cast %2 : vector<16x16x4xf32> to vector<256x4xf32>
    %4 = arith.truncf %3 : vector<256x4xf32> to vector<256x4xbf16>
    %c0_2 = arith.constant 0 : index
    %c0_3 = arith.constant 0 : index
    %c0_4 = arith.constant 0 : index
    %c0_5 = arith.constant 0 : index
    %5 = vector.load %arg2[%c0_2, %c0_3, %c0_4, %c0_5] : memref<4x9x4x4xbf16, #tpu.memory_space<vmem>>, vector<1x1x4x4xbf16>
    %6 = vector.shape_cast %5 : vector<1x1x4x4xbf16> to vector<4x4xbf16>
    %cst_6 = arith.constant dense<0.000000e+00> : vector<256x4xf32>
    %7 = tpu.matmul %4, %6, %cst_6 {dimension_numbers = #tpu.dot_dimension_numbers<[1], [0], [0], [1], [0, 0, 1, 1], [], []>} : vector<256x4xbf16>, vector<4x4xbf16>, vector<256x4xf32> -> vector<256x4xf32>
    %8 = arith.addf %0, %7 : vector<256x4xf32>
    %c0_7 = arith.constant 0 : index
    %c3_8 = arith.constant 3 : index
    %c4 = arith.constant 4 : index
    %c0_9 = arith.constant 0 : index
    %9 = vector.load %arg1[%c0_7, %c3_8, %c4, %c0_9] : memref<1x24x24x4xf32, #tpu.memory_space<vmem>>, vector<1x16x16x4xf32>
    %10 = vector.shape_cast %9 : vector<1x16x16x4xf32> to vector<16x16x4xf32>
    %11 = vector.shape_cast %10 : vector<16x16x4xf32> to vector<256x4xf32>
    %12 = arith.truncf %11 : vector<256x4xf32> to vector<256x4xbf16>
    %c0_10 = arith.constant 0 : index
    %c1 = arith.constant 1 : index
    %c0_11 = arith.constant 0 : index
    %c0_12 = arith.constant 0 : index
    %13 = vector.load %arg2[%c0_10, %c1, %c0_11, %c0_12] : memref<4x9x4x4xbf16, #tpu.memory_space<vmem>>, vector<1x1x4x4xbf16>
    %14 = vector.shape_cast %13 : vector<1x1x4x4xbf16> to vector<4x4xbf16>
    %cst_13 = arith.constant dense<0.000000e+00> : vector<256x4xf32>
    %15 = tpu.matmul %12, %14, %cst_13 {dimension_numbers = #tpu.dot_dimension_numbers<[1], [0], [0], [1], [0, 0, 1, 1], [], []>} : vector<256x4xbf16>, vector<4x4xbf16>, vector<256x4xf32> -> vector<256x4xf32>
    %16 = arith.addf %8, %15 : vector<256x4xf32>
    %c0_14 = arith.constant 0 : index
    %c3_15 = arith.constant 3 : index
    %c5 = arith.constant 5 : index
    %c0_16 = arith.constant 0 : index
    %17 = vector.load %arg1[%c0_14, %c3_15, %c5, %c0_16] : memref<1x24x24x4xf32, #tpu.memory_space<vmem>>, vector<1x16x16x4xf32>
    %18 = vector.shape_cast %17 : vector<1x16x16x4xf32> to vector<16x16x4xf32>
    %19 = vector.shape_cast %18 : vector<16x16x4xf32> to vector<256x4xf32>
    %20 = arith.truncf %19 : vector<256x4xf32> to vector<256x4xbf16>
    %c0_17 = arith.constant 0 : index
    %c2 = arith.constant 2 : index
    %c0_18 = arith.constant 0 : index
    %c0_19 = arith.constant 0 : index
    %21 = vector.load %arg2[%c0_17, %c2, %c0_18, %c0_19] : memref<4x9x4x4xbf16, #tpu.memory_space<vmem>>, vector<1x1x4x4xbf16>
    %22 = vector.shape_cast %21 : vector<1x1x4x4xbf16> to vector<4x4xbf16>
    %cst_20 = arith.constant dense<0.000000e+00> : vector<256x4xf32>
    %23 = tpu.matmul %20, %22, %cst_20 {dimension_numbers = #tpu.dot_dimension_numbers<[1], [0], [0], [1], [0, 0, 1, 1], [], []>} : vector<256x4xbf16>, vector<4x4xbf16>, vector<256x4xf32> -> vector<256x4xf32>
    %24 = arith.addf %16, %23 : vector<256x4xf32>
    %c0_21 = arith.constant 0 : index
    %c4_22 = arith.constant 4 : index
    %c3_23 = arith.constant 3 : index
    %c0_24 = arith.constant 0 : index
    %25 = vector.load %arg1[%c0_21, %c4_22, %c3_23, %c0_24] : memref<1x24x24x4xf32, #tpu.memory_space<vmem>>, vector<1x16x16x4xf32>
    %26 = vector.shape_cast %25 : vector<1x16x16x4xf32> to vector<16x16x4xf32>
    %27 = vector.shape_cast %26 : vector<16x16x4xf32> to vector<256x4xf32>
    %28 = arith.truncf %27 : vector<256x4xf32> to vector<256x4xbf16>
    %c0_25 = arith.constant 0 : index
    %c3_26 = arith.constant 3 : index
    %c0_27 = arith.constant 0 : index
    %c0_28 = arith.constant 0 : index
    %29 = vector.load %arg2[%c0_25, %c3_26, %c0_27, %c0_28] : memref<4x9x4x4xbf16, #tpu.memory_space<vmem>>, vector<1x1x4x4xbf16>
    %30 = vector.shape_cast %29 : vector<1x1x4x4xbf16> to vector<4x4xbf16>
    %cst_29 = arith.constant dense<0.000000e+00> : vector<256x4xf32>
    %31 = tpu.matmul %28, %30, %cst_29 {dimension_numbers = #tpu.dot_dimension_numbers<[1], [0], [0], [1], [0, 0, 1, 1], [], []>} : vector<256x4xbf16>, vector<4x4xbf16>, vector<256x4xf32> -> vector<256x4xf32>
    %32 = arith.addf %24, %31 : vector<256x4xf32>
    %c0_30 = arith.constant 0 : index
    %c4_31 = arith.constant 4 : index
    %c4_32 = arith.constant 4 : index
    %c0_33 = arith.constant 0 : index
    %33 = vector.load %arg1[%c0_30, %c4_31, %c4_32, %c0_33] : memref<1x24x24x4xf32, #tpu.memory_space<vmem>>, vector<1x16x16x4xf32>
    %34 = vector.shape_cast %33 : vector<1x16x16x4xf32> to vector<16x16x4xf32>
    %35 = vector.shape_cast %34 : vector<16x16x4xf32> to vector<256x4xf32>
    %36 = arith.truncf %35 : vector<256x4xf32> to vector<256x4xbf16>
    %c0_34 = arith.constant 0 : index
    %c4_35 = arith.constant 4 : index
    %c0_36 = arith.constant 0 : index
    %c0_37 = arith.constant 0 : index
    %37 = vector.load %arg2[%c0_34, %c4_35, %c0_36, %c0_37] : memref<4x9x4x4xbf16, #tpu.memory_space<vmem>>, vector<1x1x4x4xbf16>
    %38 = vector.shape_cast %37 : vector<1x1x4x4xbf16> to vector<4x4xbf16>
    %cst_38 = arith.constant dense<0.000000e+00> : vector<256x4xf32>
    %39 = tpu.matmul %36, %38, %cst_38 {dimension_numbers = #tpu.dot_dimension_numbers<[1], [0], [0], [1], [0, 0, 1, 1], [], []>} : vector<256x4xbf16>, vector<4x4xbf16>, vector<256x4xf32> -> vector<256x4xf32>
    %40 = arith.addf %32, %39 : vector<256x4xf32>
    %c0_39 = arith.constant 0 : index
    %c4_40 = arith.constant 4 : index
    %c5_41 = arith.constant 5 : index
    %c0_42 = arith.constant 0 : index
    %41 = vector.load %arg1[%c0_39, %c4_40, %c5_41, %c0_42] : memref<1x24x24x4xf32, #tpu.memory_space<vmem>>, vector<1x16x16x4xf32>
    %42 = vector.shape_cast %41 : vector<1x16x16x4xf32> to vector<16x16x4xf32>
    %43 = vector.shape_cast %42 : vector<16x16x4xf32> to vector<256x4xf32>
    %44 = arith.truncf %43 : vector<256x4xf32> to vector<256x4xbf16>
    %c0_43 = arith.constant 0 : index
    %c5_44 = arith.constant 5 : index
    %c0_45 = arith.constant 0 : index
    %c0_46 = arith.constant 0 : index
    %45 = vector.load %arg2[%c0_43, %c5_44, %c0_45, %c0_46] : memref<4x9x4x4xbf16, #tpu.memory_space<vmem>>, vector<1x1x4x4xbf16>
    %46 = vector.shape_cast %45 : vector<1x1x4x4xbf16> to vector<4x4xbf16>
    %cst_47 = arith.constant dense<0.000000e+00> : vector<256x4xf32>
    %47 = tpu.matmul %44, %46, %cst_47 {dimension_numbers = #tpu.dot_dimension_numbers<[1], [0], [0], [1], [0, 0, 1, 1], [], []>} : vector<256x4xbf16>, vector<4x4xbf16>, vector<256x4xf32> -> vector<256x4xf32>
    %48 = arith.addf %40, %47 : vector<256x4xf32>
    %c0_48 = arith.constant 0 : index
    %c5_49 = arith.constant 5 : index
    %c3_50 = arith.constant 3 : index
    %c0_51 = arith.constant 0 : index
    %49 = vector.load %arg1[%c0_48, %c5_49, %c3_50, %c0_51] : memref<1x24x24x4xf32, #tpu.memory_space<vmem>>, vector<1x16x16x4xf32>
    %50 = vector.shape_cast %49 : vector<1x16x16x4xf32> to vector<16x16x4xf32>
    %51 = vector.shape_cast %50 : vector<16x16x4xf32> to vector<256x4xf32>
    %52 = arith.truncf %51 : vector<256x4xf32> to vector<256x4xbf16>
    %c0_52 = arith.constant 0 : index
    %c6 = arith.constant 6 : index
    %c0_53 = arith.constant 0 : index
    %c0_54 = arith.constant 0 : index
    %53 = vector.load %arg2[%c0_52, %c6, %c0_53, %c0_54] : memref<4x9x4x4xbf16, #tpu.memory_space<vmem>>, vector<1x1x4x4xbf16>
    %54 = vector.shape_cast %53 : vector<1x1x4x4xbf16> to vector<4x4xbf16>
    %cst_55 = arith.constant dense<0.000000e+00> : vector<256x4xf32>
    %55 = tpu.matmul %52, %54, %cst_55 {dimension_numbers = #tpu.dot_dimension_numbers<[1], [0], [0], [1], [0, 0, 1, 1], [], []>} : vector<256x4xbf16>, vector<4x4xbf16>, vector<256x4xf32> -> vector<256x4xf32>
    %56 = arith.addf %48, %55 : vector<256x4xf32>
    %c0_56 = arith.constant 0 : index
    %c5_57 = arith.constant 5 : index
    %c4_58 = arith.constant 4 : index
    %c0_59 = arith.constant 0 : index
    %57 = vector.load %arg1[%c0_56, %c5_57, %c4_58, %c0_59] : memref<1x24x24x4xf32, #tpu.memory_space<vmem>>, vector<1x16x16x4xf32>
    %58 = vector.shape_cast %57 : vector<1x16x16x4xf32> to vector<16x16x4xf32>
    %59 = vector.shape_cast %58 : vector<16x16x4xf32> to vector<256x4xf32>
    %60 = arith.truncf %59 : vector<256x4xf32> to vector<256x4xbf16>
    %c0_60 = arith.constant 0 : index
    %c7 = arith.constant 7 : index
    %c0_61 = arith.constant 0 : index
    %c0_62 = arith.constant 0 : index
    %61 = vector.load %arg2[%c0_60, %c7, %c0_61, %c0_62] : memref<4x9x4x4xbf16, #tpu.memory_space<vmem>>, vector<1x1x4x4xbf16>
    %62 = vector.shape_cast %61 : vector<1x1x4x4xbf16> to vector<4x4xbf16>
    %cst_63 = arith.constant dense<0.000000e+00> : vector<256x4xf32>
    %63 = tpu.matmul %60, %62, %cst_63 {dimension_numbers = #tpu.dot_dimension_numbers<[1], [0], [0], [1], [0, 0, 1, 1], [], []>} : vector<256x4xbf16>, vector<4x4xbf16>, vector<256x4xf32> -> vector<256x4xf32>
    %64 = arith.addf %56, %63 : vector<256x4xf32>
    %c0_64 = arith.constant 0 : index
    %c5_65 = arith.constant 5 : index
    %c5_66 = arith.constant 5 : index
    %c0_67 = arith.constant 0 : index
    %65 = vector.load %arg1[%c0_64, %c5_65, %c5_66, %c0_67] : memref<1x24x24x4xf32, #tpu.memory_space<vmem>>, vector<1x16x16x4xf32>
    %66 = vector.shape_cast %65 : vector<1x16x16x4xf32> to vector<16x16x4xf32>
    %67 = vector.shape_cast %66 : vector<16x16x4xf32> to vector<256x4xf32>
    %68 = arith.truncf %67 : vector<256x4xf32> to vector<256x4xbf16>
    %c0_68 = arith.constant 0 : index
    %c8 = arith.constant 8 : index
    %c0_69 = arith.constant 0 : index
    %c0_70 = arith.constant 0 : index
    %69 = vector.load %arg2[%c0_68, %c8, %c0_69, %c0_70] : memref<4x9x4x4xbf16, #tpu.memory_space<vmem>>, vector<1x1x4x4xbf16>
    %70 = vector.shape_cast %69 : vector<1x1x4x4xbf16> to vector<4x4xbf16>
    %cst_71 = arith.constant dense<0.000000e+00> : vector<256x4xf32>
    %71 = tpu.matmul %68, %70, %cst_71 {dimension_numbers = #tpu.dot_dimension_numbers<[1], [0], [0], [1], [0, 0, 1, 1], [], []>} : vector<256x4xbf16>, vector<4x4xbf16>, vector<256x4xf32> -> vector<256x4xf32>
    %72 = arith.addf %64, %71 : vector<256x4xf32>
    %c0_72 = arith.constant 0 : index
    %c0_73 = arith.constant 0 : index
    %c0_74 = arith.constant 0 : index
    %73 = vector.load %arg3[%c0_72, %c0_73, %c0_74] : memref<4x1x4xf32, #tpu.memory_space<vmem>>, vector<1x1x4xf32>
    %74 = vector.shape_cast %73 : vector<1x1x4xf32> to vector<1x4xf32>
    %75 = vector.broadcast %74 : vector<1x4xf32> to vector<256x4xf32>
    %76 = arith.addf %72, %75 : vector<256x4xf32>
    %cst_75 = arith.constant 0.000000e+00 : f32
    %77 = vector.broadcast %cst_75 : f32 to vector<256x4xf32>
    %78 = arith.maximumf %76, %77 : vector<256x4xf32>
    %cst_76 = arith.constant 0.000000e+00 : f32
    %79 = vector.broadcast %cst_76 : f32 to vector<256x4xf32>
    %c0_77 = arith.constant 0 : index
    %c2_78 = arith.constant 2 : index
    %c2_79 = arith.constant 2 : index
    %c0_80 = arith.constant 0 : index
    %80 = vector.load %arg1[%c0_77, %c2_78, %c2_79, %c0_80] : memref<1x24x24x4xf32, #tpu.memory_space<vmem>>, vector<1x16x16x4xf32>
    %81 = vector.shape_cast %80 : vector<1x16x16x4xf32> to vector<16x16x4xf32>
    %82 = vector.shape_cast %81 : vector<16x16x4xf32> to vector<256x4xf32>
    %83 = arith.truncf %82 : vector<256x4xf32> to vector<256x4xbf16>
    %c1_81 = arith.constant 1 : index
    %c0_82 = arith.constant 0 : index
    %c0_83 = arith.constant 0 : index
    %c0_84 = arith.constant 0 : index
    %84 = vector.load %arg2[%c1_81, %c0_82, %c0_83, %c0_84] : memref<4x9x4x4xbf16, #tpu.memory_space<vmem>>, vector<1x1x4x4xbf16>
    %85 = vector.shape_cast %84 : vector<1x1x4x4xbf16> to vector<4x4xbf16>
    %cst_85 = arith.constant dense<0.000000e+00> : vector<256x4xf32>
    %86 = tpu.matmul %83, %85, %cst_85 {dimension_numbers = #tpu.dot_dimension_numbers<[1], [0], [0], [1], [0, 0, 1, 1], [], []>} : vector<256x4xbf16>, vector<4x4xbf16>, vector<256x4xf32> -> vector<256x4xf32>
    %87 = arith.addf %79, %86 : vector<256x4xf32>
    %c0_86 = arith.constant 0 : index
    %c2_87 = arith.constant 2 : index
    %c4_88 = arith.constant 4 : index
    %c0_89 = arith.constant 0 : index
    %88 = vector.load %arg1[%c0_86, %c2_87, %c4_88, %c0_89] : memref<1x24x24x4xf32, #tpu.memory_space<vmem>>, vector<1x16x16x4xf32>
    %89 = vector.shape_cast %88 : vector<1x16x16x4xf32> to vector<16x16x4xf32>
    %90 = vector.shape_cast %89 : vector<16x16x4xf32> to vector<256x4xf32>
    %91 = arith.truncf %90 : vector<256x4xf32> to vector<256x4xbf16>
    %c1_90 = arith.constant 1 : index
    %c1_91 = arith.constant 1 : index
    %c0_92 = arith.constant 0 : index
    %c0_93 = arith.constant 0 : index
    %92 = vector.load %arg2[%c1_90, %c1_91, %c0_92, %c0_93] : memref<4x9x4x4xbf16, #tpu.memory_space<vmem>>, vector<1x1x4x4xbf16>
    %93 = vector.shape_cast %92 : vector<1x1x4x4xbf16> to vector<4x4xbf16>
    %cst_94 = arith.constant dense<0.000000e+00> : vector<256x4xf32>
    %94 = tpu.matmul %91, %93, %cst_94 {dimension_numbers = #tpu.dot_dimension_numbers<[1], [0], [0], [1], [0, 0, 1, 1], [], []>} : vector<256x4xbf16>, vector<4x4xbf16>, vector<256x4xf32> -> vector<256x4xf32>
    %95 = arith.addf %87, %94 : vector<256x4xf32>
    %c0_95 = arith.constant 0 : index
    %c2_96 = arith.constant 2 : index
    %c6_97 = arith.constant 6 : index
    %c0_98 = arith.constant 0 : index
    %96 = vector.load %arg1[%c0_95, %c2_96, %c6_97, %c0_98] : memref<1x24x24x4xf32, #tpu.memory_space<vmem>>, vector<1x16x16x4xf32>
    %97 = vector.shape_cast %96 : vector<1x16x16x4xf32> to vector<16x16x4xf32>
    %98 = vector.shape_cast %97 : vector<16x16x4xf32> to vector<256x4xf32>
    %99 = arith.truncf %98 : vector<256x4xf32> to vector<256x4xbf16>
    %c1_99 = arith.constant 1 : index
    %c2_100 = arith.constant 2 : index
    %c0_101 = arith.constant 0 : index
    %c0_102 = arith.constant 0 : index
    %100 = vector.load %arg2[%c1_99, %c2_100, %c0_101, %c0_102] : memref<4x9x4x4xbf16, #tpu.memory_space<vmem>>, vector<1x1x4x4xbf16>
    %101 = vector.shape_cast %100 : vector<1x1x4x4xbf16> to vector<4x4xbf16>
    %cst_103 = arith.constant dense<0.000000e+00> : vector<256x4xf32>
    %102 = tpu.matmul %99, %101, %cst_103 {dimension_numbers = #tpu.dot_dimension_numbers<[1], [0], [0], [1], [0, 0, 1, 1], [], []>} : vector<256x4xbf16>, vector<4x4xbf16>, vector<256x4xf32> -> vector<256x4xf32>
    %103 = arith.addf %95, %102 : vector<256x4xf32>
    %c0_104 = arith.constant 0 : index
    %c4_105 = arith.constant 4 : index
    %c2_106 = arith.constant 2 : index
    %c0_107 = arith.constant 0 : index
    %104 = vector.load %arg1[%c0_104, %c4_105, %c2_106, %c0_107] : memref<1x24x24x4xf32, #tpu.memory_space<vmem>>, vector<1x16x16x4xf32>
    %105 = vector.shape_cast %104 : vector<1x16x16x4xf32> to vector<16x16x4xf32>
    %106 = vector.shape_cast %105 : vector<16x16x4xf32> to vector<256x4xf32>
    %107 = arith.truncf %106 : vector<256x4xf32> to vector<256x4xbf16>
    %c1_108 = arith.constant 1 : index
    %c3_109 = arith.constant 3 : index
    %c0_110 = arith.constant 0 : index
    %c0_111 = arith.constant 0 : index
    %108 = vector.load %arg2[%c1_108, %c3_109, %c0_110, %c0_111] : memref<4x9x4x4xbf16, #tpu.memory_space<vmem>>, vector<1x1x4x4xbf16>
    %109 = vector.shape_cast %108 : vector<1x1x4x4xbf16> to vector<4x4xbf16>
    %cst_112 = arith.constant dense<0.000000e+00> : vector<256x4xf32>
    %110 = tpu.matmul %107, %109, %cst_112 {dimension_numbers = #tpu.dot_dimension_numbers<[1], [0], [0], [1], [0, 0, 1, 1], [], []>} : vector<256x4xbf16>, vector<4x4xbf16>, vector<256x4xf32> -> vector<256x4xf32>
    %111 = arith.addf %103, %110 : vector<256x4xf32>
    %c0_113 = arith.constant 0 : index
    %c4_114 = arith.constant 4 : index
    %c4_115 = arith.constant 4 : index
    %c0_116 = arith.constant 0 : index
    %112 = vector.load %arg1[%c0_113, %c4_114, %c4_115, %c0_116] : memref<1x24x24x4xf32, #tpu.memory_space<vmem>>, vector<1x16x16x4xf32>
    %113 = vector.shape_cast %112 : vector<1x16x16x4xf32> to vector<16x16x4xf32>
    %114 = vector.shape_cast %113 : vector<16x16x4xf32> to vector<256x4xf32>
    %115 = arith.truncf %114 : vector<256x4xf32> to vector<256x4xbf16>
    %c1_117 = arith.constant 1 : index
    %c4_118 = arith.constant 4 : index
    %c0_119 = arith.constant 0 : index
    %c0_120 = arith.constant 0 : index
    %116 = vector.load %arg2[%c1_117, %c4_118, %c0_119, %c0_120] : memref<4x9x4x4xbf16, #tpu.memory_space<vmem>>, vector<1x1x4x4xbf16>
    %117 = vector.shape_cast %116 : vector<1x1x4x4xbf16> to vector<4x4xbf16>
    %cst_121 = arith.constant dense<0.000000e+00> : vector<256x4xf32>
    %118 = tpu.matmul %115, %117, %cst_121 {dimension_numbers = #tpu.dot_dimension_numbers<[1], [0], [0], [1], [0, 0, 1, 1], [], []>} : vector<256x4xbf16>, vector<4x4xbf16>, vector<256x4xf32> -> vector<256x4xf32>
    %119 = arith.addf %111, %118 : vector<256x4xf32>
    %c0_122 = arith.constant 0 : index
    %c4_123 = arith.constant 4 : index
    %c6_124 = arith.constant 6 : index
    %c0_125 = arith.constant 0 : index
    %120 = vector.load %arg1[%c0_122, %c4_123, %c6_124, %c0_125] : memref<1x24x24x4xf32, #tpu.memory_space<vmem>>, vector<1x16x16x4xf32>
    %121 = vector.shape_cast %120 : vector<1x16x16x4xf32> to vector<16x16x4xf32>
    %122 = vector.shape_cast %121 : vector<16x16x4xf32> to vector<256x4xf32>
    %123 = arith.truncf %122 : vector<256x4xf32> to vector<256x4xbf16>
    %c1_126 = arith.constant 1 : index
    %c5_127 = arith.constant 5 : index
    %c0_128 = arith.constant 0 : index
    %c0_129 = arith.constant 0 : index
    %124 = vector.load %arg2[%c1_126, %c5_127, %c0_128, %c0_129] : memref<4x9x4x4xbf16, #tpu.memory_space<vmem>>, vector<1x1x4x4xbf16>
    %125 = vector.shape_cast %124 : vector<1x1x4x4xbf16> to vector<4x4xbf16>
    %cst_130 = arith.constant dense<0.000000e+00> : vector<256x4xf32>
    %126 = tpu.matmul %123, %125, %cst_130 {dimension_numbers = #tpu.dot_dimension_numbers<[1], [0], [0], [1], [0, 0, 1, 1], [], []>} : vector<256x4xbf16>, vector<4x4xbf16>, vector<256x4xf32> -> vector<256x4xf32>
    %127 = arith.addf %119, %126 : vector<256x4xf32>
    %c0_131 = arith.constant 0 : index
    %c6_132 = arith.constant 6 : index
    %c2_133 = arith.constant 2 : index
    %c0_134 = arith.constant 0 : index
    %128 = vector.load %arg1[%c0_131, %c6_132, %c2_133, %c0_134] : memref<1x24x24x4xf32, #tpu.memory_space<vmem>>, vector<1x16x16x4xf32>
    %129 = vector.shape_cast %128 : vector<1x16x16x4xf32> to vector<16x16x4xf32>
    %130 = vector.shape_cast %129 : vector<16x16x4xf32> to vector<256x4xf32>
    %131 = arith.truncf %130 : vector<256x4xf32> to vector<256x4xbf16>
    %c1_135 = arith.constant 1 : index
    %c6_136 = arith.constant 6 : index
    %c0_137 = arith.constant 0 : index
    %c0_138 = arith.constant 0 : index
    %132 = vector.load %arg2[%c1_135, %c6_136, %c0_137, %c0_138] : memref<4x9x4x4xbf16, #tpu.memory_space<vmem>>, vector<1x1x4x4xbf16>
    %133 = vector.shape_cast %132 : vector<1x1x4x4xbf16> to vector<4x4xbf16>
    %cst_139 = arith.constant dense<0.000000e+00> : vector<256x4xf32>
    %134 = tpu.matmul %131, %133, %cst_139 {dimension_numbers = #tpu.dot_dimension_numbers<[1], [0], [0], [1], [0, 0, 1, 1], [], []>} : vector<256x4xbf16>, vector<4x4xbf16>, vector<256x4xf32> -> vector<256x4xf32>
    %135 = arith.addf %127, %134 : vector<256x4xf32>
    %c0_140 = arith.constant 0 : index
    %c6_141 = arith.constant 6 : index
    %c4_142 = arith.constant 4 : index
    %c0_143 = arith.constant 0 : index
    %136 = vector.load %arg1[%c0_140, %c6_141, %c4_142, %c0_143] : memref<1x24x24x4xf32, #tpu.memory_space<vmem>>, vector<1x16x16x4xf32>
    %137 = vector.shape_cast %136 : vector<1x16x16x4xf32> to vector<16x16x4xf32>
    %138 = vector.shape_cast %137 : vector<16x16x4xf32> to vector<256x4xf32>
    %139 = arith.truncf %138 : vector<256x4xf32> to vector<256x4xbf16>
    %c1_144 = arith.constant 1 : index
    %c7_145 = arith.constant 7 : index
    %c0_146 = arith.constant 0 : index
    %c0_147 = arith.constant 0 : index
    %140 = vector.load %arg2[%c1_144, %c7_145, %c0_146, %c0_147] : memref<4x9x4x4xbf16, #tpu.memory_space<vmem>>, vector<1x1x4x4xbf16>
    %141 = vector.shape_cast %140 : vector<1x1x4x4xbf16> to vector<4x4xbf16>
    %cst_148 = arith.constant dense<0.000000e+00> : vector<256x4xf32>
    %142 = tpu.matmul %139, %141, %cst_148 {dimension_numbers = #tpu.dot_dimension_numbers<[1], [0], [0], [1], [0, 0, 1, 1], [], []>} : vector<256x4xbf16>, vector<4x4xbf16>, vector<256x4xf32> -> vector<256x4xf32>
    %143 = arith.addf %135, %142 : vector<256x4xf32>
    %c0_149 = arith.constant 0 : index
    %c6_150 = arith.constant 6 : index
    %c6_151 = arith.constant 6 : index
    %c0_152 = arith.constant 0 : index
    %144 = vector.load %arg1[%c0_149, %c6_150, %c6_151, %c0_152] : memref<1x24x24x4xf32, #tpu.memory_space<vmem>>, vector<1x16x16x4xf32>
    %145 = vector.shape_cast %144 : vector<1x16x16x4xf32> to vector<16x16x4xf32>
    %146 = vector.shape_cast %145 : vector<16x16x4xf32> to vector<256x4xf32>
    %147 = arith.truncf %146 : vector<256x4xf32> to vector<256x4xbf16>
    %c1_153 = arith.constant 1 : index
    %c8_154 = arith.constant 8 : index
    %c0_155 = arith.constant 0 : index
    %c0_156 = arith.constant 0 : index
    %148 = vector.load %arg2[%c1_153, %c8_154, %c0_155, %c0_156] : memref<4x9x4x4xbf16, #tpu.memory_space<vmem>>, vector<1x1x4x4xbf16>
    %149 = vector.shape_cast %148 : vector<1x1x4x4xbf16> to vector<4x4xbf16>
    %cst_157 = arith.constant dense<0.000000e+00> : vector<256x4xf32>
    %150 = tpu.matmul %147, %149, %cst_157 {dimension_numbers = #tpu.dot_dimension_numbers<[1], [0], [0], [1], [0, 0, 1, 1], [], []>} : vector<256x4xbf16>, vector<4x4xbf16>, vector<256x4xf32> -> vector<256x4xf32>
    %151 = arith.addf %143, %150 : vector<256x4xf32>
    %c1_158 = arith.constant 1 : index
    %c0_159 = arith.constant 0 : index
    %c0_160 = arith.constant 0 : index
    %152 = vector.load %arg3[%c1_158, %c0_159, %c0_160] : memref<4x1x4xf32, #tpu.memory_space<vmem>>, vector<1x1x4xf32>
    %153 = vector.shape_cast %152 : vector<1x1x4xf32> to vector<1x4xf32>
    %154 = vector.broadcast %153 : vector<1x4xf32> to vector<256x4xf32>
    %155 = arith.addf %151, %154 : vector<256x4xf32>
    %cst_161 = arith.constant 0.000000e+00 : f32
    %156 = vector.broadcast %cst_161 : f32 to vector<256x4xf32>
    %157 = arith.maximumf %155, %156 : vector<256x4xf32>
    %cst_162 = arith.constant 0.000000e+00 : f32
    %158 = vector.broadcast %cst_162 : f32 to vector<256x4xf32>
    %c0_163 = arith.constant 0 : index
    %c1_164 = arith.constant 1 : index
    %c1_165 = arith.constant 1 : index
    %c0_166 = arith.constant 0 : index
    %159 = vector.load %arg1[%c0_163, %c1_164, %c1_165, %c0_166] : memref<1x24x24x4xf32, #tpu.memory_space<vmem>>, vector<1x16x16x4xf32>
    %160 = vector.shape_cast %159 : vector<1x16x16x4xf32> to vector<16x16x4xf32>
    %161 = vector.shape_cast %160 : vector<16x16x4xf32> to vector<256x4xf32>
    %162 = arith.truncf %161 : vector<256x4xf32> to vector<256x4xbf16>
    %c2_167 = arith.constant 2 : index
    %c0_168 = arith.constant 0 : index
    %c0_169 = arith.constant 0 : index
    %c0_170 = arith.constant 0 : index
    %163 = vector.load %arg2[%c2_167, %c0_168, %c0_169, %c0_170] : memref<4x9x4x4xbf16, #tpu.memory_space<vmem>>, vector<1x1x4x4xbf16>
    %164 = vector.shape_cast %163 : vector<1x1x4x4xbf16> to vector<4x4xbf16>
    %cst_171 = arith.constant dense<0.000000e+00> : vector<256x4xf32>
    %165 = tpu.matmul %162, %164, %cst_171 {dimension_numbers = #tpu.dot_dimension_numbers<[1], [0], [0], [1], [0, 0, 1, 1], [], []>} : vector<256x4xbf16>, vector<4x4xbf16>, vector<256x4xf32> -> vector<256x4xf32>
    %166 = arith.addf %158, %165 : vector<256x4xf32>
    %c0_172 = arith.constant 0 : index
    %c1_173 = arith.constant 1 : index
    %c4_174 = arith.constant 4 : index
    %c0_175 = arith.constant 0 : index
    %167 = vector.load %arg1[%c0_172, %c1_173, %c4_174, %c0_175] : memref<1x24x24x4xf32, #tpu.memory_space<vmem>>, vector<1x16x16x4xf32>
    %168 = vector.shape_cast %167 : vector<1x16x16x4xf32> to vector<16x16x4xf32>
    %169 = vector.shape_cast %168 : vector<16x16x4xf32> to vector<256x4xf32>
    %170 = arith.truncf %169 : vector<256x4xf32> to vector<256x4xbf16>
    %c2_176 = arith.constant 2 : index
    %c1_177 = arith.constant 1 : index
    %c0_178 = arith.constant 0 : index
    %c0_179 = arith.constant 0 : index
    %171 = vector.load %arg2[%c2_176, %c1_177, %c0_178, %c0_179] : memref<4x9x4x4xbf16, #tpu.memory_space<vmem>>, vector<1x1x4x4xbf16>
    %172 = vector.shape_cast %171 : vector<1x1x4x4xbf16> to vector<4x4xbf16>
    %cst_180 = arith.constant dense<0.000000e+00> : vector<256x4xf32>
    %173 = tpu.matmul %170, %172, %cst_180 {dimension_numbers = #tpu.dot_dimension_numbers<[1], [0], [0], [1], [0, 0, 1, 1], [], []>} : vector<256x4xbf16>, vector<4x4xbf16>, vector<256x4xf32> -> vector<256x4xf32>
    %174 = arith.addf %166, %173 : vector<256x4xf32>
    %c0_181 = arith.constant 0 : index
    %c1_182 = arith.constant 1 : index
    %c7_183 = arith.constant 7 : index
    %c0_184 = arith.constant 0 : index
    %175 = vector.load %arg1[%c0_181, %c1_182, %c7_183, %c0_184] : memref<1x24x24x4xf32, #tpu.memory_space<vmem>>, vector<1x16x16x4xf32>
    %176 = vector.shape_cast %175 : vector<1x16x16x4xf32> to vector<16x16x4xf32>
    %177 = vector.shape_cast %176 : vector<16x16x4xf32> to vector<256x4xf32>
    %178 = arith.truncf %177 : vector<256x4xf32> to vector<256x4xbf16>
    %c2_185 = arith.constant 2 : index
    %c2_186 = arith.constant 2 : index
    %c0_187 = arith.constant 0 : index
    %c0_188 = arith.constant 0 : index
    %179 = vector.load %arg2[%c2_185, %c2_186, %c0_187, %c0_188] : memref<4x9x4x4xbf16, #tpu.memory_space<vmem>>, vector<1x1x4x4xbf16>
    %180 = vector.shape_cast %179 : vector<1x1x4x4xbf16> to vector<4x4xbf16>
    %cst_189 = arith.constant dense<0.000000e+00> : vector<256x4xf32>
    %181 = tpu.matmul %178, %180, %cst_189 {dimension_numbers = #tpu.dot_dimension_numbers<[1], [0], [0], [1], [0, 0, 1, 1], [], []>} : vector<256x4xbf16>, vector<4x4xbf16>, vector<256x4xf32> -> vector<256x4xf32>
    %182 = arith.addf %174, %181 : vector<256x4xf32>
    %c0_190 = arith.constant 0 : index
    %c4_191 = arith.constant 4 : index
    %c1_192 = arith.constant 1 : index
    %c0_193 = arith.constant 0 : index
    %183 = vector.load %arg1[%c0_190, %c4_191, %c1_192, %c0_193] : memref<1x24x24x4xf32, #tpu.memory_space<vmem>>, vector<1x16x16x4xf32>
    %184 = vector.shape_cast %183 : vector<1x16x16x4xf32> to vector<16x16x4xf32>
    %185 = vector.shape_cast %184 : vector<16x16x4xf32> to vector<256x4xf32>
    %186 = arith.truncf %185 : vector<256x4xf32> to vector<256x4xbf16>
    %c2_194 = arith.constant 2 : index
    %c3_195 = arith.constant 3 : index
    %c0_196 = arith.constant 0 : index
    %c0_197 = arith.constant 0 : index
    %187 = vector.load %arg2[%c2_194, %c3_195, %c0_196, %c0_197] : memref<4x9x4x4xbf16, #tpu.memory_space<vmem>>, vector<1x1x4x4xbf16>
    %188 = vector.shape_cast %187 : vector<1x1x4x4xbf16> to vector<4x4xbf16>
    %cst_198 = arith.constant dense<0.000000e+00> : vector<256x4xf32>
    %189 = tpu.matmul %186, %188, %cst_198 {dimension_numbers = #tpu.dot_dimension_numbers<[1], [0], [0], [1], [0, 0, 1, 1], [], []>} : vector<256x4xbf16>, vector<4x4xbf16>, vector<256x4xf32> -> vector<256x4xf32>
    %190 = arith.addf %182, %189 : vector<256x4xf32>
    %c0_199 = arith.constant 0 : index
    %c4_200 = arith.constant 4 : index
    %c4_201 = arith.constant 4 : index
    %c0_202 = arith.constant 0 : index
    %191 = vector.load %arg1[%c0_199, %c4_200, %c4_201, %c0_202] : memref<1x24x24x4xf32, #tpu.memory_space<vmem>>, vector<1x16x16x4xf32>
    %192 = vector.shape_cast %191 : vector<1x16x16x4xf32> to vector<16x16x4xf32>
    %193 = vector.shape_cast %192 : vector<16x16x4xf32> to vector<256x4xf32>
    %194 = arith.truncf %193 : vector<256x4xf32> to vector<256x4xbf16>
    %c2_203 = arith.constant 2 : index
    %c4_204 = arith.constant 4 : index
    %c0_205 = arith.constant 0 : index
    %c0_206 = arith.constant 0 : index
    %195 = vector.load %arg2[%c2_203, %c4_204, %c0_205, %c0_206] : memref<4x9x4x4xbf16, #tpu.memory_space<vmem>>, vector<1x1x4x4xbf16>
    %196 = vector.shape_cast %195 : vector<1x1x4x4xbf16> to vector<4x4xbf16>
    %cst_207 = arith.constant dense<0.000000e+00> : vector<256x4xf32>
    %197 = tpu.matmul %194, %196, %cst_207 {dimension_numbers = #tpu.dot_dimension_numbers<[1], [0], [0], [1], [0, 0, 1, 1], [], []>} : vector<256x4xbf16>, vector<4x4xbf16>, vector<256x4xf32> -> vector<256x4xf32>
    %198 = arith.addf %190, %197 : vector<256x4xf32>
    %c0_208 = arith.constant 0 : index
    %c4_209 = arith.constant 4 : index
    %c7_210 = arith.constant 7 : index
    %c0_211 = arith.constant 0 : index
    %199 = vector.load %arg1[%c0_208, %c4_209, %c7_210, %c0_211] : memref<1x24x24x4xf32, #tpu.memory_space<vmem>>, vector<1x16x16x4xf32>
    %200 = vector.shape_cast %199 : vector<1x16x16x4xf32> to vector<16x16x4xf32>
    %201 = vector.shape_cast %200 : vector<16x16x4xf32> to vector<256x4xf32>
    %202 = arith.truncf %201 : vector<256x4xf32> to vector<256x4xbf16>
    %c2_212 = arith.constant 2 : index
    %c5_213 = arith.constant 5 : index
    %c0_214 = arith.constant 0 : index
    %c0_215 = arith.constant 0 : index
    %203 = vector.load %arg2[%c2_212, %c5_213, %c0_214, %c0_215] : memref<4x9x4x4xbf16, #tpu.memory_space<vmem>>, vector<1x1x4x4xbf16>
    %204 = vector.shape_cast %203 : vector<1x1x4x4xbf16> to vector<4x4xbf16>
    %cst_216 = arith.constant dense<0.000000e+00> : vector<256x4xf32>
    %205 = tpu.matmul %202, %204, %cst_216 {dimension_numbers = #tpu.dot_dimension_numbers<[1], [0], [0], [1], [0, 0, 1, 1], [], []>} : vector<256x4xbf16>, vector<4x4xbf16>, vector<256x4xf32> -> vector<256x4xf32>
    %206 = arith.addf %198, %205 : vector<256x4xf32>
    %c0_217 = arith.constant 0 : index
    %c7_218 = arith.constant 7 : index
    %c1_219 = arith.constant 1 : index
    %c0_220 = arith.constant 0 : index
    %207 = vector.load %arg1[%c0_217, %c7_218, %c1_219, %c0_220] : memref<1x24x24x4xf32, #tpu.memory_space<vmem>>, vector<1x16x16x4xf32>
    %208 = vector.shape_cast %207 : vector<1x16x16x4xf32> to vector<16x16x4xf32>
    %209 = vector.shape_cast %208 : vector<16x16x4xf32> to vector<256x4xf32>
    %210 = arith.truncf %209 : vector<256x4xf32> to vector<256x4xbf16>
    %c2_221 = arith.constant 2 : index
    %c6_222 = arith.constant 6 : index
    %c0_223 = arith.constant 0 : index
    %c0_224 = arith.constant 0 : index
    %211 = vector.load %arg2[%c2_221, %c6_222, %c0_223, %c0_224] : memref<4x9x4x4xbf16, #tpu.memory_space<vmem>>, vector<1x1x4x4xbf16>
    %212 = vector.shape_cast %211 : vector<1x1x4x4xbf16> to vector<4x4xbf16>
    %cst_225 = arith.constant dense<0.000000e+00> : vector<256x4xf32>
    %213 = tpu.matmul %210, %212, %cst_225 {dimension_numbers = #tpu.dot_dimension_numbers<[1], [0], [0], [1], [0, 0, 1, 1], [], []>} : vector<256x4xbf16>, vector<4x4xbf16>, vector<256x4xf32> -> vector<256x4xf32>
    %214 = arith.addf %206, %213 : vector<256x4xf32>
    %c0_226 = arith.constant 0 : index
    %c7_227 = arith.constant 7 : index
    %c4_228 = arith.constant 4 : index
    %c0_229 = arith.constant 0 : index
    %215 = vector.load %arg1[%c0_226, %c7_227, %c4_228, %c0_229] : memref<1x24x24x4xf32, #tpu.memory_space<vmem>>, vector<1x16x16x4xf32>
    %216 = vector.shape_cast %215 : vector<1x16x16x4xf32> to vector<16x16x4xf32>
    %217 = vector.shape_cast %216 : vector<16x16x4xf32> to vector<256x4xf32>
    %218 = arith.truncf %217 : vector<256x4xf32> to vector<256x4xbf16>
    %c2_230 = arith.constant 2 : index
    %c7_231 = arith.constant 7 : index
    %c0_232 = arith.constant 0 : index
    %c0_233 = arith.constant 0 : index
    %219 = vector.load %arg2[%c2_230, %c7_231, %c0_232, %c0_233] : memref<4x9x4x4xbf16, #tpu.memory_space<vmem>>, vector<1x1x4x4xbf16>
    %220 = vector.shape_cast %219 : vector<1x1x4x4xbf16> to vector<4x4xbf16>
    %cst_234 = arith.constant dense<0.000000e+00> : vector<256x4xf32>
    %221 = tpu.matmul %218, %220, %cst_234 {dimension_numbers = #tpu.dot_dimension_numbers<[1], [0], [0], [1], [0, 0, 1, 1], [], []>} : vector<256x4xbf16>, vector<4x4xbf16>, vector<256x4xf32> -> vector<256x4xf32>
    %222 = arith.addf %214, %221 : vector<256x4xf32>
    %c0_235 = arith.constant 0 : index
    %c7_236 = arith.constant 7 : index
    %c7_237 = arith.constant 7 : index
    %c0_238 = arith.constant 0 : index
    %223 = vector.load %arg1[%c0_235, %c7_236, %c7_237, %c0_238] : memref<1x24x24x4xf32, #tpu.memory_space<vmem>>, vector<1x16x16x4xf32>
    %224 = vector.shape_cast %223 : vector<1x16x16x4xf32> to vector<16x16x4xf32>
    %225 = vector.shape_cast %224 : vector<16x16x4xf32> to vector<256x4xf32>
    %226 = arith.truncf %225 : vector<256x4xf32> to vector<256x4xbf16>
    %c2_239 = arith.constant 2 : index
    %c8_240 = arith.constant 8 : index
    %c0_241 = arith.constant 0 : index
    %c0_242 = arith.constant 0 : index
    %227 = vector.load %arg2[%c2_239, %c8_240, %c0_241, %c0_242] : memref<4x9x4x4xbf16, #tpu.memory_space<vmem>>, vector<1x1x4x4xbf16>
    %228 = vector.shape_cast %227 : vector<1x1x4x4xbf16> to vector<4x4xbf16>
    %cst_243 = arith.constant dense<0.000000e+00> : vector<256x4xf32>
    %229 = tpu.matmul %226, %228, %cst_243 {dimension_numbers = #tpu.dot_dimension_numbers<[1], [0], [0], [1], [0, 0, 1, 1], [], []>} : vector<256x4xbf16>, vector<4x4xbf16>, vector<256x4xf32> -> vector<256x4xf32>
    %230 = arith.addf %222, %229 : vector<256x4xf32>
    %c2_244 = arith.constant 2 : index
    %c0_245 = arith.constant 0 : index
    %c0_246 = arith.constant 0 : index
    %231 = vector.load %arg3[%c2_244, %c0_245, %c0_246] : memref<4x1x4xf32, #tpu.memory_space<vmem>>, vector<1x1x4xf32>
    %232 = vector.shape_cast %231 : vector<1x1x4xf32> to vector<1x4xf32>
    %233 = vector.broadcast %232 : vector<1x4xf32> to vector<256x4xf32>
    %234 = arith.addf %230, %233 : vector<256x4xf32>
    %cst_247 = arith.constant 0.000000e+00 : f32
    %235 = vector.broadcast %cst_247 : f32 to vector<256x4xf32>
    %236 = arith.maximumf %234, %235 : vector<256x4xf32>
    %cst_248 = arith.constant 0.000000e+00 : f32
    %237 = vector.broadcast %cst_248 : f32 to vector<256x4xf32>
    %c0_249 = arith.constant 0 : index
    %c0_250 = arith.constant 0 : index
    %c0_251 = arith.constant 0 : index
    %c0_252 = arith.constant 0 : index
    %238 = vector.load %arg1[%c0_249, %c0_250, %c0_251, %c0_252] : memref<1x24x24x4xf32, #tpu.memory_space<vmem>>, vector<1x16x16x4xf32>
    %239 = vector.shape_cast %238 : vector<1x16x16x4xf32> to vector<16x16x4xf32>
    %240 = vector.shape_cast %239 : vector<16x16x4xf32> to vector<256x4xf32>
    %241 = arith.truncf %240 : vector<256x4xf32> to vector<256x4xbf16>
    %c3_253 = arith.constant 3 : index
    %c0_254 = arith.constant 0 : index
    %c0_255 = arith.constant 0 : index
    %c0_256 = arith.constant 0 : index
    %242 = vector.load %arg2[%c3_253, %c0_254, %c0_255, %c0_256] : memref<4x9x4x4xbf16, #tpu.memory_space<vmem>>, vector<1x1x4x4xbf16>
    %243 = vector.shape_cast %242 : vector<1x1x4x4xbf16> to vector<4x4xbf16>
    %cst_257 = arith.constant dense<0.000000e+00> : vector<256x4xf32>
    %244 = tpu.matmul %241, %243, %cst_257 {dimension_numbers = #tpu.dot_dimension_numbers<[1], [0], [0], [1], [0, 0, 1, 1], [], []>} : vector<256x4xbf16>, vector<4x4xbf16>, vector<256x4xf32> -> vector<256x4xf32>
    %245 = arith.addf %237, %244 : vector<256x4xf32>
    %c0_258 = arith.constant 0 : index
    %c0_259 = arith.constant 0 : index
    %c4_260 = arith.constant 4 : index
    %c0_261 = arith.constant 0 : index
    %246 = vector.load %arg1[%c0_258, %c0_259, %c4_260, %c0_261] : memref<1x24x24x4xf32, #tpu.memory_space<vmem>>, vector<1x16x16x4xf32>
    %247 = vector.shape_cast %246 : vector<1x16x16x4xf32> to vector<16x16x4xf32>
    %248 = vector.shape_cast %247 : vector<16x16x4xf32> to vector<256x4xf32>
    %249 = arith.truncf %248 : vector<256x4xf32> to vector<256x4xbf16>
    %c3_262 = arith.constant 3 : index
    %c1_263 = arith.constant 1 : index
    %c0_264 = arith.constant 0 : index
    %c0_265 = arith.constant 0 : index
    %250 = vector.load %arg2[%c3_262, %c1_263, %c0_264, %c0_265] : memref<4x9x4x4xbf16, #tpu.memory_space<vmem>>, vector<1x1x4x4xbf16>
    %251 = vector.shape_cast %250 : vector<1x1x4x4xbf16> to vector<4x4xbf16>
    %cst_266 = arith.constant dense<0.000000e+00> : vector<256x4xf32>
    %252 = tpu.matmul %249, %251, %cst_266 {dimension_numbers = #tpu.dot_dimension_numbers<[1], [0], [0], [1], [0, 0, 1, 1], [], []>} : vector<256x4xbf16>, vector<4x4xbf16>, vector<256x4xf32> -> vector<256x4xf32>
    %253 = arith.addf %245, %252 : vector<256x4xf32>
    %c0_267 = arith.constant 0 : index
    %c0_268 = arith.constant 0 : index
    %c8_269 = arith.constant 8 : index
    %c0_270 = arith.constant 0 : index
    %254 = vector.load %arg1[%c0_267, %c0_268, %c8_269, %c0_270] : memref<1x24x24x4xf32, #tpu.memory_space<vmem>>, vector<1x16x16x4xf32>
    %255 = vector.shape_cast %254 : vector<1x16x16x4xf32> to vector<16x16x4xf32>
    %256 = vector.shape_cast %255 : vector<16x16x4xf32> to vector<256x4xf32>
    %257 = arith.truncf %256 : vector<256x4xf32> to vector<256x4xbf16>
    %c3_271 = arith.constant 3 : index
    %c2_272 = arith.constant 2 : index
    %c0_273 = arith.constant 0 : index
    %c0_274 = arith.constant 0 : index
    %258 = vector.load %arg2[%c3_271, %c2_272, %c0_273, %c0_274] : memref<4x9x4x4xbf16, #tpu.memory_space<vmem>>, vector<1x1x4x4xbf16>
    %259 = vector.shape_cast %258 : vector<1x1x4x4xbf16> to vector<4x4xbf16>
    %cst_275 = arith.constant dense<0.000000e+00> : vector<256x4xf32>
    %260 = tpu.matmul %257, %259, %cst_275 {dimension_numbers = #tpu.dot_dimension_numbers<[1], [0], [0], [1], [0, 0, 1, 1], [], []>} : vector<256x4xbf16>, vector<4x4xbf16>, vector<256x4xf32> -> vector<256x4xf32>
    %261 = arith.addf %253, %260 : vector<256x4xf32>
    %c0_276 = arith.constant 0 : index
    %c4_277 = arith.constant 4 : index
    %c0_278 = arith.constant 0 : index
    %c0_279 = arith.constant 0 : index
    %262 = vector.load %arg1[%c0_276, %c4_277, %c0_278, %c0_279] : memref<1x24x24x4xf32, #tpu.memory_space<vmem>>, vector<1x16x16x4xf32>
    %263 = vector.shape_cast %262 : vector<1x16x16x4xf32> to vector<16x16x4xf32>
    %264 = vector.shape_cast %263 : vector<16x16x4xf32> to vector<256x4xf32>
    %265 = arith.truncf %264 : vector<256x4xf32> to vector<256x4xbf16>
    %c3_280 = arith.constant 3 : index
    %c3_281 = arith.constant 3 : index
    %c0_282 = arith.constant 0 : index
    %c0_283 = arith.constant 0 : index
    %266 = vector.load %arg2[%c3_280, %c3_281, %c0_282, %c0_283] : memref<4x9x4x4xbf16, #tpu.memory_space<vmem>>, vector<1x1x4x4xbf16>
    %267 = vector.shape_cast %266 : vector<1x1x4x4xbf16> to vector<4x4xbf16>
    %cst_284 = arith.constant dense<0.000000e+00> : vector<256x4xf32>
    %268 = tpu.matmul %265, %267, %cst_284 {dimension_numbers = #tpu.dot_dimension_numbers<[1], [0], [0], [1], [0, 0, 1, 1], [], []>} : vector<256x4xbf16>, vector<4x4xbf16>, vector<256x4xf32> -> vector<256x4xf32>
    %269 = arith.addf %261, %268 : vector<256x4xf32>
    %c0_285 = arith.constant 0 : index
    %c4_286 = arith.constant 4 : index
    %c4_287 = arith.constant 4 : index
    %c0_288 = arith.constant 0 : index
    %270 = vector.load %arg1[%c0_285, %c4_286, %c4_287, %c0_288] : memref<1x24x24x4xf32, #tpu.memory_space<vmem>>, vector<1x16x16x4xf32>
    %271 = vector.shape_cast %270 : vector<1x16x16x4xf32> to vector<16x16x4xf32>
    %272 = vector.shape_cast %271 : vector<16x16x4xf32> to vector<256x4xf32>
    %273 = arith.truncf %272 : vector<256x4xf32> to vector<256x4xbf16>
    %c3_289 = arith.constant 3 : index
    %c4_290 = arith.constant 4 : index
    %c0_291 = arith.constant 0 : index
    %c0_292 = arith.constant 0 : index
    %274 = vector.load %arg2[%c3_289, %c4_290, %c0_291, %c0_292] : memref<4x9x4x4xbf16, #tpu.memory_space<vmem>>, vector<1x1x4x4xbf16>
    %275 = vector.shape_cast %274 : vector<1x1x4x4xbf16> to vector<4x4xbf16>
    %cst_293 = arith.constant dense<0.000000e+00> : vector<256x4xf32>
    %276 = tpu.matmul %273, %275, %cst_293 {dimension_numbers = #tpu.dot_dimension_numbers<[1], [0], [0], [1], [0, 0, 1, 1], [], []>} : vector<256x4xbf16>, vector<4x4xbf16>, vector<256x4xf32> -> vector<256x4xf32>
    %277 = arith.addf %269, %276 : vector<256x4xf32>
    %c0_294 = arith.constant 0 : index
    %c4_295 = arith.constant 4 : index
    %c8_296 = arith.constant 8 : index
    %c0_297 = arith.constant 0 : index
    %278 = vector.load %arg1[%c0_294, %c4_295, %c8_296, %c0_297] : memref<1x24x24x4xf32, #tpu.memory_space<vmem>>, vector<1x16x16x4xf32>
    %279 = vector.shape_cast %278 : vector<1x16x16x4xf32> to vector<16x16x4xf32>
    %280 = vector.shape_cast %279 : vector<16x16x4xf32> to vector<256x4xf32>
    %281 = arith.truncf %280 : vector<256x4xf32> to vector<256x4xbf16>
    %c3_298 = arith.constant 3 : index
    %c5_299 = arith.constant 5 : index
    %c0_300 = arith.constant 0 : index
    %c0_301 = arith.constant 0 : index
    %282 = vector.load %arg2[%c3_298, %c5_299, %c0_300, %c0_301] : memref<4x9x4x4xbf16, #tpu.memory_space<vmem>>, vector<1x1x4x4xbf16>
    %283 = vector.shape_cast %282 : vector<1x1x4x4xbf16> to vector<4x4xbf16>
    %cst_302 = arith.constant dense<0.000000e+00> : vector<256x4xf32>
    %284 = tpu.matmul %281, %283, %cst_302 {dimension_numbers = #tpu.dot_dimension_numbers<[1], [0], [0], [1], [0, 0, 1, 1], [], []>} : vector<256x4xbf16>, vector<4x4xbf16>, vector<256x4xf32> -> vector<256x4xf32>
    %285 = arith.addf %277, %284 : vector<256x4xf32>
    %c0_303 = arith.constant 0 : index
    %c8_304 = arith.constant 8 : index
    %c0_305 = arith.constant 0 : index
    %c0_306 = arith.constant 0 : index
    %286 = vector.load %arg1[%c0_303, %c8_304, %c0_305, %c0_306] : memref<1x24x24x4xf32, #tpu.memory_space<vmem>>, vector<1x16x16x4xf32>
    %287 = vector.shape_cast %286 : vector<1x16x16x4xf32> to vector<16x16x4xf32>
    %288 = vector.shape_cast %287 : vector<16x16x4xf32> to vector<256x4xf32>
    %289 = arith.truncf %288 : vector<256x4xf32> to vector<256x4xbf16>
    %c3_307 = arith.constant 3 : index
    %c6_308 = arith.constant 6 : index
    %c0_309 = arith.constant 0 : index
    %c0_310 = arith.constant 0 : index
    %290 = vector.load %arg2[%c3_307, %c6_308, %c0_309, %c0_310] : memref<4x9x4x4xbf16, #tpu.memory_space<vmem>>, vector<1x1x4x4xbf16>
    %291 = vector.shape_cast %290 : vector<1x1x4x4xbf16> to vector<4x4xbf16>
    %cst_311 = arith.constant dense<0.000000e+00> : vector<256x4xf32>
    %292 = tpu.matmul %289, %291, %cst_311 {dimension_numbers = #tpu.dot_dimension_numbers<[1], [0], [0], [1], [0, 0, 1, 1], [], []>} : vector<256x4xbf16>, vector<4x4xbf16>, vector<256x4xf32> -> vector<256x4xf32>
    %293 = arith.addf %285, %292 : vector<256x4xf32>
    %c0_312 = arith.constant 0 : index
    %c8_313 = arith.constant 8 : index
    %c4_314 = arith.constant 4 : index
    %c0_315 = arith.constant 0 : index
    %294 = vector.load %arg1[%c0_312, %c8_313, %c4_314, %c0_315] : memref<1x24x24x4xf32, #tpu.memory_space<vmem>>, vector<1x16x16x4xf32>
    %295 = vector.shape_cast %294 : vector<1x16x16x4xf32> to vector<16x16x4xf32>
    %296 = vector.shape_cast %295 : vector<16x16x4xf32> to vector<256x4xf32>
    %297 = arith.truncf %296 : vector<256x4xf32> to vector<256x4xbf16>
    %c3_316 = arith.constant 3 : index
    %c7_317 = arith.constant 7 : index
    %c0_318 = arith.constant 0 : index
    %c0_319 = arith.constant 0 : index
    %298 = vector.load %arg2[%c3_316, %c7_317, %c0_318, %c0_319] : memref<4x9x4x4xbf16, #tpu.memory_space<vmem>>, vector<1x1x4x4xbf16>
    %299 = vector.shape_cast %298 : vector<1x1x4x4xbf16> to vector<4x4xbf16>
    %cst_320 = arith.constant dense<0.000000e+00> : vector<256x4xf32>
    %300 = tpu.matmul %297, %299, %cst_320 {dimension_numbers = #tpu.dot_dimension_numbers<[1], [0], [0], [1], [0, 0, 1, 1], [], []>} : vector<256x4xbf16>, vector<4x4xbf16>, vector<256x4xf32> -> vector<256x4xf32>
    %301 = arith.addf %293, %300 : vector<256x4xf32>
    %c0_321 = arith.constant 0 : index
    %c8_322 = arith.constant 8 : index
    %c8_323 = arith.constant 8 : index
    %c0_324 = arith.constant 0 : index
    %302 = vector.load %arg1[%c0_321, %c8_322, %c8_323, %c0_324] : memref<1x24x24x4xf32, #tpu.memory_space<vmem>>, vector<1x16x16x4xf32>
    %303 = vector.shape_cast %302 : vector<1x16x16x4xf32> to vector<16x16x4xf32>
    %304 = vector.shape_cast %303 : vector<16x16x4xf32> to vector<256x4xf32>
    %305 = arith.truncf %304 : vector<256x4xf32> to vector<256x4xbf16>
    %c3_325 = arith.constant 3 : index
    %c8_326 = arith.constant 8 : index
    %c0_327 = arith.constant 0 : index
    %c0_328 = arith.constant 0 : index
    %306 = vector.load %arg2[%c3_325, %c8_326, %c0_327, %c0_328] : memref<4x9x4x4xbf16, #tpu.memory_space<vmem>>, vector<1x1x4x4xbf16>
    %307 = vector.shape_cast %306 : vector<1x1x4x4xbf16> to vector<4x4xbf16>
    %cst_329 = arith.constant dense<0.000000e+00> : vector<256x4xf32>
    %308 = tpu.matmul %305, %307, %cst_329 {dimension_numbers = #tpu.dot_dimension_numbers<[1], [0], [0], [1], [0, 0, 1, 1], [], []>} : vector<256x4xbf16>, vector<4x4xbf16>, vector<256x4xf32> -> vector<256x4xf32>
    %309 = arith.addf %301, %308 : vector<256x4xf32>
    %c3_330 = arith.constant 3 : index
    %c0_331 = arith.constant 0 : index
    %c0_332 = arith.constant 0 : index
    %310 = vector.load %arg3[%c3_330, %c0_331, %c0_332] : memref<4x1x4xf32, #tpu.memory_space<vmem>>, vector<1x1x4xf32>
    %311 = vector.shape_cast %310 : vector<1x1x4xf32> to vector<1x4xf32>
    %312 = vector.broadcast %311 : vector<1x4xf32> to vector<256x4xf32>
    %313 = arith.addf %309, %312 : vector<256x4xf32>
    %cst_333 = arith.constant 0.000000e+00 : f32
    %314 = vector.broadcast %cst_333 : f32 to vector<256x4xf32>
    %315 = arith.maximumf %313, %314 : vector<256x4xf32>
    %316 = tpu.concatenate %78, %157, %236, %315 in 1 : vector<256x4xf32>, vector<256x4xf32>, vector<256x4xf32>, vector<256x4xf32> -> vector<256x16xf32>
    %317 = vector.shape_cast %316 : vector<256x16xf32> to vector<16x16x16xf32>
    %c0_334 = arith.constant 0 : index
    %c0_335 = arith.constant 0 : index
    %c0_336 = arith.constant 0 : index
    %c0_337 = arith.constant 0 : index
    %318 = vector.load %arg4[%c0_334, %c0_335, %c0_336, %c0_337] : memref<1x16x16x16xf32, #tpu.memory_space<vmem>>, vector<1x16x16x16xf32>
    %319 = vector.shape_cast %318 : vector<1x16x16x16xf32> to vector<16x16x16xf32>
    %320 = vector.shape_cast %317 : vector<16x16x16xf32> to vector<1x16x16x16xf32>
    tpu.vector_store %arg4[%c0_334, %c0_335, %c0_336, %c0_337], %320 {strides = array<i32>} : memref<1x16x16x16xf32, #tpu.memory_space<vmem>>, vector<1x16x16x16xf32>,
    return
  }
  func.func @transform_0(%arg0: i32) -> (i32, i32, i32, i32) {
    %c0_i32 = arith.constant 0 : i32
    %c0_i32_0 = arith.constant 0 : i32
    %c0_i32_1 = arith.constant 0 : i32
    %c0_i32_2 = arith.constant 0 : i32
    return %arg0, %c0_i32, %c0_i32_0, %c0_i32_1 : i32, i32, i32, i32
  }
  func.func @transform_1(%arg0: i32) -> (i32, i32, i32, i32) {
    %c0_i32 = arith.constant 0 : i32
    %c0_i32_0 = arith.constant 0 : i32
    %c0_i32_1 = arith.constant 0 : i32
    %c0_i32_2 = arith.constant 0 : i32
    %c0_i32_3 = arith.constant 0 : i32
    return %c0_i32, %c0_i32_0, %c0_i32_1, %c0_i32_2 : i32, i32, i32, i32
  }
  func.func @transform_2(%arg0: i32) -> (i32, i32, i32) {
    %c0_i32 = arith.constant 0 : i32
    %c0_i32_0 = arith.constant 0 : i32
    %c0_i32_1 = arith.constant 0 : i32
    %c0_i32_2 = arith.constant 0 : i32
    return %c0_i32, %c0_i32_0, %c0_i32_1 : i32, i32, i32
  }
  func.func @transform_3(%arg0: i32) -> (i32, i32, i32, i32) {
    %c0_i32 = arith.constant 0 : i32
    %c0_i32_0 = arith.constant 0 : i32
    %c0_i32_1 = arith.constant 0 : i32
    %c0_i32_2 = arith.constant 0 : i32
    return %arg0, %c0_i32, %c0_i32_0, %c0_i32_1 : i32, i32, i32, i32
  }
}

module attributes {stable_mosaic.version = 11 : i64} {
  func.func @_multi_dilated_conv_kernel(%arg0: i32, %arg1: memref<1x18x18x16xf32, #tpu.memory_space<vmem>>, %arg2: memref<1x9x16x4xbf16, #tpu.memory_space<vmem>>, %arg3: memref<1x1x4xf32, #tpu.memory_space<vmem>>, %arg4: memref<1x16x16x4xf32, #tpu.memory_space<vmem>>) attributes {dimension_semantics = [#tpu.dimension_semantics<parallel>], iteration_bounds = array<i64: 2>, scalar_prefetch = 0 : i64, scratch_operands = 0 : i64, tpu.core_type = #tpu.core_type<tc>, window_params = [{transform_indices = @transform_0, window_bounds = array<i64: 1, 18, 18, 16>}, {pipeline_mode = #tpu.pipeline_mode<synchronous>, transform_indices = @transform_1, window_bounds = array<i64: 1, 9, 16, 4>}, {pipeline_mode = #tpu.pipeline_mode<synchronous>, transform_indices = @transform_2, window_bounds = array<i64: 1, 1, 4>}, {transform_indices = @transform_3, window_bounds = array<i64: 1, 16, 16, 4>}]} {
    %cst = arith.constant 0.000000e+00 : f32
    %0 = vector.broadcast %cst : f32 to vector<256x4xf32>
    %c0 = arith.constant 0 : index
    %c0_0 = arith.constant 0 : index
    %c0_1 = arith.constant 0 : index
    %c0_2 = arith.constant 0 : index
    %1 = vector.load %arg1[%c0, %c0_0, %c0_1, %c0_2] : memref<1x18x18x16xf32, #tpu.memory_space<vmem>>, vector<1x16x16x16xf32>
    %2 = vector.shape_cast %1 : vector<1x16x16x16xf32> to vector<16x16x16xf32>
    %3 = vector.shape_cast %2 : vector<16x16x16xf32> to vector<256x16xf32>
    %4 = arith.truncf %3 : vector<256x16xf32> to vector<256x16xbf16>
    %c0_3 = arith.constant 0 : index
    %c0_4 = arith.constant 0 : index
    %c0_5 = arith.constant 0 : index
    %c0_6 = arith.constant 0 : index
    %5 = vector.load %arg2[%c0_3, %c0_4, %c0_5, %c0_6] : memref<1x9x16x4xbf16, #tpu.memory_space<vmem>>, vector<1x1x16x4xbf16>
    %6 = vector.shape_cast %5 : vector<1x1x16x4xbf16> to vector<16x4xbf16>
    %cst_7 = arith.constant dense<0.000000e+00> : vector<256x4xf32>
    %7 = tpu.matmul %4, %6, %cst_7 {dimension_numbers = #tpu.dot_dimension_numbers<[1], [0], [0], [1], [0, 0, 1, 1], [], []>} : vector<256x16xbf16>, vector<16x4xbf16>, vector<256x4xf32> -> vector<256x4xf32>
    %8 = arith.addf %0, %7 : vector<256x4xf32>
    %c0_8 = arith.constant 0 : index
    %c0_9 = arith.constant 0 : index
    %c1 = arith.constant 1 : index
    %c0_10 = arith.constant 0 : index
    %9 = vector.load %arg1[%c0_8, %c0_9, %c1, %c0_10] : memref<1x18x18x16xf32, #tpu.memory_space<vmem>>, vector<1x16x16x16xf32>
    %10 = vector.shape_cast %9 : vector<1x16x16x16xf32> to vector<16x16x16xf32>
    %11 = vector.shape_cast %10 : vector<16x16x16xf32> to vector<256x16xf32>
    %12 = arith.truncf %11 : vector<256x16xf32> to vector<256x16xbf16>
    %c0_11 = arith.constant 0 : index
    %c1_12 = arith.constant 1 : index
    %c0_13 = arith.constant 0 : index
    %c0_14 = arith.constant 0 : index
    %13 = vector.load %arg2[%c0_11, %c1_12, %c0_13, %c0_14] : memref<1x9x16x4xbf16, #tpu.memory_space<vmem>>, vector<1x1x16x4xbf16>
    %14 = vector.shape_cast %13 : vector<1x1x16x4xbf16> to vector<16x4xbf16>
    %cst_15 = arith.constant dense<0.000000e+00> : vector<256x4xf32>
    %15 = tpu.matmul %12, %14, %cst_15 {dimension_numbers = #tpu.dot_dimension_numbers<[1], [0], [0], [1], [0, 0, 1, 1], [], []>} : vector<256x16xbf16>, vector<16x4xbf16>, vector<256x4xf32> -> vector<256x4xf32>
    %16 = arith.addf %8, %15 : vector<256x4xf32>
    %c0_16 = arith.constant 0 : index
    %c0_17 = arith.constant 0 : index
    %c2 = arith.constant 2 : index
    %c0_18 = arith.constant 0 : index
    %17 = vector.load %arg1[%c0_16, %c0_17, %c2, %c0_18] : memref<1x18x18x16xf32, #tpu.memory_space<vmem>>, vector<1x16x16x16xf32>
    %18 = vector.shape_cast %17 : vector<1x16x16x16xf32> to vector<16x16x16xf32>
    %19 = vector.shape_cast %18 : vector<16x16x16xf32> to vector<256x16xf32>
    %20 = arith.truncf %19 : vector<256x16xf32> to vector<256x16xbf16>
    %c0_19 = arith.constant 0 : index
    %c2_20 = arith.constant 2 : index
    %c0_21 = arith.constant 0 : index
    %c0_22 = arith.constant 0 : index
    %21 = vector.load %arg2[%c0_19, %c2_20, %c0_21, %c0_22] : memref<1x9x16x4xbf16, #tpu.memory_space<vmem>>, vector<1x1x16x4xbf16>
    %22 = vector.shape_cast %21 : vector<1x1x16x4xbf16> to vector<16x4xbf16>
    %cst_23 = arith.constant dense<0.000000e+00> : vector<256x4xf32>
    %23 = tpu.matmul %20, %22, %cst_23 {dimension_numbers = #tpu.dot_dimension_numbers<[1], [0], [0], [1], [0, 0, 1, 1], [], []>} : vector<256x16xbf16>, vector<16x4xbf16>, vector<256x4xf32> -> vector<256x4xf32>
    %24 = arith.addf %16, %23 : vector<256x4xf32>
    %c0_24 = arith.constant 0 : index
    %c1_25 = arith.constant 1 : index
    %c0_26 = arith.constant 0 : index
    %c0_27 = arith.constant 0 : index
    %25 = vector.load %arg1[%c0_24, %c1_25, %c0_26, %c0_27] : memref<1x18x18x16xf32, #tpu.memory_space<vmem>>, vector<1x16x16x16xf32>
    %26 = vector.shape_cast %25 : vector<1x16x16x16xf32> to vector<16x16x16xf32>
    %27 = vector.shape_cast %26 : vector<16x16x16xf32> to vector<256x16xf32>
    %28 = arith.truncf %27 : vector<256x16xf32> to vector<256x16xbf16>
    %c0_28 = arith.constant 0 : index
    %c3 = arith.constant 3 : index
    %c0_29 = arith.constant 0 : index
    %c0_30 = arith.constant 0 : index
    %29 = vector.load %arg2[%c0_28, %c3, %c0_29, %c0_30] : memref<1x9x16x4xbf16, #tpu.memory_space<vmem>>, vector<1x1x16x4xbf16>
    %30 = vector.shape_cast %29 : vector<1x1x16x4xbf16> to vector<16x4xbf16>
    %cst_31 = arith.constant dense<0.000000e+00> : vector<256x4xf32>
    %31 = tpu.matmul %28, %30, %cst_31 {dimension_numbers = #tpu.dot_dimension_numbers<[1], [0], [0], [1], [0, 0, 1, 1], [], []>} : vector<256x16xbf16>, vector<16x4xbf16>, vector<256x4xf32> -> vector<256x4xf32>
    %32 = arith.addf %24, %31 : vector<256x4xf32>
    %c0_32 = arith.constant 0 : index
    %c1_33 = arith.constant 1 : index
    %c1_34 = arith.constant 1 : index
    %c0_35 = arith.constant 0 : index
    %33 = vector.load %arg1[%c0_32, %c1_33, %c1_34, %c0_35] : memref<1x18x18x16xf32, #tpu.memory_space<vmem>>, vector<1x16x16x16xf32>
    %34 = vector.shape_cast %33 : vector<1x16x16x16xf32> to vector<16x16x16xf32>
    %35 = vector.shape_cast %34 : vector<16x16x16xf32> to vector<256x16xf32>
    %36 = arith.truncf %35 : vector<256x16xf32> to vector<256x16xbf16>
    %c0_36 = arith.constant 0 : index
    %c4 = arith.constant 4 : index
    %c0_37 = arith.constant 0 : index
    %c0_38 = arith.constant 0 : index
    %37 = vector.load %arg2[%c0_36, %c4, %c0_37, %c0_38] : memref<1x9x16x4xbf16, #tpu.memory_space<vmem>>, vector<1x1x16x4xbf16>
    %38 = vector.shape_cast %37 : vector<1x1x16x4xbf16> to vector<16x4xbf16>
    %cst_39 = arith.constant dense<0.000000e+00> : vector<256x4xf32>
    %39 = tpu.matmul %36, %38, %cst_39 {dimension_numbers = #tpu.dot_dimension_numbers<[1], [0], [0], [1], [0, 0, 1, 1], [], []>} : vector<256x16xbf16>, vector<16x4xbf16>, vector<256x4xf32> -> vector<256x4xf32>
    %40 = arith.addf %32, %39 : vector<256x4xf32>
    %c0_40 = arith.constant 0 : index
    %c1_41 = arith.constant 1 : index
    %c2_42 = arith.constant 2 : index
    %c0_43 = arith.constant 0 : index
    %41 = vector.load %arg1[%c0_40, %c1_41, %c2_42, %c0_43] : memref<1x18x18x16xf32, #tpu.memory_space<vmem>>, vector<1x16x16x16xf32>
    %42 = vector.shape_cast %41 : vector<1x16x16x16xf32> to vector<16x16x16xf32>
    %43 = vector.shape_cast %42 : vector<16x16x16xf32> to vector<256x16xf32>
    %44 = arith.truncf %43 : vector<256x16xf32> to vector<256x16xbf16>
    %c0_44 = arith.constant 0 : index
    %c5 = arith.constant 5 : index
    %c0_45 = arith.constant 0 : index
    %c0_46 = arith.constant 0 : index
    %45 = vector.load %arg2[%c0_44, %c5, %c0_45, %c0_46] : memref<1x9x16x4xbf16, #tpu.memory_space<vmem>>, vector<1x1x16x4xbf16>
    %46 = vector.shape_cast %45 : vector<1x1x16x4xbf16> to vector<16x4xbf16>
    %cst_47 = arith.constant dense<0.000000e+00> : vector<256x4xf32>
    %47 = tpu.matmul %44, %46, %cst_47 {dimension_numbers = #tpu.dot_dimension_numbers<[1], [0], [0], [1], [0, 0, 1, 1], [], []>} : vector<256x16xbf16>, vector<16x4xbf16>, vector<256x4xf32> -> vector<256x4xf32>
    %48 = arith.addf %40, %47 : vector<256x4xf32>
    %c0_48 = arith.constant 0 : index
    %c2_49 = arith.constant 2 : index
    %c0_50 = arith.constant 0 : index
    %c0_51 = arith.constant 0 : index
    %49 = vector.load %arg1[%c0_48, %c2_49, %c0_50, %c0_51] : memref<1x18x18x16xf32, #tpu.memory_space<vmem>>, vector<1x16x16x16xf32>
    %50 = vector.shape_cast %49 : vector<1x16x16x16xf32> to vector<16x16x16xf32>
    %51 = vector.shape_cast %50 : vector<16x16x16xf32> to vector<256x16xf32>
    %52 = arith.truncf %51 : vector<256x16xf32> to vector<256x16xbf16>
    %c0_52 = arith.constant 0 : index
    %c6 = arith.constant 6 : index
    %c0_53 = arith.constant 0 : index
    %c0_54 = arith.constant 0 : index
    %53 = vector.load %arg2[%c0_52, %c6, %c0_53, %c0_54] : memref<1x9x16x4xbf16, #tpu.memory_space<vmem>>, vector<1x1x16x4xbf16>
    %54 = vector.shape_cast %53 : vector<1x1x16x4xbf16> to vector<16x4xbf16>
    %cst_55 = arith.constant dense<0.000000e+00> : vector<256x4xf32>
    %55 = tpu.matmul %52, %54, %cst_55 {dimension_numbers = #tpu.dot_dimension_numbers<[1], [0], [0], [1], [0, 0, 1, 1], [], []>} : vector<256x16xbf16>, vector<16x4xbf16>, vector<256x4xf32> -> vector<256x4xf32>
    %56 = arith.addf %48, %55 : vector<256x4xf32>
    %c0_56 = arith.constant 0 : index
    %c2_57 = arith.constant 2 : index
    %c1_58 = arith.constant 1 : index
    %c0_59 = arith.constant 0 : index
    %57 = vector.load %arg1[%c0_56, %c2_57, %c1_58, %c0_59] : memref<1x18x18x16xf32, #tpu.memory_space<vmem>>, vector<1x16x16x16xf32>
    %58 = vector.shape_cast %57 : vector<1x16x16x16xf32> to vector<16x16x16xf32>
    %59 = vector.shape_cast %58 : vector<16x16x16xf32> to vector<256x16xf32>
    %60 = arith.truncf %59 : vector<256x16xf32> to vector<256x16xbf16>
    %c0_60 = arith.constant 0 : index
    %c7 = arith.constant 7 : index
    %c0_61 = arith.constant 0 : index
    %c0_62 = arith.constant 0 : index
    %61 = vector.load %arg2[%c0_60, %c7, %c0_61, %c0_62] : memref<1x9x16x4xbf16, #tpu.memory_space<vmem>>, vector<1x1x16x4xbf16>
    %62 = vector.shape_cast %61 : vector<1x1x16x4xbf16> to vector<16x4xbf16>
    %cst_63 = arith.constant dense<0.000000e+00> : vector<256x4xf32>
    %63 = tpu.matmul %60, %62, %cst_63 {dimension_numbers = #tpu.dot_dimension_numbers<[1], [0], [0], [1], [0, 0, 1, 1], [], []>} : vector<256x16xbf16>, vector<16x4xbf16>, vector<256x4xf32> -> vector<256x4xf32>
    %64 = arith.addf %56, %63 : vector<256x4xf32>
    %c0_64 = arith.constant 0 : index
    %c2_65 = arith.constant 2 : index
    %c2_66 = arith.constant 2 : index
    %c0_67 = arith.constant 0 : index
    %65 = vector.load %arg1[%c0_64, %c2_65, %c2_66, %c0_67] : memref<1x18x18x16xf32, #tpu.memory_space<vmem>>, vector<1x16x16x16xf32>
    %66 = vector.shape_cast %65 : vector<1x16x16x16xf32> to vector<16x16x16xf32>
    %67 = vector.shape_cast %66 : vector<16x16x16xf32> to vector<256x16xf32>
    %68 = arith.truncf %67 : vector<256x16xf32> to vector<256x16xbf16>
    %c0_68 = arith.constant 0 : index
    %c8 = arith.constant 8 : index
    %c0_69 = arith.constant 0 : index
    %c0_70 = arith.constant 0 : index
    %69 = vector.load %arg2[%c0_68, %c8, %c0_69, %c0_70] : memref<1x9x16x4xbf16, #tpu.memory_space<vmem>>, vector<1x1x16x4xbf16>
    %70 = vector.shape_cast %69 : vector<1x1x16x4xbf16> to vector<16x4xbf16>
    %cst_71 = arith.constant dense<0.000000e+00> : vector<256x4xf32>
    %71 = tpu.matmul %68, %70, %cst_71 {dimension_numbers = #tpu.dot_dimension_numbers<[1], [0], [0], [1], [0, 0, 1, 1], [], []>} : vector<256x16xbf16>, vector<16x4xbf16>, vector<256x4xf32> -> vector<256x4xf32>
    %72 = arith.addf %64, %71 : vector<256x4xf32>
    %c0_72 = arith.constant 0 : index
    %c0_73 = arith.constant 0 : index
    %c0_74 = arith.constant 0 : index
    %73 = vector.load %arg3[%c0_72, %c0_73, %c0_74] : memref<1x1x4xf32, #tpu.memory_space<vmem>>, vector<1x1x4xf32>
    %74 = vector.shape_cast %73 : vector<1x1x4xf32> to vector<1x4xf32>
    %75 = vector.broadcast %74 : vector<1x4xf32> to vector<256x4xf32>
    %76 = arith.addf %72, %75 : vector<256x4xf32>
    %cst_75 = arith.constant 0.000000e+00 : f32
    %77 = vector.broadcast %cst_75 : f32 to vector<256x4xf32>
    %78 = arith.maximumf %76, %77 : vector<256x4xf32>
    %79 = vector.shape_cast %78 : vector<256x4xf32> to vector<16x16x4xf32>
    %c0_76 = arith.constant 0 : index
    %c0_77 = arith.constant 0 : index
    %c0_78 = arith.constant 0 : index
    %c0_79 = arith.constant 0 : index
    %80 = vector.load %arg4[%c0_76, %c0_77, %c0_78, %c0_79] : memref<1x16x16x4xf32, #tpu.memory_space<vmem>>, vector<1x16x16x4xf32>
    %81 = vector.shape_cast %80 : vector<1x16x16x4xf32> to vector<16x16x4xf32>
    %82 = vector.shape_cast %79 : vector<16x16x4xf32> to vector<1x16x16x4xf32>
    tpu.vector_store %arg4[%c0_76, %c0_77, %c0_78, %c0_79], %82 {strides = array<i32>} : memref<1x16x16x4xf32, #tpu.memory_space<vmem>>, vector<1x16x16x4xf32>,
    return
  }
  func.func @transform_0(%arg0: i32) -> (i32, i32, i32, i32) {
    %c0_i32 = arith.constant 0 : i32
    %c0_i32_0 = arith.constant 0 : i32
    %c0_i32_1 = arith.constant 0 : i32
    %c0_i32_2 = arith.constant 0 : i32
    return %arg0, %c0_i32, %c0_i32_0, %c0_i32_1 : i32, i32, i32, i32
  }
  func.func @transform_1(%arg0: i32) -> (i32, i32, i32, i32) {
    %c0_i32 = arith.constant 0 : i32
    %c0_i32_0 = arith.constant 0 : i32
    %c0_i32_1 = arith.constant 0 : i32
    %c0_i32_2 = arith.constant 0 : i32
    %c0_i32_3 = arith.constant 0 : i32
    return %c0_i32, %c0_i32_0, %c0_i32_1, %c0_i32_2 : i32, i32, i32, i32
  }
  func.func @transform_2(%arg0: i32) -> (i32, i32, i32) {
    %c0_i32 = arith.constant 0 : i32
    %c0_i32_0 = arith.constant 0 : i32
    %c0_i32_1 = arith.constant 0 : i32
    %c0_i32_2 = arith.constant 0 : i32
    return %c0_i32, %c0_i32_0, %c0_i32_1 : i32, i32, i32
  }
  func.func @transform_3(%arg0: i32) -> (i32, i32, i32, i32) {
    %c0_i32 = arith.constant 0 : i32
    %c0_i32_0 = arith.constant 0 : i32
    %c0_i32_1 = arith.constant 0 : i32
    %c0_i32_2 = arith.constant 0 : i32
    return %arg0, %c0_i32, %c0_i32_0, %c0_i32_1 : i32, i32, i32, i32
  }
}

module attributes {stable_mosaic.version = 11 : i64} {
  func.func @_matmul_bias_act_kernel(%arg0: i32, %arg1: memref<64x4xbf16, #tpu.memory_space<vmem>>, %arg2: memref<4x8xbf16, #tpu.memory_space<vmem>>, %arg3: memref<1x8xf32, #tpu.memory_space<vmem>>, %arg4: memref<64x8xf32, #tpu.memory_space<vmem>>) attributes {dimension_semantics = [#tpu.dimension_semantics<parallel>], iteration_bounds = array<i64: 1>, scalar_prefetch = 0 : i64, scratch_operands = 0 : i64, tpu.core_type = #tpu.core_type<tc>, window_params = [{transform_indices = @transform_0, window_bounds = array<i64: 64, 4>}, {pipeline_mode = #tpu.pipeline_mode<synchronous>, transform_indices = @transform_1, window_bounds = array<i64: 4, 8>}, {pipeline_mode = #tpu.pipeline_mode<synchronous>, transform_indices = @transform_2, window_bounds = array<i64: 1, 8>}, {transform_indices = @transform_3, window_bounds = array<i64: 64, 8>}]} {
    %c0 = arith.constant 0 : index
    %c0_0 = arith.constant 0 : index
    %0 = vector.load %arg1[%c0, %c0_0] : memref<64x4xbf16, #tpu.memory_space<vmem>>, vector<64x4xbf16>
    %c0_1 = arith.constant 0 : index
    %c0_2 = arith.constant 0 : index
    %1 = vector.load %arg2[%c0_1, %c0_2] : memref<4x8xbf16, #tpu.memory_space<vmem>>, vector<4x8xbf16>
    %cst = arith.constant dense<0.000000e+00> : vector<64x8xf32>
    %2 = tpu.matmul %0, %1, %cst {dimension_numbers = #tpu.dot_dimension_numbers<[1], [0], [0], [1], [0, 0, 1, 1], [], []>} : vector<64x4xbf16>, vector<4x8xbf16>, vector<64x8xf32> -> vector<64x8xf32>
    %c0_3 = arith.constant 0 : index
    %c0_4 = arith.constant 0 : index
    %3 = vector.load %arg3[%c0_3, %c0_4] : memref<1x8xf32, #tpu.memory_space<vmem>>, vector<1x8xf32>
    %4 = vector.broadcast %3 : vector<1x8xf32> to vector<64x8xf32>
    %5 = arith.addf %2, %4 : vector<64x8xf32>
    %cst_5 = arith.constant 3.000000e+00 : f32
    %6 = vector.broadcast %cst_5 : f32 to vector<64x8xf32>
    %7 = arith.addf %5, %6 : vector<64x8xf32>
    %cst_6 = arith.constant 0.000000e+00 : f32
    %cst_7 = arith.constant 6.000000e+00 : f32
    %8 = vector.broadcast %cst_6 : f32 to vector<64x8xf32>
    %9 = arith.maximumf %8, %7 : vector<64x8xf32>
    %10 = vector.broadcast %cst_7 : f32 to vector<64x8xf32>
    %11 = arith.minimumf %10, %9 : vector<64x8xf32>
    %cst_8 = arith.constant 0.166666672 : f32
    %12 = vector.broadcast %cst_8 : f32 to vector<64x8xf32>
    %13 = arith.mulf %11, %12 : vector<64x8xf32>
    %14 = arith.mulf %5, %13 : vector<64x8xf32>
    %c0_9 = arith.constant 0 : index
    %c0_10 = arith.constant 0 : index
    %15 = vector.load %arg4[%c0_9, %c0_10] : memref<64x8xf32, #tpu.memory_space<vmem>>, vector<64x8xf32>
    tpu.vector_store %arg4[%c0_9, %c0_10], %14 {strides = array<i32>} : memref<64x8xf32, #tpu.memory_space<vmem>>, vector<64x8xf32>,
    return
  }
  func.func @transform_0(%arg0: i32) -> (i32, i32) {
    %c0_i32 = arith.constant 0 : i32
    %c0_i32_0 = arith.constant 0 : i32
    return %arg0, %c0_i32 : i32, i32
  }
  func.func @transform_1(%arg0: i32) -> (i32, i32) {
    %c0_i32 = arith.constant 0 : i32
    %c0_i32_0 = arith.constant 0 : i32
    %c0_i32_1 = arith.constant 0 : i32
    return %c0_i32, %c0_i32_0 : i32, i32
  }
  func.func @transform_2(%arg0: i32) -> (i32, i32) {
    %c0_i32 = arith.constant 0 : i32
    %c0_i32_0 = arith.constant 0 : i32
    %c0_i32_1 = arith.constant 0 : i32
    return %c0_i32, %c0_i32_0 : i32, i32
  }
  func.func @transform_3(%arg0: i32) -> (i32, i32) {
    %c0_i32 = arith.constant 0 : i32
    %c0_i32_0 = arith.constant 0 : i32
    return %arg0, %c0_i32 : i32, i32
  }
}

module attributes {stable_mosaic.version = 11 : i64} {
  func.func @_matmul_bias_act_kernel(%arg0: i32, %arg1: memref<32x8xbf16, #tpu.memory_space<vmem>>, %arg2: memref<8x4xbf16, #tpu.memory_space<vmem>>, %arg3: memref<1x4xf32, #tpu.memory_space<vmem>>, %arg4: memref<32x4xf32, #tpu.memory_space<vmem>>) attributes {dimension_semantics = [#tpu.dimension_semantics<parallel>], iteration_bounds = array<i64: 1>, scalar_prefetch = 0 : i64, scratch_operands = 0 : i64, tpu.core_type = #tpu.core_type<tc>, window_params = [{transform_indices = @transform_0, window_bounds = array<i64: 32, 8>}, {pipeline_mode = #tpu.pipeline_mode<synchronous>, transform_indices = @transform_1, window_bounds = array<i64: 8, 4>}, {pipeline_mode = #tpu.pipeline_mode<synchronous>, transform_indices = @transform_2, window_bounds = array<i64: 1, 4>}, {transform_indices = @transform_3, window_bounds = array<i64: 32, 4>}]} {
    %c0 = arith.constant 0 : index
    %c0_0 = arith.constant 0 : index
    %0 = vector.load %arg1[%c0, %c0_0] : memref<32x8xbf16, #tpu.memory_space<vmem>>, vector<32x8xbf16>
    %c0_1 = arith.constant 0 : index
    %c0_2 = arith.constant 0 : index
    %1 = vector.load %arg2[%c0_1, %c0_2] : memref<8x4xbf16, #tpu.memory_space<vmem>>, vector<8x4xbf16>
    %cst = arith.constant dense<0.000000e+00> : vector<32x4xf32>
    %2 = tpu.matmul %0, %1, %cst {dimension_numbers = #tpu.dot_dimension_numbers<[1], [0], [0], [1], [0, 0, 1, 1], [], []>} : vector<32x8xbf16>, vector<8x4xbf16>, vector<32x4xf32> -> vector<32x4xf32>
    %c0_3 = arith.constant 0 : index
    %c0_4 = arith.constant 0 : index
    %3 = vector.load %arg3[%c0_3, %c0_4] : memref<1x4xf32, #tpu.memory_space<vmem>>, vector<1x4xf32>
    %4 = vector.broadcast %3 : vector<1x4xf32> to vector<32x4xf32>
    %5 = arith.addf %2, %4 : vector<32x4xf32>
    %6 = arith.negf %5 : vector<32x4xf32>
    %7 = math.exp %6 : vector<32x4xf32>
    %cst_5 = arith.constant 1.000000e+00 : f32
    %8 = vector.broadcast %cst_5 : f32 to vector<32x4xf32>
    %9 = arith.addf %8, %7 : vector<32x4xf32>
    %10 = arith.divf %8, %9 : vector<32x4xf32>
    %c0_6 = arith.constant 0 : index
    %c0_7 = arith.constant 0 : index
    %11 = vector.load %arg4[%c0_6, %c0_7] : memref<32x4xf32, #tpu.memory_space<vmem>>, vector<32x4xf32>
    tpu.vector_store %arg4[%c0_6, %c0_7], %10 {strides = array<i32>} : memref<32x4xf32, #tpu.memory_space<vmem>>, vector<32x4xf32>,
    return
  }
  func.func @transform_0(%arg0: i32) -> (i32, i32) {
    %c0_i32 = arith.constant 0 : i32
    %c0_i32_0 = arith.constant 0 : i32
    return %arg0, %c0_i32 : i32, i32
  }
  func.func @transform_1(%arg0: i32) -> (i32, i32) {
    %c0_i32 = arith.constant 0 : i32
    %c0_i32_0 = arith.constant 0 : i32
    %c0_i32_1 = arith.constant 0 : i32
    return %c0_i32, %c0_i32_0 : i32, i32
  }
  func.func @transform_2(%arg0: i32) -> (i32, i32) {
    %c0_i32 = arith.constant 0 : i32
    %c0_i32_0 = arith.constant 0 : i32
    %c0_i32_1 = arith.constant 0 : i32
    return %c0_i32, %c0_i32_0 : i32, i32
  }
  func.func @transform_3(%arg0: i32) -> (i32, i32) {
    %c0_i32 = arith.constant 0 : i32
    %c0_i32_0 = arith.constant 0 : i32
    return %arg0, %c0_i32 : i32, i32
  }
}

module attributes {stable_mosaic.version = 11 : i64} {
  func.func @_fuse_kernel(%arg0: i32, %arg1: memref<1x16x16x4xf32, #tpu.memory_space<vmem>>, %arg2: memref<1x16x1x4xf32, #tpu.memory_space<vmem>>, %arg3: memref<1x1x16x4xf32, #tpu.memory_space<vmem>>, %arg4: memref<1x16x16x1xf32, #tpu.memory_space<vmem>>, %arg5: memref<1x16x16x4xf32, #tpu.memory_space<vmem>>, %arg6: memref<1x16x16x4xf32, #tpu.memory_space<vmem>>) attributes {dimension_semantics = [#tpu.dimension_semantics<parallel>], iteration_bounds = array<i64: 2>, scalar_prefetch = 0 : i64, scratch_operands = 0 : i64, tpu.core_type = #tpu.core_type<tc>, window_params = [{transform_indices = @transform_0, window_bounds = array<i64: 1, 16, 16, 4>}, {transform_indices = @transform_1, window_bounds = array<i64: 1, 16, 1, 4>}, {transform_indices = @transform_2, window_bounds = array<i64: 1, 1, 16, 4>}, {transform_indices = @transform_3, window_bounds = array<i64: 1, 16, 16, 1>}, {transform_indices = @transform_4, window_bounds = array<i64: 1, 16, 16, 4>}, {transform_indices = @transform_5, window_bounds = array<i64: 1, 16, 16, 4>}]} {
    %c0 = arith.constant 0 : index
    %c0_0 = arith.constant 0 : index
    %c0_1 = arith.constant 0 : index
    %c0_2 = arith.constant 0 : index
    %0 = vector.load %arg1[%c0, %c0_0, %c0_1, %c0_2] : memref<1x16x16x4xf32, #tpu.memory_space<vmem>>, vector<1x16x16x4xf32>
    %1 = vector.shape_cast %0 : vector<1x16x16x4xf32> to vector<16x16x4xf32>
    %c0_3 = arith.constant 0 : index
    %c0_4 = arith.constant 0 : index
    %c0_5 = arith.constant 0 : index
    %c0_6 = arith.constant 0 : index
    %2 = vector.load %arg2[%c0_3, %c0_4, %c0_5, %c0_6] : memref<1x16x1x4xf32, #tpu.memory_space<vmem>>, vector<1x16x1x4xf32>
    %3 = vector.shape_cast %2 : vector<1x16x1x4xf32> to vector<16x1x4xf32>
    %4 = vector.broadcast %3 : vector<16x1x4xf32> to vector<16x16x4xf32>
    %5 = arith.mulf %1, %4 : vector<16x16x4xf32>
    %c0_7 = arith.constant 0 : index
    %c0_8 = arith.constant 0 : index
    %c0_9 = arith.constant 0 : index
    %c0_10 = arith.constant 0 : index
    %6 = vector.load %arg3[%c0_7, %c0_8, %c0_9, %c0_10] : memref<1x1x16x4xf32, #tpu.memory_space<vmem>>, vector<1x1x16x4xf32>
    %7 = vector.shape_cast %6 : vector<1x1x16x4xf32> to vector<1x16x4xf32>
    %8 = vector.broadcast %7 : vector<1x16x4xf32> to vector<16x16x4xf32>
    %9 = arith.mulf %5, %8 : vector<16x16x4xf32>
    %c0_11 = arith.constant 0 : index
    %c0_12 = arith.constant 0 : index
    %c0_13 = arith.constant 0 : index
    %c0_14 = arith.constant 0 : index
    %10 = vector.load %arg4[%c0_11, %c0_12, %c0_13, %c0_14] : memref<1x16x16x1xf32, #tpu.memory_space<vmem>>, vector<1x16x16x1xf32>
    %11 = vector.shape_cast %10 : vector<1x16x16x1xf32> to vector<16x16x1xf32>
    %12 = vector.broadcast %11 : vector<16x16x1xf32> to vector<16x16x4xf32>
    %13 = arith.mulf %1, %12 : vector<16x16x4xf32>
    %14 = arith.addf %9, %13 : vector<16x16x4xf32>
    %c0_15 = arith.constant 0 : index
    %c0_16 = arith.constant 0 : index
    %c0_17 = arith.constant 0 : index
    %c0_18 = arith.constant 0 : index
    %15 = vector.load %arg5[%c0_15, %c0_16, %c0_17, %c0_18] : memref<1x16x16x4xf32, #tpu.memory_space<vmem>>, vector<1x16x16x4xf32>
    %16 = vector.shape_cast %15 : vector<1x16x16x4xf32> to vector<16x16x4xf32>
    %17 = arith.addf %14, %16 : vector<16x16x4xf32>
    %c0_19 = arith.constant 0 : index
    %c0_20 = arith.constant 0 : index
    %c0_21 = arith.constant 0 : index
    %c0_22 = arith.constant 0 : index
    %18 = vector.load %arg6[%c0_19, %c0_20, %c0_21, %c0_22] : memref<1x16x16x4xf32, #tpu.memory_space<vmem>>, vector<1x16x16x4xf32>
    %19 = vector.shape_cast %18 : vector<1x16x16x4xf32> to vector<16x16x4xf32>
    %20 = vector.shape_cast %17 : vector<16x16x4xf32> to vector<1x16x16x4xf32>
    tpu.vector_store %arg6[%c0_19, %c0_20, %c0_21, %c0_22], %20 {strides = array<i32>} : memref<1x16x16x4xf32, #tpu.memory_space<vmem>>, vector<1x16x16x4xf32>,
    return
  }
  func.func @transform_0(%arg0: i32) -> (i32, i32, i32, i32) {
    %c0_i32 = arith.constant 0 : i32
    %c0_i32_0 = arith.constant 0 : i32
    %c0_i32_1 = arith.constant 0 : i32
    %c0_i32_2 = arith.constant 0 : i32
    return %arg0, %c0_i32, %c0_i32_0, %c0_i32_1 : i32, i32, i32, i32
  }
  func.func @transform_1(%arg0: i32) -> (i32, i32, i32, i32) {
    %c0_i32 = arith.constant 0 : i32
    %c0_i32_0 = arith.constant 0 : i32
    %c0_i32_1 = arith.constant 0 : i32
    %c0_i32_2 = arith.constant 0 : i32
    return %arg0, %c0_i32, %c0_i32_0, %c0_i32_1 : i32, i32, i32, i32
  }
  func.func @transform_2(%arg0: i32) -> (i32, i32, i32, i32) {
    %c0_i32 = arith.constant 0 : i32
    %c0_i32_0 = arith.constant 0 : i32
    %c0_i32_1 = arith.constant 0 : i32
    %c0_i32_2 = arith.constant 0 : i32
    return %arg0, %c0_i32, %c0_i32_0, %c0_i32_1 : i32, i32, i32, i32
  }
  func.func @transform_3(%arg0: i32) -> (i32, i32, i32, i32) {
    %c0_i32 = arith.constant 0 : i32
    %c0_i32_0 = arith.constant 0 : i32
    %c0_i32_1 = arith.constant 0 : i32
    %c0_i32_2 = arith.constant 0 : i32
    return %arg0, %c0_i32, %c0_i32_0, %c0_i32_1 : i32, i32, i32, i32
  }
  func.func @transform_4(%arg0: i32) -> (i32, i32, i32, i32) {
    %c0_i32 = arith.constant 0 : i32
    %c0_i32_0 = arith.constant 0 : i32
    %c0_i32_1 = arith.constant 0 : i32
    %c0_i32_2 = arith.constant 0 : i32
    return %arg0, %c0_i32, %c0_i32_0, %c0_i32_1 : i32, i32, i32, i32
  }
  func.func @transform_5(%arg0: i32) -> (i32, i32, i32, i32) {
    %c0_i32 = arith.constant 0 : i32
    %c0_i32_0 = arith.constant 0 : i32
    %c0_i32_1 = arith.constant 0 : i32
    %c0_i32_2 = arith.constant 0 : i32
    return %arg0, %c0_i32, %c0_i32_0, %c0_i32_1 : i32, i32, i32, i32
  }
}

module attributes {stable_mosaic.version = 11 : i64} {
  func.func @_sa_conv7x7_kernel(%arg0: i32, %arg1: memref<1x22x22xf32, #tpu.memory_space<vmem>>, %arg2: memref<7x7xf32, #tpu.memory_space<smem>>, %arg3: memref<1x16x16xf32, #tpu.memory_space<vmem>>) attributes {dimension_semantics = [#tpu.dimension_semantics<parallel>], iteration_bounds = array<i64: 2>, scalar_prefetch = 0 : i64, scratch_operands = 0 : i64, tpu.core_type = #tpu.core_type<tc>, window_params = [{transform_indices = @transform_0, window_bounds = array<i64: 1, 22, 22>}, {transform_indices = @transform_1, window_bounds = array<i64: 7, 7>}, {transform_indices = @transform_2, window_bounds = array<i64: 1, 16, 16>}]} {
    %cst = arith.constant 0.000000e+00 : f32
    %0 = vector.broadcast %cst : f32 to vector<16x16xf32>
    %c0 = arith.constant 0 : index
    %c0_0 = arith.constant 0 : index
    %1 = memref.load %arg2[%c0, %c0_0] : memref<7x7xf32, #tpu.memory_space<smem>>
    %c0_1 = arith.constant 0 : index
    %c0_2 = arith.constant 0 : index
    %c0_3 = arith.constant 0 : index
    %2 = vector.load %arg1[%c0_1, %c0_2, %c0_3] : memref<1x22x22xf32, #tpu.memory_space<vmem>>, vector<1x16x16xf32>
    %3 = vector.shape_cast %2 : vector<1x16x16xf32> to vector<16x16xf32>
    %4 = vector.broadcast %1 : f32 to vector<16x16xf32>
    %5 = arith.mulf %4, %3 : vector<16x16xf32>
    %6 = arith.addf %0, %5 : vector<16x16xf32>
    %c0_4 = arith.constant 0 : index
    %c1 = arith.constant 1 : index
    %7 = memref.load %arg2[%c0_4, %c1] : memref<7x7xf32, #tpu.memory_space<smem>>
    %c0_5 = arith.constant 0 : index
    %c0_6 = arith.constant 0 : index
    %c1_7 = arith.constant 1 : index
    %8 = vector.load %arg1[%c0_5, %c0_6, %c1_7] : memref<1x22x22xf32, #tpu.memory_space<vmem>>, vector<1x16x16xf32>
    %9 = vector.shape_cast %8 : vector<1x16x16xf32> to vector<16x16xf32>
    %10 = vector.broadcast %7 : f32 to vector<16x16xf32>
    %11 = arith.mulf %10, %9 : vector<16x16xf32>
    %12 = arith.addf %6, %11 : vector<16x16xf32>
    %c0_8 = arith.constant 0 : index
    %c2 = arith.constant 2 : index
    %13 = memref.load %arg2[%c0_8, %c2] : memref<7x7xf32, #tpu.memory_space<smem>>
    %c0_9 = arith.constant 0 : index
    %c0_10 = arith.constant 0 : index
    %c2_11 = arith.constant 2 : index
    %14 = vector.load %arg1[%c0_9, %c0_10, %c2_11] : memref<1x22x22xf32, #tpu.memory_space<vmem>>, vector<1x16x16xf32>
    %15 = vector.shape_cast %14 : vector<1x16x16xf32> to vector<16x16xf32>
    %16 = vector.broadcast %13 : f32 to vector<16x16xf32>
    %17 = arith.mulf %16, %15 : vector<16x16xf32>
    %18 = arith.addf %12, %17 : vector<16x16xf32>
    %c0_12 = arith.constant 0 : index
    %c3 = arith.constant 3 : index
    %19 = memref.load %arg2[%c0_12, %c3] : memref<7x7xf32, #tpu.memory_space<smem>>
    %c0_13 = arith.constant 0 : index
    %c0_14 = arith.constant 0 : index
    %c3_15 = arith.constant 3 : index
    %20 = vector.load %arg1[%c0_13, %c0_14, %c3_15] : memref<1x22x22xf32, #tpu.memory_space<vmem>>, vector<1x16x16xf32>
    %21 = vector.shape_cast %20 : vector<1x16x16xf32> to vector<16x16xf32>
    %22 = vector.broadcast %19 : f32 to vector<16x16xf32>
    %23 = arith.mulf %22, %21 : vector<16x16xf32>
    %24 = arith.addf %18, %23 : vector<16x16xf32>
    %c0_16 = arith.constant 0 : index
    %c4 = arith.constant 4 : index
    %25 = memref.load %arg2[%c0_16, %c4] : memref<7x7xf32, #tpu.memory_space<smem>>
    %c0_17 = arith.constant 0 : index
    %c0_18 = arith.constant 0 : index
    %c4_19 = arith.constant 4 : index
    %26 = vector.load %arg1[%c0_17, %c0_18, %c4_19] : memref<1x22x22xf32, #tpu.memory_space<vmem>>, vector<1x16x16xf32>
    %27 = vector.shape_cast %26 : vector<1x16x16xf32> to vector<16x16xf32>
    %28 = vector.broadcast %25 : f32 to vector<16x16xf32>
    %29 = arith.mulf %28, %27 : vector<16x16xf32>
    %30 = arith.addf %24, %29 : vector<16x16xf32>
    %c0_20 = arith.constant 0 : index
    %c5 = arith.constant 5 : index
    %31 = memref.load %arg2[%c0_20, %c5] : memref<7x7xf32, #tpu.memory_space<smem>>
    %c0_21 = arith.constant 0 : index
    %c0_22 = arith.constant 0 : index
    %c5_23 = arith.constant 5 : index
    %32 = vector.load %arg1[%c0_21, %c0_22, %c5_23] : memref<1x22x22xf32, #tpu.memory_space<vmem>>, vector<1x16x16xf32>
    %33 = vector.shape_cast %32 : vector<1x16x16xf32> to vector<16x16xf32>
    %34 = vector.broadcast %31 : f32 to vector<16x16xf32>
    %35 = arith.mulf %34, %33 : vector<16x16xf32>
    %36 = arith.addf %30, %35 : vector<16x16xf32>
    %c0_24 = arith.constant 0 : index
    %c6 = arith.constant 6 : index
    %37 = memref.load %arg2[%c0_24, %c6] : memref<7x7xf32, #tpu.memory_space<smem>>
    %c0_25 = arith.constant 0 : index
    %c0_26 = arith.constant 0 : index
    %c6_27 = arith.constant 6 : index
    %38 = vector.load %arg1[%c0_25, %c0_26, %c6_27] : memref<1x22x22xf32, #tpu.memory_space<vmem>>, vector<1x16x16xf32>
    %39 = vector.shape_cast %38 : vector<1x16x16xf32> to vector<16x16xf32>
    %40 = vector.broadcast %37 : f32 to vector<16x16xf32>
    %41 = arith.mulf %40, %39 : vector<16x16xf32>
    %42 = arith.addf %36, %41 : vector<16x16xf32>
    %c1_28 = arith.constant 1 : index
    %c0_29 = arith.constant 0 : index
    %43 = memref.load %arg2[%c1_28, %c0_29] : memref<7x7xf32, #tpu.memory_space<smem>>
    %c0_30 = arith.constant 0 : index
    %c1_31 = arith.constant 1 : index
    %c0_32 = arith.constant 0 : index
    %44 = vector.load %arg1[%c0_30, %c1_31, %c0_32] : memref<1x22x22xf32, #tpu.memory_space<vmem>>, vector<1x16x16xf32>
    %45 = vector.shape_cast %44 : vector<1x16x16xf32> to vector<16x16xf32>
    %46 = vector.broadcast %43 : f32 to vector<16x16xf32>
    %47 = arith.mulf %46, %45 : vector<16x16xf32>
    %48 = arith.addf %42, %47 : vector<16x16xf32>
    %c1_33 = arith.constant 1 : index
    %c1_34 = arith.constant 1 : index
    %49 = memref.load %arg2[%c1_33, %c1_34] : memref<7x7xf32, #tpu.memory_space<smem>>
    %c0_35 = arith.constant 0 : index
    %c1_36 = arith.constant 1 : index
    %c1_37 = arith.constant 1 : index
    %50 = vector.load %arg1[%c0_35, %c1_36, %c1_37] : memref<1x22x22xf32, #tpu.memory_space<vmem>>, vector<1x16x16xf32>
    %51 = vector.shape_cast %50 : vector<1x16x16xf32> to vector<16x16xf32>
    %52 = vector.broadcast %49 : f32 to vector<16x16xf32>
    %53 = arith.mulf %52, %51 : vector<16x16xf32>
    %54 = arith.addf %48, %53 : vector<16x16xf32>
    %c1_38 = arith.constant 1 : index
    %c2_39 = arith.constant 2 : index
    %55 = memref.load %arg2[%c1_38, %c2_39] : memref<7x7xf32, #tpu.memory_space<smem>>
    %c0_40 = arith.constant 0 : index
    %c1_41 = arith.constant 1 : index
    %c2_42 = arith.constant 2 : index
    %56 = vector.load %arg1[%c0_40, %c1_41, %c2_42] : memref<1x22x22xf32, #tpu.memory_space<vmem>>, vector<1x16x16xf32>
    %57 = vector.shape_cast %56 : vector<1x16x16xf32> to vector<16x16xf32>
    %58 = vector.broadcast %55 : f32 to vector<16x16xf32>
    %59 = arith.mulf %58, %57 : vector<16x16xf32>
    %60 = arith.addf %54, %59 : vector<16x16xf32>
    %c1_43 = arith.constant 1 : index
    %c3_44 = arith.constant 3 : index
    %61 = memref.load %arg2[%c1_43, %c3_44] : memref<7x7xf32, #tpu.memory_space<smem>>
    %c0_45 = arith.constant 0 : index
    %c1_46 = arith.constant 1 : index
    %c3_47 = arith.constant 3 : index
    %62 = vector.load %arg1[%c0_45, %c1_46, %c3_47] : memref<1x22x22xf32, #tpu.memory_space<vmem>>, vector<1x16x16xf32>
    %63 = vector.shape_cast %62 : vector<1x16x16xf32> to vector<16x16xf32>
    %64 = vector.broadcast %61 : f32 to vector<16x16xf32>
    %65 = arith.mulf %64, %63 : vector<16x16xf32>
    %66 = arith.addf %60, %65 : vector<16x16xf32>
    %c1_48 = arith.constant 1 : index
    %c4_49 = arith.constant 4 : index
    %67 = memref.load %arg2[%c1_48, %c4_49] : memref<7x7xf32, #tpu.memory_space<smem>>
    %c0_50 = arith.constant 0 : index
    %c1_51 = arith.constant 1 : index
    %c4_52 = arith.constant 4 : index
    %68 = vector.load %arg1[%c0_50, %c1_51, %c4_52] : memref<1x22x22xf32, #tpu.memory_space<vmem>>, vector<1x16x16xf32>
    %69 = vector.shape_cast %68 : vector<1x16x16xf32> to vector<16x16xf32>
    %70 = vector.broadcast %67 : f32 to vector<16x16xf32>
    %71 = arith.mulf %70, %69 : vector<16x16xf32>
    %72 = arith.addf %66, %71 : vector<16x16xf32>
    %c1_53 = arith.constant 1 : index
    %c5_54 = arith.constant 5 : index
    %73 = memref.load %arg2[%c1_53, %c5_54] : memref<7x7xf32, #tpu.memory_space<smem>>
    %c0_55 = arith.constant 0 : index
    %c1_56 = arith.constant 1 : index
    %c5_57 = arith.constant 5 : index
    %74 = vector.load %arg1[%c0_55, %c1_56, %c5_57] : memref<1x22x22xf32, #tpu.memory_space<vmem>>, vector<1x16x16xf32>
    %75 = vector.shape_cast %74 : vector<1x16x16xf32> to vector<16x16xf32>
    %76 = vector.broadcast %73 : f32 to vector<16x16xf32>
    %77 = arith.mulf %76, %75 : vector<16x16xf32>
    %78 = arith.addf %72, %77 : vector<16x16xf32>
    %c1_58 = arith.constant 1 : index
    %c6_59 = arith.constant 6 : index
    %79 = memref.load %arg2[%c1_58, %c6_59] : memref<7x7xf32, #tpu.memory_space<smem>>
    %c0_60 = arith.constant 0 : index
    %c1_61 = arith.constant 1 : index
    %c6_62 = arith.constant 6 : index
    %80 = vector.load %arg1[%c0_60, %c1_61, %c6_62] : memref<1x22x22xf32, #tpu.memory_space<vmem>>, vector<1x16x16xf32>
    %81 = vector.shape_cast %80 : vector<1x16x16xf32> to vector<16x16xf32>
    %82 = vector.broadcast %79 : f32 to vector<16x16xf32>
    %83 = arith.mulf %82, %81 : vector<16x16xf32>
    %84 = arith.addf %78, %83 : vector<16x16xf32>
    %c2_63 = arith.constant 2 : index
    %c0_64 = arith.constant 0 : index
    %85 = memref.load %arg2[%c2_63, %c0_64] : memref<7x7xf32, #tpu.memory_space<smem>>
    %c0_65 = arith.constant 0 : index
    %c2_66 = arith.constant 2 : index
    %c0_67 = arith.constant 0 : index
    %86 = vector.load %arg1[%c0_65, %c2_66, %c0_67] : memref<1x22x22xf32, #tpu.memory_space<vmem>>, vector<1x16x16xf32>
    %87 = vector.shape_cast %86 : vector<1x16x16xf32> to vector<16x16xf32>
    %88 = vector.broadcast %85 : f32 to vector<16x16xf32>
    %89 = arith.mulf %88, %87 : vector<16x16xf32>
    %90 = arith.addf %84, %89 : vector<16x16xf32>
    %c2_68 = arith.constant 2 : index
    %c1_69 = arith.constant 1 : index
    %91 = memref.load %arg2[%c2_68, %c1_69] : memref<7x7xf32, #tpu.memory_space<smem>>
    %c0_70 = arith.constant 0 : index
    %c2_71 = arith.constant 2 : index
    %c1_72 = arith.constant 1 : index
    %92 = vector.load %arg1[%c0_70, %c2_71, %c1_72] : memref<1x22x22xf32, #tpu.memory_space<vmem>>, vector<1x16x16xf32>
    %93 = vector.shape_cast %92 : vector<1x16x16xf32> to vector<16x16xf32>
    %94 = vector.broadcast %91 : f32 to vector<16x16xf32>
    %95 = arith.mulf %94, %93 : vector<16x16xf32>
    %96 = arith.addf %90, %95 : vector<16x16xf32>
    %c2_73 = arith.constant 2 : index
    %c2_74 = arith.constant 2 : index
    %97 = memref.load %arg2[%c2_73, %c2_74] : memref<7x7xf32, #tpu.memory_space<smem>>
    %c0_75 = arith.constant 0 : index
    %c2_76 = arith.constant 2 : index
    %c2_77 = arith.constant 2 : index
    %98 = vector.load %arg1[%c0_75, %c2_76, %c2_77] : memref<1x22x22xf32, #tpu.memory_space<vmem>>, vector<1x16x16xf32>
    %99 = vector.shape_cast %98 : vector<1x16x16xf32> to vector<16x16xf32>
    %100 = vector.broadcast %97 : f32 to vector<16x16xf32>
    %101 = arith.mulf %100, %99 : vector<16x16xf32>
    %102 = arith.addf %96, %101 : vector<16x16xf32>
    %c2_78 = arith.constant 2 : index
    %c3_79 = arith.constant 3 : index
    %103 = memref.load %arg2[%c2_78, %c3_79] : memref<7x7xf32, #tpu.memory_space<smem>>
    %c0_80 = arith.constant 0 : index
    %c2_81 = arith.constant 2 : index
    %c3_82 = arith.constant 3 : index
    %104 = vector.load %arg1[%c0_80, %c2_81, %c3_82] : memref<1x22x22xf32, #tpu.memory_space<vmem>>, vector<1x16x16xf32>
    %105 = vector.shape_cast %104 : vector<1x16x16xf32> to vector<16x16xf32>
    %106 = vector.broadcast %103 : f32 to vector<16x16xf32>
    %107 = arith.mulf %106, %105 : vector<16x16xf32>
    %108 = arith.addf %102, %107 : vector<16x16xf32>
    %c2_83 = arith.constant 2 : index
    %c4_84 = arith.constant 4 : index
    %109 = memref.load %arg2[%c2_83, %c4_84] : memref<7x7xf32, #tpu.memory_space<smem>>
    %c0_85 = arith.constant 0 : index
    %c2_86 = arith.constant 2 : index
    %c4_87 = arith.constant 4 : index
    %110 = vector.load %arg1[%c0_85, %c2_86, %c4_87] : memref<1x22x22xf32, #tpu.memory_space<vmem>>, vector<1x16x16xf32>
    %111 = vector.shape_cast %110 : vector<1x16x16xf32> to vector<16x16xf32>
    %112 = vector.broadcast %109 : f32 to vector<16x16xf32>
    %113 = arith.mulf %112, %111 : vector<16x16xf32>
    %114 = arith.addf %108, %113 : vector<16x16xf32>
    %c2_88 = arith.constant 2 : index
    %c5_89 = arith.constant 5 : index
    %115 = memref.load %arg2[%c2_88, %c5_89] : memref<7x7xf32, #tpu.memory_space<smem>>
    %c0_90 = arith.constant 0 : index
    %c2_91 = arith.constant 2 : index
    %c5_92 = arith.constant 5 : index
    %116 = vector.load %arg1[%c0_90, %c2_91, %c5_92] : memref<1x22x22xf32, #tpu.memory_space<vmem>>, vector<1x16x16xf32>
    %117 = vector.shape_cast %116 : vector<1x16x16xf32> to vector<16x16xf32>
    %118 = vector.broadcast %115 : f32 to vector<16x16xf32>
    %119 = arith.mulf %118, %117 : vector<16x16xf32>
    %120 = arith.addf %114, %119 : vector<16x16xf32>
    %c2_93 = arith.constant 2 : index
    %c6_94 = arith.constant 6 : index
    %121 = memref.load %arg2[%c2_93, %c6_94] : memref<7x7xf32, #tpu.memory_space<smem>>
    %c0_95 = arith.constant 0 : index
    %c2_96 = arith.constant 2 : index
    %c6_97 = arith.constant 6 : index
    %122 = vector.load %arg1[%c0_95, %c2_96, %c6_97] : memref<1x22x22xf32, #tpu.memory_space<vmem>>, vector<1x16x16xf32>
    %123 = vector.shape_cast %122 : vector<1x16x16xf32> to vector<16x16xf32>
    %124 = vector.broadcast %121 : f32 to vector<16x16xf32>
    %125 = arith.mulf %124, %123 : vector<16x16xf32>
    %126 = arith.addf %120, %125 : vector<16x16xf32>
    %c3_98 = arith.constant 3 : index
    %c0_99 = arith.constant 0 : index
    %127 = memref.load %arg2[%c3_98, %c0_99] : memref<7x7xf32, #tpu.memory_space<smem>>
    %c0_100 = arith.constant 0 : index
    %c3_101 = arith.constant 3 : index
    %c0_102 = arith.constant 0 : index
    %128 = vector.load %arg1[%c0_100, %c3_101, %c0_102] : memref<1x22x22xf32, #tpu.memory_space<vmem>>, vector<1x16x16xf32>
    %129 = vector.shape_cast %128 : vector<1x16x16xf32> to vector<16x16xf32>
    %130 = vector.broadcast %127 : f32 to vector<16x16xf32>
    %131 = arith.mulf %130, %129 : vector<16x16xf32>
    %132 = arith.addf %126, %131 : vector<16x16xf32>
    %c3_103 = arith.constant 3 : index
    %c1_104 = arith.constant 1 : index
    %133 = memref.load %arg2[%c3_103, %c1_104] : memref<7x7xf32, #tpu.memory_space<smem>>
    %c0_105 = arith.constant 0 : index
    %c3_106 = arith.constant 3 : index
    %c1_107 = arith.constant 1 : index
    %134 = vector.load %arg1[%c0_105, %c3_106, %c1_107] : memref<1x22x22xf32, #tpu.memory_space<vmem>>, vector<1x16x16xf32>
    %135 = vector.shape_cast %134 : vector<1x16x16xf32> to vector<16x16xf32>
    %136 = vector.broadcast %133 : f32 to vector<16x16xf32>
    %137 = arith.mulf %136, %135 : vector<16x16xf32>
    %138 = arith.addf %132, %137 : vector<16x16xf32>
    %c3_108 = arith.constant 3 : index
    %c2_109 = arith.constant 2 : index
    %139 = memref.load %arg2[%c3_108, %c2_109] : memref<7x7xf32, #tpu.memory_space<smem>>
    %c0_110 = arith.constant 0 : index
    %c3_111 = arith.constant 3 : index
    %c2_112 = arith.constant 2 : index
    %140 = vector.load %arg1[%c0_110, %c3_111, %c2_112] : memref<1x22x22xf32, #tpu.memory_space<vmem>>, vector<1x16x16xf32>
    %141 = vector.shape_cast %140 : vector<1x16x16xf32> to vector<16x16xf32>
    %142 = vector.broadcast %139 : f32 to vector<16x16xf32>
    %143 = arith.mulf %142, %141 : vector<16x16xf32>
    %144 = arith.addf %138, %143 : vector<16x16xf32>
    %c3_113 = arith.constant 3 : index
    %c3_114 = arith.constant 3 : index
    %145 = memref.load %arg2[%c3_113, %c3_114] : memref<7x7xf32, #tpu.memory_space<smem>>
    %c0_115 = arith.constant 0 : index
    %c3_116 = arith.constant 3 : index
    %c3_117 = arith.constant 3 : index
    %146 = vector.load %arg1[%c0_115, %c3_116, %c3_117] : memref<1x22x22xf32, #tpu.memory_space<vmem>>, vector<1x16x16xf32>
    %147 = vector.shape_cast %146 : vector<1x16x16xf32> to vector<16x16xf32>
    %148 = vector.broadcast %145 : f32 to vector<16x16xf32>
    %149 = arith.mulf %148, %147 : vector<16x16xf32>
    %150 = arith.addf %144, %149 : vector<16x16xf32>
    %c3_118 = arith.constant 3 : index
    %c4_119 = arith.constant 4 : index
    %151 = memref.load %arg2[%c3_118, %c4_119] : memref<7x7xf32, #tpu.memory_space<smem>>
    %c0_120 = arith.constant 0 : index
    %c3_121 = arith.constant 3 : index
    %c4_122 = arith.constant 4 : index
    %152 = vector.load %arg1[%c0_120, %c3_121, %c4_122] : memref<1x22x22xf32, #tpu.memory_space<vmem>>, vector<1x16x16xf32>
    %153 = vector.shape_cast %152 : vector<1x16x16xf32> to vector<16x16xf32>
    %154 = vector.broadcast %151 : f32 to vector<16x16xf32>
    %155 = arith.mulf %154, %153 : vector<16x16xf32>
    %156 = arith.addf %150, %155 : vector<16x16xf32>
    %c3_123 = arith.constant 3 : index
    %c5_124 = arith.constant 5 : index
    %157 = memref.load %arg2[%c3_123, %c5_124] : memref<7x7xf32, #tpu.memory_space<smem>>
    %c0_125 = arith.constant 0 : index
    %c3_126 = arith.constant 3 : index
    %c5_127 = arith.constant 5 : index
    %158 = vector.load %arg1[%c0_125, %c3_126, %c5_127] : memref<1x22x22xf32, #tpu.memory_space<vmem>>, vector<1x16x16xf32>
    %159 = vector.shape_cast %158 : vector<1x16x16xf32> to vector<16x16xf32>
    %160 = vector.broadcast %157 : f32 to vector<16x16xf32>
    %161 = arith.mulf %160, %159 : vector<16x16xf32>
    %162 = arith.addf %156, %161 : vector<16x16xf32>
    %c3_128 = arith.constant 3 : index
    %c6_129 = arith.constant 6 : index
    %163 = memref.load %arg2[%c3_128, %c6_129] : memref<7x7xf32, #tpu.memory_space<smem>>
    %c0_130 = arith.constant 0 : index
    %c3_131 = arith.constant 3 : index
    %c6_132 = arith.constant 6 : index
    %164 = vector.load %arg1[%c0_130, %c3_131, %c6_132] : memref<1x22x22xf32, #tpu.memory_space<vmem>>, vector<1x16x16xf32>
    %165 = vector.shape_cast %164 : vector<1x16x16xf32> to vector<16x16xf32>
    %166 = vector.broadcast %163 : f32 to vector<16x16xf32>
    %167 = arith.mulf %166, %165 : vector<16x16xf32>
    %168 = arith.addf %162, %167 : vector<16x16xf32>
    %c4_133 = arith.constant 4 : index
    %c0_134 = arith.constant 0 : index
    %169 = memref.load %arg2[%c4_133, %c0_134] : memref<7x7xf32, #tpu.memory_space<smem>>
    %c0_135 = arith.constant 0 : index
    %c4_136 = arith.constant 4 : index
    %c0_137 = arith.constant 0 : index
    %170 = vector.load %arg1[%c0_135, %c4_136, %c0_137] : memref<1x22x22xf32, #tpu.memory_space<vmem>>, vector<1x16x16xf32>
    %171 = vector.shape_cast %170 : vector<1x16x16xf32> to vector<16x16xf32>
    %172 = vector.broadcast %169 : f32 to vector<16x16xf32>
    %173 = arith.mulf %172, %171 : vector<16x16xf32>
    %174 = arith.addf %168, %173 : vector<16x16xf32>
    %c4_138 = arith.constant 4 : index
    %c1_139 = arith.constant 1 : index
    %175 = memref.load %arg2[%c4_138, %c1_139] : memref<7x7xf32, #tpu.memory_space<smem>>
    %c0_140 = arith.constant 0 : index
    %c4_141 = arith.constant 4 : index
    %c1_142 = arith.constant 1 : index
    %176 = vector.load %arg1[%c0_140, %c4_141, %c1_142] : memref<1x22x22xf32, #tpu.memory_space<vmem>>, vector<1x16x16xf32>
    %177 = vector.shape_cast %176 : vector<1x16x16xf32> to vector<16x16xf32>
    %178 = vector.broadcast %175 : f32 to vector<16x16xf32>
    %179 = arith.mulf %178, %177 : vector<16x16xf32>
    %180 = arith.addf %174, %179 : vector<16x16xf32>
    %c4_143 = arith.constant 4 : index
    %c2_144 = arith.constant 2 : index
    %181 = memref.load %arg2[%c4_143, %c2_144] : memref<7x7xf32, #tpu.memory_space<smem>>
    %c0_145 = arith.constant 0 : index
    %c4_146 = arith.constant 4 : index
    %c2_147 = arith.constant 2 : index
    %182 = vector.load %arg1[%c0_145, %c4_146, %c2_147] : memref<1x22x22xf32, #tpu.memory_space<vmem>>, vector<1x16x16xf32>
    %183 = vector.shape_cast %182 : vector<1x16x16xf32> to vector<16x16xf32>
    %184 = vector.broadcast %181 : f32 to vector<16x16xf32>
    %185 = arith.mulf %184, %183 : vector<16x16xf32>
    %186 = arith.addf %180, %185 : vector<16x16xf32>
    %c4_148 = arith.constant 4 : index
    %c3_149 = arith.constant 3 : index
    %187 = memref.load %arg2[%c4_148, %c3_149] : memref<7x7xf32, #tpu.memory_space<smem>>
    %c0_150 = arith.constant 0 : index
    %c4_151 = arith.constant 4 : index
    %c3_152 = arith.constant 3 : index
    %188 = vector.load %arg1[%c0_150, %c4_151, %c3_152] : memref<1x22x22xf32, #tpu.memory_space<vmem>>, vector<1x16x16xf32>
    %189 = vector.shape_cast %188 : vector<1x16x16xf32> to vector<16x16xf32>
    %190 = vector.broadcast %187 : f32 to vector<16x16xf32>
    %191 = arith.mulf %190, %189 : vector<16x16xf32>
    %192 = arith.addf %186, %191 : vector<16x16xf32>
    %c4_153 = arith.constant 4 : index
    %c4_154 = arith.constant 4 : index
    %193 = memref.load %arg2[%c4_153, %c4_154] : memref<7x7xf32, #tpu.memory_space<smem>>
    %c0_155 = arith.constant 0 : index
    %c4_156 = arith.constant 4 : index
    %c4_157 = arith.constant 4 : index
    %194 = vector.load %arg1[%c0_155, %c4_156, %c4_157] : memref<1x22x22xf32, #tpu.memory_space<vmem>>, vector<1x16x16xf32>
    %195 = vector.shape_cast %194 : vector<1x16x16xf32> to vector<16x16xf32>
    %196 = vector.broadcast %193 : f32 to vector<16x16xf32>
    %197 = arith.mulf %196, %195 : vector<16x16xf32>
    %198 = arith.addf %192, %197 : vector<16x16xf32>
    %c4_158 = arith.constant 4 : index
    %c5_159 = arith.constant 5 : index
    %199 = memref.load %arg2[%c4_158, %c5_159] : memref<7x7xf32, #tpu.memory_space<smem>>
    %c0_160 = arith.constant 0 : index
    %c4_161 = arith.constant 4 : index
    %c5_162 = arith.constant 5 : index
    %200 = vector.load %arg1[%c0_160, %c4_161, %c5_162] : memref<1x22x22xf32, #tpu.memory_space<vmem>>, vector<1x16x16xf32>
    %201 = vector.shape_cast %200 : vector<1x16x16xf32> to vector<16x16xf32>
    %202 = vector.broadcast %199 : f32 to vector<16x16xf32>
    %203 = arith.mulf %202, %201 : vector<16x16xf32>
    %204 = arith.addf %198, %203 : vector<16x16xf32>
    %c4_163 = arith.constant 4 : index
    %c6_164 = arith.constant 6 : index
    %205 = memref.load %arg2[%c4_163, %c6_164] : memref<7x7xf32, #tpu.memory_space<smem>>
    %c0_165 = arith.constant 0 : index
    %c4_166 = arith.constant 4 : index
    %c6_167 = arith.constant 6 : index
    %206 = vector.load %arg1[%c0_165, %c4_166, %c6_167] : memref<1x22x22xf32, #tpu.memory_space<vmem>>, vector<1x16x16xf32>
    %207 = vector.shape_cast %206 : vector<1x16x16xf32> to vector<16x16xf32>
    %208 = vector.broadcast %205 : f32 to vector<16x16xf32>
    %209 = arith.mulf %208, %207 : vector<16x16xf32>
    %210 = arith.addf %204, %209 : vector<16x16xf32>
    %c5_168 = arith.constant 5 : index
    %c0_169 = arith.constant 0 : index
    %211 = memref.load %arg2[%c5_168, %c0_169] : memref<7x7xf32, #tpu.memory_space<smem>>
    %c0_170 = arith.constant 0 : index
    %c5_171 = arith.constant 5 : index
    %c0_172 = arith.constant 0 : index
    %212 = vector.load %arg1[%c0_170, %c5_171, %c0_172] : memref<1x22x22xf32, #tpu.memory_space<vmem>>, vector<1x16x16xf32>
    %213 = vector.shape_cast %212 : vector<1x16x16xf32> to vector<16x16xf32>
    %214 = vector.broadcast %211 : f32 to vector<16x16xf32>
    %215 = arith.mulf %214, %213 : vector<16x16xf32>
    %216 = arith.addf %210, %215 : vector<16x16xf32>
    %c5_173 = arith.constant 5 : index
    %c1_174 = arith.constant 1 : index
    %217 = memref.load %arg2[%c5_173, %c1_174] : memref<7x7xf32, #tpu.memory_space<smem>>
    %c0_175 = arith.constant 0 : index
    %c5_176 = arith.constant 5 : index
    %c1_177 = arith.constant 1 : index
    %218 = vector.load %arg1[%c0_175, %c5_176, %c1_177] : memref<1x22x22xf32, #tpu.memory_space<vmem>>, vector<1x16x16xf32>
    %219 = vector.shape_cast %218 : vector<1x16x16xf32> to vector<16x16xf32>
    %220 = vector.broadcast %217 : f32 to vector<16x16xf32>
    %221 = arith.mulf %220, %219 : vector<16x16xf32>
    %222 = arith.addf %216, %221 : vector<16x16xf32>
    %c5_178 = arith.constant 5 : index
    %c2_179 = arith.constant 2 : index
    %223 = memref.load %arg2[%c5_178, %c2_179] : memref<7x7xf32, #tpu.memory_space<smem>>
    %c0_180 = arith.constant 0 : index
    %c5_181 = arith.constant 5 : index
    %c2_182 = arith.constant 2 : index
    %224 = vector.load %arg1[%c0_180, %c5_181, %c2_182] : memref<1x22x22xf32, #tpu.memory_space<vmem>>, vector<1x16x16xf32>
    %225 = vector.shape_cast %224 : vector<1x16x16xf32> to vector<16x16xf32>
    %226 = vector.broadcast %223 : f32 to vector<16x16xf32>
    %227 = arith.mulf %226, %225 : vector<16x16xf32>
    %228 = arith.addf %222, %227 : vector<16x16xf32>
    %c5_183 = arith.constant 5 : index
    %c3_184 = arith.constant 3 : index
    %229 = memref.load %arg2[%c5_183, %c3_184] : memref<7x7xf32, #tpu.memory_space<smem>>
    %c0_185 = arith.constant 0 : index
    %c5_186 = arith.constant 5 : index
    %c3_187 = arith.constant 3 : index
    %230 = vector.load %arg1[%c0_185, %c5_186, %c3_187] : memref<1x22x22xf32, #tpu.memory_space<vmem>>, vector<1x16x16xf32>
    %231 = vector.shape_cast %230 : vector<1x16x16xf32> to vector<16x16xf32>
    %232 = vector.broadcast %229 : f32 to vector<16x16xf32>
    %233 = arith.mulf %232, %231 : vector<16x16xf32>
    %234 = arith.addf %228, %233 : vector<16x16xf32>
    %c5_188 = arith.constant 5 : index
    %c4_189 = arith.constant 4 : index
    %235 = memref.load %arg2[%c5_188, %c4_189] : memref<7x7xf32, #tpu.memory_space<smem>>
    %c0_190 = arith.constant 0 : index
    %c5_191 = arith.constant 5 : index
    %c4_192 = arith.constant 4 : index
    %236 = vector.load %arg1[%c0_190, %c5_191, %c4_192] : memref<1x22x22xf32, #tpu.memory_space<vmem>>, vector<1x16x16xf32>
    %237 = vector.shape_cast %236 : vector<1x16x16xf32> to vector<16x16xf32>
    %238 = vector.broadcast %235 : f32 to vector<16x16xf32>
    %239 = arith.mulf %238, %237 : vector<16x16xf32>
    %240 = arith.addf %234, %239 : vector<16x16xf32>
    %c5_193 = arith.constant 5 : index
    %c5_194 = arith.constant 5 : index
    %241 = memref.load %arg2[%c5_193, %c5_194] : memref<7x7xf32, #tpu.memory_space<smem>>
    %c0_195 = arith.constant 0 : index
    %c5_196 = arith.constant 5 : index
    %c5_197 = arith.constant 5 : index
    %242 = vector.load %arg1[%c0_195, %c5_196, %c5_197] : memref<1x22x22xf32, #tpu.memory_space<vmem>>, vector<1x16x16xf32>
    %243 = vector.shape_cast %242 : vector<1x16x16xf32> to vector<16x16xf32>
    %244 = vector.broadcast %241 : f32 to vector<16x16xf32>
    %245 = arith.mulf %244, %243 : vector<16x16xf32>
    %246 = arith.addf %240, %245 : vector<16x16xf32>
    %c5_198 = arith.constant 5 : index
    %c6_199 = arith.constant 6 : index
    %247 = memref.load %arg2[%c5_198, %c6_199] : memref<7x7xf32, #tpu.memory_space<smem>>
    %c0_200 = arith.constant 0 : index
    %c5_201 = arith.constant 5 : index
    %c6_202 = arith.constant 6 : index
    %248 = vector.load %arg1[%c0_200, %c5_201, %c6_202] : memref<1x22x22xf32, #tpu.memory_space<vmem>>, vector<1x16x16xf32>
    %249 = vector.shape_cast %248 : vector<1x16x16xf32> to vector<16x16xf32>
    %250 = vector.broadcast %247 : f32 to vector<16x16xf32>
    %251 = arith.mulf %250, %249 : vector<16x16xf32>
    %252 = arith.addf %246, %251 : vector<16x16xf32>
    %c6_203 = arith.constant 6 : index
    %c0_204 = arith.constant 0 : index
    %253 = memref.load %arg2[%c6_203, %c0_204] : memref<7x7xf32, #tpu.memory_space<smem>>
    %c0_205 = arith.constant 0 : index
    %c6_206 = arith.constant 6 : index
    %c0_207 = arith.constant 0 : index
    %254 = vector.load %arg1[%c0_205, %c6_206, %c0_207] : memref<1x22x22xf32, #tpu.memory_space<vmem>>, vector<1x16x16xf32>
    %255 = vector.shape_cast %254 : vector<1x16x16xf32> to vector<16x16xf32>
    %256 = vector.broadcast %253 : f32 to vector<16x16xf32>
    %257 = arith.mulf %256, %255 : vector<16x16xf32>
    %258 = arith.addf %252, %257 : vector<16x16xf32>
    %c6_208 = arith.constant 6 : index
    %c1_209 = arith.constant 1 : index
    %259 = memref.load %arg2[%c6_208, %c1_209] : memref<7x7xf32, #tpu.memory_space<smem>>
    %c0_210 = arith.constant 0 : index
    %c6_211 = arith.constant 6 : index
    %c1_212 = arith.constant 1 : index
    %260 = vector.load %arg1[%c0_210, %c6_211, %c1_212] : memref<1x22x22xf32, #tpu.memory_space<vmem>>, vector<1x16x16xf32>
    %261 = vector.shape_cast %260 : vector<1x16x16xf32> to vector<16x16xf32>
    %262 = vector.broadcast %259 : f32 to vector<16x16xf32>
    %263 = arith.mulf %262, %261 : vector<16x16xf32>
    %264 = arith.addf %258, %263 : vector<16x16xf32>
    %c6_213 = arith.constant 6 : index
    %c2_214 = arith.constant 2 : index
    %265 = memref.load %arg2[%c6_213, %c2_214] : memref<7x7xf32, #tpu.memory_space<smem>>
    %c0_215 = arith.constant 0 : index
    %c6_216 = arith.constant 6 : index
    %c2_217 = arith.constant 2 : index
    %266 = vector.load %arg1[%c0_215, %c6_216, %c2_217] : memref<1x22x22xf32, #tpu.memory_space<vmem>>, vector<1x16x16xf32>
    %267 = vector.shape_cast %266 : vector<1x16x16xf32> to vector<16x16xf32>
    %268 = vector.broadcast %265 : f32 to vector<16x16xf32>
    %269 = arith.mulf %268, %267 : vector<16x16xf32>
    %270 = arith.addf %264, %269 : vector<16x16xf32>
    %c6_218 = arith.constant 6 : index
    %c3_219 = arith.constant 3 : index
    %271 = memref.load %arg2[%c6_218, %c3_219] : memref<7x7xf32, #tpu.memory_space<smem>>
    %c0_220 = arith.constant 0 : index
    %c6_221 = arith.constant 6 : index
    %c3_222 = arith.constant 3 : index
    %272 = vector.load %arg1[%c0_220, %c6_221, %c3_222] : memref<1x22x22xf32, #tpu.memory_space<vmem>>, vector<1x16x16xf32>
    %273 = vector.shape_cast %272 : vector<1x16x16xf32> to vector<16x16xf32>
    %274 = vector.broadcast %271 : f32 to vector<16x16xf32>
    %275 = arith.mulf %274, %273 : vector<16x16xf32>
    %276 = arith.addf %270, %275 : vector<16x16xf32>
    %c6_223 = arith.constant 6 : index
    %c4_224 = arith.constant 4 : index
    %277 = memref.load %arg2[%c6_223, %c4_224] : memref<7x7xf32, #tpu.memory_space<smem>>
    %c0_225 = arith.constant 0 : index
    %c6_226 = arith.constant 6 : index
    %c4_227 = arith.constant 4 : index
    %278 = vector.load %arg1[%c0_225, %c6_226, %c4_227] : memref<1x22x22xf32, #tpu.memory_space<vmem>>, vector<1x16x16xf32>
    %279 = vector.shape_cast %278 : vector<1x16x16xf32> to vector<16x16xf32>
    %280 = vector.broadcast %277 : f32 to vector<16x16xf32>
    %281 = arith.mulf %280, %279 : vector<16x16xf32>
    %282 = arith.addf %276, %281 : vector<16x16xf32>
    %c6_228 = arith.constant 6 : index
    %c5_229 = arith.constant 5 : index
    %283 = memref.load %arg2[%c6_228, %c5_229] : memref<7x7xf32, #tpu.memory_space<smem>>
    %c0_230 = arith.constant 0 : index
    %c6_231 = arith.constant 6 : index
    %c5_232 = arith.constant 5 : index
    %284 = vector.load %arg1[%c0_230, %c6_231, %c5_232] : memref<1x22x22xf32, #tpu.memory_space<vmem>>, vector<1x16x16xf32>
    %285 = vector.shape_cast %284 : vector<1x16x16xf32> to vector<16x16xf32>
    %286 = vector.broadcast %283 : f32 to vector<16x16xf32>
    %287 = arith.mulf %286, %285 : vector<16x16xf32>
    %288 = arith.addf %282, %287 : vector<16x16xf32>
    %c6_233 = arith.constant 6 : index
    %c6_234 = arith.constant 6 : index
    %289 = memref.load %arg2[%c6_233, %c6_234] : memref<7x7xf32, #tpu.memory_space<smem>>
    %c0_235 = arith.constant 0 : index
    %c6_236 = arith.constant 6 : index
    %c6_237 = arith.constant 6 : index
    %290 = vector.load %arg1[%c0_235, %c6_236, %c6_237] : memref<1x22x22xf32, #tpu.memory_space<vmem>>, vector<1x16x16xf32>
    %291 = vector.shape_cast %290 : vector<1x16x16xf32> to vector<16x16xf32>
    %292 = vector.broadcast %289 : f32 to vector<16x16xf32>
    %293 = arith.mulf %292, %291 : vector<16x16xf32>
    %294 = arith.addf %288, %293 : vector<16x16xf32>
    %295 = arith.negf %294 : vector<16x16xf32>
    %296 = math.exp %295 : vector<16x16xf32>
    %cst_238 = arith.constant 1.000000e+00 : f32
    %297 = vector.broadcast %cst_238 : f32 to vector<16x16xf32>
    %298 = arith.addf %297, %296 : vector<16x16xf32>
    %299 = arith.divf %297, %298 : vector<16x16xf32>
    %c0_239 = arith.constant 0 : index
    %c0_240 = arith.constant 0 : index
    %c0_241 = arith.constant 0 : index
    %300 = vector.load %arg3[%c0_239, %c0_240, %c0_241] : memref<1x16x16xf32, #tpu.memory_space<vmem>>, vector<1x16x16xf32>
    %301 = vector.shape_cast %300 : vector<1x16x16xf32> to vector<16x16xf32>
    %302 = vector.shape_cast %299 : vector<16x16xf32> to vector<1x16x16xf32>
    tpu.vector_store %arg3[%c0_239, %c0_240, %c0_241], %302 {strides = array<i32>} : memref<1x16x16xf32, #tpu.memory_space<vmem>>, vector<1x16x16xf32>,
    return
  }
  func.func @transform_0(%arg0: i32) -> (i32, i32, i32) {
    %c0_i32 = arith.constant 0 : i32
    %c0_i32_0 = arith.constant 0 : i32
    %c0_i32_1 = arith.constant 0 : i32
    return %arg0, %c0_i32, %c0_i32_0 : i32, i32, i32
  }
  func.func @transform_1(%arg0: i32) -> (i32, i32) {
    %c0_i32 = arith.constant 0 : i32
    %c0_i32_0 = arith.constant 0 : i32
    %c0_i32_1 = arith.constant 0 : i32
    return %c0_i32, %c0_i32_0 : i32, i32
  }
  func.func @transform_2(%arg0: i32) -> (i32, i32, i32) {
    %c0_i32 = arith.constant 0 : i32
    %c0_i32_0 = arith.constant 0 : i32
    %c0_i32_1 = arith.constant 0 : i32
    return %arg0, %c0_i32, %c0_i32_0 : i32, i32, i32
  }
}

</mosaic_0001>

<bundles_post_ra>
// kernel: cscm3_forward.9
= control target key start
LH: loop header
LB: loop body
LE: loop exit
PB: predicated region body
PF: predicated region fallthrough
CT: control target
= control target key end

     0   :  { %vm64_vm0 = vcmask 1041408   ;;  %vm51_vm1 = vcmask 31744   ;;  %vm173_vm2 = vcmask 64512   ;;  %s288_s1 = inlined_call_operand.vmem [shape: bf16[4,8], index: 1, kind: input, shape index: {}]   ;;  %s289_s0 = inlined_call_operand.vmem [shape: bf16[64,4], index: 0, kind: input, shape index: {}]   ;;  %s290_s2 = inlined_call_operand.vmem [shape: f32[1,8], index: 2, kind: input, shape index: {}]   ;;  %s291_s3 = inlined_call_operand.vmem [shape: f32[64,8], index: 3, kind: output, shape index: {}]  }
   0x1   :  { %v23_v0 = vld [vmem:[%s288_s1] sm:$0x3]  ;;  %v215_v3 = vld [vmem:[%s289_s0 + $0x10] sm:$0xff]   ;;  %v216_v4 = vld [vmem:[%s289_s0 + $0x8] sm:$0xff]  }
   0x2   :  { %212 = vmatprep.subr.msk.bf16.mxu0 %vm64_vm0, %v23_v0  ;;  %213 = vmatprep.subr.msk.bf16.mxu1 %vm64_vm0, %v23_v0  ;;  %v66_v1 = vsel %vm64_vm0, %v23_v0, 0  ;;  %v214_v2 = vld [vmem:[%s289_s0] sm:$0xff]   ;;  %v217_v5 = vld [vmem:[%s289_s0 + $0x18] sm:$0xff]  }
   0x3   :  { %201 = vmatpush3.bf16.msra.mxu0 %v66_v1  ;;  %211 = vmatpush3.bf16.msra.mxu1 %v66_v1  ;;  %v186_v6 = vld [vmem:[%s290_s2] ss:$0 sm:$0xff] }
   0x4   :  { %202 = vmatprep.mubr.msk.bf16.mxu0 %vm51_vm1, %v214_v2  ;;  %206 = vmatprep.mubr.msk.bf16.mxu1 %vm51_vm1, %v215_v3 }
   0x6   :  { %203 = vmatmul.mubr.msk.bf16.vlgmr.msra.gmra.mrb[0].mxu0 %vm51_vm1, %v216_v4  ;;  %207 = vmatmul.mubr.msk.bf16.vlgmr.msra.gmra.mrb[0].mxu1 %vm51_vm1, %v217_v5 }
  0xd9   :  { %v204_v7 = vpop.f32.mrb[0].mxu0  ;;  %v208_v9 = vpop.f32.mrb[0].mxu1 }
  0xda   :  { %v111_v8 = vadd.f32 %v204_v7, %v186_v6  ;;  %v102_v10 = vpop.f32.mrb[1].mxu0  ;;  %v127_v11 = vadd.f32 %v208_v9, %v186_v6  ;;  %v118_v13 = vpop.f32.mrb[1].mxu1 }
  0xdb   :  { %v103_v12 = vadd.f32 %v186_v6, %v102_v10  ;;  %v205_v14 = vpop.f32.mrb[2].mxu0  ;;  %v119_v16 = vadd.f32 %v186_v6, %v118_v13  ;;  %v209_v18 = vpop.f32.mrb[2].mxu1 }
  0xdc   :  { %v135_v15 = vadd.f32 3.0, %v111_v8  ;;  %v114_v17 = vadd.f32 %v205_v14, %v186_v6  ;;  %v105_v19 = vpop.f32.mrb[3].mxu0  ;;  %v139_v20 = vadd.f32 3.0, %v127_v11  ;;  %v130_v22 = vadd.f32 %v209_v18, %v186_v6  ;;  %v121_v24 = vpop.f32.mrb[3].mxu1 }
  0xdd   :  { %v133_v21 = vadd.f32 3.0, %v103_v12  ;;  %v106_v23 = vadd.f32 %v186_v6, %v105_v19  ;;  %v137_v26 = vadd.f32 3.0, %v119_v16  ;;  %v122_v28 = vadd.f32 %v186_v6, %v121_v24 }
  0xde   :  { %v143_v25 = vmax.f32 %v135_v15, 0.0  ;;  %v136_v27 = vadd.f32 3.0, %v114_v17  ;;  %v147_v29 = vmax.f32 %v139_v20, 0.0  ;;  %v140_v31 = vadd.f32 3.0, %v130_v22 }
  0xdf   :  { %v141_v30 = vmax.f32 %v133_v21, 0.0  ;;  %v134_v32 = vadd.f32 3.0, %v106_v23  ;;  %v145_v34 = vmax.f32 %v137_v26, 0.0  ;;  %v138_v36 = vadd.f32 3.0, %v122_v28 }
  0xe0   :  { %v151_v33 = vmin.f32 %v143_v25, 6.0  ;;  %v144_v35 = vmax.f32 %v136_v27, 0.0  ;;  %v155_v37 = vmin.f32 %v147_v29, 6.0  ;;  %v148_v39 = vmax.f32 %v140_v31, 0.0 }
  0xe1   :  { %v149_v38 = vmin.f32 %v141_v30, 6.0  ;;  %v142_v40 = vmax.f32 %v134_v32, 0.0  ;;  %v153_v42 = vmin.f32 %v145_v34, 6.0  ;;  %v146_v44 = vmax.f32 %v138_v36, 0.0 }
  0xe2   :  { %v159_v41 = vmul.f32 0.16666667, %v151_v33  ;;  %v152_v43 = vmin.f32 %v144_v35, 6.0  ;;  %v163_v45 = vmul.f32 0.16666667, %v155_v37  ;;  %v156_v47 = vmin.f32 %v148_v39, 6.0 }
  0xe3   :  { %v157_v46 = vmul.f32 0.16666667, %v149_v38  ;;  %v150_v48 = vmin.f32 %v142_v40, 6.0  ;;  %v161_v50 = vmul.f32 0.16666667, %v153_v42  ;;  %v154_v52 = vmin.f32 %v146_v44, 6.0 }
  0xe4   :  { %v167_v49 = vmul.f32 %v159_v41, %v111_v8  ;;  %v160_v51 = vmul.f32 0.16666667, %v152_v43  ;;  %v171_v53 = vmul.f32 %v163_v45, %v127_v11  ;;  %v164_v55 = vmul.f32 0.16666667, %v156_v47 }
  0xe5   :  { %v165_v54 = vmul.f32 %v157_v46, %v103_v12  ;;  %v158_v56 = vmul.f32 0.16666667, %v150_v48  ;;  %v169_v57 = vmul.f32 %v161_v50, %v119_v16  ;;  %v162_v59 = vmul.f32 0.16666667, %v154_v52 }
  0xe6   :  { %176 = vst.msk [vmem:[%s291_s3 + $0x10] sm:$0xff] %vm173_vm2, %v167_v49  ;;  %v168_v58 = vmul.f32 %v160_v51, %v114_v17  ;;  %180 = vst.msk [vmem:[%s291_s3 + $0x30] sm:$0xff] %vm173_vm2, %v171_v53  ;;  %v172_v60 = vmul.f32 %v164_v55, %v130_v22 }
  0xe7   :  { %174 = vst.msk [vmem:[%s291_s3] sm:$0xff] %vm173_vm2, %v165_v54  ;;  %v166_v61 = vmul.f32 %v158_v56, %v106_v23  ;;  %178 = vst.msk [vmem:[%s291_s3 + $0x20] sm:$0xff] %vm173_vm2, %v169_v57  ;;  %v170_v62 = vmul.f32 %v162_v59, %v122_v28 }
  0xe8   :  { %177 = vst.msk [vmem:[%s291_s3 + $0x18] sm:$0xff] %vm173_vm2, %v168_v58  ;;  %181 = vst.msk [vmem:[%s291_s3 + $0x38] sm:$0xff] %vm173_vm2, %v172_v60 }
  0xe9   :  { %175 = vst.msk [vmem:[%s291_s3 + $0x8] sm:$0xff] %vm173_vm2, %v166_v61  ;;  %179 = vst.msk [vmem:[%s291_s3 + $0x28] sm:$0xff] %vm173_vm2, %v170_v62 }

// kernel: cscm3_forward.10
= control target key start
LH: loop header
LB: loop body
LE: loop exit
PB: predicated region body
PF: predicated region fallthrough
CT: control target
= control target key end

     0   :  { %vm44_vm0 = vcmask 1043456   ;;  %vm37_vm1 = vcmask 64512   ;;  %vm121_vm2 = vcmask 31744   ;;  %s211_s1 = inlined_call_operand.vmem [shape: bf16[8,4], index: 1, kind: input, shape index: {}]   ;;  %s212_s0 = inlined_call_operand.vmem [shape: bf16[32,8], index: 0, kind: input, shape index: {}]   ;;  %s213_s2 = inlined_call_operand.vmem [shape: f32[1,4], index: 2, kind: input, shape index: {}]   ;;  %s214_s3 = inlined_call_operand.vmem [shape: f32[32,4], index: 3, kind: output, shape index: {}]  }
   0x1   :  { %v19_v0 = vld [vmem:[%s211_s1] sm:$0xf]  ;;  %v150_v3 = vld [vmem:[%s212_s0 + $0x8] sm:$0xff]  }
   0x2   :  { %148 = vmatprep.subr.msk.bf16.mxu0 %vm44_vm0, %v19_v0  ;;  %v46_v1 = vsel %vm44_vm0, %v19_v0, 0  ;;  %v149_v2 = vld [vmem:[%s212_s0] sm:$0xff]  }
   0x3   :  { %143 = vmatpush3.bf16.msra.mxu0 %v46_v1  ;;  %144 = vmatprep.mubr.msk.bf16.mxu0 %vm37_vm1, %v149_v2  ;;  %v130_v4 = vld [vmem:[%s213_s2] ss:$0 sm:$0xff] }
   0x6   :  { %145 = vmatmul.mubr.msk.bf16.vlgmr.msra.gmra.mrb[0].mxu0 %vm37_vm1, %v150_v3 }
  0xd9   :  { %v146_v5 = vpop.f32.mrb[0].mxu0 }
  0xda   :  { %v91_v6 = vadd.f32 %v146_v5, %v130_v4  ;;  %v82_v7 = vpop.f32.mrb[1].mxu0 }
  0xdb   :  { %v83_v8 = vadd.f32 %v130_v4, %v82_v7  ;;  %v147_v9 = vpop.f32.mrb[2].mxu0 }
  0xdc   :  { %v137_v10 = vmul.f32 -1.442695, %v91_v6  ;;  %v94_v11 = vadd.f32 %v147_v9, %v130_v4  ;;  %v85_v12 = vpop.f32.mrb[3].mxu0 }
  0xdd   :  { %v135_v13 = vmul.f32 -1.442695, %v83_v8  ;;  %v86_v14 = vadd.f32 %v130_v4, %v85_v12 }
  0xde   :  { %151 = vpow2.f32 %v137_v10  ;;  %v138_v15 = vmul.f32 -1.442695, %v94_v11 }
  0xdf   :  { %153 = vpow2.f32 %v135_v13  ;;  %v136_v16 = vmul.f32 -1.442695, %v86_v14 }
  0xe0   :  { %155 = vpow2.f32 %v138_v15 }
  0xe1   :  { %157 = vpow2.f32 %v136_v16 }
  0xe8   :  { %v152_v17 = vpop.eup %151 }
  0xe9   :  { %v154_v18 = vpop.eup %153  ;;  %v111_v19 = vadd.f32 1.0, %v152_v17 }
  0xea   :  { %v156_v20 = vpop.eup %155  ;;  %v109_v21 = vadd.f32 1.0, %v154_v18 }
  0xeb   :  { %v158_v22 = vpop.eup %157  ;;  %159 = vrcp.f32 %v111_v19  ;;  %v112_v23 = vadd.f32 1.0, %v156_v20 }
  0xec   :  { %161 = vrcp.f32 %v109_v21  ;;  %v110_v24 = vadd.f32 1.0, %v158_v22 }
  0xed   :  { %163 = vrcp.f32 %v112_v23 }
  0xee   :  { %165 = vrcp.f32 %v110_v24 }
  0xf5   :  { %v160_v25 = vpop.eup %159 }
  0xf6   :  { %v162_v26 = vpop.eup %161  ;;  %124 = vst.msk [vmem:[%s214_s3 + $0x10] sm:$0xff] %vm121_vm2, %v160_v25 }
  0xf7   :  { %v164_v27 = vpop.eup %163  ;;  %122 = vst.msk [vmem:[%s214_s3] sm:$0xff] %vm121_vm2, %v162_v26 }
  0xf8   :  { %v166_v28 = vpop.eup %165  ;;  %125 = vst.msk [vmem:[%s214_s3 + $0x18] sm:$0xff] %vm121_vm2, %v164_v27 }
  0xf9   :  { %123 = vst.msk [vmem:[%s214_s3 + $0x8] sm:$0xff] %vm121_vm2, %v166_v28 }

// kernel: cscm3_forward.8
= control target key start
LH: loop header
LB: loop body
LE: loop exit
PB: predicated region body
PF: predicated region fallthrough
CT: control target
= control target key end

     0   :  { %s4087_s12 = smov 0   ;;  %s4752_s0 = inlined_call_operand.vmem [shape: f32[2,18,18,16], index: 0, kind: input, shape index: {}]   ;;  %s4753_s1 = inlined_call_operand.vmem [shape: bf16[1,9,16,4], index: 1, kind: input, shape index: {}]   ;;  %s4754_s2 = inlined_call_operand.vmem [shape: f32[1,1,4], index: 2, kind: input, shape index: {}]   ;;  %s4755_s3 = inlined_call_operand.vmem [shape: f32[2,16,16,4], index: 3, kind: output, shape index: {}]  }
   0x1 LB: > { %s2951_s13 = sadd.s32 4294967295, %s4065_s12   ;;  %p2955_p0 = scmp.ge.s32.totalorder %s4065_s12, 1  ;;  %s4065_s12 = sphi %s4087_s12, %s13_s12  }
   0x2   : > { %p137_p1 = scmp.lt.s32.totalorder %s4065_s12, 3 }
   0x4   : > { %p138_p2 = pnand %p2955_p0, %p137_p1 }
   0x5   : > { %v4050_v0 = vld [vmem:[%s4753_s1 + $0x8] sm:$0xff] (!%p138_p2)   ;;  %p161_p3 = scmp.lt.s32.totalorder (!%p138_p2), %s2951_s13, 1  ;;  %v4101_v1 = vld [vmem:[%s4753_s1 + $0x20] sm:$0xff] (!%p138_p2)   ;;  %vm279_vm0 = vcmask (!%p138_p2), 130048   ;;  %v4054_v16 = vld [vmem:[%s4753_s1 + $0x30] sm:$0xff] (!%p138_p2)   ;;  %vm2863_vm1 = vcmask (!%p138_p2), 31744  }
   0x6   : > { %141 = sbr.rel (%p138_p2) target bundleno = 524 (0x20c), region = 32  ;;  %3477 = vmatprep.subr.bf16.mxu1 (!%p138_p2), %v4050_v0  ;;  %v4052_v2 = vld [vmem:[%s4753_s1] sm:$0xff] (!%p138_p2)   ;;  %3613 = vmatprep.subr.bf16.mxu0 (!%p138_p2), %v4101_v1  ;;  %v4053_v3 = vld [vmem:[%s4753_s1 + $0x28] sm:$0xff] (!%p138_p2)   ;;  %v4140_v17 = vld [vmem:[%s4753_s1 + $0x10] sm:$0xff] (!%p138_p2)  }
   0x7   : > { %3478 = vmatpush3.bf16.msra.mxu1 (!%p138_p2), %v4050_v0  ;;  %3614 = vmatpush3.bf16.msra.mxu0 (!%p138_p2), %v4101_v1  ;;  %v4216_v48 = vld [vmem:[%s4753_s1 + $0x38] sm:$0xff] (!%p138_p2)  }
   0x8   : > { %3511 = vmatprep.subr.bf16.mxu1 (!%p138_p2), %v4052_v2  ;;  %3647 = vmatprep.subr.bf16.mxu0 (!%p138_p2), %v4053_v3 }
   0xd   : > { %s4757_s13 = smov (!%p161_p3, %s2951_s13), 1 }
   0xe   : > { %s4041_s22 = smul.u32 432, %s4757_s13  ;;  %s3323_s11 = sshll.u32 %s4757_s13, 8 }
   0xf   : > { %s4648_s16 = scalar_lea.vmem %s4755_s3, %s3323_s11 }
  0x10   : > { %s4117_s25 = scalar_lea.vmem %s4752_s0, %s4041_s22 }
  0x11   : > { %v222_v4 = vld [vmem:[%s4117_s25 + $0x1] sm:$0xff]  ;;  %v223_v5 = vld [vmem:[%s4117_s25 + $0x9] sm:$0xff]  ;;  %v3065_v6 = vld [vmem:[%s4117_s25 + $0x19] sm:$0xff] }
  0x12   : > { %v254_v7 = vpack.c.bf16 %v223_v5, %v222_v4  ;;  %v3066_v8 = vld [vmem:[%s4117_s25 + $0x21] sm:$0xff]  ;;  %v3067_v9 = vld [vmem:[%s4117_s25 + $0x31] sm:$0xff]  ;;  %v3068_v10 = vld [vmem:[%s4117_s25 + $0x39] sm:$0xff] }
  0x13   : > { %v1333_v11 = vpack.c.bf16 %v3066_v8, %v3065_v6  ;;  %v4125_v12 = vpack.c.bf16 %v3068_v10, %v3067_v9  ;;  %v3069_v13 = vld [vmem:[%s4117_s25 + $0x49] sm:$0xff]  ;;  %v3070_v14 = vld [vmem:[%s4117_s25 + $0x51] sm:$0xff]  ;;  %v3071_v18 = vld [vmem:[%s4117_s25 + $0x61] sm:$0xff] }
  0x14   : > { %3479 = vmatprep.mubr.msk.bf16.mxu1 %vm279_vm0, %v254_v7  ;;  %v4130_v15 = vpack.c.bf16 %v3070_v14, %v3069_v13  ;;  %v3072_v19 = vld [vmem:[%s4117_s25 + $0x69] sm:$0xff]  ;;  %v3073_v20 = vld [vmem:[%s4117_s25 + $0x79] sm:$0xff]  ;;  %v3074_v21 = vld [vmem:[%s4117_s25 + $0x81] sm:$0xff] }
  0x15   : > { %3615 = vmatprep.mubr.msk.bf16.mxu0 %vm279_vm0, %v1333_v11  ;;  %3480 = vmatmul.mubr.msk.bf16.vlgmr.msra.gmra.mrb[0].mxu1 %vm279_vm0, %v1333_v11  ;;  %v4153_v22 = vpack.c.bf16 %v3072_v19, %v3071_v18  ;;  %v4155_v23 = vpack.c.bf16 %v3074_v21, %v3073_v20  ;;  %v3075_v24 = vld [vmem:[%s4117_s25 + $0x91] sm:$0xff]  ;;  %v3076_v25 = vld [vmem:[%s4117_s25 + $0x99] sm:$0xff]  ;;  %v3077_v26 = vld [vmem:[%s4117_s25 + $0xa9] sm:$0xff] }
  0x16   : > { %3512 = vmatpush3.bf16.msra.mxu1 %v4052_v2  ;;  %3616 = vmatmul.mubr.msk.bf16.vlgmr.msra.gmra.mrb[0].mxu0 %vm279_vm0, %v4125_v12  ;;  %v3078_v27 = vld [vmem:[%s4117_s25 + $0xb1] sm:$0xff]  ;;  %v4169_v28 = vpack.c.bf16 %v3076_v25, %v3075_v24  ;;  %v3079_v30 = vld [vmem:[%s4117_s25 + $0xc1] sm:$0xff]  ;;  %v3080_v31 = vld [vmem:[%s4117_s25 + $0xc9] sm:$0xff] }
  0x17   : > { %3648 = vmatpush3.bf16.msra.mxu0 %v4053_v3  ;;  %3483 = vmatprep.mubr.msk.bf16.mxu1 %vm279_vm0, %v4125_v12  ;;  %v4171_v29 = vpack.c.bf16 %v3078_v27, %v3077_v26  ;;  %v3116_v32 = vld [vmem:[%s4117_s25 + $0x1a] sm:$0xff]  ;;  %v3117_v33 = vld [vmem:[%s4117_s25 + $0x22] sm:$0xff]  ;;  %v4185_v34 = vpack.c.bf16 %v3080_v31, %v3079_v30  ;;  %v3118_v38 = vld [vmem:[%s4117_s25 + $0x32] sm:$0xff] }
  0x18   : > { %3619 = vmatprep.mubr.msk.bf16.mxu0 %vm279_vm0, %v4130_v15  ;;  %3681 = vmatprep.subr.bf16.mxu0 %v4054_v16  ;;  %v4187_v35 = vpack.c.bf16 %v3117_v33, %v3116_v32  ;;  %v240_v36 = vld [vmem:[%s4117_s25 + $0xd9] sm:$0xff]  ;;  %v241_v37 = vld [vmem:[%s4117_s25 + $0xe1] sm:$0xff]  ;;  %v242_v40 = vld [vmem:[%s4117_s25 + $0xf1] sm:$0xff] }
  0x19   : > { %3545 = vmatprep.subr.bf16.mxu1 %v4140_v17  ;;  %v3119_v39 = vld [vmem:[%s4117_s25 + $0x3a] sm:$0xff]  ;;  %v3120_v42 = vld [vmem:[%s4117_s25 + $0x4a] sm:$0xff]  ;;  %v3121_v43 = vld [vmem:[%s4117_s25 + $0x52] sm:$0xff]  ;;  %v4205_v44 = vpack.c.bf16 %v241_v37, %v240_v36 }
  0x1a   : > { %v243_v41 = vld [vmem:[%s4117_s25 + $0xf9] sm:$0xff]  ;;  %v4207_v45 = vpack.c.bf16 %v3119_v39, %v3118_v38  ;;  %v4211_v47 = vpack.c.bf16 %v3121_v43, %v3120_v42  ;;  %v244_v49 = vld [vmem:[%s4117_s25 + $0x109] sm:$0xff]  ;;  %v245_v50 = vld [vmem:[%s4117_s25 + $0x111] sm:$0xff] }
  0x1b   : > { %v4209_v46 = vpack.c.bf16 %v243_v41, %v242_v40  ;;  %v3122_v51 = vld [vmem:[%s4117_s25 + $0x62] sm:$0xff]  ;;  %v3123_v52 = vld [vmem:[%s4117_s25 + $0x6a] sm:$0xff]  ;;  %v3124_v55 = vld [vmem:[%s4117_s25 + $0x7a] sm:$0xff]  ;;  %v4235_v57 = vpack.c.bf16 %v245_v50, %v244_v49 }
  0x1c   : > { %v246_v53 = vld [vmem:[%s4117_s25 + $0x121] sm:$0xff]  ;;  %v247_v54 = vld [vmem:[%s4117_s25 + $0x129] sm:$0xff]  ;;  %v4237_v58 = vpack.c.bf16 %v3123_v52, %v3122_v51  ;;  %v248_v61 = vld [vmem:[%s4117_s25 + $0x139] sm:$0xff] }
  0x1d   : > { %3484 = vmatmul.mubr.msk.bf16.gmra.mrb[4].mxu1 %vm279_vm0, %v4130_v15  ;;  %v3125_v56 = vld [vmem:[%s4117_s25 + $0x82] sm:$0xff]  ;;  %v4239_v59 = vpack.c.bf16 %v247_v54, %v246_v53  ;;  %v3126_v63 = vld [vmem:[%s4117_s25 + $0x92] sm:$0xff]  ;;  %v3127_v0 = vld [vmem:[%s4117_s25 + $0x9a] sm:$0xff] }
  0x1e   : > { %3620 = vmatmul.mubr.msk.bf16.gmra.mrb[4].mxu0 %vm279_vm0, %v4153_v22  ;;  %3487 = vmatprep.mubr.msk.bf16.mxu1 %vm279_vm0, %v4153_v22  ;;  %v4241_v60 = vpack.c.bf16 %v3125_v56, %v3124_v55  ;;  %v249_v62 = vld [vmem:[%s4117_s25 + $0x141] sm:$0xff]  ;;  %v250_v2 = vld [vmem:[%s4117_s25 + $0x151] sm:$0xff]  ;;  %v251_v3 = vld [vmem:[%s4117_s25 + $0x159] sm:$0xff]  ;;  %v4261_v7 = vpack.c.bf16 %v3127_v0, %v3126_v63 }
  0x1f   : > { %3623 = vmatprep.mubr.msk.bf16.mxu0 %vm279_vm0, %v4155_v23  ;;  %v3128_v4 = vld [vmem:[%s4117_s25 + $0xaa] sm:$0xff]  ;;  %v3129_v5 = vld [vmem:[%s4117_s25 + $0xb2] sm:$0xff]  ;;  %v4259_v6 = vpack.c.bf16 %v249_v62, %v248_v61  ;;  %v4263_v8 = vpack.c.bf16 %v251_v3, %v250_v2  ;;  %v3130_v13 = vld [vmem:[%s4117_s25 + $0xc2] sm:$0xff] }
  0x20   : > { %v4265_v9 = vpack.c.bf16 %v3129_v5, %v3128_v4  ;;  %v252_v10 = vld [vmem:[%s4117_s25 + $0x169] sm:$0xff]  ;;  %v253_v11 = vld [vmem:[%s4117_s25 + $0x171] sm:$0xff]  ;;  %v3132_v19 = vld [vmem:[%s4117_s25 + $0xda] sm:$0xff] }
  0x21   : > { %v3131_v14 = vld [vmem:[%s4117_s25 + $0xca] sm:$0xff]  ;;  %v3133_v20 = vld [vmem:[%s4117_s25 + $0xe2] sm:$0xff]  ;;  %v4283_v21 = vpack.c.bf16 %v253_v11, %v252_v10  ;;  %v174_v27 = vld [vmem:[%s4117_s25 + $0x18] sm:$0xff] }
  0x22   : > { %v173_v18 = vld [vmem:[%s4117_s25 + $0x8] sm:$0xff]  ;;  %v4285_v24 = vpack.c.bf16 %v3131_v14, %v3130_v13  ;;  %v4287_v26 = vpack.c.bf16 %v3133_v20, %v3132_v19  ;;  %v175_v30 = vld [vmem:[%s4117_s25 + $0x20] sm:$0xff]  ;;  %v3134_v31 = vld [vmem:[%s4117_s25 + $0xf2] sm:$0xff] }
  0x23   : > { %v3135_v32 = vld [vmem:[%s4117_s25 + $0xfa] sm:$0xff]  ;;  %v176_v33 = vld [vmem:[%s4117_s25 + $0x30] sm:$0xff]  ;;  %v4304_v39 = vpack.c.bf16 %v175_v30, %v174_v27  ;;  %v178_v49 = vld [vmem:[%s4117_s25 + $0x48] sm:$0xff] }
  0x24   : > { %v177_v36 = vld [vmem:[%s4117_s25 + $0x38] sm:$0xff]  ;;  %v3136_v37 = vld [vmem:[%s4117_s25 + $0x10a] sm:$0xff]  ;;  %v4306_v40 = vpack.c.bf16 %v3135_v32, %v3134_v31  ;;  %v3138_v51 = vld [vmem:[%s4117_s25 + $0x122] sm:$0xff] }
  0x25   : > { %3488 = vmatmul.mubr.msk.bf16.gmra.mrb[8].mxu1 %vm279_vm0, %v4155_v23  ;;  %v3137_v38 = vld [vmem:[%s4117_s25 + $0x112] sm:$0xff]  ;;  %v4308_v41 = vpack.c.bf16 %v177_v36, %v176_v33  ;;  %v3139_v52 = vld [vmem:[%s4117_s25 + $0x12a] sm:$0xff]  ;;  %v180_v53 = vld [vmem:[%s4117_s25 + $0x60] sm:$0xff] }
  0x26   : > { %3624 = vmatmul.mubr.msk.bf16.gmra.mrb[8].mxu0 %vm279_vm0, %v4169_v28  ;;  %3491 = vmatprep.mubr.msk.bf16.mxu1 %vm279_vm0, %v4169_v28  ;;  %v4310_v42 = vpack.c.bf16 %v3137_v38, %v3136_v37  ;;  %v4315_v43 = vld [vmem:[%s4753_s1 + $0x18] sm:$0xff]   ;;  %v179_v50 = vld [vmem:[%s4117_s25 + $0x50] sm:$0xff]  ;;  %v181_v54 = vld [vmem:[%s4117_s25 + $0x68] sm:$0xff]  ;;  %v4337_v61 = vpack.c.bf16 %v3139_v52, %v3138_v51 }
  0x27   : > { %3627 = vmatprep.mubr.msk.bf16.mxu0 %vm279_vm0, %v4171_v29  ;;  %v3141_v55 = vld [vmem:[%s4117_s25 + $0x142] sm:$0xff]  ;;  %v4335_v56 = vpack.c.bf16 %v179_v50, %v178_v49  ;;  %v4339_v62 = vpack.c.bf16 %v181_v54, %v180_v53  ;;  %v182_v0 = vld [vmem:[%s4117_s25 + $0x78] sm:$0xff]  ;;  %v184_v5 = vld [vmem:[%s4117_s25 + $0x90] sm:$0xff] }
  0x28   : > { %v183_v2 = vld [vmem:[%s4117_s25 + $0x80] sm:$0xff]  ;;  %v3142_v3 = vld [vmem:[%s4117_s25 + $0x152] sm:$0xff]  ;;  %v3144_v11 = vld [vmem:[%s4117_s25 + $0x16a] sm:$0xff] }
  0x29   : > { %v3143_v4 = vld [vmem:[%s4117_s25 + $0x15a] sm:$0xff]  ;;  %v3145_v13 = vld [vmem:[%s4117_s25 + $0x172] sm:$0xff]  ;;  %v4359_v14 = vpack.c.bf16 %v183_v2, %v182_v0  ;;  %v186_v20 = vld [vmem:[%s4117_s25 + $0xa8] sm:$0xff] }
  0x2a   : > { %v185_v10 = vld [vmem:[%s4117_s25 + $0x98] sm:$0xff]  ;;  %v4365_v19 = vpack.c.bf16 %v3145_v13, %v3144_v11  ;;  %v3146_v27 = vld [vmem:[%s4117_s25 + $0x182] sm:$0xff]  ;;  %v3147_v30 = vld [vmem:[%s4117_s25 + $0x18a] sm:$0xff] }
  0x2b   : > { %v188_v31 = vld [vmem:[%s4117_s25 + $0xc0] sm:$0xff]  ;;  %v189_v32 = vld [vmem:[%s4117_s25 + $0xc8] sm:$0xff]  ;;  %v4383_v36 = vpack.c.bf16 %v3147_v30, %v3146_v27  ;;  %v190_v38 = vld [vmem:[%s4117_s25 + $0xd8] sm:$0xff] }
  0x2c   : > { %v4385_v37 = vpack.c.bf16 %v189_v32, %v188_v31  ;;  %v191_v49 = vld [vmem:[%s4117_s25 + $0xe0] sm:$0xff]  ;;  %v192_v50 = vld [vmem:[%s4117_s25 + $0xf0] sm:$0xff]  ;;  %v193_v51 = vld [vmem:[%s4117_s25 + $0xf8] sm:$0xff] }
  0x2d   : > { %3492 = vmatmul.mubr.msk.bf16.gmra.mrb[12].mxu1 %vm279_vm0, %v4171_v29  ;;  %v4399_v52 = vpack.c.bf16 %v191_v49, %v190_v38  ;;  %v4401_v53 = vpack.c.bf16 %v193_v51, %v192_v50  ;;  %v4406_v54 = vld [vmem:[%s4753_s1 + $0x40] sm:$0xff]   ;;  %v197_v2 = vld [vmem:[%s4117_s25 + $0x128] sm:$0xff]  ;;  %v201_v11 = vld [vmem:[%s4117_s25 + $0x158] sm:$0xff] }
  0x2e   : > { %3628 = vmatmul.mubr.msk.bf16.gmra.mrb[12].mxu0 %vm279_vm0, %v4185_v34  ;;  %3495 = vmatprep.mubr.msk.bf16.mxu1 %vm279_vm0, %v4185_v34  ;;  %v196_v0 = vld [vmem:[%s4117_s25 + $0x120] sm:$0xff]  ;;  %v203_v27 = vld [vmem:[%s4117_s25 + $0x170] sm:$0xff]  ;;  %v3197_v50 = vld [vmem:[%s4117_s25 + $0x198] sm:$0xff] }
  0x2f   : > { %3649 = vmatprep.mubr.msk.bf16.mxu0 %vm279_vm0, %v4187_v35  ;;  %v704_v30 = vld [vmem:[%s4117_s25 + $0x2] sm:$0xff]  ;;  %v705_v31 = vld [vmem:[%s4117_s25 + $0xa] sm:$0xff] }
  0x30   : > { %v736_v38 = vpack.c.bf16 %v705_v31, %v704_v30  ;;  %v3198_v51 = vld [vmem:[%s4117_s25 + $0x1a0] sm:$0xff] }
  0x35   : > { %3496 = vmatmul.mubr.msk.bf16.gmra.mrb[16].mxu1 %vm279_vm0, %v4205_v44 }
  0x36   : > { %3650 = vmatmul.mubr.msk.bf16.vlgmr.msra.gmra.mrb[0].mxu0 %vm279_vm0, %v4207_v45  ;;  %3499 = vmatprep.mubr.msk.bf16.mxu1 %vm279_vm0, %v4209_v46 }
  0x37   : > { %3682 = vmatpush3.bf16.msra.mxu0 %v4054_v16  ;;  %3653 = vmatprep.mubr.msk.bf16.mxu0 %vm279_vm0, %v4211_v47  ;;  %v172_v16 = vld [vmem:[%s4117_s25] sm:$0xff] }
  0x38   : > { %3715 = vmatprep.subr.bf16.mxu0 %v4216_v48  ;;  %v204_v25 = vpack.c.bf16 %v173_v18, %v172_v16  ;;  %v4361_v16 = vpack.c.bf16 %v3143_v4, %v3142_v3  ;;  %v4363_v18 = vpack.c.bf16 %v185_v10, %v184_v5  ;;  %v4424_v4 = vpack.c.bf16 %v197_v2, %v196_v0  ;;  %v199_v5 = vld [vmem:[%s4117_s25 + $0x140] sm:$0xff]  ;;  %v200_v10 = vld [vmem:[%s4117_s25 + $0x150] sm:$0xff] }
  0x3d   : > { %3500 = vmatmul.mubr.msk.bf16.gmra.mrb[20].mxu1 %vm279_vm0, %v4235_v57 }
  0x3e   : > { %3654 = vmatmul.mubr.msk.bf16.gmra.mrb[4].mxu0 %vm279_vm0, %v4237_v58  ;;  %3503 = vmatprep.mubr.msk.bf16.mxu1 %vm279_vm0, %v4239_v59 }
  0x3f   : > { %3657 = vmatprep.mubr.msk.bf16.mxu0 %vm279_vm0, %v4241_v60 }
  0x45   : > { %3504 = vmatmul.mubr.msk.bf16.gmra.mrb[24].mxu1 %vm279_vm0, %v4259_v6 }
  0x46   : > { %3658 = vmatmul.mubr.msk.bf16.gmra.mrb[8].mxu0 %vm279_vm0, %v4261_v7  ;;  %3507 = vmatprep.mubr.msk.bf16.mxu1 %vm279_vm0, %v4263_v8 }
  0x47   : > { %3661 = vmatprep.mubr.msk.bf16.mxu0 %vm279_vm0, %v4265_v9 }
  0x4d   : > { %3508 = vmatmul.mubr.msk.bf16.gmra.mrb[28].mxu1 %vm279_vm0, %v4283_v21 }
  0x4e   : > { %3662 = vmatmul.mubr.msk.bf16.gmra.mrb[12].mxu0 %vm279_vm0, %v4285_v24  ;;  %3513 = vmatprep.mubr.msk.bf16.mxu1 %vm279_vm0, %v204_v25  ;;  %v187_v25 = vld [vmem:[%s4117_s25 + $0xb0] sm:$0xff] }
  0x4f   : > { %3665 = vmatprep.mubr.msk.bf16.mxu0 %vm279_vm0, %v4287_v26  ;;  %v4381_v33 = vpack.c.bf16 %v187_v25, %v186_v20  ;;  %v4440_v20 = vpack.c.bf16 %v201_v11, %v200_v10  ;;  %v202_v25 = vld [vmem:[%s4117_s25 + $0x168] sm:$0xff] }
  0x50   : > { %v4454_v32 = vpack.c.bf16 %v203_v27, %v202_v25 }
  0x55   : > { %3514 = vmatmul.mubr.msk.bf16.vlgmr.msra.gmra.mrb[0].mxu1 %vm279_vm0, %v4304_v39 }
  0x56   : > { %3546 = vmatpush3.bf16.msra.mxu1 %v4140_v17  ;;  %3666 = vmatmul.mubr.msk.bf16.gmra.mrb[16].mxu0 %vm279_vm0, %v4306_v40  ;;  %v3140_v17 = vld [vmem:[%s4117_s25 + $0x13a] sm:$0xff] }
  0x57   : > { %3517 = vmatprep.mubr.msk.bf16.mxu1 %vm279_vm0, %v4308_v41  ;;  %3669 = vmatprep.mubr.msk.bf16.mxu0 %vm279_vm0, %v4310_v42  ;;  %v4341_v63 = vpack.c.bf16 %v3141_v55, %v3140_v17  ;;  %v194_v17 = vld [vmem:[%s4117_s25 + $0x108] sm:$0xff]  ;;  %v195_v55 = vld [vmem:[%s4117_s25 + $0x110] sm:$0xff] }
  0x58   : > { %3579 = vmatprep.subr.bf16.mxu1 %v4315_v43  ;;  %v4422_v3 = vpack.c.bf16 %v195_v55, %v194_v17  ;;  %v1945_v17 = vpack.c.bf16 %v3198_v51, %v3197_v50 }
  0x5d   : > { %3518 = vmatmul.mubr.msk.bf16.gmra.mrb[4].mxu1 %vm279_vm0, %v4335_v56 }
  0x5e   : > { %3670 = vmatmul.mubr.msk.bf16.gmra.mrb[20].mxu0 %vm279_vm0, %v4337_v61  ;;  %3521 = vmatprep.mubr.msk.bf16.mxu1 %vm279_vm0, %v4339_v62 }
  0x5f   : > { %3673 = vmatprep.mubr.msk.bf16.mxu0 %vm279_vm0, %v4341_v63 }
  0x65   : > { %3522 = vmatmul.mubr.msk.bf16.gmra.mrb[8].mxu1 %vm279_vm0, %v4359_v14 }
  0x66   : > { %3674 = vmatmul.mubr.msk.bf16.gmra.mrb[24].mxu0 %vm279_vm0, %v4361_v16  ;;  %3525 = vmatprep.mubr.msk.bf16.mxu1 %vm279_vm0, %v4363_v18 }
  0x67   : > { %3677 = vmatprep.mubr.msk.bf16.mxu0 %vm279_vm0, %v4365_v19 }
  0x6d   : > { %3526 = vmatmul.mubr.msk.bf16.gmra.mrb[12].mxu1 %vm279_vm0, %v4381_v33 }
  0x6e   : > { %3678 = vmatmul.mubr.msk.bf16.gmra.mrb[28].mxu0 %vm279_vm0, %v4383_v36  ;;  %3529 = vmatprep.mubr.msk.bf16.mxu1 %vm279_vm0, %v4385_v37 }
  0x6f   : > { %3683 = vmatprep.mubr.msk.bf16.mxu0 %vm279_vm0, %v4308_v41 }
  0x75   : > { %3530 = vmatmul.mubr.msk.bf16.gmra.mrb[16].mxu1 %vm279_vm0, %v4399_v52 }
  0x76   : > { %3684 = vmatmul.mubr.msk.bf16.vlgmr.msra.gmra.mrb[0].mxu0 %vm279_vm0, %v4335_v56  ;;  %3533 = vmatprep.mubr.msk.bf16.mxu1 %vm279_vm0, %v4401_v53 }
  0x77   : > { %3716 = vmatpush3.bf16.msra.mxu0 %v4216_v48  ;;  %3687 = vmatprep.mubr.msk.bf16.mxu0 %vm279_vm0, %v4339_v62  ;;  %v198_v48 = vld [vmem:[%s4117_s25 + $0x138] sm:$0xff] }
  0x78   : > { %3749 = vmatprep.subr.bf16.mxu0 %v4406_v54  ;;  %v4438_v13 = vpack.c.bf16 %v199_v5, %v198_v48 }
  0x7d   : > { %3534 = vmatmul.mubr.msk.bf16.gmra.mrb[20].mxu1 %vm279_vm0, %v4422_v3 }
  0x7e   : > { %3688 = vmatmul.mubr.msk.bf16.gmra.mrb[4].mxu0 %vm279_vm0, %v4359_v14  ;;  %3537 = vmatprep.mubr.msk.bf16.mxu1 %vm279_vm0, %v4424_v4 }
  0x7f   : > { %3691 = vmatprep.mubr.msk.bf16.mxu0 %vm279_vm0, %v4363_v18 }
  0x85   : > { %3538 = vmatmul.mubr.msk.bf16.gmra.mrb[24].mxu1 %vm279_vm0, %v4438_v13 }
  0x86   : > { %3692 = vmatmul.mubr.msk.bf16.gmra.mrb[8].mxu0 %vm279_vm0, %v4381_v33  ;;  %3541 = vmatprep.mubr.msk.bf16.mxu1 %vm279_vm0, %v4440_v20 }
  0x87   : > { %3695 = vmatprep.mubr.msk.bf16.mxu0 %vm279_vm0, %v4385_v37 }
  0x8d   : > { %3542 = vmatmul.mubr.msk.bf16.gmra.mrb[28].mxu1 %vm279_vm0, %v4454_v32 }
  0x8e   : > { %3696 = vmatmul.mubr.msk.bf16.gmra.mrb[12].mxu0 %vm279_vm0, %v4399_v52  ;;  %3547 = vmatprep.mubr.msk.bf16.mxu1 %vm279_vm0, %v736_v38 }
  0x8f   : > { %3699 = vmatprep.mubr.msk.bf16.mxu0 %vm279_vm0, %v4401_v53 }
  0x95   : > { %3548 = vmatmul.mubr.msk.bf16.vlgmr.msra.gmra.mrb[0].mxu1 %vm279_vm0, %v4187_v35  ;;  %v3195_v35 = vld [vmem:[%s4117_s25 + $0x180] sm:$0xff] }
  0x96   : > { %3580 = vmatpush3.bf16.msra.mxu1 %v4315_v43  ;;  %3700 = vmatmul.mubr.msk.bf16.gmra.mrb[16].mxu0 %vm279_vm0, %v4422_v3  ;;  %v3196_v43 = vld [vmem:[%s4117_s25 + $0x188] sm:$0xff] }
  0x97   : > { %3551 = vmatprep.mubr.msk.bf16.mxu1 %vm279_vm0, %v4207_v45  ;;  %3703 = vmatprep.mubr.msk.bf16.mxu0 %vm279_vm0, %v4424_v4  ;;  %v4483_v49 = vpack.c.bf16 %v3196_v43, %v3195_v35 }
  0x98   : > { %3783 = vmatprep.subr.bf16.mxu1 %v4101_v1 }
  0x9d   : > { %3552 = vmatmul.mubr.msk.bf16.gmra.mrb[4].mxu1 %vm279_vm0, %v4211_v47 }
  0x9e   : > { %3704 = vmatmul.mubr.msk.bf16.gmra.mrb[20].mxu0 %vm279_vm0, %v4438_v13  ;;  %3555 = vmatprep.mubr.msk.bf16.mxu1 %vm279_vm0, %v4237_v58 }
  0x9f   : > { %3707 = vmatprep.mubr.msk.bf16.mxu0 %vm279_vm0, %v4440_v20 }
  0xa5   : > { %3556 = vmatmul.mubr.msk.bf16.gmra.mrb[8].mxu1 %vm279_vm0, %v4241_v60 }
  0xa6   : > { %3708 = vmatmul.mubr.msk.bf16.gmra.mrb[24].mxu0 %vm279_vm0, %v4454_v32  ;;  %3559 = vmatprep.mubr.msk.bf16.mxu1 %vm279_vm0, %v4261_v7 }
  0xa7   : > { %3711 = vmatprep.mubr.msk.bf16.mxu0 %vm279_vm0, %v4483_v49 }
  0xad   : > { %3560 = vmatmul.mubr.msk.bf16.gmra.mrb[12].mxu1 %vm279_vm0, %v4265_v9 }
  0xae   : > { %3712 = vmatmul.mubr.msk.bf16.gmra.mrb[28].mxu0 %vm279_vm0, %v1945_v17  ;;  %3563 = vmatprep.mubr.msk.bf16.mxu1 %vm279_vm0, %v4285_v24 }
  0xaf   : > { %3717 = vmatprep.mubr.msk.bf16.mxu0 %vm279_vm0, %v4125_v12  ;;  %v3247_v12 = vld [vmem:[%s4117_s25 + $0x189] sm:$0xff] }
  0xb5   : > { %3564 = vmatmul.mubr.msk.bf16.gmra.mrb[16].mxu1 %vm279_vm0, %v4287_v26 }
  0xb6   : > { %3718 = vmatmul.mubr.msk.bf16.vlgmr.msra.gmra.mrb[0].mxu0 %vm279_vm0, %v4130_v15  ;;  %3567 = vmatprep.mubr.msk.bf16.mxu1 %vm279_vm0, %v4306_v40 }
  0xb7   : > { %3750 = vmatpush3.bf16.msra.mxu0 %v4406_v54  ;;  %3721 = vmatprep.mubr.msk.bf16.mxu0 %vm279_vm0, %v4153_v22  ;;  %v3248_v22 = vld [vmem:[%s4117_s25 + $0x199] sm:$0xff] }
  0xbd   : > { %3568 = vmatmul.mubr.msk.bf16.gmra.mrb[20].mxu1 %vm279_vm0, %v4310_v42 }
  0xbe   : > { %3722 = vmatmul.mubr.msk.bf16.gmra.mrb[4].mxu0 %vm279_vm0, %v4155_v23  ;;  %3571 = vmatprep.mubr.msk.bf16.mxu1 %vm279_vm0, %v4337_v61  ;;  %v3249_v23 = vld [vmem:[%s4117_s25 + $0x1a1] sm:$0xff] }
  0xbf   : > { %3725 = vmatprep.mubr.msk.bf16.mxu0 %vm279_vm0, %v4169_v28  ;;  %v2243_v28 = vpack.c.bf16 %v3249_v23, %v3248_v22 }
  0xc5   : > { %3572 = vmatmul.mubr.msk.bf16.gmra.mrb[24].mxu1 %vm279_vm0, %v4341_v63 }
  0xc6   : > { %3726 = vmatmul.mubr.msk.bf16.gmra.mrb[8].mxu0 %vm279_vm0, %v4171_v29  ;;  %3575 = vmatprep.mubr.msk.bf16.mxu1 %vm279_vm0, %v4361_v16  ;;  %v3299_v29 = vld [vmem:[%s4117_s25 + $0x19a] sm:$0xff] }
  0xc7   : > { %3729 = vmatprep.mubr.msk.bf16.mxu0 %vm279_vm0, %v4185_v34  ;;  %v3300_v34 = vld [vmem:[%s4117_s25 + $0x1a2] sm:$0xff] }
  0xcd   : > { %3576 = vmatmul.mubr.msk.bf16.gmra.mrb[28].mxu1 %vm279_vm0, %v4365_v19 }
  0xce   : > { %3730 = vmatmul.mubr.msk.bf16.gmra.mrb[12].mxu0 %vm279_vm0, %v4205_v44  ;;  %3581 = vmatprep.mubr.msk.bf16.mxu1 %vm279_vm0, %v4304_v39 }
  0xcf   : > { %3733 = vmatprep.mubr.msk.bf16.mxu0 %vm279_vm0, %v4209_v46 }
  0xd5   : > { %3582 = vmatmul.mubr.msk.bf16.vlgmr.msra.gmra.mrb[0].mxu1 %vm279_vm0, %v4308_v41 }
  0xd6   : > { %3784 = vmatpush3.bf16.msra.mxu1 %v4101_v1  ;;  %3734 = vmatmul.mubr.msk.bf16.gmra.mrb[16].mxu0 %vm279_vm0, %v4235_v57  ;;  %v3246_v1 = vld [vmem:[%s4117_s25 + $0x181] sm:$0xff] }
  0xd7   : > { %3585 = vmatprep.mubr.msk.bf16.mxu1 %vm279_vm0, %v4335_v56  ;;  %3737 = vmatprep.mubr.msk.bf16.mxu0 %vm279_vm0, %v4239_v59  ;;  %v2242_v15 = vpack.c.bf16 %v3247_v12, %v3246_v1 }
  0xdd   : > { %3586 = vmatmul.mubr.msk.bf16.gmra.mrb[4].mxu1 %vm279_vm0, %v4339_v62 }
  0xde   : > { %3738 = vmatmul.mubr.msk.bf16.gmra.mrb[20].mxu0 %vm279_vm0, %v4259_v6  ;;  %3589 = vmatprep.mubr.msk.bf16.mxu1 %vm279_vm0, %v4359_v14 }
  0xdf   : > { %3741 = vmatprep.mubr.msk.bf16.mxu0 %vm279_vm0, %v4263_v8 }
  0xe5   : > { %3590 = vmatmul.mubr.msk.bf16.gmra.mrb[8].mxu1 %vm279_vm0, %v4363_v18 }
  0xe6   : > { %3742 = vmatmul.mubr.msk.bf16.gmra.mrb[24].mxu0 %vm279_vm0, %v4283_v21  ;;  %3593 = vmatprep.mubr.msk.bf16.mxu1 %vm279_vm0, %v4381_v33 }
  0xe7   : > { %3745 = vmatprep.mubr.msk.bf16.mxu0 %vm279_vm0, %v2242_v15 }
  0xed   : > { %3594 = vmatmul.mubr.msk.bf16.gmra.mrb[12].mxu1 %vm279_vm0, %v4385_v37 }
  0xee   : > { %3746 = vmatmul.mubr.msk.bf16.gmra.mrb[28].mxu0 %vm279_vm0, %v2243_v28  ;;  %3597 = vmatprep.mubr.msk.bf16.mxu1 %vm279_vm0, %v4399_v52 }
  0xef   : > { %3751 = vmatprep.mubr.msk.bf16.mxu0 %vm279_vm0, %v4207_v45 }
  0xf5   : > { %3598 = vmatmul.mubr.msk.bf16.gmra.mrb[16].mxu1 %vm279_vm0, %v4401_v53 }
  0xf6   : > { %3752 = vmatmul.mubr.msk.bf16.vlgmr.msra.gmra.mrb[0].mxu0 %vm279_vm0, %v4211_v47  ;;  %3601 = vmatprep.mubr.msk.bf16.mxu1 %vm279_vm0, %v4422_v3 }
  0xf7   : > { %3755 = vmatprep.mubr.msk.bf16.mxu0 %vm279_vm0, %v4237_v58 }
  0xfd   : > { %3602 = vmatmul.mubr.msk.bf16.gmra.mrb[20].mxu1 %vm279_vm0, %v4424_v4 }
  0xfe   : > { %3756 = vmatmul.mubr.msk.bf16.gmra.mrb[4].mxu0 %vm279_vm0, %v4241_v60  ;;  %3605 = vmatprep.mubr.msk.bf16.mxu1 %vm279_vm0, %v4438_v13 }
  0xff   : > { %3759 = vmatprep.mubr.msk.bf16.mxu0 %vm279_vm0, %v4261_v7 }
 0x105   : > { %3606 = vmatmul.mubr.msk.bf16.gmra.mrb[24].mxu1 %vm279_vm0, %v4440_v20 }
 0x106   : > { %3760 = vmatmul.mubr.msk.bf16.gmra.mrb[8].mxu0 %vm279_vm0, %v4265_v9  ;;  %3609 = vmatprep.mubr.msk.bf16.mxu1 %vm279_vm0, %v4454_v32 }
 0x107   : > { %3763 = vmatprep.mubr.msk.bf16.mxu0 %vm279_vm0, %v4285_v24 }
 0x10d   : > { %3610 = vmatmul.mubr.msk.bf16.gmra.mrb[28].mxu1 %vm279_vm0, %v4483_v49 }
 0x10e   : > { %3764 = vmatmul.mubr.msk.bf16.gmra.mrb[12].mxu0 %vm279_vm0, %v4287_v26  ;;  %3631 = vmatprep.mubr.msk.bf16.mxu1 %vm279_vm0, %v4205_v44  ;;  %v2541_v44 = vpack.c.bf16 %v3300_v34, %v3299_v29 }
 0x10f   : > { %3767 = vmatprep.mubr.msk.bf16.mxu0 %vm279_vm0, %v4306_v40 }
 0x115   : > { %3632 = vmatmul.mubr.msk.bf16.vlgmr.msra.gmra.mrb[16].mxu1 %vm279_vm0, %v4209_v46 }
 0x116   : > { %3768 = vmatmul.mubr.msk.bf16.gmra.mrb[16].mxu0 %vm279_vm0, %v4310_v42  ;;  %3635 = vmatprep.mubr.msk.bf16.mxu1 %vm279_vm0, %v4235_v57  ;;  %v4641_v42 = vld [vmem:[%s4754_s2] ss:$0 sm:$0xff] }
 0x117   : > { %3771 = vmatprep.mubr.msk.bf16.mxu0 %vm279_vm0, %v4337_v61 }
 0x11d   : > { %3636 = vmatmul.mubr.msk.bf16.gmra.mrb[20].mxu1 %vm279_vm0, %v4239_v59 }
 0x11e   : > { %3772 = vmatmul.mubr.msk.bf16.gmra.mrb[20].mxu0 %vm279_vm0, %v4341_v63  ;;  %3639 = vmatprep.mubr.msk.bf16.mxu1 %vm279_vm0, %v4259_v6 }
 0x11f   : > { %3775 = vmatprep.mubr.msk.bf16.mxu0 %vm279_vm0, %v4361_v16 }
 0x125   : > { %3640 = vmatmul.mubr.msk.bf16.gmra.mrb[24].mxu1 %vm279_vm0, %v4263_v8 }
 0x126   : > { %3776 = vmatmul.mubr.msk.bf16.gmra.mrb[24].mxu0 %vm279_vm0, %v4365_v19  ;;  %3643 = vmatprep.mubr.msk.bf16.mxu1 %vm279_vm0, %v4283_v21 }
 0x127   : > { %3779 = vmatprep.mubr.msk.bf16.mxu0 %vm279_vm0, %v4383_v36 }
 0x12d   : > { %3644 = vmatmul.mubr.msk.bf16.gmra.mrb[28].mxu1 %vm279_vm0, %v2242_v15 }
 0x12e   : > { %3780 = vmatmul.mubr.msk.bf16.gmra.mrb[28].mxu0 %vm279_vm0, %v2541_v44 }
 0x1a8   : > { %v3583_v45 = vpop.f32.mrb[0].mxu1 }
 0x1a9   : > { %v1142_v46 = vpop.f32.mrb[1].mxu1 }
 0x1aa   : > { %v3584_v47 = vpop.f32.mrb[2].mxu1 }
 0x1ab   : > { %v1145_v57 = vpop.f32.mrb[3].mxu1 }
 0x1b0   : > { %v3587_v58 = vpop.f32.mrb[4].mxu1 }
 0x1b1   : > { %v1158_v59 = vpop.f32.mrb[5].mxu1 }
 0x1b2   : > { %v3588_v60 = vpop.f32.mrb[6].mxu1 }
 0x1b3   : > { %v1161_v6 = vpop.f32.mrb[7].mxu1 }
 0x1b8   : > { %v3591_v7 = vpop.f32.mrb[8].mxu1 }
 0x1b9   : > { %v1174_v8 = vpop.f32.mrb[9].mxu1 }
 0x1ba   : > { %v3592_v9 = vpop.f32.mrb[10].mxu1 }
 0x1bb   : > { %v1177_v21 = vpop.f32.mrb[11].mxu1 }
 0x1c0   : > { %v4630_v24 = vpop.f32.mrb[12].mxu1 }
 0x1c1   : > { %v4632_v26 = vpop.f32.mrb[13].mxu1 }
 0x1c2   : > { %v4634_v39 = vpop.f32.mrb[14].mxu1 }
 0x1c3   : > { %v4636_v40 = vpop.f32.mrb[15].mxu1 }
 0x1c9   : > { %v3753_v41 = vpop.f32.mrb[0].mxu0 }
 0x1ca   : > { %v3785_v56 = vadd.f32 %v3753_v41, %v3583_v45  ;;  %v2633_v61 = vpop.f32.mrb[1].mxu0 }
 0x1cb   : > { %v3786_v62 = vadd.f32 %v2633_v61, %v1142_v46  ;;  %v3754_v63 = vpop.f32.mrb[2].mxu0 }
 0x1cc   : > { %v2801_v14 = vadd.f32 %v3785_v56, %v4641_v42  ;;  %v3787_v16 = vadd.f32 %v3754_v63, %v3584_v47  ;;  %v2636_v18 = vpop.f32.mrb[3].mxu0 }
 0x1cd   : > { %v2799_v19 = vadd.f32 %v3786_v62, %v4641_v42  ;;  %v3788_v33 = vadd.f32 %v2636_v18, %v1145_v57 }
 0x1ce   : > { %v2833_v36 = vmax.f32 %v2801_v14, 0.0  ;;  %v2802_v37 = vadd.f32 %v3787_v16, %v4641_v42 }
 0x1cf   : > { %v2831_v52 = vmax.f32 %v2799_v19, 0.0  ;;  %v2800_v53 = vadd.f32 %v3788_v33, %v4641_v42 }
 0x1d0   : > { %2866 = vst.msk [vmem:[%s4648_s16 + $0x10] sm:$0xff] %vm2863_vm1, %v2833_v36  ;;  %v2834_v54 = vmax.f32 %v2802_v37, 0.0 }
 0x1d1   : > { %2864 = vst.msk [vmem:[%s4648_s16] sm:$0xff] %vm2863_vm1, %v2831_v52  ;;  %v2832_v55 = vmax.f32 %v2800_v53, 0.0  ;;  %v3757_v0 = vpop.f32.mrb[4].mxu0 }
 0x1d2   : > { %2867 = vst.msk [vmem:[%s4648_s16 + $0x18] sm:$0xff] %vm2863_vm1, %v2834_v54  ;;  %v3789_v2 = vadd.f32 %v3757_v0, %v3587_v58  ;;  %v2649_v3 = vpop.f32.mrb[5].mxu0 }
 0x1d3   : > { %2865 = vst.msk [vmem:[%s4648_s16 + $0x8] sm:$0xff] %vm2863_vm1, %v2832_v55  ;;  %v3790_v4 = vadd.f32 %v2649_v3, %v1158_v59  ;;  %v3758_v48 = vpop.f32.mrb[6].mxu0 }
 0x1d4   : > { %v2805_v5 = vadd.f32 %v3789_v2, %v4641_v42  ;;  %v3791_v10 = vadd.f32 %v3758_v48, %v3588_v60  ;;  %v2652_v11 = vpop.f32.mrb[7].mxu0 }
 0x1d5   : > { %v2803_v13 = vadd.f32 %v3790_v4, %v4641_v42  ;;  %v3792_v20 = vadd.f32 %v2652_v11, %v1161_v6 }
 0x1d6   : > { %v2837_v25 = vmax.f32 %v2805_v5, 0.0  ;;  %v2806_v27 = vadd.f32 %v3791_v10, %v4641_v42 }
 0x1d7   : > { %v2835_v30 = vmax.f32 %v2803_v13, 0.0  ;;  %v2804_v31 = vadd.f32 %v3792_v20, %v4641_v42 }
 0x1d8   : > { %2870 = vst.msk [vmem:[%s4648_s16 + $0x30] sm:$0xff] %vm2863_vm1, %v2837_v25  ;;  %v2838_v32 = vmax.f32 %v2806_v27, 0.0 }
 0x1d9   : > { %2868 = vst.msk [vmem:[%s4648_s16 + $0x20] sm:$0xff] %vm2863_vm1, %v2835_v30  ;;  %v2836_v38 = vmax.f32 %v2804_v31, 0.0  ;;  %v3761_v35 = vpop.f32.mrb[8].mxu0 }
 0x1da   : > { %2871 = vst.msk [vmem:[%s4648_s16 + $0x38] sm:$0xff] %vm2863_vm1, %v2838_v32  ;;  %v3793_v43 = vadd.f32 %v3761_v35, %v3591_v7  ;;  %v2665_v49 = vpop.f32.mrb[9].mxu0 }
 0x1db   : > { %2869 = vst.msk [vmem:[%s4648_s16 + $0x28] sm:$0xff] %vm2863_vm1, %v2836_v38  ;;  %v3794_v50 = vadd.f32 %v2665_v49, %v1174_v8  ;;  %v3762_v51 = vpop.f32.mrb[10].mxu0 }
 0x1dc   : > { %v2809_v17 = vadd.f32 %v3793_v43, %v4641_v42  ;;  %v3795_v1 = vadd.f32 %v3762_v51, %v3592_v9  ;;  %v2668_v12 = vpop.f32.mrb[11].mxu0 }
 0x1dd   : > { %v2807_v15 = vadd.f32 %v3794_v50, %v4641_v42  ;;  %v3796_v22 = vadd.f32 %v2668_v12, %v1177_v21 }
 0x1de   : > { %v2841_v23 = vmax.f32 %v2809_v17, 0.0  ;;  %v2810_v28 = vadd.f32 %v3795_v1, %v4641_v42 }
 0x1df   : > { %v2839_v29 = vmax.f32 %v2807_v15, 0.0  ;;  %v2808_v34 = vadd.f32 %v3796_v22, %v4641_v42 }
 0x1e0   : > { %2874 = vst.msk [vmem:[%s4648_s16 + $0x50] sm:$0xff] %vm2863_vm1, %v2841_v23  ;;  %v2842_v44 = vmax.f32 %v2810_v28, 0.0 }
 0x1e1   : > { %2872 = vst.msk [vmem:[%s4648_s16 + $0x40] sm:$0xff] %vm2863_vm1, %v2839_v29  ;;  %v2840_v45 = vmax.f32 %v2808_v34, 0.0  ;;  %v3765_v46 = vpop.f32.mrb[12].mxu0 }
 0x1e2   : > { %2875 = vst.msk [vmem:[%s4648_s16 + $0x58] sm:$0xff] %vm2863_vm1, %v2842_v44  ;;  %v3797_v47 = vadd.f32 %v3765_v46, %v4630_v24  ;;  %v2681_v57 = vpop.f32.mrb[13].mxu0 }
 0x1e3   : > { %2873 = vst.msk [vmem:[%s4648_s16 + $0x48] sm:$0xff] %vm2863_vm1, %v2840_v45  ;;  %v3798_v58 = vadd.f32 %v2681_v57, %v4632_v26  ;;  %v3766_v59 = vpop.f32.mrb[14].mxu0 }
 0x1e4   : > { %v2813_v60 = vadd.f32 %v3797_v47, %v4641_v42  ;;  %v3799_v6 = vadd.f32 %v3766_v59, %v4634_v39  ;;  %v2684_v7 = vpop.f32.mrb[15].mxu0 }
 0x1e5   : > { %v2811_v8 = vadd.f32 %v3798_v58, %v4641_v42  ;;  %v3800_v9 = vadd.f32 %v2684_v7, %v4636_v40 }
 0x1e6   : > { %v2845_v21 = vmax.f32 %v2813_v60, 0.0  ;;  %v2814_v24 = vadd.f32 %v3799_v6, %v4641_v42 }
 0x1e7   : > { %v2843_v41 = vmax.f32 %v2811_v8, 0.0  ;;  %v2812_v56 = vadd.f32 %v3800_v9, %v4641_v42 }
 0x1e8   : > { %2878 = vst.msk [vmem:[%s4648_s16 + $0x70] sm:$0xff] %vm2863_vm1, %v2845_v21  ;;  %v2846_v26 = vmax.f32 %v2814_v24, 0.0  ;;  %v3633_v61 = vpop.f32.mrb[16].mxu1 }
 0x1e9   : > { %2876 = vst.msk [vmem:[%s4648_s16 + $0x60] sm:$0xff] %vm2863_vm1, %v2843_v41  ;;  %v2844_v62 = vmax.f32 %v2812_v56, 0.0  ;;  %v3769_v39 = vpop.f32.mrb[16].mxu0  ;;  %v1504_v63 = vpop.f32.mrb[17].mxu1 }
 0x1ea   : > { %2879 = vst.msk [vmem:[%s4648_s16 + $0x78] sm:$0xff] %vm2863_vm1, %v2846_v26  ;;  %v3801_v14 = vadd.f32 %v3769_v39, %v3633_v61  ;;  %v2697_v40 = vpop.f32.mrb[17].mxu0  ;;  %v3634_v16 = vpop.f32.mrb[18].mxu1 }
 0x1eb   : > { %2877 = vst.msk [vmem:[%s4648_s16 + $0x68] sm:$0xff] %vm2863_vm1, %v2844_v62  ;;  %v3802_v18 = vadd.f32 %v2697_v40, %v1504_v63  ;;  %v3770_v19 = vpop.f32.mrb[18].mxu0  ;;  %v1507_v33 = vpop.f32.mrb[19].mxu1 }
 0x1ec   : > { %v2817_v36 = vadd.f32 %v3801_v14, %v4641_v42  ;;  %v3803_v37 = vadd.f32 %v3770_v19, %v3634_v16  ;;  %v2700_v52 = vpop.f32.mrb[19].mxu0 }
 0x1ed   : > { %v2815_v53 = vadd.f32 %v3802_v18, %v4641_v42  ;;  %v3804_v54 = vadd.f32 %v2700_v52, %v1507_v33 }
 0x1ee   : > { %v2849_v55 = vmax.f32 %v2817_v36, 0.0  ;;  %v2818_v0 = vadd.f32 %v3803_v37, %v4641_v42 }
 0x1ef   : > { %v2847_v2 = vmax.f32 %v2815_v53, 0.0  ;;  %v2816_v3 = vadd.f32 %v3804_v54, %v4641_v42 }
 0x1f0   : > { %2882 = vst.msk [vmem:[%s4648_s16 + $0x90] sm:$0xff] %vm2863_vm1, %v2849_v55  ;;  %v2850_v4 = vmax.f32 %v2818_v0, 0.0  ;;  %v3637_v48 = vpop.f32.mrb[20].mxu1 }
 0x1f1   : > { %2880 = vst.msk [vmem:[%s4648_s16 + $0x80] sm:$0xff] %vm2863_vm1, %v2847_v2  ;;  %v2848_v5 = vmax.f32 %v2816_v3, 0.0  ;;  %v3773_v10 = vpop.f32.mrb[20].mxu0  ;;  %v1520_v11 = vpop.f32.mrb[21].mxu1 }
 0x1f2   : > { %2883 = vst.msk [vmem:[%s4648_s16 + $0x98] sm:$0xff] %vm2863_vm1, %v2850_v4  ;;  %v3805_v13 = vadd.f32 %v3773_v10, %v3637_v48  ;;  %v2713_v20 = vpop.f32.mrb[21].mxu0  ;;  %v3638_v25 = vpop.f32.mrb[22].mxu1 }
 0x1f3   : > { %2881 = vst.msk [vmem:[%s4648_s16 + $0x88] sm:$0xff] %vm2863_vm1, %v2848_v5  ;;  %v3806_v27 = vadd.f32 %v2713_v20, %v1520_v11  ;;  %v3774_v30 = vpop.f32.mrb[22].mxu0  ;;  %v1523_v31 = vpop.f32.mrb[23].mxu1 }
 0x1f4   : > { %v2821_v32 = vadd.f32 %v3805_v13, %v4641_v42  ;;  %v3807_v38 = vadd.f32 %v3774_v30, %v3638_v25  ;;  %v2716_v35 = vpop.f32.mrb[23].mxu0 }
 0x1f5   : > { %v2819_v43 = vadd.f32 %v3806_v27, %v4641_v42  ;;  %v3808_v49 = vadd.f32 %v2716_v35, %v1523_v31 }
 0x1f6   : > { %v2853_v50 = vmax.f32 %v2821_v32, 0.0  ;;  %v2822_v51 = vadd.f32 %v3807_v38, %v4641_v42 }
 0x1f7   : > { %v2851_v17 = vmax.f32 %v2819_v43, 0.0  ;;  %v2820_v1 = vadd.f32 %v3808_v49, %v4641_v42 }
 0x1f8   : > { %2886 = vst.msk [vmem:[%s4648_s16 + $0xb0] sm:$0xff] %vm2863_vm1, %v2853_v50  ;;  %v2854_v12 = vmax.f32 %v2822_v51, 0.0  ;;  %v3641_v15 = vpop.f32.mrb[24].mxu1 }
 0x1f9   : > { %2884 = vst.msk [vmem:[%s4648_s16 + $0xa0] sm:$0xff] %vm2863_vm1, %v2851_v17  ;;  %v2852_v22 = vmax.f32 %v2820_v1, 0.0  ;;  %v3777_v23 = vpop.f32.mrb[24].mxu0  ;;  %v1536_v28 = vpop.f32.mrb[25].mxu1 }
 0x1fa   : > { %2887 = vst.msk [vmem:[%s4648_s16 + $0xb8] sm:$0xff] %vm2863_vm1, %v2854_v12  ;;  %v3809_v29 = vadd.f32 %v3777_v23, %v3641_v15  ;;  %v2729_v34 = vpop.f32.mrb[25].mxu0  ;;  %v3642_v44 = vpop.f32.mrb[26].mxu1 }
 0x1fb   : > { %2885 = vst.msk [vmem:[%s4648_s16 + $0xa8] sm:$0xff] %vm2863_vm1, %v2852_v22  ;;  %v3810_v45 = vadd.f32 %v2729_v34, %v1536_v28  ;;  %v3778_v46 = vpop.f32.mrb[26].mxu0  ;;  %v1539_v47 = vpop.f32.mrb[27].mxu1 }
 0x1fc   : > { %v2825_v57 = vadd.f32 %v3809_v29, %v4641_v42  ;;  %v3811_v58 = vadd.f32 %v3778_v46, %v3642_v44  ;;  %v2732_v59 = vpop.f32.mrb[27].mxu0 }
 0x1fd   : > { %v2823_v60 = vadd.f32 %v3810_v45, %v4641_v42  ;;  %v3812_v6 = vadd.f32 %v2732_v59, %v1539_v47 }
 0x1fe   : > { %v2857_v7 = vmax.f32 %v2825_v57, 0.0  ;;  %v2826_v8 = vadd.f32 %v3811_v58, %v4641_v42 }
 0x1ff   : > { %v2855_v9 = vmax.f32 %v2823_v60, 0.0  ;;  %v2824_v21 = vadd.f32 %v3812_v6, %v4641_v42 }
 0x200   : > { %2890 = vst.msk [vmem:[%s4648_s16 + $0xd0] sm:$0xff] %vm2863_vm1, %v2857_v7  ;;  %v2858_v24 = vmax.f32 %v2826_v8, 0.0  ;;  %v3645_v41 = vpop.f32.mrb[28].mxu1 }
 0x201   : > { %2888 = vst.msk [vmem:[%s4648_s16 + $0xc0] sm:$0xff] %vm2863_vm1, %v2855_v9  ;;  %v2856_v56 = vmax.f32 %v2824_v21, 0.0  ;;  %v3781_v26 = vpop.f32.mrb[28].mxu0  ;;  %v1552_v61 = vpop.f32.mrb[29].mxu1 }
 0x202   : > { %2891 = vst.msk [vmem:[%s4648_s16 + $0xd8] sm:$0xff] %vm2863_vm1, %v2858_v24  ;;  %v3813_v62 = vadd.f32 %v3781_v26, %v3645_v41  ;;  %v2745_v39 = vpop.f32.mrb[29].mxu0  ;;  %v3646_v63 = vpop.f32.mrb[30].mxu1 }
 0x203   : > { %2889 = vst.msk [vmem:[%s4648_s16 + $0xc8] sm:$0xff] %vm2863_vm1, %v2856_v56  ;;  %v3814_v14 = vadd.f32 %v2745_v39, %v1552_v61  ;;  %v3782_v40 = vpop.f32.mrb[30].mxu0  ;;  %v1555_v16 = vpop.f32.mrb[31].mxu1 }
 0x204   : > { %v2829_v18 = vadd.f32 %v3813_v62, %v4641_v42  ;;  %v3815_v19 = vadd.f32 %v3782_v40, %v3646_v63  ;;  %v2748_v33 = vpop.f32.mrb[31].mxu0 }
 0x205   : > { %v2827_v36 = vadd.f32 %v3814_v14, %v4641_v42  ;;  %v3816_v37 = vadd.f32 %v2748_v33, %v1555_v16 }
 0x206   : > { %v2861_v52 = vmax.f32 %v2829_v18, 0.0  ;;  %v2830_v53 = vadd.f32 %v3815_v19, %v4641_v42 }
 0x207   : > { %v2859_v54 = vmax.f32 %v2827_v36, 0.0  ;;  %v2828_v55 = vadd.f32 %v3816_v37, %v4641_v42 }
 0x208   : > { %2894 = vst.msk [vmem:[%s4648_s16 + $0xf0] sm:$0xff] %vm2863_vm1, %v2861_v52  ;;  %v2862_v0 = vmax.f32 %v2830_v53, 0.0 }
 0x209   : > { %2892 = vst.msk [vmem:[%s4648_s16 + $0xe0] sm:$0xff] %vm2863_vm1, %v2859_v54  ;;  %v2860_v2 = vmax.f32 %v2828_v55, 0.0 }
 0x20a   : > { %2895 = vst.msk [vmem:[%s4648_s16 + $0xf8] sm:$0xff] %vm2863_vm1, %v2862_v0 }
 0x20b   : > { %2893 = vst.msk [vmem:[%s4648_s16 + $0xe8] sm:$0xff] %vm2863_vm1, %v2860_v2 }
 0x20c PF: > { %s13_s12 = sadd.s32 1, %s4065_s12  }
 0x20d   : > { %p10_p4 = scmp.ge.s32.totalorder %s13_s12, 4  }
 0x20f   :  { %12 = sbr.rel (!%p10_p4) target bundleno = 1 (0x1), region = 72 }

// kernel: cscm3_forward.13
= control target key start
LH: loop header
LB: loop body
LE: loop exit
PB: predicated region body
PF: predicated region fallthrough
CT: control target
= control target key end

     0   :  { %s1057_s18 = smov 0   ;;  %s1538_s0 = inlined_call_operand.vmem [shape: f32[2,16,16,4], index: 0, kind: input, shape index: {}]   ;;  %s1539_s1 = inlined_call_operand.vmem [shape: f32[2,16,1,4], index: 1, kind: input, shape index: {}]   ;;  %s1540_s2 = inlined_call_operand.vmem [shape: f32[2,1,16,4], index: 2, kind: input, shape index: {}]   ;;  %s1541_s3 = inlined_call_operand.vmem [shape: f32[2,16,16,1], index: 3, kind: input, shape index: {}]   ;;  %s1542_s4 = inlined_call_operand.vmem [shape: f32[2,16,16,4], index: 4, kind: input, shape index: {}]   ;;  %s1543_s5 = inlined_call_operand.vmem [shape: f32[2,16,16,4], index: 5, kind: output, shape index: {}]  }
   0x1 LB: > { %s968_s19 = sadd.s32 4294967295, %s1024_s18   ;;  %p972_p0 = scmp.ge.s32.totalorder %s1024_s18, 1  ;;  %s1024_s18 = sphi %s1057_s18, %s15_s18  }
   0x2   : > { %p226_p1 = scmp.lt.s32.totalorder %s1024_s18, 3 }
   0x4   : > { %p227_p2 = pnand %p972_p0, %p226_p1 }
   0x6   : > { %230 = sbr.rel (%p227_p2) target bundleno = 214 (0xd6), region = 40 }
   0xd   : > { %p273_p3 = scmp.lt.s32.totalorder %s968_s19, 1  ;;  %v1026_v0 = vmov 0   ;;  %vm832_vm0 = vcmask 31744  }
   0xe   : > { %1017 = vset.pattern.permute.xlu1 %v1026_v0  ;;  %1016 = vset.pattern.permute.xlu0 %v1026_v0 }
   0xf   : > { %s1572_s19 = smov (!%p273_p3, %s968_s19), 1 }
  0x10   : > { %s1065_s20 = sshll.u32 %s1572_s19, 8  ;;  %s975_s24 = sshll.u32 %s1572_s19, 4 }
  0x11   : > { %s1071_s23 = scalar_lea.vmem %s1541_s3, %s1065_s20  ;;  %s1082_s27 = scalar_lea.vmem %s1539_s1, %s975_s24 }
  0x12   : > { %v514_v1 = vld [vmem:[%s1071_s23 + $0x10] sm:$0xff]  ;;  %v512_v2 = vld [vmem:[%s1071_s23] sm:$0xff]  ;;  %v515_v3 = vld [vmem:[%s1071_s23 + $0x18] sm:$0xff]  ;;  %s286_s30 = scalar_lea.vmem %s1540_s2, %s975_s24  ;;  %s1091_s8 = scalar_lea.vmem %s1538_s0, %s1065_s20 }
  0x13   : > { %556 = vperm.xlu1 %1017, %v514_v1   ;;  %546 = vperm.xlu0 %1016, %v512_v2   ;;  %v513_v4 = vld [vmem:[%s1071_s23 + $0x8] sm:$0xff]  ;;  %v516_v6 = vld [vmem:[%s1071_s23 + $0x20] sm:$0xff]  ;;  %v519_v7 = vld [vmem:[%s1071_s23 + $0x38] sm:$0xff]  ;;  %s1367_s11 = scalar_lea.vmem %s1542_s4, %s1065_s20  ;;  %s1379_s14 = scalar_lea.vmem %s1543_s5, %s1065_s20 }
  0x14   : > { %v517_v5 = vld [vmem:[%s1071_s23 + $0x28] sm:$0xff]  ;;  %v518_v8 = vld [vmem:[%s1071_s23 + $0x30] sm:$0xff]  ;;  %v985_v9 = vld [vmem:[%s1082_s27 + $0x1] ss:$0 sm:$0xff] }
  0x15   : > { %v1096_v10 = vld [vmem:[%s286_s30] sm:$0xff]  ;;  %v1099_v11 = vld [vmem:[%s1091_s8 + $0x10] sm:$0xff]  ;;  %v521_v15 = vld [vmem:[%s1071_s23 + $0x48] sm:$0xff] }
  0x16   : > { %v448_v12 = vmul.f32 %v985_v9, %v1099_v11  ;;  %v984_v13 = vld [vmem:[%s1082_s27] ss:$0 sm:$0xff]  ;;  %v1108_v17 = vld [vmem:[%s286_s30 + $0x8] sm:$0xff]  ;;  %v1111_v18 = vld [vmem:[%s1091_s8 + $0x18] sm:$0xff] }
  0x17   : > { %561 = vperm.xlu1 %1017, %v515_v3   ;;  %551 = vperm.xlu0 %1016, %v513_v4   ;;  %v1104_v14 = vld [vmem:[%s1091_s8] sm:$0xff]  ;;  %v449_v21 = vmul.f32 %v985_v9, %v1111_v18  ;;  %v1119_v22 = vld [vmem:[%s1091_s8 + $0x8] sm:$0xff]  ;;  %v523_v27 = vld [vmem:[%s1071_s23 + $0x58] sm:$0xff] }
  0x18   : > { %v446_v16 = vmul.f32 %v984_v13, %v1104_v14  ;;  %v520_v19 = vld [vmem:[%s1071_s23 + $0x40] sm:$0xff]  ;;  %v1115_v20 = vmul.f32 %v1096_v10, %v448_v12  ;;  %v447_v25 = vmul.f32 %v984_v13, %v1119_v22  ;;  %v1127_v26 = vld [vmem:[%s1091_s8 + $0x28] sm:$0xff]  ;;  %v522_v32 = vld [vmem:[%s1071_s23 + $0x50] sm:$0xff] }
  0x19   : > { %v986_v23 = vld [vmem:[%s1082_s27 + $0x2] ss:$0 sm:$0xff]  ;;  %v1131_v28 = vmul.f32 %v1108_v17, %v449_v21  ;;  %v987_v31 = vld [vmem:[%s1082_s27 + $0x3] ss:$0 sm:$0xff]  ;;  %v1144_v35 = vld [vmem:[%s1091_s8 + $0x38] sm:$0xff] }
  0x1a   : > { %v1123_v24 = vmul.f32 %v1096_v10, %v446_v16  ;;  %v451_v29 = vmul.f32 %v986_v23, %v1127_v26  ;;  %v1135_v30 = vld [vmem:[%s1091_s8 + $0x20] sm:$0xff]  ;;  %v1140_v33 = vmul.f32 %v1108_v17, %v447_v25  ;;  %v1147_v36 = vld [vmem:[%s1091_s8 + $0x30] sm:$0xff]  ;;  %v453_v38 = vmul.f32 %v987_v31, %v1144_v35  ;;  %v1156_v41 = vld [vmem:[%s1091_s8 + $0x48] sm:$0xff] }
  0x1b   : > { %571 = vperm.xlu1 %1017, %v517_v5   ;;  %566 = vperm.xlu0 %1016, %v516_v6   ;;  %v450_v34 = vmul.f32 %v986_v23, %v1135_v30  ;;  %v452_v39 = vmul.f32 %v987_v31, %v1147_v36  ;;  %v988_v40 = vld [vmem:[%s1082_s27 + $0x4] ss:$0 sm:$0xff]  ;;  %v989_v46 = vld [vmem:[%s1082_s27 + $0x5] ss:$0 sm:$0xff]  ;;  %v1168_v47 = vld [vmem:[%s1091_s8 + $0x58] sm:$0xff] }
  0x1c   : > { %v1150_v37 = vmul.f32 %v1108_v17, %v451_v29  ;;  %v1159_v42 = vld [vmem:[%s1091_s8 + $0x40] sm:$0xff]  ;;  %v455_v44 = vmul.f32 %v988_v40, %v1156_v41  ;;  %v1171_v48 = vmul.f32 %v1108_v17, %v453_v38  ;;  %v457_v50 = vmul.f32 %v989_v46, %v1168_v47  ;;  %v1178_v51 = vld [vmem:[%s1091_s8 + $0x50] sm:$0xff]  ;;  %v525_v52 = vld [vmem:[%s1071_s23 + $0x68] sm:$0xff] }
  0x1d   : > { %v1162_v43 = vmul.f32 %v1096_v10, %v450_v34  ;;  %v454_v45 = vmul.f32 %v988_v40, %v1159_v42  ;;  %v1174_v49 = vmul.f32 %v1096_v10, %v452_v39  ;;  %v524_v53 = vld [vmem:[%s1071_s23 + $0x60] sm:$0xff]  ;;  %v456_v56 = vmul.f32 %v989_v46, %v1178_v51  ;;  %v1194_v59 = vld [vmem:[%s1091_s8 + $0x68] sm:$0xff]  ;;  %v527_v0 = vld [vmem:[%s1071_s23 + $0x78] sm:$0xff] }
  0x1e   : > { %v1183_v54 = vmul.f32 %v1108_v17, %v455_v44  ;;  %v1190_v57 = vmul.f32 %v1108_v17, %v457_v50  ;;  %v990_v58 = vld [vmem:[%s1082_s27 + $0x6] ss:$0 sm:$0xff]  ;;  %v526_v1 = vld [vmem:[%s1071_s23 + $0x70] sm:$0xff]  ;;  %v991_v4 = vld [vmem:[%s1082_s27 + $0x7] ss:$0 sm:$0xff] }
  0x1f   : > { %581 = vperm.xlu1 %1017, %v519_v7   ;;  %576 = vperm.xlu0 %1016, %v518_v8   ;;  %v1186_v55 = vmul.f32 %v1096_v10, %v454_v45  ;;  %v1197_v60 = vld [vmem:[%s1091_s8 + $0x60] sm:$0xff]  ;;  %v1200_v61 = vmul.f32 %v1096_v10, %v456_v56  ;;  %v459_v62 = vmul.f32 %v990_v58, %v1194_v59  ;;  %v1214_v5 = vld [vmem:[%s1091_s8 + $0x78] sm:$0xff]  ;;  %v1217_v6 = vld [vmem:[%s1091_s8 + $0x70] sm:$0xff] }
  0x20   : > { %v458_v63 = vmul.f32 %v990_v58, %v1197_v60  ;;  %v461_v7 = vmul.f32 %v991_v4, %v1214_v5  ;;  %v460_v8 = vmul.f32 %v991_v4, %v1217_v6  ;;  %v529_v9 = vld [vmem:[%s1071_s23 + $0x88] sm:$0xff]  ;;  %v528_v12 = vld [vmem:[%s1071_s23 + $0x80] sm:$0xff]  ;;  %v530_v29 = vld [vmem:[%s1071_s23 + $0x90] sm:$0xff] }
  0x21   : > { %v1207_v2 = vmul.f32 %v1108_v17, %v459_v62  ;;  %v992_v16 = vld [vmem:[%s1082_s27 + $0x8] ss:$0 sm:$0xff]  ;;  %v1234_v21 = vld [vmem:[%s1091_s8 + $0x80] sm:$0xff]  ;;  %v993_v34 = vld [vmem:[%s1082_s27 + $0x9] ss:$0 sm:$0xff] }
  0x22   : > { %v1210_v3 = vmul.f32 %v1096_v10, %v458_v63  ;;  %v1224_v13 = vmul.f32 %v1108_v17, %v461_v7  ;;  %v462_v25 = vmul.f32 %v992_v16, %v1234_v21  ;;  %v1248_v38 = vld [vmem:[%s1091_s8 + $0x98] sm:$0xff]  ;;  %v1251_v39 = vld [vmem:[%s1091_s8 + $0x90] sm:$0xff]  ;;  %v533_v45 = vld [vmem:[%s1071_s23 + $0xa8] sm:$0xff] }
  0x23   : > { %591 = vperm.xlu1 %1017, %v521_v15   ;;  %586 = vperm.xlu0 %1016, %v520_v19   ;;  %v1227_v15 = vmul.f32 %v1096_v10, %v460_v8  ;;  %v1231_v19 = vld [vmem:[%s1091_s8 + $0x88] sm:$0xff]  ;;  %v465_v40 = vmul.f32 %v993_v34, %v1248_v38  ;;  %v464_v44 = vmul.f32 %v993_v34, %v1251_v39  ;;  %v532_v46 = vld [vmem:[%s1071_s23 + $0xa0] sm:$0xff] }
  0x24   : > { %v463_v23 = vmul.f32 %v992_v16, %v1231_v19  ;;  %v1265_v56 = vld [vmem:[%s1091_s8 + $0xa8] sm:$0xff]  ;;  %v1268_v58 = vld [vmem:[%s1091_s8 + $0xa0] sm:$0xff] }
  0x25   : > { %v1258_v50 = vmul.f32 %v1108_v17, %v465_v40  ;;  %v995_v8 = vld [vmem:[%s1082_s27 + $0xb] ss:$0 sm:$0xff]  ;;  %v996_v40 = vld [vmem:[%s1082_s27 + $0xc] ss:$0 sm:$0xff] }
  0x26   : > { %v1241_v31 = vmul.f32 %v1108_v17, %v463_v23 }
  0x27   : > { %601 = vperm.xlu1 %1017, %v523_v27   ;;  %596 = vperm.xlu0 %1016, %v522_v32   ;;  %v531_v27 = vld [vmem:[%s1071_s23 + $0x98] sm:$0xff]  ;;  %v1244_v32 = vmul.f32 %v1096_v10, %v462_v25  ;;  %v537_v25 = vld [vmem:[%s1071_s23 + $0xc8] sm:$0xff] }
  0x2b   : > { %611 = vperm.xlu1 %1017, %v525_v52   ;;  %606 = vperm.xlu0 %1016, %v524_v53   ;;  %v1261_v52 = vmul.f32 %v1096_v10, %v464_v44  ;;  %v994_v53 = vld [vmem:[%s1082_s27 + $0xa] ss:$0 sm:$0xff] }
  0x2c   : > { %v467_v62 = vmul.f32 %v994_v53, %v1265_v56  ;;  %v466_v63 = vmul.f32 %v994_v53, %v1268_v58  ;;  %v1299_v44 = vld [vmem:[%s1091_s8 + $0xc8] sm:$0xff] }
  0x2d   : > { %1549 = vst [vmem:[#allocation2_spill] sm:$0xff] %v1299_v44 }
  0x2e   : > { %v1275_v4 = vmul.f32 %v1108_v17, %v467_v62  ;;  %v1278_v7 = vmul.f32 %v1096_v10, %v466_v63  ;;  %v539_v62 = vld [vmem:[%s1071_s23 + $0xd8] sm:$0xff]  ;;  %v538_v63 = vld [vmem:[%s1071_s23 + $0xd0] sm:$0xff] }
  0x2f   : > { %621 = vperm.xlu1 %1017, %v527_v0   ;;  %616 = vperm.xlu0 %1016, %v526_v1   ;;  %v535_v0 = vld [vmem:[%s1071_s23 + $0xb8] sm:$0xff]  ;;  %v534_v1 = vld [vmem:[%s1071_s23 + $0xb0] sm:$0xff] }
  0x33   : > { %631 = vperm.xlu1 %1017, %v529_v9   ;;  %626 = vperm.xlu0 %1016, %v528_v12   ;;  %v1282_v9 = vld [vmem:[%s1091_s8 + $0xb8] sm:$0xff]  ;;  %v1285_v12 = vld [vmem:[%s1091_s8 + $0xb0] sm:$0xff] }
  0x34   : > { %v469_v16 = vmul.f32 %v995_v8, %v1282_v9  ;;  %v468_v23 = vmul.f32 %v995_v8, %v1285_v12  ;;  %v997_v8 = vld [vmem:[%s1082_s27 + $0xd] ss:$0 sm:$0xff] }
  0x36   : > { %v1295_v34 = vmul.f32 %v1096_v10, %v468_v23  ;;  %v1319_v23 = vld [vmem:[%s1091_s8 + $0xd0] sm:$0xff] }
  0x37   : > { %641 = vperm.xlu1 %1017, %v531_v27   ;;  %636 = vperm.xlu0 %1016, %v530_v29   ;;  %v536_v27 = vld [vmem:[%s1071_s23 + $0xc0] sm:$0xff]  ;;  %v1292_v29 = vmul.f32 %v1108_v17, %v469_v16  ;;  %v1316_v16 = vld [vmem:[%s1091_s8 + $0xd8] sm:$0xff]  ;;  %1554 = vst [vmem:[#allocation7_spill] sm:$0xff] %v1319_v23 }
  0x38   : > { %1553 = vst [vmem:[#allocation6_spill] sm:$0xff] %v1316_v16 }
  0x3b   : > { %651 = vperm.xlu1 %1017, %v533_v45   ;;  %646 = vperm.xlu0 %1016, %v532_v46   ;;  %v1302_v45 = vld [vmem:[%s1091_s8 + $0xc0] sm:$0xff]  ;;  %v471_v46 = vmul.f32 %v996_v40, %v1299_v44  ;;  %v1353_v44 = vld [vmem:[%s1091_s8 + $0xf0] sm:$0xff] }
  0x3c   : > { %1550 = vst [vmem:[#allocation3_spill] sm:$0xff] %v1302_v45  ;;  %v470_v53 = vmul.f32 %v996_v40, %v1302_v45  ;;  %v541_v40 = vld [vmem:[%s1071_s23 + $0xe8] sm:$0xff] }
  0x3d   : > { %v1333_v45 = vld [vmem:[%s1091_s8 + $0xe8] sm:$0xff] }
  0x3e   : > { %1557 = vst [vmem:[#allocation10_spill] sm:$0xff] %v1333_v45 }
  0x3f   : > { %661 = vperm.xlu1 %1017, %v535_v0   ;;  %656 = vperm.xlu0 %1016, %v534_v1   ;;  %v1309_v0 = vmul.f32 %v1108_v17, %v471_v46  ;;  %v1312_v1 = vmul.f32 %v1096_v10, %v470_v53  ;;  %v540_v46 = vld [vmem:[%s1071_s23 + $0xe0] sm:$0xff] }
  0x41   : > { %1551 = vst [vmem:[#allocation4_spill] sm:$0xff] %v1309_v0  ;;  %1552 = vst [vmem:[#allocation5_spill] sm:$0xff] %v1312_v1  ;;  %v998_v0 = vld [vmem:[%s1082_s27 + $0xe] ss:$0 sm:$0xff] }
  0x43   : > { %671 = vperm.xlu1 %1017, %v537_v25   ;;  %666 = vperm.xlu0 %1016, %v536_v27   ;;  %v473_v25 = vmul.f32 %v997_v8, %v1316_v16  ;;  %v472_v27 = vmul.f32 %v997_v8, %v1319_v23  ;;  %v1336_v16 = vld [vmem:[%s1091_s8 + $0xe0] sm:$0xff]  ;;  %v475_v8 = vmul.f32 %v998_v0, %v1333_v45  ;;  %v542_v23 = vld [vmem:[%s1071_s23 + $0xf0] sm:$0xff] }
  0x45   : > { %v1326_v53 = vmul.f32 %v1108_v17, %v473_v25  ;;  %v1329_v1 = vmul.f32 %v1096_v10, %v472_v27  ;;  %v1343_v25 = vmul.f32 %v1108_v17, %v475_v8 }
  0x47   : > { %681 = vperm.xlu1 %1017, %v539_v62   ;;  %676 = vperm.xlu0 %1016, %v538_v63   ;;  %1555 = vst [vmem:[#allocation8_spill] sm:$0xff] %v1326_v53  ;;  %1556 = vst [vmem:[#allocation9_spill] sm:$0xff] %v1329_v1  ;;  %v474_v62 = vmul.f32 %v998_v0, %v1336_v16  ;;  %v543_v63 = vld [vmem:[%s1071_s23 + $0xf8] sm:$0xff]  ;;  %v999_v1 = vld [vmem:[%s1082_s27 + $0xf] ss:$0 sm:$0xff] }
  0x48   : > { %v1350_v53 = vld [vmem:[%s1091_s8 + $0xf8] sm:$0xff]  ;;  %v476_v0 = vmul.f32 %v999_v1, %v1353_v44 }
  0x49   : > { %v1346_v27 = vmul.f32 %v1096_v10, %v474_v62  ;;  %v477_v45 = vmul.f32 %v999_v1, %v1350_v53 }
  0x4b   : > { %691 = vperm.xlu1 %1017, %v541_v40   ;;  %686 = vperm.xlu0 %1016, %v540_v46   ;;  %v1358_v40 = vmul.f32 %v1108_v17, %v477_v45  ;;  %v1361_v46 = vmul.f32 %v1096_v10, %v476_v0  ;;  %v770_v17 = vld [vmem:[%s1367_s11 + $0x10] sm:$0xff]  ;;  %v768_v45 = vld [vmem:[%s1367_s11] sm:$0xff] }
  0x4d   : > { %1558 = vst [vmem:[#allocation11_spill] sm:$0xff] %v1358_v40  ;;  %1559 = vst [vmem:[#allocation12_spill] sm:$0xff] %v1361_v46 }
  0x4f   : > { %701 = vperm.xlu1 %1017, %v543_v63   ;;  %696 = vperm.xlu0 %1016, %v542_v23  }
  0x92   : > { %v557_v8 = vpop.permute.xlu1 %556  ;;  %v547_v62 = vpop.permute.xlu0 %546 }
  0x93   : > { %v706_v1 = vmul.f32 %v557_v8, %v1099_v11  ;;  %v704_v23 = vmul.f32 %v547_v62, %v1104_v14  ;;  %v769_v8 = vld [vmem:[%s1367_s11 + $0x8] sm:$0xff] }
  0x95   : > { %v738_v10 = vadd.f32 %v706_v1, %v1115_v20  ;;  %v736_v63 = vadd.f32 %v704_v23, %v1123_v24  ;;  %v771_v24 = vld [vmem:[%s1367_s11 + $0x18] sm:$0xff] }
  0x96   : > { %v562_v0 = vpop.permute.xlu1 %561  ;;  %v552_v46 = vpop.permute.xlu0 %551 }
  0x97   : > { %v802_v40 = vadd.f32 %v770_v17, %v738_v10  ;;  %v800_v11 = vadd.f32 %v768_v45, %v736_v63  ;;  %v707_v14 = vmul.f32 %v562_v0, %v1111_v18  ;;  %v705_v20 = vmul.f32 %v552_v46, %v1119_v22  ;;  %v773_v46 = vld [vmem:[%s1367_s11 + $0x28] sm:$0xff] }
  0x99   : > { %835 = vst.msk [vmem:[%s1379_s14 + $0x10] sm:$0xff] %vm832_vm0, %v802_v40  ;;  %833 = vst.msk [vmem:[%s1379_s14] sm:$0xff] %vm832_vm0, %v800_v11  ;;  %v739_v62 = vadd.f32 %v707_v14, %v1131_v28  ;;  %v737_v1 = vadd.f32 %v705_v20, %v1140_v33  ;;  %v772_v40 = vld [vmem:[%s1367_s11 + $0x20] sm:$0xff]  ;;  %v775_v20 = vld [vmem:[%s1367_s11 + $0x38] sm:$0xff] }
  0x9a   : > { %v572_v23 = vpop.permute.xlu1 %571  ;;  %v567_v17 = vpop.permute.xlu0 %566 }
  0x9b   : > { %v803_v45 = vadd.f32 %v771_v24, %v739_v62  ;;  %v801_v10 = vadd.f32 %v769_v8, %v737_v1  ;;  %v709_v18 = vmul.f32 %v572_v23, %v1127_v26  ;;  %v708_v22 = vmul.f32 %v567_v17, %v1135_v30  ;;  %v774_v24 = vld [vmem:[%s1367_s11 + $0x30] sm:$0xff]  ;;  %v777_v17 = vld [vmem:[%s1367_s11 + $0x48] sm:$0xff] }
  0x9d   : > { %836 = vst.msk [vmem:[%s1379_s14 + $0x18] sm:$0xff] %vm832_vm0, %v803_v45  ;;  %834 = vst.msk [vmem:[%s1379_s14 + $0x8] sm:$0xff] %vm832_vm0, %v801_v10  ;;  %v741_v28 = vadd.f32 %v709_v18, %v1150_v37  ;;  %v740_v33 = vadd.f32 %v708_v22, %v1162_v43  ;;  %v776_v45 = vld [vmem:[%s1367_s11 + $0x40] sm:$0xff] }
  0x9e   : > { %v582_v63 = vpop.permute.xlu1 %581  ;;  %v577_v0 = vpop.permute.xlu0 %576 }
  0x9f   : > { %v805_v11 = vadd.f32 %v773_v46, %v741_v28  ;;  %v804_v14 = vadd.f32 %v772_v40, %v740_v33  ;;  %v711_v26 = vmul.f32 %v582_v63, %v1144_v35  ;;  %v710_v30 = vmul.f32 %v577_v0, %v1147_v36  ;;  %v779_v40 = vld [vmem:[%s1367_s11 + $0x58] sm:$0xff]  ;;  %v778_v28 = vld [vmem:[%s1367_s11 + $0x50] sm:$0xff] }
  0xa1   : > { %838 = vst.msk [vmem:[%s1379_s14 + $0x28] sm:$0xff] %vm832_vm0, %v805_v11  ;;  %837 = vst.msk [vmem:[%s1379_s14 + $0x20] sm:$0xff] %vm832_vm0, %v804_v14  ;;  %v743_v37 = vadd.f32 %v711_v26, %v1171_v48  ;;  %v742_v43 = vadd.f32 %v710_v30, %v1174_v49  ;;  %v781_v14 = vld [vmem:[%s1367_s11 + $0x68] sm:$0xff]  ;;  %v780_v26 = vld [vmem:[%s1367_s11 + $0x60] sm:$0xff] }
  0xa2   : > { %v592_v8 = vpop.permute.xlu1 %591  ;;  %v587_v62 = vpop.permute.xlu0 %586 }
  0xa3   : > { %v807_v1 = vadd.f32 %v775_v20, %v743_v37  ;;  %v806_v23 = vadd.f32 %v774_v24, %v742_v43  ;;  %v713_v35 = vmul.f32 %v592_v8, %v1156_v41  ;;  %v712_v36 = vmul.f32 %v587_v62, %v1159_v42  ;;  %v783_v43 = vld [vmem:[%s1367_s11 + $0x78] sm:$0xff]  ;;  %v782_v8 = vld [vmem:[%s1367_s11 + $0x70] sm:$0xff] }
  0xa5   : > { %840 = vst.msk [vmem:[%s1379_s14 + $0x38] sm:$0xff] %vm832_vm0, %v807_v1  ;;  %839 = vst.msk [vmem:[%s1379_s14 + $0x30] sm:$0xff] %vm832_vm0, %v806_v23  ;;  %v745_v48 = vadd.f32 %v713_v35, %v1183_v54  ;;  %v744_v49 = vadd.f32 %v712_v36, %v1186_v55  ;;  %v785_v36 = vld [vmem:[%s1367_s11 + $0x88] sm:$0xff] }
  0xa6   : > { %v602_v10 = vpop.permute.xlu1 %601  ;;  %v597_v18 = vpop.permute.xlu0 %596 }
  0xa7   : > { %v809_v22 = vadd.f32 %v777_v17, %v745_v48  ;;  %v808_v46 = vadd.f32 %v776_v45, %v744_v49  ;;  %v715_v41 = vmul.f32 %v602_v10, %v1168_v47  ;;  %v714_v42 = vmul.f32 %v597_v18, %v1178_v51  ;;  %v784_v17 = vld [vmem:[%s1367_s11 + $0x80] sm:$0xff]  ;;  %v787_v18 = vld [vmem:[%s1367_s11 + $0x98] sm:$0xff] }
  0xa9   : > { %842 = vst.msk [vmem:[%s1379_s14 + $0x48] sm:$0xff] %vm832_vm0, %v809_v22  ;;  %841 = vst.msk [vmem:[%s1379_s14 + $0x40] sm:$0xff] %vm832_vm0, %v808_v46  ;;  %v747_v54 = vadd.f32 %v715_v41, %v1190_v57  ;;  %v746_v55 = vadd.f32 %v714_v42, %v1200_v61  ;;  %v786_v22 = vld [vmem:[%s1367_s11 + $0x90] sm:$0xff] }
  0xaa   : > { %v612_v33 = vpop.permute.xlu1 %611  ;;  %v607_v63 = vpop.permute.xlu0 %606 }
  0xab   : > { %v811_v0 = vadd.f32 %v779_v40, %v747_v54  ;;  %v810_v11 = vadd.f32 %v778_v28, %v746_v55  ;;  %v717_v47 = vmul.f32 %v612_v33, %v1194_v59  ;;  %v716_v51 = vmul.f32 %v607_v63, %v1197_v60  ;;  %v789_v28 = vld [vmem:[%s1367_s11 + $0xa8] sm:$0xff]  ;;  %v788_v54 = vld [vmem:[%s1367_s11 + $0xa0] sm:$0xff] }
  0xad   : > { %844 = vst.msk [vmem:[%s1379_s14 + $0x58] sm:$0xff] %vm832_vm0, %v811_v0  ;;  %843 = vst.msk [vmem:[%s1379_s14 + $0x50] sm:$0xff] %vm832_vm0, %v810_v11  ;;  %v749_v57 = vadd.f32 %v717_v47, %v1207_v2  ;;  %v748_v61 = vadd.f32 %v716_v51, %v1210_v3  ;;  %v791_v11 = vld [vmem:[%s1367_s11 + $0xb8] sm:$0xff]  ;;  %v790_v47 = vld [vmem:[%s1367_s11 + $0xb0] sm:$0xff] }
  0xae   : > { %v622_v30 = vpop.permute.xlu1 %621  ;;  %v617_v20 = vpop.permute.xlu0 %616 }
  0xaf   : > { %v813_v24 = vadd.f32 %v781_v14, %v749_v57  ;;  %v812_v37 = vadd.f32 %v780_v26, %v748_v61  ;;  %v719_v59 = vmul.f32 %v622_v30, %v1214_v5  ;;  %v718_v60 = vmul.f32 %v617_v20, %v1217_v6  ;;  %v793_v20 = vld [vmem:[%s1367_s11 + $0xc8] sm:$0xff] }
  0xb1   : > { %846 = vst.msk [vmem:[%s1379_s14 + $0x68] sm:$0xff] %vm832_vm0, %v813_v24  ;;  %845 = vst.msk [vmem:[%s1379_s14 + $0x60] sm:$0xff] %vm832_vm0, %v812_v37  ;;  %v751_v2 = vadd.f32 %v719_v59, %v1224_v13  ;;  %v750_v3 = vadd.f32 %v718_v60, %v1227_v15  ;;  %v792_v24 = vld [vmem:[%s1367_s11 + $0xc0] sm:$0xff]  ;;  %v1563_v37 = vld [vmem:[#allocation5_spill] sm:$0xff] }
  0xb2   : > { %v632_v62 = vpop.permute.xlu1 %631  ;;  %v627_v1 = vpop.permute.xlu0 %626 }
  0xb3   : > { %v815_v23 = vadd.f32 %v783_v43, %v751_v2  ;;  %v814_v35 = vadd.f32 %v782_v8, %v750_v3  ;;  %v721_v5 = vmul.f32 %v632_v62, %v1231_v19  ;;  %v720_v6 = vmul.f32 %v627_v1, %v1234_v21  ;;  %v1564_v3 = vld [vmem:[#allocation6_spill] sm:$0xff]  ;;  %v1565_v1 = vld [vmem:[#allocation7_spill] sm:$0xff] }
  0xb5   : > { %848 = vst.msk [vmem:[%s1379_s14 + $0x78] sm:$0xff] %vm832_vm0, %v815_v23  ;;  %847 = vst.msk [vmem:[%s1379_s14 + $0x70] sm:$0xff] %vm832_vm0, %v814_v35  ;;  %v753_v13 = vadd.f32 %v721_v5, %v1241_v31  ;;  %v752_v15 = vadd.f32 %v720_v6, %v1244_v32  ;;  %v795_v35 = vld [vmem:[%s1367_s11 + $0xd8] sm:$0xff]  ;;  %v794_v5 = vld [vmem:[%s1367_s11 + $0xd0] sm:$0xff] }
  0xb6   : > { %v642_v45 = vpop.permute.xlu1 %641  ;;  %v637_v48 = vpop.permute.xlu0 %636  ;;  %v1566_v6 = vld [vmem:[#allocation8_spill] sm:$0xff] }
  0xb7   : > { %v817_v49 = vadd.f32 %v785_v36, %v753_v13  ;;  %v816_v10 = vadd.f32 %v784_v17, %v752_v15  ;;  %v723_v19 = vmul.f32 %v642_v45, %v1248_v38  ;;  %v722_v21 = vmul.f32 %v637_v48, %v1251_v39  ;;  %v1567_v17 = vld [vmem:[#allocation9_spill] sm:$0xff] }
  0xb9   : > { %850 = vst.msk [vmem:[%s1379_s14 + $0x88] sm:$0xff] %vm832_vm0, %v817_v49  ;;  %849 = vst.msk [vmem:[%s1379_s14 + $0x80] sm:$0xff] %vm832_vm0, %v816_v10  ;;  %v755_v31 = vadd.f32 %v723_v19, %v1258_v50  ;;  %v754_v32 = vadd.f32 %v722_v21, %v1261_v52  ;;  %v1568_v10 = vld [vmem:[#allocation10_spill] sm:$0xff] }
  0xba   : > { %v652_v46 = vpop.permute.xlu1 %651  ;;  %v647_v41 = vpop.permute.xlu0 %646 }
  0xbb   : > { %v819_v42 = vadd.f32 %v787_v18, %v755_v31  ;;  %v818_v40 = vadd.f32 %v786_v22, %v754_v32  ;;  %v725_v38 = vmul.f32 %v652_v46, %v1265_v56  ;;  %v724_v39 = vmul.f32 %v647_v41, %v1268_v58  ;;  %v797_v18 = vld [vmem:[%s1367_s11 + $0xe8] sm:$0xff]  ;;  %v796_v22 = vld [vmem:[%s1367_s11 + $0xe0] sm:$0xff] }
  0xbd   : > { %852 = vst.msk [vmem:[%s1379_s14 + $0x98] sm:$0xff] %vm832_vm0, %v819_v42  ;;  %851 = vst.msk [vmem:[%s1379_s14 + $0x90] sm:$0xff] %vm832_vm0, %v818_v40  ;;  %v757_v50 = vadd.f32 %v725_v38, %v1275_v4  ;;  %v756_v52 = vadd.f32 %v724_v39, %v1278_v7  ;;  %v799_v39 = vld [vmem:[%s1367_s11 + $0xf8] sm:$0xff] }
  0xbe   : > { %v662_v55 = vpop.permute.xlu1 %661  ;;  %v657_v33 = vpop.permute.xlu0 %656 }
  0xbf   : > { %v821_v63 = vadd.f32 %v789_v28, %v757_v50  ;;  %v820_v0 = vadd.f32 %v788_v54, %v756_v52  ;;  %v727_v56 = vmul.f32 %v662_v55, %v1282_v9  ;;  %v726_v58 = vmul.f32 %v657_v33, %v1285_v12  ;;  %v1560_v9 = vld [vmem:[#allocation2_spill] sm:$0xff]  ;;  %v1561_v12 = vld [vmem:[#allocation3_spill] sm:$0xff]  ;;  %v798_v28 = vld [vmem:[%s1367_s11 + $0xf0] sm:$0xff] }
  0xc0   : > { %v1569_v54 = vld [vmem:[#allocation11_spill] sm:$0xff]  ;;  %v1570_v50 = vld [vmem:[#allocation12_spill] sm:$0xff] }
  0xc1   : > { %854 = vst.msk [vmem:[%s1379_s14 + $0xa8] sm:$0xff] %vm832_vm0, %v821_v63  ;;  %853 = vst.msk [vmem:[%s1379_s14 + $0xa0] sm:$0xff] %vm832_vm0, %v820_v0  ;;  %v759_v4 = vadd.f32 %v727_v56, %v1292_v29  ;;  %v758_v7 = vadd.f32 %v726_v58, %v1295_v34  ;;  %v1562_v29 = vld [vmem:[#allocation4_spill] sm:$0xff] }
  0xc2   : > { %v672_v51 = vpop.permute.xlu1 %671  ;;  %v667_v14 = vpop.permute.xlu0 %666 }
  0xc3   : > { %v823_v26 = vadd.f32 %v791_v11, %v759_v4  ;;  %v822_v57 = vadd.f32 %v790_v47, %v758_v7  ;;  %v729_v61 = vmul.f32 %v672_v51, %v1560_v9  ;;  %v728_v30 = vmul.f32 %v667_v14, %v1561_v12 }
  0xc5   : > { %856 = vst.msk [vmem:[%s1379_s14 + $0xb8] sm:$0xff] %vm832_vm0, %v823_v26  ;;  %855 = vst.msk [vmem:[%s1379_s14 + $0xb0] sm:$0xff] %vm832_vm0, %v822_v57  ;;  %v761_v34 = vadd.f32 %v729_v61, %v1562_v29  ;;  %v760_v59 = vadd.f32 %v728_v30, %v1563_v37 }
  0xc6   : > { %v682_v60 = vpop.permute.xlu1 %681  ;;  %v677_v43 = vpop.permute.xlu0 %676 }
  0xc7   : > { %v825_v8 = vadd.f32 %v793_v20, %v761_v34  ;;  %v824_v2 = vadd.f32 %v792_v24, %v760_v59  ;;  %v731_v62 = vmul.f32 %v682_v60, %v1564_v3  ;;  %v730_v23 = vmul.f32 %v677_v43, %v1565_v1 }
  0xc9   : > { %858 = vst.msk [vmem:[%s1379_s14 + $0xc8] sm:$0xff] %vm832_vm0, %v825_v8  ;;  %857 = vst.msk [vmem:[%s1379_s14 + $0xc0] sm:$0xff] %vm832_vm0, %v824_v2  ;;  %v763_v36 = vadd.f32 %v731_v62, %v1566_v6  ;;  %v762_v13 = vadd.f32 %v730_v23, %v1567_v17 }
  0xca   : > { %v692_v15 = vpop.permute.xlu1 %691  ;;  %v687_v45 = vpop.permute.xlu0 %686 }
  0xcb   : > { %v827_v48 = vadd.f32 %v795_v35, %v763_v36  ;;  %v826_v49 = vadd.f32 %v794_v5, %v762_v13  ;;  %v733_v19 = vmul.f32 %v692_v15, %v1568_v10  ;;  %v732_v21 = vmul.f32 %v687_v45, %v1336_v16 }
  0xcd   : > { %860 = vst.msk [vmem:[%s1379_s14 + $0xd8] sm:$0xff] %vm832_vm0, %v827_v48  ;;  %859 = vst.msk [vmem:[%s1379_s14 + $0xd0] sm:$0xff] %vm832_vm0, %v826_v49  ;;  %v765_v31 = vadd.f32 %v733_v19, %v1343_v25  ;;  %v764_v32 = vadd.f32 %v732_v21, %v1346_v27 }
  0xce   : > { %v702_v46 = vpop.permute.xlu1 %701  ;;  %v697_v41 = vpop.permute.xlu0 %696 }
  0xcf   : > { %v829_v42 = vadd.f32 %v797_v18, %v765_v31  ;;  %v828_v40 = vadd.f32 %v796_v22, %v764_v32  ;;  %v735_v38 = vmul.f32 %v702_v46, %v1350_v53  ;;  %v734_v16 = vmul.f32 %v697_v41, %v1353_v44 }
  0xd1   : > { %862 = vst.msk [vmem:[%s1379_s14 + $0xe8] sm:$0xff] %vm832_vm0, %v829_v42  ;;  %861 = vst.msk [vmem:[%s1379_s14 + $0xe0] sm:$0xff] %vm832_vm0, %v828_v40  ;;  %v767_v25 = vadd.f32 %v735_v38, %v1569_v54  ;;  %v766_v52 = vadd.f32 %v734_v16, %v1570_v50 }
  0xd3   : > { %v831_v27 = vadd.f32 %v799_v39, %v767_v25  ;;  %v830_v55 = vadd.f32 %v798_v28, %v766_v52 }
  0xd5   : > { %864 = vst.msk [vmem:[%s1379_s14 + $0xf8] sm:$0xff] %vm832_vm0, %v831_v27  ;;  %863 = vst.msk [vmem:[%s1379_s14 + $0xf0] sm:$0xff] %vm832_vm0, %v830_v55 }
  0xd6 PF: > { %s15_s18 = sadd.s32 1, %s1024_s18  }
  0xd7   : > { %p12_p4 = scmp.ge.s32.totalorder %s15_s18, 4  }
  0xd9   :  { %14 = sbr.rel (!%p12_p4) target bundleno = 1 (0x1), region = 82 }

// kernel: cscm3_forward.12
= control target key start
LH: loop header
LB: loop body
LE: loop exit
PB: predicated region body
PF: predicated region fallthrough
CT: control target
= control target key end

     0   :  { %7 = vsyncpa [#allocation3], 0  ;;  %s1030_s9 = smov 0   ;;  %s1309_s0 = inlined_call_operand.vmem [shape: f32[2,22,22], index: 0, kind: input, shape index: {}]   ;;  %s1310_s1 = inlined_call_operand.vmem [shape: f32[7,7], index: 1, kind: input, shape index: {}]   ;;  %s1311_s2 = inlined_call_operand.vmem [shape: f32[2,16,16], index: 2, kind: output, shape index: {}]  }
   0x1 LB: > { %s884_s10 = sadd.s32 4294967295, %s1006_s9   ;;  %p886_p0 = scmp.ge.s32.totalorder %s1006_s9, 1  ;;  %s1006_s9 = sphi %s1030_s9, %s13_s9  }
   0x2   : > { %p91_p1 = scmp.lt.s32.totalorder %s1006_s9, 3  ;;  %s104_s13 = sshll.u32 %s1310_s1, 4  ;;  %s105_s13 = int_to_ptr.vmem [resolvable:$true] %s104_s13 }
   0x3   : > { %p956_p3 = scmp.eq.s32.totalorder %s884_s10, 0  ;;  %s981_s15 = scalar_lea.vmem %s105_s13, 128 }
   0x4   : > { %p1041_p2 = pnand %p886_p0, %p91_p1  ;;  %p982_p6 = scmp.ne.s32.totalorder %s105_s13, %s981_s15 }
   0x5   : > { %p989_p10 = scmp.lt.s32.totalorder %s105_s13, %s105_s13  ;;  %p990_p11 = scmp.lt.s32.totalorder %s981_s15, %s981_s15 }
   0x6   : > { %p952_p4 = pneg %p1041_p2 }
   0x7   : > { %p991_p12 = por %p990_p11, %p989_p10 }
   0x8   : > { %p953_p5 = pnand %p956_p3, %p952_p4 }
   0xa   : > { %p983_p7 = pneg %p953_p5 }
   0xc   : > { %p984_p8 = pnand %p983_p7, %p982_p6 }
   0xe   : > { %p985_p9 = pneg %p984_p8 }
  0x10   : > { %p992_p13 = pnand %p991_p12, %p985_p9 }
  0x12   : > { %995 = shalt.err (!%p992_p13)
}
  0x13   : > { %s1008_s16 = smov [#allocation2]   ;;  %125 = sbr.rel (%p1041_p2) target bundleno = 347 (0x15b), region = 28 }
  0x14   : > { %955 = dma.vmem_to_smem (!%p953_p5), %s105_s13, 128, %s1008_s16, [#allocation3]  }
  0x1a   : > { %1001 = dma.done.wait (%p956_p3), [#allocation3], 128  }
  0x1b   : > { %1003 = vsyncadd (%p956_p3), [#allocation3], 4294967168 }
  0x1c   : > { %131 = sfence }
  0x1d   : > { %p148_p0 = scmp.lt.s32.totalorder %s884_s10, 1  ;;  %s895_s17 = sld [smem:[#allocation2 + $0x2]]  ;;  %vm814_vm0 = vcmask 130048  }
  0x1e   : > { %s894_s18 = sld [smem:[#allocation2 + $0x1]]  ;;  %s896_s19 = sld [smem:[#allocation2 + $0x3]] }
  0x1f   : > { %s1314_s10 = smov (!%p148_p0, %s884_s10), 1  ;;  %s897_s24 = sld [smem:[#allocation2 + $0x4]] }
  0x20   : > { %s947_s20 = smul.u32 24, %s1314_s10  ;;  %s1009_s25 = smov 126  }
  0x21   : > { %s1010_s26 = smov 127   ;;  %s898_s27 = sld [smem:[#allocation2 + $0x5]] }
  0x22   : > { %s1058_s23 = scalar_lea.vmem %s1309_s0, %s947_s20  ;;  %s899_s28 = sld [smem:[#allocation2 + $0x6]] }
  0x23   : > { %v181_v0 = vstv %s895_s17  ;;  %v1061_v1 = vld [vmem:[%s1058_s23] sm:$0xff]  ;;  %v1064_v2 = vld [vmem:[%s1058_s23 + $0x8] sm:$0xff]  ;;  %s1011_s29 = smov 125   ;;  %s901_s30 = sld [smem:[#allocation2 + $0x81]] }
  0x24   : > { %v167_v3 = vstv %s894_s18  ;;  %v182_v4 = vmul.f32 %v181_v0, %v1061_v1  ;;  %v183_v6 = vmul.f32 %v181_v0, %v1064_v2  ;;  %v195_v8 = vstv %s896_s19  ;;  %s1012_s3 = smov 124   ;;  %s902_s4 = sld [smem:[#allocation2 + $0x82]]  ;;  %v1089_v20 = vld [vmem:[%s1058_s23 + $0x9] sm:$0xff]  ;;  %v1092_v22 = vld [vmem:[%s1058_s23 + $0x1] sm:$0xff] }
  0x25   : > { %v168_v5 = vmul.f32 %v167_v3, %v1061_v1  ;;  %v169_v7 = vmul.f32 %v167_v3, %v1064_v2  ;;  %v197_v9 = vmul.f32 %v195_v8, %v1064_v2  ;;  %v196_v10 = vmul.f32 %v195_v8, %v1061_v1  ;;  %s1013_s5 = smov 123   ;;  %s903_s6 = sld [smem:[#allocation2 + $0x83]]  ;;  %v1119_v40 = vld [vmem:[%s1058_s23 + $0xa] sm:$0xff]  ;;  %v1122_v42 = vld [vmem:[%s1058_s23 + $0x2] sm:$0xff] }
  0x26   : > { %186 = vrot.lane.b32.xlu1 %v182_v4, %s1009_s25  ;;  %v209_v11 = vstv %s897_s24  ;;  %s1014_s7 = smov 122   ;;  %s904_s8 = sld [smem:[#allocation2 + $0x84]]  ;;  %v1149_v60 = vld [vmem:[%s1058_s23 + $0xb] sm:$0xff]  ;;  %v1152_v62 = vld [vmem:[%s1058_s23 + $0x3] sm:$0xff] }
  0x27   : > { %172 = vrot.lane.b32.xlu0 %v168_v5, %s1010_s26  ;;  %v211_v12 = vmul.f32 %v209_v11, %v1064_v2  ;;  %v210_v13 = vmul.f32 %v209_v11, %v1061_v1  ;;  %v223_v14 = vstv %s898_s27  ;;  %s905_s11 = sld [smem:[#allocation2 + $0x85]]  ;;  %s906_s12 = sld [smem:[#allocation2 + $0x86]] }
  0x28   : > { %v225_v15 = vmul.f32 %v223_v14, %v1064_v2  ;;  %v224_v16 = vmul.f32 %v223_v14, %v1061_v1  ;;  %v237_v17 = vstv %s899_s28  ;;  %s908_s13 = sld [smem:[#allocation2 + $0x101]]  ;;  %s909_s14 = sld [smem:[#allocation2 + $0x102]] }
  0x29   : > { %v239_v18 = vmul.f32 %v237_v17, %v1064_v2  ;;  %v238_v19 = vmul.f32 %v237_v17, %v1061_v1  ;;  %v259_v21 = vstv %s901_s30  ;;  %s910_s15 = sld [smem:[#allocation2 + $0x103]]  ;;  %s911_s16 = sld [smem:[#allocation2 + $0x104]] }
  0x2a   : > { %188 = vrot.lane.b32.xlu1 %v183_v6, %s1009_s25  ;;  %v261_v23 = vmul.f32 %v259_v21, %v1089_v20  ;;  %v260_v24 = vmul.f32 %v259_v21, %v1092_v22  ;;  %v273_v25 = vstv %s902_s4  ;;  %s912_s17 = sld [smem:[#allocation2 + $0x105]]  ;;  %s913_s18 = sld [smem:[#allocation2 + $0x106]]  ;;  %v1182_v21 = vld [vmem:[%s1058_s23 + $0x4] sm:$0xff] }
  0x2b   : > { %174 = vrot.lane.b32.xlu0 %v169_v7, %s1010_s26  ;;  %v275_v26 = vmul.f32 %v273_v25, %v1089_v20  ;;  %v274_v27 = vmul.f32 %v273_v25, %v1092_v22  ;;  %v287_v28 = vstv %s903_s6  ;;  %s915_s19 = sld [smem:[#allocation2 + $0x181]]  ;;  %s916_s20 = sld [smem:[#allocation2 + $0x182]] }
  0x2c   : > { %v289_v29 = vmul.f32 %v287_v28, %v1089_v20  ;;  %v288_v30 = vmul.f32 %v287_v28, %v1092_v22  ;;  %v301_v31 = vstv %s904_s8  ;;  %s917_s21 = sld [smem:[#allocation2 + $0x183]]  ;;  %s918_s22 = sld [smem:[#allocation2 + $0x184]] }
  0x2d   : > { %v303_v32 = vmul.f32 %v301_v31, %v1089_v20  ;;  %v302_v33 = vmul.f32 %v301_v31, %v1092_v22  ;;  %v315_v34 = vstv %s905_s11  ;;  %v329_v37 = vstv %s906_s12  ;;  %s919_s24 = sld [smem:[#allocation2 + $0x185]]  ;;  %s920_s27 = sld [smem:[#allocation2 + $0x186]] }
  0x2e   : > { %202 = vrot.lane.b32.xlu1 %v197_v9, %s1011_s29  ;;  %v317_v35 = vmul.f32 %v315_v34, %v1089_v20  ;;  %v316_v36 = vmul.f32 %v315_v34, %v1092_v22  ;;  %v331_v38 = vmul.f32 %v329_v37, %v1089_v20  ;;  %v330_v39 = vmul.f32 %v329_v37, %v1092_v22  ;;  %s922_s28 = sld [smem:[#allocation2 + $0x201]]  ;;  %s923_s30 = sld [smem:[#allocation2 + $0x202]] }
  0x2f   : > { %200 = vrot.lane.b32.xlu0 %v196_v10, %s1011_s29  ;;  %v351_v41 = vstv %s908_s13  ;;  %v365_v45 = vstv %s909_s14  ;;  %v379_v48 = vstv %s910_s15  ;;  %s924_s4 = sld [smem:[#allocation2 + $0x203]]  ;;  %s925_s6 = sld [smem:[#allocation2 + $0x204]] }
  0x30   : > { %v353_v43 = vmul.f32 %v351_v41, %v1119_v40  ;;  %v352_v44 = vmul.f32 %v351_v41, %v1122_v42  ;;  %v367_v46 = vmul.f32 %v365_v45, %v1119_v40  ;;  %v366_v47 = vmul.f32 %v365_v45, %v1122_v42  ;;  %s926_s8 = sld [smem:[#allocation2 + $0x205]]  ;;  %s158_s11 = sld [smem:[#allocation2]] }
  0x31   : > { %v381_v49 = vmul.f32 %v379_v48, %v1119_v40  ;;  %v380_v50 = vmul.f32 %v379_v48, %v1122_v42  ;;  %v393_v51 = vstv %s911_s16  ;;  %v407_v54 = vstv %s912_s17  ;;  %s927_s12 = sld [smem:[#allocation2 + $0x206]]  ;;  %s929_s13 = sld [smem:[#allocation2 + $0x281]] }
  0x32   : > { %216 = vrot.lane.b32.xlu1 %v211_v12, %s1012_s3  ;;  %v395_v52 = vmul.f32 %v393_v51, %v1119_v40  ;;  %v394_v53 = vmul.f32 %v393_v51, %v1122_v42  ;;  %v409_v55 = vmul.f32 %v407_v54, %v1119_v40  ;;  %v408_v56 = vmul.f32 %v407_v54, %v1122_v42  ;;  %s930_s14 = sld [smem:[#allocation2 + $0x282]]  ;;  %s931_s15 = sld [smem:[#allocation2 + $0x283]] }
  0x33   : > { %214 = vrot.lane.b32.xlu0 %v210_v13, %s1012_s3  ;;  %v421_v57 = vstv %s913_s18  ;;  %v443_v61 = vstv %s915_s19  ;;  %v457_v3 = vstv %s916_s20  ;;  %s932_s16 = sld [smem:[#allocation2 + $0x284]]  ;;  %s1224_s17 = sld [smem:[#allocation2 + $0x80]] }
  0x34   : > { %v423_v58 = vmul.f32 %v421_v57, %v1119_v40  ;;  %v422_v59 = vmul.f32 %v421_v57, %v1122_v42  ;;  %v445_v63 = vmul.f32 %v443_v61, %v1149_v60  ;;  %v444_v0 = vmul.f32 %v443_v61, %v1152_v62  ;;  %s933_s18 = sld [smem:[#allocation2 + $0x285]]  ;;  %s1230_s19 = sld [smem:[#allocation2 + $0x286]] }
  0x35   : > { %v459_v4 = vmul.f32 %v457_v3, %v1149_v60  ;;  %v458_v5 = vmul.f32 %v457_v3, %v1152_v62  ;;  %v471_v6 = vstv %s917_s21  ;;  %v485_v9 = vstv %s918_s22  ;;  %s1237_s20 = sld [smem:[#allocation2 + $0x301]]  ;;  %s937_s21 = sld [smem:[#allocation2 + $0x302]] }
  0x36   : > { %230 = vrot.lane.b32.xlu1 %v225_v15, %s1013_s5  ;;  %v473_v7 = vmul.f32 %v471_v6, %v1149_v60  ;;  %v472_v8 = vmul.f32 %v471_v6, %v1152_v62  ;;  %v487_v10 = vmul.f32 %v485_v9, %v1149_v60  ;;  %v486_v11 = vmul.f32 %v485_v9, %v1152_v62  ;;  %s938_s22 = sld [smem:[#allocation2 + $0x303]] }
  0x37   : > { %228 = vrot.lane.b32.xlu0 %v224_v16, %s1013_s5  ;;  %v499_v12 = vstv %s919_s24  ;;  %v513_v15 = vstv %s920_s27  ;;  %v549_v25 = vstv %s923_s30  ;;  %s939_s24 = sld [smem:[#allocation2 + $0x304]]  ;;  %s1267_s27 = sld [smem:[#allocation2 + $0x100]] }
  0x38   : > { %v501_v13 = vmul.f32 %v499_v12, %v1149_v60  ;;  %v500_v14 = vmul.f32 %v499_v12, %v1152_v62  ;;  %v515_v16 = vmul.f32 %v513_v15, %v1149_v60  ;;  %v514_v17 = vmul.f32 %v513_v15, %v1152_v62 }
  0x39   : > { %v563_v28 = vstv %s924_s4  ;;  %v577_v31 = vstv %s925_s6  ;;  %v591_v34 = vstv %s926_s8  ;;  %v161_v37 = vstv %s158_s11 }
  0x3a   : > { %244 = vrot.lane.b32.xlu1 %v239_v18, %s1014_s7  ;;  %v1179_v18 = vld [vmem:[%s1058_s23 + $0xc] sm:$0xff]  ;;  %v627_v45 = vstv %s929_s13  ;;  %v669_v6 = vstv %s932_s16 }
  0x3b   : > { %242 = vrot.lane.b32.xlu0 %v238_v19, %s1014_s7  ;;  %v535_v19 = vstv %s922_s28 }
  0x3e   : > { %266 = vrot.lane.b32.xlu1 %v261_v23, %s1010_s26  ;;  %v537_v23 = vmul.f32 %v535_v19, %v1179_v18 }
  0x3f   : > { %264 = vrot.lane.b32.xlu0 %v260_v24, %s1010_s26  ;;  %v536_v24 = vmul.f32 %v535_v19, %v1182_v21 }
  0x42   : > { %280 = vrot.lane.b32.xlu1 %v275_v26, %s1009_s25  ;;  %v551_v26 = vmul.f32 %v549_v25, %v1179_v18 }
  0x43   : > { %278 = vrot.lane.b32.xlu0 %v274_v27, %s1009_s25  ;;  %v550_v27 = vmul.f32 %v549_v25, %v1182_v21 }
  0x46   : > { %294 = vrot.lane.b32.xlu1 %v289_v29, %s1011_s29  ;;  %v565_v29 = vmul.f32 %v563_v28, %v1179_v18 }
  0x47   : > { %292 = vrot.lane.b32.xlu0 %v288_v30, %s1011_s29  ;;  %v564_v30 = vmul.f32 %v563_v28, %v1182_v21 }
  0x4a   : > { %308 = vrot.lane.b32.xlu1 %v303_v32, %s1012_s3  ;;  %v579_v32 = vmul.f32 %v577_v31, %v1179_v18 }
  0x4b   : > { %306 = vrot.lane.b32.xlu0 %v302_v33, %s1012_s3  ;;  %v578_v33 = vmul.f32 %v577_v31, %v1182_v21 }
  0x4e   : > { %322 = vrot.lane.b32.xlu1 %v317_v35, %s1013_s5  ;;  %v593_v35 = vmul.f32 %v591_v34, %v1179_v18 }
  0x4f   : > { %320 = vrot.lane.b32.xlu0 %v316_v36, %s1013_s5  ;;  %v592_v36 = vmul.f32 %v591_v34, %v1182_v21 }
  0x52   : > { %336 = vrot.lane.b32.xlu1 %v331_v38, %s1014_s7  ;;  %v605_v38 = vstv %s927_s12 }
  0x53   : > { %334 = vrot.lane.b32.xlu0 %v330_v39, %s1014_s7  ;;  %v162_v39 = vmul.f32 %v161_v37, %v1061_v1  ;;  %v607_v41 = vmul.f32 %v605_v38, %v1179_v18 }
  0x56   : > { %358 = vrot.lane.b32.xlu1 %v353_v43, %s1010_s26  ;;  %v606_v43 = vmul.f32 %v605_v38, %v1182_v21 }
  0x57   : > { %356 = vrot.lane.b32.xlu0 %v352_v44, %s1010_s26  ;;  %v1210_v44 = vld [vmem:[%s1058_s23 + $0xd] sm:$0xff] }
  0x58   : > { %v629_v1 = vmul.f32 %v627_v45, %v1210_v44 }
  0x5a   : > { %372 = vrot.lane.b32.xlu1 %v367_v46, %s1009_s25  ;;  %v1213_v46 = vld [vmem:[%s1058_s23 + $0x5] sm:$0xff] }
  0x5b   : > { %370 = vrot.lane.b32.xlu0 %v366_v47, %s1009_s25  ;;  %v628_v51 = vmul.f32 %v627_v45, %v1213_v46  ;;  %v670_v12 = vmul.f32 %v669_v6, %v1213_v46 }
  0x5e   : > { %386 = vrot.lane.b32.xlu1 %v381_v49, %s1011_s29 }
  0x5f   : > { %384 = vrot.lane.b32.xlu0 %v380_v50, %s1011_s29  ;;  %v163_v50 = vmul.f32 %v161_v37, %v1064_v2 }
  0x62   : > { %400 = vrot.lane.b32.xlu1 %v395_v52, %s1012_s3 }
  0x63   : > { %398 = vrot.lane.b32.xlu0 %v394_v53, %s1012_s3  ;;  %v641_v53 = vstv %s930_s14 }
  0x64   : > { %v643_v2 = vmul.f32 %v641_v53, %v1210_v44  ;;  %v642_v57 = vmul.f32 %v641_v53, %v1213_v46 }
  0x66   : > { %414 = vrot.lane.b32.xlu1 %v409_v55, %s1013_s5 }
  0x67   : > { %412 = vrot.lane.b32.xlu0 %v408_v56, %s1013_s5 }
  0x6a   : > { %428 = vrot.lane.b32.xlu1 %v423_v58, %s1014_s7 }
  0x6b   : > { %426 = vrot.lane.b32.xlu0 %v422_v59, %s1014_s7  ;;  %v655_v59 = vstv %s931_s15 }
  0x6e   : > { %450 = vrot.lane.b32.xlu1 %v445_v63, %s1010_s26 }
  0x6f   : > { %448 = vrot.lane.b32.xlu0 %v444_v0, %s1010_s26 }
  0x72   : > { %464 = vrot.lane.b32.xlu1 %v459_v4, %s1009_s25  ;;  %v657_v4 = vmul.f32 %v655_v59, %v1210_v44 }
  0x73   : > { %462 = vrot.lane.b32.xlu0 %v458_v5, %s1009_s25  ;;  %v656_v5 = vmul.f32 %v655_v59, %v1213_v46 }
  0x76   : > { %478 = vrot.lane.b32.xlu1 %v473_v7, %s1011_s29 }
  0x77   : > { %476 = vrot.lane.b32.xlu0 %v472_v8, %s1011_s29 }
  0x7a   : > { %492 = vrot.lane.b32.xlu1 %v487_v10, %s1012_s3 }
  0x7b   : > { %490 = vrot.lane.b32.xlu0 %v486_v11, %s1012_s3  ;;  %v671_v11 = vmul.f32 %v669_v6, %v1210_v44 }
  0x7e   : > { %506 = vrot.lane.b32.xlu1 %v501_v13, %s1013_s5  ;;  %v253_v13 = vstv %s1224_s17 }
  0x7f   : > { %504 = vrot.lane.b32.xlu0 %v500_v14, %s1013_s5  ;;  %v683_v14 = vstv %s933_s18 }
  0x80   : > { %v685_v19 = vmul.f32 %v683_v14, %v1210_v44 }
  0x82   : > { %520 = vrot.lane.b32.xlu1 %v515_v16, %s1014_s7 }
  0x83   : > { %518 = vrot.lane.b32.xlu0 %v514_v17, %s1014_s7  ;;  %v255_v17 = vmul.f32 %v253_v13, %v1089_v20 }
  0x86   : > { %542 = vrot.lane.b32.xlu1 %v537_v23, %s1010_s26  ;;  %v684_v23 = vmul.f32 %v683_v14, %v1213_v46 }
  0x87   : > { %540 = vrot.lane.b32.xlu0 %v536_v24, %s1010_s26 }
  0x8a   : > { %556 = vrot.lane.b32.xlu1 %v551_v26, %s1009_s25  ;;  %v254_v26 = vmul.f32 %v253_v13, %v1092_v22  ;;  %v1255_v22 = vld [vmem:[%s1058_s23 + $0x6] sm:$0xff] }
  0x8b   : > { %554 = vrot.lane.b32.xlu0 %v550_v27, %s1009_s25  ;;  %v697_v27 = vstv %s1230_s19 }
  0x8c   : > { %v699_v20 = vmul.f32 %v697_v27, %v1210_v44 }
  0x8e   : > { %570 = vrot.lane.b32.xlu1 %v565_v29, %s1011_s29 }
  0x8f   : > { %568 = vrot.lane.b32.xlu0 %v564_v30, %s1011_s29 }
  0x92   : > { %584 = vrot.lane.b32.xlu1 %v579_v32, %s1012_s3  ;;  %v698_v32 = vmul.f32 %v697_v27, %v1213_v46 }
  0x93   : > { %582 = vrot.lane.b32.xlu0 %v578_v33, %s1012_s3 }
  0x96   : > { %598 = vrot.lane.b32.xlu1 %v593_v35, %s1013_s5  ;;  %v1251_v35 = vld [vmem:[%s1058_s23 + $0xe] sm:$0xff]  ;;  %s1265_s23 = sld [smem:[#allocation2 + $0x305]] }
  0x97   : > { %596 = vrot.lane.b32.xlu0 %v592_v36, %s1013_s5  ;;  %v719_v36 = vstv %s1237_s20 }
  0x98   : > { %v187_v47 = vpop.permute.xlu1 %186 }
  0x99   : > { %v173_v48 = vpop.permute.xlu0 %172 }
  0x9a   : > { %v178_v49 = vadd.f32 %v173_v48, %v162_v39  ;;  %612 = vrot.lane.b32.xlu1 %v607_v41, %s1014_s7  ;;  %v721_v39 = vmul.f32 %v719_v36, %v1251_v35  ;;  %v720_v41 = vmul.f32 %v719_v36, %v1255_v22 }
  0x9b   : > { %610 = vrot.lane.b32.xlu0 %v606_v43, %s1014_s7  ;;  %v733_v43 = vstv %s937_s21 }
  0x9c   : > { %v192_v52 = vadd.f32 %v187_v47, %v178_v49  ;;  %v189_v54 = vpop.permute.xlu1 %188  ;;  %v735_v48 = vmul.f32 %v733_v43, %v1251_v35  ;;  %v734_v49 = vmul.f32 %v733_v43, %v1255_v22 }
  0x9d   : > { %v175_v55 = vpop.permute.xlu0 %174 }
  0x9e   : > { %v179_v56 = vadd.f32 %v175_v55, %v163_v50  ;;  %634 = vrot.lane.b32.xlu1 %v629_v1, %s1010_s26  ;;  %v747_v50 = vstv %s938_s22 }
  0x9f   : > { %632 = vrot.lane.b32.xlu0 %v628_v51, %s1010_s26  ;;  %v748_v53 = vmul.f32 %v747_v50, %v1255_v22 }
  0xa0   : > { %v193_v58 = vadd.f32 %v189_v54, %v179_v56  ;;  %v203_v61 = vpop.permute.xlu1 %202  ;;  %v761_v56 = vstv %s939_s24 }
  0xa1   : > { %v201_v63 = vpop.permute.xlu0 %200 }
  0xa2   : > { %v207_v0 = vadd.f32 %v203_v61, %v193_v58  ;;  %v206_v3 = vadd.f32 %v201_v63, %v192_v52  ;;  %648 = vrot.lane.b32.xlu1 %v643_v2, %s1009_s25  ;;  %v749_v52 = vmul.f32 %v747_v50, %v1251_v35  ;;  %v763_v61 = vmul.f32 %v761_v56, %v1251_v35 }
  0xa3   : > { %646 = vrot.lane.b32.xlu0 %v642_v57, %s1009_s25  ;;  %v762_v63 = vmul.f32 %v761_v56, %v1255_v22 }
  0xa4   : > { %v217_v7 = vpop.permute.xlu1 %216 }
  0xa5   : > { %v215_v8 = vpop.permute.xlu0 %214  ;;  %v221_v9 = vadd.f32 %v217_v7, %v207_v0  ;;  %v345_v7 = vstv %s1267_s27 }
  0xa6   : > { %v220_v10 = vadd.f32 %v215_v8, %v206_v3  ;;  %662 = vrot.lane.b32.xlu1 %v657_v4, %s1011_s29  ;;  %v775_v4 = vstv %s1265_s23 }
  0xa7   : > { %660 = vrot.lane.b32.xlu0 %v656_v5, %s1011_s29 }
  0xa8   : > { %v231_v15 = vpop.permute.xlu1 %230 }
  0xa9   : > { %v229_v16 = vpop.permute.xlu0 %228  ;;  %v235_v24 = vadd.f32 %v231_v15, %v221_v9  ;;  %v347_v15 = vmul.f32 %v345_v7, %v1119_v40 }
  0xaa   : > { %676 = vrot.lane.b32.xlu1 %v671_v11, %s1012_s3  ;;  %v234_v25 = vadd.f32 %v229_v16, %v220_v10  ;;  %v777_v10 = vmul.f32 %v775_v4, %v1251_v35  ;;  %v776_v11 = vmul.f32 %v775_v4, %v1255_v22  ;;  %v346_v16 = vmul.f32 %v345_v7, %v1122_v42 }
  0xab   : > { %674 = vrot.lane.b32.xlu0 %v670_v12, %s1012_s3 }
  0xac   : > { %v245_v28 = vpop.permute.xlu1 %244 }
  0xad   : > { %v243_v29 = vpop.permute.xlu0 %242  ;;  %v249_v30 = vadd.f32 %v245_v28, %v235_v24 }
  0xae   : > { %v248_v31 = vadd.f32 %v243_v29, %v234_v25  ;;  %690 = vrot.lane.b32.xlu1 %v685_v19, %s1013_s5 }
  0xaf   : > { %688 = vrot.lane.b32.xlu0 %v684_v23, %s1013_s5  ;;  %v257_v33 = vadd.f32 %v255_v17, %v249_v30 }
  0xb0   : > { %v256_v34 = vadd.f32 %v254_v26, %v248_v31  ;;  %v267_v37 = vpop.permute.xlu1 %266 }
  0xb1   : > { %v265_v38 = vpop.permute.xlu0 %264  ;;  %v271_v54 = vadd.f32 %v267_v37, %v257_v33 }
  0xb2   : > { %704 = vrot.lane.b32.xlu1 %v699_v20, %s1014_s7  ;;  %v270_v55 = vadd.f32 %v265_v38, %v256_v34 }
  0xb3   : > { %702 = vrot.lane.b32.xlu0 %v698_v32, %s1014_s7 }
  0xb4   : > { %v281_v45 = vpop.permute.xlu1 %280 }
  0xb5   : > { %v279_v47 = vpop.permute.xlu0 %278  ;;  %v285_v58 = vadd.f32 %v281_v45, %v271_v54 }
  0xb6   : > { %726 = vrot.lane.b32.xlu1 %v721_v39, %s1010_s26  ;;  %v284_v59 = vadd.f32 %v279_v47, %v270_v55 }
  0xb7   : > { %724 = vrot.lane.b32.xlu0 %v720_v41, %s1010_s26  ;;  %s1273_s26 = sld [smem:[#allocation2 + $0x306]] }
  0xb8   : > { %v295_v1 = vpop.permute.xlu1 %294 }
  0xb9   : > { %v293_v51 = vpop.permute.xlu0 %292  ;;  %v299_v0 = vadd.f32 %v295_v1, %v285_v58 }
  0xba   : > { %740 = vrot.lane.b32.xlu1 %v735_v48, %s1009_s25  ;;  %v298_v3 = vadd.f32 %v293_v51, %v284_v59 }
  0xbb   : > { %738 = vrot.lane.b32.xlu0 %v734_v49, %s1009_s25  ;;  %s914_s25 = sld [smem:[#allocation2 + $0x180]] }
  0xbc   : > { %v309_v2 = vpop.permute.xlu1 %308 }
  0xbd   : > { %v307_v57 = vpop.permute.xlu0 %306  ;;  %v313_v8 = vadd.f32 %v309_v2, %v299_v0  ;;  %v789_v12 = vstv %s1273_s26 }
  0xbe   : > { %754 = vrot.lane.b32.xlu1 %v749_v52, %s1011_s29  ;;  %v312_v9 = vadd.f32 %v307_v57, %v298_v3  ;;  %v791_v25 = vmul.f32 %v789_v12, %v1251_v35  ;;  %v790_v26 = vmul.f32 %v789_v12, %v1255_v22 }
  0xbf   : > { %752 = vrot.lane.b32.xlu0 %v748_v53, %s1011_s29  ;;  %s921_s29 = sld [smem:[#allocation2 + $0x200]] }
  0xc0   : > { %v323_v5 = vpop.permute.xlu1 %322 }
  0xc1   : > { %v321_v6 = vpop.permute.xlu0 %320  ;;  %v327_v13 = vadd.f32 %v323_v5, %v313_v8  ;;  %v437_v47 = vstv %s914_s25 }
  0xc2   : > { %768 = vrot.lane.b32.xlu1 %v763_v61, %s1012_s3  ;;  %v326_v14 = vadd.f32 %v321_v6, %v312_v9  ;;  %v439_v51 = vmul.f32 %v437_v47, %v1149_v60  ;;  %v438_v52 = vmul.f32 %v437_v47, %v1152_v62 }
  0xc3   : > { %766 = vrot.lane.b32.xlu0 %v762_v63, %s1012_s3  ;;  %s928_s3 = sld [smem:[#allocation2 + $0x280]] }
  0xc4   : > { %v337_v17 = vpop.permute.xlu1 %336 }
  0xc5   : > { %v335_v19 = vpop.permute.xlu0 %334  ;;  %v341_v23 = vadd.f32 %v337_v17, %v327_v13  ;;  %v529_v12 = vstv %s921_s29 }
  0xc6   : > { %v340_v24 = vadd.f32 %v335_v19, %v326_v14  ;;  %782 = vrot.lane.b32.xlu1 %v777_v10, %s1013_s5  ;;  %v531_v17 = vmul.f32 %v529_v12, %v1179_v18  ;;  %v530_v19 = vmul.f32 %v529_v12, %v1182_v21 }
  0xc7   : > { %780 = vrot.lane.b32.xlu0 %v776_v11, %s1013_s5  ;;  %v349_v27 = vadd.f32 %v347_v15, %v341_v23  ;;  %s935_s5 = sld [smem:[#allocation2 + $0x300]] }
  0xc8   : > { %v348_v28 = vadd.f32 %v346_v16, %v340_v24  ;;  %v359_v29 = vpop.permute.xlu1 %358 }
  0xc9   : > { %v357_v30 = vpop.permute.xlu0 %356  ;;  %v363_v32 = vadd.f32 %v359_v29, %v349_v27 }
  0xca   : > { %796 = vrot.lane.b32.xlu1 %v791_v25, %s1014_s7  ;;  %v362_v33 = vadd.f32 %v357_v30, %v348_v28 }
  0xcb   : > { %794 = vrot.lane.b32.xlu0 %v790_v26, %s1014_s7  ;;  %s946_s7 = sshll.u32 %s1314_s10, 4 }
  0xcc   : > { %v373_v40 = vpop.permute.xlu1 %372  ;;  %s157_s4 = scalar_lea.vmem %s1311_s2, %s946_s7 }
  0xcd   : > { %v371_v42 = vpop.permute.xlu0 %370  ;;  %v377_v37 = vadd.f32 %v373_v40, %v363_v32 }
  0xce   : > { %v376_v38 = vadd.f32 %v371_v42, %v362_v33 }
  0xd0   : > { %v387_v31 = vpop.permute.xlu1 %386 }
  0xd1   : > { %v385_v20 = vpop.permute.xlu0 %384  ;;  %v391_v39 = vadd.f32 %v387_v31, %v377_v37 }
  0xd2   : > { %v390_v41 = vadd.f32 %v385_v20, %v376_v38 }
  0xd4   : > { %v401_v34 = vpop.permute.xlu1 %400 }
  0xd5   : > { %v399_v36 = vpop.permute.xlu0 %398  ;;  %v405_v48 = vadd.f32 %v401_v34, %v391_v39 }
  0xd6   : > { %v404_v49 = vadd.f32 %v399_v36, %v390_v41 }
  0xd8   : > { %v415_v43 = vpop.permute.xlu1 %414 }
  0xd9   : > { %v413_v45 = vpop.permute.xlu0 %412  ;;  %v419_v50 = vadd.f32 %v415_v43, %v405_v48 }
  0xda   : > { %v418_v1 = vadd.f32 %v413_v45, %v404_v49 }
  0xdc   : > { %v429_v53 = vpop.permute.xlu1 %428 }
  0xdd   : > { %v427_v54 = vpop.permute.xlu0 %426  ;;  %v433_v55 = vadd.f32 %v429_v53, %v419_v50 }
  0xde   : > { %v432_v56 = vadd.f32 %v427_v54, %v418_v1 }
  0xdf   : > { %v441_v2 = vadd.f32 %v439_v51, %v433_v55 }
  0xe0   : > { %v440_v57 = vadd.f32 %v438_v52, %v432_v56  ;;  %v451_v58 = vpop.permute.xlu1 %450  ;;  %v621_v52 = vstv %s928_s3 }
  0xe1   : > { %v449_v59 = vpop.permute.xlu0 %448  ;;  %v455_v4 = vadd.f32 %v451_v58, %v441_v2  ;;  %v623_v58 = vmul.f32 %v621_v52, %v1210_v44  ;;  %v713_v44 = vstv %s935_s5 }
  0xe2   : > { %v454_v5 = vadd.f32 %v449_v59, %v440_v57  ;;  %v622_v59 = vmul.f32 %v621_v52, %v1213_v46 }
  0xe4   : > { %v465_v61 = vpop.permute.xlu1 %464 }
  0xe5   : > { %v463_v63 = vpop.permute.xlu0 %462  ;;  %v469_v60 = vadd.f32 %v465_v61, %v455_v4 }
  0xe6   : > { %v468_v8 = vadd.f32 %v463_v63, %v454_v5 }
  0xe8   : > { %v479_v0 = vpop.permute.xlu1 %478 }
  0xe9   : > { %v477_v3 = vpop.permute.xlu0 %476  ;;  %v483_v62 = vadd.f32 %v479_v0, %v469_v60 }
  0xea   : > { %v482_v9 = vadd.f32 %v477_v3, %v468_v8 }
  0xec   : > { %v493_v6 = vpop.permute.xlu1 %492 }
  0xed   : > { %v491_v7 = vpop.permute.xlu0 %490  ;;  %v497_v13 = vadd.f32 %v493_v6, %v483_v62 }
  0xee   : > { %v496_v14 = vadd.f32 %v491_v7, %v482_v9 }
  0xf0   : > { %v507_v10 = vpop.permute.xlu1 %506 }
  0xf1   : > { %v505_v11 = vpop.permute.xlu0 %504  ;;  %v511_v15 = vadd.f32 %v507_v10, %v497_v13 }
  0xf2   : > { %v510_v16 = vadd.f32 %v505_v11, %v496_v14 }
  0xf4   : > { %v521_v23 = vpop.permute.xlu1 %520 }
  0xf5   : > { %v519_v24 = vpop.permute.xlu0 %518  ;;  %v525_v25 = vadd.f32 %v521_v23, %v511_v15  ;;  %v715_v23 = vmul.f32 %v713_v44, %v1251_v35 }
  0xf6   : > { %v524_v26 = vadd.f32 %v519_v24, %v510_v16  ;;  %v714_v24 = vmul.f32 %v713_v44, %v1255_v22 }
  0xf7   : > { %v533_v27 = vadd.f32 %v531_v17, %v525_v25 }
  0xf8   : > { %v532_v28 = vadd.f32 %v530_v19, %v524_v26  ;;  %v543_v29 = vpop.permute.xlu1 %542 }
  0xf9   : > { %v541_v30 = vpop.permute.xlu0 %540  ;;  %v547_v21 = vadd.f32 %v543_v29, %v533_v27 }
  0xfa   : > { %v546_v38 = vadd.f32 %v541_v30, %v532_v28 }
  0xfc   : > { %v557_v40 = vpop.permute.xlu1 %556 }
  0xfd   : > { %v555_v42 = vpop.permute.xlu0 %554  ;;  %v561_v43 = vadd.f32 %v557_v40, %v547_v21 }
  0xfe   : > { %v560_v45 = vadd.f32 %v555_v42, %v546_v38 }
 0x100   : > { %v571_v31 = vpop.permute.xlu1 %570 }
 0x101   : > { %v569_v20 = vpop.permute.xlu0 %568  ;;  %v575_v47 = vadd.f32 %v571_v31, %v561_v43 }
 0x102   : > { %v574_v48 = vadd.f32 %v569_v20, %v560_v45 }
 0x104   : > { %v585_v32 = vpop.permute.xlu1 %584 }
 0x105   : > { %v583_v33 = vpop.permute.xlu0 %582  ;;  %v589_v1 = vadd.f32 %v585_v32, %v575_v47 }
 0x106   : > { %v588_v51 = vadd.f32 %v583_v33, %v574_v48 }
 0x108   : > { %v599_v34 = vpop.permute.xlu1 %598 }
 0x109   : > { %v597_v36 = vpop.permute.xlu0 %596  ;;  %v603_v53 = vadd.f32 %v599_v34, %v589_v1 }
 0x10a   : > { %v602_v54 = vadd.f32 %v597_v36, %v588_v51 }
 0x10c   : > { %v613_v37 = vpop.permute.xlu1 %612 }
 0x10d   : > { %v611_v18 = vpop.permute.xlu0 %610  ;;  %v617_v2 = vadd.f32 %v613_v37, %v603_v53 }
 0x10e   : > { %v616_v57 = vadd.f32 %v611_v18, %v602_v54 }
 0x10f   : > { %v625_v0 = vadd.f32 %v623_v58, %v617_v2 }
 0x110   : > { %v635_v39 = vpop.permute.xlu1 %634  ;;  %v624_v3 = vadd.f32 %v622_v59, %v616_v57 }
 0x111   : > { %v633_v41 = vpop.permute.xlu0 %632  ;;  %v639_v6 = vadd.f32 %v635_v39, %v625_v0 }
 0x112   : > { %v638_v7 = vadd.f32 %v633_v41, %v624_v3 }
 0x114   : > { %v649_v49 = vpop.permute.xlu1 %648 }
 0x115   : > { %v647_v50 = vpop.permute.xlu0 %646  ;;  %v653_v60 = vadd.f32 %v649_v49, %v639_v6 }
 0x116   : > { %v652_v8 = vadd.f32 %v647_v50, %v638_v7 }
 0x118   : > { %v663_v55 = vpop.permute.xlu1 %662 }
 0x119   : > { %v661_v56 = vpop.permute.xlu0 %660  ;;  %v667_v10 = vadd.f32 %v663_v55, %v653_v60 }
 0x11a   : > { %v666_v11 = vadd.f32 %v661_v56, %v652_v8 }
 0x11c   : > { %v677_v61 = vpop.permute.xlu1 %676 }
 0x11d   : > { %v675_v63 = vpop.permute.xlu0 %674  ;;  %v681_v12 = vadd.f32 %v677_v61, %v667_v10 }
 0x11e   : > { %v680_v13 = vadd.f32 %v675_v63, %v666_v11 }
 0x120   : > { %v691_v4 = vpop.permute.xlu1 %690 }
 0x121   : > { %v689_v5 = vpop.permute.xlu0 %688  ;;  %v695_v15 = vadd.f32 %v691_v4, %v681_v12 }
 0x122   : > { %v694_v16 = vadd.f32 %v689_v5, %v680_v13 }
 0x124   : > { %v705_v62 = vpop.permute.xlu1 %704 }
 0x125   : > { %v703_v9 = vpop.permute.xlu0 %702  ;;  %v709_v17 = vadd.f32 %v705_v62, %v695_v15 }
 0x126   : > { %v708_v19 = vadd.f32 %v703_v9, %v694_v16 }
 0x127   : > { %v717_v27 = vadd.f32 %v715_v23, %v709_v17 }
 0x128   : > { %v727_v14 = vpop.permute.xlu1 %726  ;;  %v716_v28 = vadd.f32 %v714_v24, %v708_v19 }
 0x129   : > { %v725_v46 = vpop.permute.xlu0 %724  ;;  %v731_v40 = vadd.f32 %v727_v14, %v717_v27 }
 0x12a   : > { %v730_v42 = vadd.f32 %v725_v46, %v716_v28 }
 0x12c   : > { %v741_v25 = vpop.permute.xlu1 %740 }
 0x12d   : > { %v739_v26 = vpop.permute.xlu0 %738  ;;  %v745_v32 = vadd.f32 %v741_v25, %v731_v40 }
 0x12e   : > { %v744_v33 = vadd.f32 %v739_v26, %v730_v42 }
 0x130   : > { %v755_v29 = vpop.permute.xlu1 %754 }
 0x131   : > { %v753_v30 = vpop.permute.xlu0 %752  ;;  %v759_v34 = vadd.f32 %v755_v29, %v745_v32 }
 0x132   : > { %v758_v36 = vadd.f32 %v753_v30, %v744_v33 }
 0x134   : > { %v769_v31 = vpop.permute.xlu1 %768 }
 0x135   : > { %v767_v20 = vpop.permute.xlu0 %766  ;;  %v773_v21 = vadd.f32 %v769_v31, %v759_v34 }
 0x136   : > { %v772_v35 = vadd.f32 %v767_v20, %v758_v36 }
 0x138   : > { %v783_v37 = vpop.permute.xlu1 %782 }
 0x139   : > { %v781_v18 = vpop.permute.xlu0 %780  ;;  %v787_v38 = vadd.f32 %v783_v37, %v773_v21 }
 0x13a   : > { %v786_v22 = vadd.f32 %v781_v18, %v772_v35 }
 0x13c   : > { %v797_v39 = vpop.permute.xlu1 %796 }
 0x13d   : > { %v795_v41 = vpop.permute.xlu0 %794  ;;  %v801_v43 = vadd.f32 %v797_v39, %v787_v38 }
 0x13e   : > { %v800_v45 = vadd.f32 %v795_v41, %v786_v22 }
 0x13f   : > { %v943_v47 = vmul.f32 -1.442695, %v801_v43 }
 0x140   : > { %v942_v48 = vmul.f32 -1.442695, %v800_v45 }
 0x141   : > { %973 = vpow2.f32 %v943_v47 }
 0x142   : > { %975 = vpow2.f32 %v942_v48 }
 0x14b   : > { %v974_v49 = vpop.eup %973 }
 0x14c   : > { %v976_v50 = vpop.eup %975  ;;  %v809_v1 = vadd.f32 1.0, %v974_v49 }
 0x14d   : > { %v808_v51 = vadd.f32 1.0, %v976_v50 }
 0x14e   : > { %977 = vrcp.f32 %v809_v1 }
 0x14f   : > { %979 = vrcp.f32 %v808_v51 }
 0x158   : > { %v978_v52 = vpop.eup %977 }
 0x159   : > { %v980_v53 = vpop.eup %979  ;;  %816 = vst.msk [vmem:[%s157_s4 + $0x8] sm:$0xff] %vm814_vm0, %v978_v52 }
 0x15a   : > { %815 = vst.msk [vmem:[%s157_s4] sm:$0xff] %vm814_vm0, %v980_v53 }
 0x15b PF: > { %s13_s9 = sadd.s32 1, %s1006_s9  }
 0x15c   : > { %p10_p1 = scmp.ge.s32.totalorder %s13_s9, 4  }
 0x15e   :  { %12 = sbr.rel (!%p10_p1) target bundleno = 1 (0x1), region = 63 }
 0x165   :  { %838 = vsyncpa [#allocation3], 1 }
 0x166   :  { %840 = vsyncpa [#allocation3 + $0x1], 1 }

// kernel: cscm3_forward.7
= control target key start
LH: loop header
LB: loop body
LE: loop exit
PB: predicated region body
PF: predicated region fallthrough
CT: control target
= control target key end

     0   :  { %s15607_s12 = smov 0   ;;  %s18613_s0 = inlined_call_operand.vmem [shape: f32[2,24,24,4], index: 0, kind: input, shape index: {}]   ;;  %s18614_s1 = inlined_call_operand.vmem [shape: bf16[4,9,4,4], index: 1, kind: input, shape index: {}]   ;;  %s18615_s2 = inlined_call_operand.vmem [shape: f32[4,1,4], index: 2, kind: input, shape index: {}]   ;;  %s18616_s3 = inlined_call_operand.vmem [shape: f32[2,16,16,16], index: 3, kind: output, shape index: {}]  }
   0x1 LB: > { %s11078_s13 = sadd.s32 4294967295, %s15582_s12   ;;  %p11082_p0 = scmp.ge.s32.totalorder %s15582_s12, 1  ;;  %s15582_s12 = sphi %s15607_s12, %s13_s12  }
   0x2   : > { %p137_p1 = scmp.lt.s32.totalorder %s15582_s12, 3 }
   0x4   : > { %p138_p2 = pnand %p11082_p0, %p137_p1 }
   0x6   : > { %141 = sbr.rel (%p138_p2) target bundleno = 1570 (0x622), region = 32 }
   0xd   : > { %v11150_v0 = vld [vmem:[%s18614_s1 + $0x2] sm:$0x3]  ;;  %vm321_vm0 = vcmask 1041408   ;;  %v11592_v1 = vld [vmem:[%s18614_s1 + $0x14] sm:$0x3]  ;;  %p161_p3 = scmp.lt.s32.totalorder %s11078_s13, 1 }
   0xe   : > { %15527 = vmatprep.subr.msk.bf16.mxu0 %vm321_vm0, %v11150_v0  ;;  %v323_v2 = vsel %vm321_vm0, %v11150_v0, 0  ;;  %15536 = vmatprep.subr.msk.bf16.mxu1 %vm321_vm0, %v11592_v1  ;;  %v2979_v3 = vsel %vm321_vm0, %v11592_v1, 0  ;;  %v221_v4 = vld [vmem:[%s18614_s1] sm:$0x3]  ;;  %v11559_v5 = vld [vmem:[%s18614_s1 + $0x12] sm:$0x3] }
   0xf   : > { %13280 = vmatpush3.bf16.msra.mxu0 %v323_v2  ;;  %13586 = vmatpush3.bf16.msra.mxu1 %v2979_v3  ;;  %s18760_s13 = smov (!%p161_p3, %s11078_s13), 1  ;;  %vm272_vm1 = vcmask 31744   ;;  %v535_v15 = vsel %vm321_vm0, %v221_v4, 0  ;;  %v3191_v18 = vsel %vm321_vm0, %v11559_v5, 0  ;;  %v15657_v20 = vld [vmem:[%s18614_s1 + $0x4] sm:$0x3] }
  0x10   : > { %15528 = vmatprep.subr.msk.bf16.mxu0 %vm321_vm0, %v221_v4  ;;  %15537 = vmatprep.subr.msk.bf16.mxu1 %vm321_vm0, %v11559_v5  ;;  %s15563_s22 = smul.u32 576, %s18760_s13  ;;  %v15665_v23 = vld [vmem:[%s18614_s1 + $0x16] sm:$0x3]  ;;  %s15584_s28 = smov 4   ;;  %vm10924_vm2 = vcmask 64512   ;;  %vm10957_vm3 = vcmask 97280  }
  0x11   : > { %s15586_s27 = smov 12   ;;  %s12666_s30 = sshll.u32 %s18760_s13, 8  ;;  %vm10990_vm4 = vcmask 130048  }
  0x12   : > { %s15639_s25 = scalar_lea.vmem %s18613_s0, %s15563_s22  ;;  %s18434_s6 = scalar_lea.vmem %s18616_s3, %s12666_s30 }
  0x13   : > { %v11118_v6 = vld [vmem:[%s15639_s25 + $0x4c] sm:$0xff]  ;;  %v11119_v7 = vld [vmem:[%s15639_s25 + $0x54] sm:$0xff]  ;;  %v11561_v10 = vld [vmem:[%s15639_s25 + $0x3c] sm:$0xff] }
  0x14   : > { %v11560_v8 = vld [vmem:[%s15639_s25 + $0x34] sm:$0xff]  ;;  %v254_v9 = vpack.c.bf16 %v11119_v7, %v11118_v6  ;;  %v11120_v11 = vld [vmem:[%s15639_s25 + $0x64] sm:$0xff]  ;;  %v11121_v12 = vld [vmem:[%s15639_s25 + $0x6c] sm:$0xff] }
  0x15   : > { %v2912_v13 = vpack.c.bf16 %v11561_v10, %v11560_v8  ;;  %v255_v14 = vpack.c.bf16 %v11121_v12, %v11120_v11  ;;  %v11122_v16 = vld [vmem:[%s15639_s25 + $0x7c] sm:$0xff]  ;;  %v11123_v17 = vld [vmem:[%s15639_s25 + $0x84] sm:$0xff]  ;;  %v11124_v21 = vld [vmem:[%s15639_s25 + $0x94] sm:$0xff] }
  0x16   : > { %13281 = vmatprep.mubr.msk.bf16.mxu0 %vm272_vm1, %v254_v9  ;;  %v256_v19 = vpack.c.bf16 %v11123_v17, %v11122_v16  ;;  %v11125_v22 = vld [vmem:[%s15639_s25 + $0x9c] sm:$0xff]  ;;  %v11126_v24 = vld [vmem:[%s15639_s25 + $0xac] sm:$0xff]  ;;  %v11127_v25 = vld [vmem:[%s15639_s25 + $0xb4] sm:$0xff] }
  0x17   : > { %13587 = vmatprep.mubr.msk.bf16.mxu1 %vm272_vm1, %v2912_v13  ;;  %13282 = vmatmul.mubr.msk.bf16.vlgmr.msra.gmra.mrb[0].mxu0 %vm272_vm1, %v255_v14  ;;  %v257_v26 = vpack.c.bf16 %v11125_v22, %v11124_v21  ;;  %v258_v27 = vpack.c.bf16 %v11127_v25, %v11126_v24  ;;  %v11128_v28 = vld [vmem:[%s15639_s25 + $0xc4] sm:$0xff]  ;;  %v11129_v29 = vld [vmem:[%s15639_s25 + $0xcc] sm:$0xff]  ;;  %v11130_v30 = vld [vmem:[%s15639_s25 + $0xdc] sm:$0xff]  ;;  %v797_v13 = vsel %vm321_vm0, %v15657_v20, 0 }
  0x18   : > { %13314 = vmatpush3.bf16.msra.mxu0 %v535_v15  ;;  %13588 = vmatmul.mubr.msk.bf16.vlgmr.msra.gmra.mrb[0].mxu1 %vm272_vm1, %v254_v9  ;;  %v11131_v31 = vld [vmem:[%s15639_s25 + $0xe4] sm:$0xff]  ;;  %v259_v32 = vpack.c.bf16 %v11129_v29, %v11128_v28  ;;  %v11132_v34 = vld [vmem:[%s15639_s25 + $0xf4] sm:$0xff]  ;;  %v11133_v35 = vld [vmem:[%s15639_s25 + $0xfc] sm:$0xff]  ;;  %v3453_v15 = vsel %vm321_vm0, %v15665_v23, 0 }
  0x19   : > { %13620 = vmatpush3.bf16.msra.mxu1 %v3191_v18  ;;  %13285 = vmatprep.mubr.msk.bf16.mxu0 %vm272_vm1, %v256_v19  ;;  %v260_v33 = vpack.c.bf16 %v11131_v31, %v11130_v30  ;;  %v11134_v36 = vld [vmem:[%s15639_s25 + $0x10c] sm:$0xff]  ;;  %v11135_v37 = vld [vmem:[%s15639_s25 + $0x114] sm:$0xff]  ;;  %v261_v38 = vpack.c.bf16 %v11133_v35, %v11132_v34  ;;  %v11136_v40 = vld [vmem:[%s15639_s25 + $0x124] sm:$0xff] }
  0x1a   : > { %13591 = vmatprep.mubr.msk.bf16.mxu1 %vm272_vm1, %v255_v14  ;;  %15529 = vmatprep.subr.msk.bf16.mxu0 %vm321_vm0, %v15657_v20  ;;  %v262_v39 = vpack.c.bf16 %v11135_v37, %v11134_v36  ;;  %v11137_v41 = vld [vmem:[%s15639_s25 + $0x12c] sm:$0xff]  ;;  %v11138_v42 = vld [vmem:[%s15639_s25 + $0x13c] sm:$0xff]  ;;  %v11139_v43 = vld [vmem:[%s15639_s25 + $0x144] sm:$0xff] }
  0x1b   : > { %15538 = vmatprep.subr.msk.bf16.mxu1 %vm321_vm0, %v15665_v23  ;;  %v15699_v44 = vpack.c.bf16 %v11137_v41, %v11136_v40  ;;  %v15701_v45 = vpack.c.bf16 %v11139_v43, %v11138_v42  ;;  %v11140_v46 = vld [vmem:[%s15639_s25 + $0x154] sm:$0xff]  ;;  %v11141_v47 = vld [vmem:[%s15639_s25 + $0x15c] sm:$0xff]  ;;  %v11142_v48 = vld [vmem:[%s15639_s25 + $0x16c] sm:$0xff] }
  0x1c   : > { %v11143_v49 = vld [vmem:[%s15639_s25 + $0x174] sm:$0xff]  ;;  %v15714_v50 = vpack.c.bf16 %v11141_v47, %v11140_v46  ;;  %v11144_v52 = vld [vmem:[%s15639_s25 + $0x184] sm:$0xff]  ;;  %v11145_v53 = vld [vmem:[%s15639_s25 + $0x18c] sm:$0xff] }
  0x1d   : > { %18657 = vst [vmem:[#allocation2_spill] sm:$0xff] %v15699_v44  ;;  %18658 = vst [vmem:[#allocation3_spill] sm:$0xff] %v15701_v45  ;;  %v15716_v51 = vpack.c.bf16 %v11143_v49, %v11142_v48  ;;  %v11146_v54 = vld [vmem:[%s15639_s25 + $0x19c] sm:$0xff]  ;;  %v11147_v55 = vld [vmem:[%s15639_s25 + $0x1a4] sm:$0xff]  ;;  %v15730_v56 = vpack.c.bf16 %v11145_v53, %v11144_v52 }
  0x1e   : > { %18659 = vst [vmem:[#allocation4_spill] sm:$0xff] %v15714_v50  ;;  %v15732_v57 = vpack.c.bf16 %v11147_v55, %v11146_v54  ;;  %v11148_v58 = vld [vmem:[%s15639_s25 + $0x1b4] sm:$0xff]  ;;  %v11149_v59 = vld [vmem:[%s15639_s25 + $0x1bc] sm:$0xff]  ;;  %v11086_v60 = vld [vmem:[%s15639_s25 + $0x4b] sm:$0xff] }
  0x1f   : > { %13286 = vmatmul.mubr.msk.bf16.gmra.mrb[4].mxu0 %vm272_vm1, %v257_v26  ;;  %18660 = vst [vmem:[#allocation5_spill] sm:$0xff] %v15716_v51  ;;  %18661 = vst [vmem:[#allocation6_spill] sm:$0xff] %v15730_v56  ;;  %v11087_v61 = vld [vmem:[%s15639_s25 + $0x53] sm:$0xff]  ;;  %v15748_v0 = vpack.c.bf16 %v11149_v59, %v11148_v58  ;;  %v11088_v3 = vld [vmem:[%s15639_s25 + $0x63] sm:$0xff] }
  0x20   : > { %13592 = vmatmul.mubr.msk.bf16.gmra.mrb[4].mxu1 %vm272_vm1, %v256_v19  ;;  %13289 = vmatprep.mubr.msk.bf16.mxu0 %vm272_vm1, %v258_v27  ;;  %18662 = vst [vmem:[#allocation7_spill] sm:$0xff] %v15732_v57  ;;  %v11527_v62 = vld [vmem:[%s15639_s25 + $0x32] sm:$0xff]  ;;  %v11528_v63 = vld [vmem:[%s15639_s25 + $0x3a] sm:$0xff]  ;;  %v205_v1 = vpack.c.bf16 %v11087_v61, %v11086_v60  ;;  %v11529_v5 = vld [vmem:[%s15639_s25 + $0x4a] sm:$0xff] }
  0x21   : > { %13595 = vmatprep.mubr.msk.bf16.mxu1 %vm272_vm1, %v257_v26  ;;  %18663 = vst [vmem:[#allocation8_spill] sm:$0xff] %v15748_v0  ;;  %v2862_v2 = vpack.c.bf16 %v11528_v63, %v11527_v62  ;;  %v11089_v4 = vld [vmem:[%s15639_s25 + $0x6b] sm:$0xff]  ;;  %v11090_v7 = vld [vmem:[%s15639_s25 + $0x7b] sm:$0xff]  ;;  %v11091_v8 = vld [vmem:[%s15639_s25 + $0x83] sm:$0xff] }
  0x22   : > { %v11530_v6 = vld [vmem:[%s15639_s25 + $0x52] sm:$0xff]  ;;  %v15762_v9 = vpack.c.bf16 %v11089_v4, %v11088_v3  ;;  %v11531_v10 = vld [vmem:[%s15639_s25 + $0x62] sm:$0xff]  ;;  %v11532_v11 = vld [vmem:[%s15639_s25 + $0x6a] sm:$0xff]  ;;  %v15768_v14 = vpack.c.bf16 %v11091_v8, %v11090_v7 }
  0x23   : > { %v2863_v12 = vpack.c.bf16 %v11530_v6, %v11529_v5  ;;  %v15772_v16 = vpack.c.bf16 %v11532_v11, %v11531_v10  ;;  %v11092_v17 = vld [vmem:[%s15639_s25 + $0x93] sm:$0xff]  ;;  %v15780_v18 = vld [vmem:[%s18614_s1 + $0x6] sm:$0x3]  ;;  %v11093_v19 = vld [vmem:[%s15639_s25 + $0x9b] sm:$0xff] }
  0x24   : > { %v11533_v20 = vld [vmem:[%s15639_s25 + $0x7a] sm:$0xff]  ;;  %v15788_v21 = vld [vmem:[%s18614_s1 + $0x18] sm:$0x3]  ;;  %v11534_v22 = vld [vmem:[%s15639_s25 + $0x82] sm:$0xff] }
  0x25   : > { %v11094_v23 = vld [vmem:[%s15639_s25 + $0xab] sm:$0xff]  ;;  %v11095_v24 = vld [vmem:[%s15639_s25 + $0xb3] sm:$0xff]  ;;  %v15805_v28 = vpack.c.bf16 %v11534_v22, %v11533_v20  ;;  %v11096_v31 = vld [vmem:[%s15639_s25 + $0xc3] sm:$0xff] }
  0x26   : > { %v11535_v25 = vld [vmem:[%s15639_s25 + $0x92] sm:$0xff]  ;;  %v11536_v26 = vld [vmem:[%s15639_s25 + $0x9a] sm:$0xff]  ;;  %v15807_v29 = vpack.c.bf16 %v11095_v24, %v11094_v23  ;;  %v11099_v36 = vld [vmem:[%s15639_s25 + $0xe3] sm:$0xff] }
  0x27   : > { %13290 = vmatmul.mubr.msk.bf16.gmra.mrb[8].mxu0 %vm272_vm1, %v259_v32  ;;  %v15809_v30 = vpack.c.bf16 %v11536_v26, %v11535_v25  ;;  %v11538_v34 = vld [vmem:[%s15639_s25 + $0xb2] sm:$0xff]  ;;  %v11098_v35 = vld [vmem:[%s15639_s25 + $0xdb] sm:$0xff]  ;;  %v11104_v61 = vld [vmem:[%s15639_s25 + $0x123] sm:$0xff] }
  0x28   : > { %13596 = vmatmul.mubr.msk.bf16.gmra.mrb[8].mxu1 %vm272_vm1, %v258_v27  ;;  %13293 = vmatprep.mubr.msk.bf16.mxu0 %vm272_vm1, %v260_v33  ;;  %v15801_v27 = vpack.c.bf16 %v11093_v19, %v11092_v17  ;;  %v11539_v37 = vld [vmem:[%s15639_s25 + $0xc2] sm:$0xff]  ;;  %v15831_v41 = vpack.c.bf16 %v11099_v36, %v11098_v35  ;;  %v11100_v43 = vld [vmem:[%s15639_s25 + $0xf3] sm:$0xff]  ;;  %v11102_v49 = vld [vmem:[%s15639_s25 + $0x10b] sm:$0xff] }
  0x29   : > { %13599 = vmatprep.mubr.msk.bf16.mxu1 %vm272_vm1, %v259_v32  ;;  %v11097_v32 = vld [vmem:[%s15639_s25 + $0xcb] sm:$0xff]  ;;  %v11101_v46 = vld [vmem:[%s15639_s25 + $0xfb] sm:$0xff]  ;;  %v11103_v52 = vld [vmem:[%s15639_s25 + $0x113] sm:$0xff] }
  0x2a   : > { %v11541_v47 = vld [vmem:[%s15639_s25 + $0xda] sm:$0xff]  ;;  %v11542_v48 = vld [vmem:[%s15639_s25 + $0xe2] sm:$0xff]  ;;  %v11543_v53 = vld [vmem:[%s15639_s25 + $0xf2] sm:$0xff]  ;;  %v15851_v55 = vpack.c.bf16 %v11101_v46, %v11100_v43  ;;  %v15855_v59 = vpack.c.bf16 %v11103_v52, %v11102_v49 }
  0x2b   : > { %v11544_v54 = vld [vmem:[%s15639_s25 + $0xfa] sm:$0xff]  ;;  %v15853_v58 = vpack.c.bf16 %v11542_v48, %v11541_v47  ;;  %v11105_v62 = vld [vmem:[%s15639_s25 + $0x12b] sm:$0xff]  ;;  %v11107_v3 = vld [vmem:[%s15639_s25 + $0x143] sm:$0xff] }
  0x2c   : > { %v15857_v60 = vpack.c.bf16 %v11544_v54, %v11543_v53  ;;  %v11545_v63 = vld [vmem:[%s15639_s25 + $0x10a] sm:$0xff]  ;;  %v11547_v4 = vld [vmem:[%s15639_s25 + $0x122] sm:$0xff]  ;;  %v15875_v6 = vpack.c.bf16 %v11105_v62, %v11104_v61  ;;  %v11108_v11 = vld [vmem:[%s15639_s25 + $0x153] sm:$0xff] }
  0x2d   : > { %v11548_v5 = vld [vmem:[%s15639_s25 + $0x12a] sm:$0xff]  ;;  %v11111_v19 = vld [vmem:[%s15639_s25 + $0x173] sm:$0xff]  ;;  %v11114_v35 = vld [vmem:[%s15639_s25 + $0x19b] sm:$0xff] }
  0x2e   : > { %v15881_v10 = vpack.c.bf16 %v11548_v5, %v11547_v4  ;;  %v11110_v17 = vld [vmem:[%s15639_s25 + $0x16b] sm:$0xff]  ;;  %v11552_v22 = vld [vmem:[%s15639_s25 + $0x15a] sm:$0xff]  ;;  %v11115_v36 = vld [vmem:[%s15639_s25 + $0x1a3] sm:$0xff] }
  0x2f   : > { %13294 = vmatmul.mubr.msk.bf16.gmra.mrb[12].mxu0 %vm272_vm1, %v261_v38  ;;  %v11551_v20 = vld [vmem:[%s15639_s25 + $0x152] sm:$0xff]  ;;  %v15903_v25 = vpack.c.bf16 %v11111_v19, %v11110_v17  ;;  %v15927_v47 = vpack.c.bf16 %v11115_v36, %v11114_v35  ;;  %v11117_v52 = vld [vmem:[%s15639_s25 + $0x1bb] sm:$0xff]  ;;  %v11188_v19 = vld [vmem:[%s15639_s25 + $0x85] sm:$0xff]  ;;  %v3747_v35 = vsel %vm321_vm0, %v15788_v21, 0 }
  0x30   : > { %13600 = vmatmul.mubr.msk.bf16.gmra.mrb[12].mxu1 %vm272_vm1, %v260_v33  ;;  %13297 = vmatprep.mubr.msk.bf16.mxu0 %vm272_vm1, %v262_v39  ;;  %v11537_v33 = vld [vmem:[%s15639_s25 + $0xaa] sm:$0xff]  ;;  %v15905_v26 = vpack.c.bf16 %v11552_v22, %v11551_v20  ;;  %v11116_v49 = vld [vmem:[%s15639_s25 + $0x1b3] sm:$0xff]  ;;  %v11558_v54 = vld [vmem:[%s15639_s25 + $0x1a2] sm:$0xff] }
  0x31   : > { %13603 = vmatprep.mubr.msk.bf16.mxu1 %vm272_vm1, %v261_v38  ;;  %v11540_v38 = vld [vmem:[%s15639_s25 + $0xca] sm:$0xff]  ;;  %v15829_v40 = vpack.c.bf16 %v11538_v34, %v11537_v33  ;;  %v11554_v34 = vld [vmem:[%s15639_s25 + $0x172] sm:$0xff]  ;;  %v11557_v53 = vld [vmem:[%s15639_s25 + $0x19a] sm:$0xff] }
  0x32   : > { %v15833_v42 = vpack.c.bf16 %v11540_v38, %v11539_v37  ;;  %v11553_v33 = vld [vmem:[%s15639_s25 + $0x16a] sm:$0xff]  ;;  %v11555_v37 = vld [vmem:[%s15639_s25 + $0x182] sm:$0xff]  ;;  %v11184_v62 = vld [vmem:[%s15639_s25 + $0x55] sm:$0xff] }
  0x33   : > { %v11556_v38 = vld [vmem:[%s15639_s25 + $0x18a] sm:$0xff]  ;;  %v15925_v46 = vpack.c.bf16 %v11554_v34, %v11553_v33  ;;  %v11187_v17 = vld [vmem:[%s15639_s25 + $0x7d] sm:$0xff]  ;;  %v1092_v33 = vsel %vm321_vm0, %v15780_v18, 0 }
  0x34   : > { %v15929_v48 = vpack.c.bf16 %v11556_v38, %v11555_v37  ;;  %v11183_v61 = vld [vmem:[%s15639_s25 + $0x4d] sm:$0xff]  ;;  %v15969_v34 = vpack.c.bf16 %v11188_v19, %v11187_v17  ;;  %v11189_v37 = vld [vmem:[%s15639_s25 + $0x95] sm:$0xff]  ;;  %v15981_v38 = vld [vmem:[%s18614_s1 + $0x8] sm:$0x3] }
  0x35   : > { %v730_v4 = vpack.c.bf16 %v11184_v62, %v11183_v61  ;;  %v11629_v22 = vld [vmem:[%s15639_s25 + $0x66] sm:$0xff]  ;;  %v11633_v61 = vld [vmem:[%s15639_s25 + $0x96] sm:$0xff]  ;;  %v11634_v62 = vld [vmem:[%s15639_s25 + $0x9e] sm:$0xff] }
  0x36   : > { %v11195_v17 = vld [vmem:[%s15639_s25 + $0xdd] sm:$0xff]  ;;  %v11196_v19 = vld [vmem:[%s15639_s25 + $0xe5] sm:$0xff] }
  0x37   : > { %13298 = vmatmul.mubr.msk.bf16.gmra.mrb[16].mxu0 %vm272_vm1, %v15699_v44 }
  0x38   : > { %13604 = vmatmul.mubr.msk.bf16.gmra.mrb[16].mxu1 %vm272_vm1, %v262_v39  ;;  %13301 = vmatprep.mubr.msk.bf16.mxu0 %vm272_vm1, %v15701_v45  ;;  %v15827_v39 = vpack.c.bf16 %v11097_v32, %v11096_v31  ;;  %v11112_v31 = vld [vmem:[%s15639_s25 + $0x183] sm:$0xff]  ;;  %v11113_v32 = vld [vmem:[%s15639_s25 + $0x18b] sm:$0xff] }
  0x39   : > { %13607 = vmatprep.mubr.msk.bf16.mxu1 %vm272_vm1, %v15699_v44  ;;  %v15923_v43 = vpack.c.bf16 %v11113_v32, %v11112_v31  ;;  %v11630_v31 = vld [vmem:[%s15639_s25 + $0x6e] sm:$0xff] }
  0x3a   : > { %v15973_v36 = vpack.c.bf16 %v11630_v31, %v11629_v22  ;;  %v11637_v22 = vld [vmem:[%s15639_s25 + $0xc6] sm:$0xff]  ;;  %v11638_v31 = vld [vmem:[%s15639_s25 + $0xce] sm:$0xff] }
  0x3f   : > { %13302 = vmatmul.mubr.msk.bf16.gmra.mrb[20].mxu0 %vm272_vm1, %v15714_v50 }
  0x40   : > { %13608 = vmatmul.mubr.msk.bf16.gmra.mrb[20].mxu1 %vm272_vm1, %v15701_v45  ;;  %13305 = vmatprep.mubr.msk.bf16.mxu0 %vm272_vm1, %v15716_v51 }
  0x41   : > { %13611 = vmatprep.mubr.msk.bf16.mxu1 %vm272_vm1, %v15714_v50 }
  0x47   : > { %13306 = vmatmul.mubr.msk.bf16.gmra.mrb[24].mxu0 %vm272_vm1, %v15730_v56 }
  0x48   : > { %13612 = vmatmul.mubr.msk.bf16.gmra.mrb[24].mxu1 %vm272_vm1, %v15716_v51  ;;  %13309 = vmatprep.mubr.msk.bf16.mxu0 %vm272_vm1, %v15732_v57 }
  0x49   : > { %13615 = vmatprep.mubr.msk.bf16.mxu1 %vm272_vm1, %v15730_v56 }
  0x4f   : > { %13310 = vmatmul.mubr.msk.bf16.gmra.mrb[28].mxu0 %vm272_vm1, %v15748_v0 }
  0x50   : > { %13616 = vmatmul.mubr.msk.bf16.gmra.mrb[28].mxu1 %vm272_vm1, %v15732_v57  ;;  %13315 = vmatprep.mubr.msk.bf16.mxu0 %vm272_vm1, %v205_v1  ;;  %v11546_v1 = vld [vmem:[%s15639_s25 + $0x112] sm:$0xff] }
  0x51   : > { %13621 = vmatprep.mubr.msk.bf16.mxu1 %vm272_vm1, %v2862_v2  ;;  %v11106_v2 = vld [vmem:[%s15639_s25 + $0x13b] sm:$0xff]  ;;  %v15877_v7 = vpack.c.bf16 %v11546_v1, %v11545_v63 }
  0x52   : > { %v15879_v8 = vpack.c.bf16 %v11107_v3, %v11106_v2  ;;  %v11625_v63 = vld [vmem:[%s15639_s25 + $0x36] sm:$0xff]  ;;  %v11626_v1 = vld [vmem:[%s15639_s25 + $0x3e] sm:$0xff]  ;;  %v15947_v2 = vpack.c.bf16 %v11117_v52, %v11116_v49  ;;  %v15949_v3 = vpack.c.bf16 %v11558_v54, %v11557_v53  ;;  %v11632_v52 = vld [vmem:[%s15639_s25 + $0x86] sm:$0xff] }
  0x53   : > { %v3386_v5 = vpack.c.bf16 %v11626_v1, %v11625_v63  ;;  %v11631_v49 = vld [vmem:[%s15639_s25 + $0x7e] sm:$0xff]  ;;  %v11191_v53 = vld [vmem:[%s15639_s25 + $0xad] sm:$0xff]  ;;  %v11192_v54 = vld [vmem:[%s15639_s25 + $0xb5] sm:$0xff] }
  0x54   : > { %v16006_v1 = vpack.c.bf16 %v11632_v52, %v11631_v49  ;;  %v11198_v49 = vld [vmem:[%s15639_s25 + $0xfd] sm:$0xff] }
  0x55   : > { %v11639_v52 = vld [vmem:[%s15639_s25 + $0xde] sm:$0xff] }
  0x57   : > { %13316 = vmatmul.mubr.msk.bf16.vlgmr.msra.gmra.mrb[0].mxu0 %vm272_vm1, %v15762_v9 }
  0x58   : > { %13348 = vmatpush3.bf16.msra.mxu0 %v797_v13  ;;  %13622 = vmatmul.mubr.msk.bf16.vlgmr.msra.gmra.mrb[0].mxu1 %vm272_vm1, %v2863_v12  ;;  %v11109_v12 = vld [vmem:[%s15639_s25 + $0x15b] sm:$0xff] }
  0x59   : > { %13654 = vmatpush3.bf16.msra.mxu1 %v3453_v15  ;;  %13319 = vmatprep.mubr.msk.bf16.mxu0 %vm272_vm1, %v15768_v14  ;;  %v11549_v13 = vld [vmem:[%s15639_s25 + $0x13a] sm:$0xff]  ;;  %v11550_v15 = vld [vmem:[%s15639_s25 + $0x142] sm:$0xff]  ;;  %v15899_v23 = vpack.c.bf16 %v11109_v12, %v11108_v11  ;;  %v11186_v12 = vld [vmem:[%s15639_s25 + $0x6d] sm:$0xff] }
  0x5a   : > { %13625 = vmatprep.mubr.msk.bf16.mxu1 %vm272_vm1, %v15772_v16  ;;  %15530 = vmatprep.subr.msk.bf16.mxu0 %vm321_vm0, %v15780_v18  ;;  %v15901_v24 = vpack.c.bf16 %v11550_v15, %v11549_v13  ;;  %v11185_v11 = vld [vmem:[%s15639_s25 + $0x65] sm:$0xff]  ;;  %v11627_v13 = vld [vmem:[%s15639_s25 + $0x4e] sm:$0xff]  ;;  %v11628_v15 = vld [vmem:[%s15639_s25 + $0x56] sm:$0xff] }
  0x5b   : > { %15539 = vmatprep.subr.msk.bf16.mxu1 %vm321_vm0, %v15788_v21  ;;  %v15963_v20 = vpack.c.bf16 %v11186_v12, %v11185_v11  ;;  %v3387_v32 = vpack.c.bf16 %v11628_v15, %v11627_v13  ;;  %v11190_v18 = vld [vmem:[%s15639_s25 + $0x9d] sm:$0xff]  ;;  %v15989_v21 = vld [vmem:[%s18614_s1 + $0x1a] sm:$0x3]  ;;  %v11193_v11 = vld [vmem:[%s15639_s25 + $0xc5] sm:$0xff] }
  0x5c   : > { %v16002_v63 = vpack.c.bf16 %v11190_v18, %v11189_v37  ;;  %v11194_v12 = vld [vmem:[%s15639_s25 + $0xcd] sm:$0xff]  ;;  %v11636_v15 = vld [vmem:[%s15639_s25 + $0xb6] sm:$0xff]  ;;  %v16034_v37 = vpack.c.bf16 %v11638_v31, %v11637_v22 }
  0x5d   : > { %v11635_v13 = vld [vmem:[%s15639_s25 + $0xae] sm:$0xff] }
  0x5e   : > { %v11197_v18 = vld [vmem:[%s15639_s25 + $0xf5] sm:$0xff]  ;;  %v11202_v22 = vld [vmem:[%s15639_s25 + $0x12d] sm:$0xff] }
  0x5f   : > { %13320 = vmatmul.mubr.msk.bf16.gmra.mrb[4].mxu0 %vm272_vm1, %v15801_v27  ;;  %v11643_v31 = vld [vmem:[%s15639_s25 + $0x10e] sm:$0xff] }
  0x60   : > { %13626 = vmatmul.mubr.msk.bf16.gmra.mrb[4].mxu1 %vm272_vm1, %v15805_v28  ;;  %13323 = vmatprep.mubr.msk.bf16.mxu0 %vm272_vm1, %v15807_v29 }
  0x61   : > { %13629 = vmatprep.mubr.msk.bf16.mxu1 %vm272_vm1, %v15809_v30 }
  0x67   : > { %13324 = vmatmul.mubr.msk.bf16.gmra.mrb[8].mxu0 %vm272_vm1, %v15827_v39 }
  0x68   : > { %13630 = vmatmul.mubr.msk.bf16.gmra.mrb[8].mxu1 %vm272_vm1, %v15829_v40  ;;  %13327 = vmatprep.mubr.msk.bf16.mxu0 %vm272_vm1, %v15831_v41 }
  0x69   : > { %13633 = vmatprep.mubr.msk.bf16.mxu1 %vm272_vm1, %v15833_v42 }
  0x6f   : > { %13328 = vmatmul.mubr.msk.bf16.gmra.mrb[12].mxu0 %vm272_vm1, %v15851_v55 }
  0x70   : > { %13634 = vmatmul.mubr.msk.bf16.gmra.mrb[12].mxu1 %vm272_vm1, %v15853_v58  ;;  %13331 = vmatprep.mubr.msk.bf16.mxu0 %vm272_vm1, %v15855_v59 }
  0x71   : > { %13637 = vmatprep.mubr.msk.bf16.mxu1 %vm272_vm1, %v15857_v60 }
  0x77   : > { %13332 = vmatmul.mubr.msk.bf16.gmra.mrb[16].mxu0 %vm272_vm1, %v15875_v6 }
  0x78   : > { %13638 = vmatmul.mubr.msk.bf16.gmra.mrb[16].mxu1 %vm272_vm1, %v15877_v7  ;;  %13335 = vmatprep.mubr.msk.bf16.mxu0 %vm272_vm1, %v15879_v8 }
  0x79   : > { %13641 = vmatprep.mubr.msk.bf16.mxu1 %vm272_vm1, %v15881_v10 }
  0x7f   : > { %13336 = vmatmul.mubr.msk.bf16.gmra.mrb[20].mxu0 %vm272_vm1, %v15899_v23 }
  0x80   : > { %13642 = vmatmul.mubr.msk.bf16.gmra.mrb[20].mxu1 %vm272_vm1, %v15901_v24  ;;  %13339 = vmatprep.mubr.msk.bf16.mxu0 %vm272_vm1, %v15903_v25 }
  0x81   : > { %13645 = vmatprep.mubr.msk.bf16.mxu1 %vm272_vm1, %v15905_v26 }
  0x87   : > { %13340 = vmatmul.mubr.msk.bf16.gmra.mrb[24].mxu0 %vm272_vm1, %v15923_v43 }
  0x88   : > { %13646 = vmatmul.mubr.msk.bf16.gmra.mrb[24].mxu1 %vm272_vm1, %v15925_v46  ;;  %13343 = vmatprep.mubr.msk.bf16.mxu0 %vm272_vm1, %v15927_v47 }
  0x89   : > { %13649 = vmatprep.mubr.msk.bf16.mxu1 %vm272_vm1, %v15929_v48 }
  0x8f   : > { %13344 = vmatmul.mubr.msk.bf16.gmra.mrb[28].mxu0 %vm272_vm1, %v15947_v2 }
  0x90   : > { %13650 = vmatmul.mubr.msk.bf16.gmra.mrb[28].mxu1 %vm272_vm1, %v15949_v3  ;;  %13349 = vmatprep.mubr.msk.bf16.mxu0 %vm272_vm1, %v730_v4  ;;  %v16008_v4 = vpack.c.bf16 %v11192_v54, %v11191_v53  ;;  %v11640_v53 = vld [vmem:[%s15639_s25 + $0xe6] sm:$0xff] }
  0x91   : > { %13655 = vmatprep.mubr.msk.bf16.mxu1 %vm272_vm1, %v3386_v5  ;;  %v16010_v5 = vpack.c.bf16 %v11634_v62, %v11633_v61  ;;  %v11199_v54 = vld [vmem:[%s15639_s25 + $0x10d] sm:$0xff]  ;;  %v11200_v61 = vld [vmem:[%s15639_s25 + $0x115] sm:$0xff] }
  0x92   : > { %v11641_v62 = vld [vmem:[%s15639_s25 + $0xf6] sm:$0xff] }
  0x97   : > { %13350 = vmatmul.mubr.msk.bf16.vlgmr.msra.gmra.mrb[0].mxu0 %vm272_vm1, %v15963_v20 }
  0x98   : > { %13382 = vmatpush3.bf16.msra.mxu0 %v1092_v33  ;;  %13656 = vmatmul.mubr.msk.bf16.vlgmr.msra.gmra.mrb[0].mxu1 %vm272_vm1, %v3387_v32  ;;  %v16028_v32 = vpack.c.bf16 %v11194_v12, %v11193_v11  ;;  %v16030_v33 = vpack.c.bf16 %v11636_v15, %v11635_v13  ;;  %v11642_v11 = vld [vmem:[%s15639_s25 + $0xfe] sm:$0xff]  ;;  %v16052_v12 = vpack.c.bf16 %v11198_v49, %v11197_v18  ;;  %v11644_v18 = vld [vmem:[%s15639_s25 + $0x116] sm:$0xff] }
  0x99   : > { %13688 = vmatpush3.bf16.msra.mxu1 %v3747_v35  ;;  %13353 = vmatprep.mubr.msk.bf16.mxu0 %vm272_vm1, %v15969_v34  ;;  %v16032_v35 = vpack.c.bf16 %v11196_v19, %v11195_v17  ;;  %v16054_v13 = vpack.c.bf16 %v11640_v53, %v11639_v52  ;;  %v16056_v15 = vpack.c.bf16 %v11200_v61, %v11199_v54  ;;  %v11201_v19 = vld [vmem:[%s15639_s25 + $0x125] sm:$0xff]  ;;  %v11203_v49 = vld [vmem:[%s15639_s25 + $0x13d] sm:$0xff]  ;;  %v11646_v54 = vld [vmem:[%s15639_s25 + $0x12e] sm:$0xff] }
  0x9a   : > { %13659 = vmatprep.mubr.msk.bf16.mxu1 %vm272_vm1, %v15973_v36  ;;  %15531 = vmatprep.subr.msk.bf16.mxu0 %vm321_vm0, %v15981_v38  ;;  %18664 = vst [vmem:[#allocation9_spill] sm:$0xff] %v16052_v12  ;;  %v16058_v17 = vpack.c.bf16 %v11642_v11, %v11641_v62  ;;  %v11204_v52 = vld [vmem:[%s15639_s25 + $0x145] sm:$0xff]  ;;  %v16076_v61 = vpack.c.bf16 %v11202_v22, %v11201_v19 }
  0x9b   : > { %15540 = vmatprep.subr.msk.bf16.mxu1 %vm321_vm0, %v15989_v21  ;;  %18665 = vst [vmem:[#allocation10_spill] sm:$0xff] %v16056_v15  ;;  %v11645_v53 = vld [vmem:[%s15639_s25 + $0x126] sm:$0xff]  ;;  %v16078_v62 = vpack.c.bf16 %v11644_v18, %v11643_v31  ;;  %v16080_v11 = vpack.c.bf16 %v11204_v52, %v11203_v49  ;;  %v11647_v19 = vld [vmem:[%s15639_s25 + $0x13e] sm:$0xff]  ;;  %v11208_v18 = vld [vmem:[%s15639_s25 + $0x175] sm:$0xff] }
  0x9c   : > { %18666 = vst [vmem:[#allocation11_spill] sm:$0xff] %v16058_v17  ;;  %18667 = vst [vmem:[#allocation12_spill] sm:$0xff] %v16076_v61  ;;  %v11648_v22 = vld [vmem:[%s15639_s25 + $0x146] sm:$0xff]  ;;  %v11649_v49 = vld [vmem:[%s15639_s25 + $0x156] sm:$0xff] }
  0x9d   : > { %18668 = vst [vmem:[#allocation13_spill] sm:$0xff] %v16078_v62  ;;  %18669 = vst [vmem:[#allocation14_spill] sm:$0xff] %v16080_v11  ;;  %v11207_v31 = vld [vmem:[%s15639_s25 + $0x16d] sm:$0xff]  ;;  %v11650_v52 = vld [vmem:[%s15639_s25 + $0x15e] sm:$0xff] }
  0x9f   : > { %13354 = vmatmul.mubr.msk.bf16.gmra.mrb[4].mxu0 %vm272_vm1, %v16002_v63 }
  0xa0   : > { %13660 = vmatmul.mubr.msk.bf16.gmra.mrb[4].mxu1 %vm272_vm1, %v16006_v1  ;;  %13357 = vmatprep.mubr.msk.bf16.mxu0 %vm272_vm1, %v16008_v4 }
  0xa1   : > { %13663 = vmatprep.mubr.msk.bf16.mxu1 %vm272_vm1, %v16010_v5 }
  0xa7   : > { %13358 = vmatmul.mubr.msk.bf16.gmra.mrb[8].mxu0 %vm272_vm1, %v16028_v32 }
  0xa8   : > { %13664 = vmatmul.mubr.msk.bf16.gmra.mrb[8].mxu1 %vm272_vm1, %v16030_v33  ;;  %13361 = vmatprep.mubr.msk.bf16.mxu0 %vm272_vm1, %v16032_v35 }
  0xa9   : > { %13667 = vmatprep.mubr.msk.bf16.mxu1 %vm272_vm1, %v16034_v37 }
  0xaf   : > { %13362 = vmatmul.mubr.msk.bf16.gmra.mrb[12].mxu0 %vm272_vm1, %v16052_v12  ;;  %v11206_v12 = vld [vmem:[%s15639_s25 + $0x15d] sm:$0xff] }
  0xb0   : > { %13668 = vmatmul.mubr.msk.bf16.gmra.mrb[12].mxu1 %vm272_vm1, %v16054_v13  ;;  %13365 = vmatprep.mubr.msk.bf16.mxu0 %vm272_vm1, %v16056_v15  ;;  %v16082_v15 = vpack.c.bf16 %v11646_v54, %v11645_v53  ;;  %v16102_v54 = vpack.c.bf16 %v11648_v22, %v11647_v19  ;;  %v11211_v19 = vld [vmem:[%s15639_s25 + $0x19d] sm:$0xff]  ;;  %v11212_v22 = vld [vmem:[%s15639_s25 + $0x1a5] sm:$0xff] }
  0xb1   : > { %13671 = vmatprep.mubr.msk.bf16.mxu1 %vm272_vm1, %v16058_v17  ;;  %v11205_v17 = vld [vmem:[%s15639_s25 + $0x155] sm:$0xff] }
  0xb2   : > { %18670 = vst [vmem:[#allocation15_spill] sm:$0xff] %v16082_v15  ;;  %v16100_v53 = vpack.c.bf16 %v11206_v12, %v11205_v17  ;;  %18672 = vst [vmem:[#allocation17_spill] sm:$0xff] %v16102_v54  ;;  %v11651_v12 = vld [vmem:[%s15639_s25 + $0x16e] sm:$0xff]  ;;  %v11652_v17 = vld [vmem:[%s15639_s25 + $0x176] sm:$0xff] }
  0xb4   : > { %18671 = vst [vmem:[#allocation16_spill] sm:$0xff] %v16100_v53 }
  0xb7   : > { %13366 = vmatmul.mubr.msk.bf16.gmra.mrb[16].mxu0 %vm272_vm1, %v16076_v61  ;;  %v16106_v61 = vpack.c.bf16 %v11650_v52, %v11649_v49  ;;  %v16126_v52 = vpack.c.bf16 %v11652_v17, %v11651_v12 }
  0xb8   : > { %13672 = vmatmul.mubr.msk.bf16.gmra.mrb[16].mxu1 %vm272_vm1, %v16078_v62  ;;  %13369 = vmatprep.mubr.msk.bf16.mxu0 %vm272_vm1, %v16080_v11  ;;  %v16104_v11 = vpack.c.bf16 %v11208_v18, %v11207_v31  ;;  %v11210_v62 = vld [vmem:[%s15639_s25 + $0x18d] sm:$0xff] }
  0xb9   : > { %13675 = vmatprep.mubr.msk.bf16.mxu1 %vm272_vm1, %v16082_v15  ;;  %18674 = vst [vmem:[#allocation19_spill] sm:$0xff] %v16106_v61  ;;  %v11209_v15 = vld [vmem:[%s15639_s25 + $0x185] sm:$0xff]  ;;  %v11654_v18 = vld [vmem:[%s15639_s25 + $0x18e] sm:$0xff] }
  0xba   : > { %18673 = vst [vmem:[#allocation18_spill] sm:$0xff] %v16104_v11  ;;  %v11653_v31 = vld [vmem:[%s15639_s25 + $0x186] sm:$0xff]  ;;  %v16124_v49 = vpack.c.bf16 %v11210_v62, %v11209_v15  ;;  %v11655_v15 = vld [vmem:[%s15639_s25 + $0x19e] sm:$0xff] }
  0xbb   : > { %v11656_v62 = vld [vmem:[%s15639_s25 + $0x1a6] sm:$0xff] }
  0xbc   : > { %v16146_v17 = vpack.c.bf16 %v11656_v62, %v11655_v15  ;;  %v11295_v62 = vld [vmem:[%s15639_s25 + $0x10c] sm:$0xff] }
  0xbf   : > { %13370 = vmatmul.mubr.msk.bf16.gmra.mrb[20].mxu0 %vm272_vm1, %v16100_v53  ;;  %v16130_v53 = vpack.c.bf16 %v11654_v18, %v11653_v31  ;;  %v11294_v31 = vld [vmem:[%s15639_s25 + $0xfc] sm:$0xff] }
  0xc0   : > { %13676 = vmatmul.mubr.msk.bf16.gmra.mrb[20].mxu1 %vm272_vm1, %v16102_v54  ;;  %13373 = vmatprep.mubr.msk.bf16.mxu0 %vm272_vm1, %v16104_v11  ;;  %v16128_v11 = vpack.c.bf16 %v11212_v22, %v11211_v19  ;;  %v11214_v54 = vld [vmem:[%s15639_s25 + $0x1bd] sm:$0xff]  ;;  %v1386_v19 = vsel %vm321_vm0, %v15981_v38, 0  ;;  %v11293_v22 = vld [vmem:[%s15639_s25 + $0xf4] sm:$0xff] }
  0xc1   : > { %13679 = vmatprep.mubr.msk.bf16.mxu1 %vm272_vm1, %v16106_v61  ;;  %v11213_v61 = vld [vmem:[%s15639_s25 + $0x1b5] sm:$0xff]  ;;  %v16296_v15 = vpack.c.bf16 %v11294_v31, %v11293_v22 }
  0xc2   : > { %v16144_v12 = vpack.c.bf16 %v11214_v54, %v11213_v61  ;;  %v3945_v61 = vsel %vm321_vm0, %v15989_v21, 0  ;;  %v11362_v54 = vld [vmem:[%s18614_s1 + $0xa] sm:$0x3]  ;;  %v11291_v38 = vld [vmem:[%s15639_s25 + $0xdc] sm:$0xff] }
  0xc3   : > { %v11292_v21 = vld [vmem:[%s15639_s25 + $0xe4] sm:$0xff] }
  0xc4   : > { %v16294_v18 = vpack.c.bf16 %v11292_v21, %v11291_v38  ;;  %v11793_v38 = vld [vmem:[%s15639_s25 + $0xc2] sm:$0xff]  ;;  %v11794_v21 = vld [vmem:[%s15639_s25 + $0xca] sm:$0xff] }
  0xc7   : > { %13374 = vmatmul.mubr.msk.bf16.gmra.mrb[24].mxu0 %vm272_vm1, %v16124_v49 }
  0xc8   : > { %13680 = vmatmul.mubr.msk.bf16.gmra.mrb[24].mxu1 %vm272_vm1, %v16126_v52  ;;  %13377 = vmatprep.mubr.msk.bf16.mxu0 %vm272_vm1, %v16128_v11 }
  0xc9   : > { %13683 = vmatprep.mubr.msk.bf16.mxu1 %vm272_vm1, %v16130_v53 }
  0xcf   : > { %13378 = vmatmul.mubr.msk.bf16.gmra.mrb[28].mxu0 %vm272_vm1, %v16144_v12 }
  0xd0   : > { %13684 = vmatmul.mubr.msk.bf16.gmra.mrb[28].mxu1 %vm272_vm1, %v16146_v17  ;;  %13383 = vmatprep.mubr.msk.bf16.mxu0 %vm272_vm1, %v15762_v9  ;;  %v11772_v9 = vld [vmem:[%s18614_s1 + $0x1c] sm:$0x3] }
  0xd1   : > { %13689 = vmatprep.mubr.msk.bf16.mxu1 %vm272_vm1, %v15772_v16  ;;  %v11703_v16 = vld [vmem:[%s15639_s25 + $0x1ba] sm:$0xff] }
  0xd7   : > { %13384 = vmatmul.mubr.msk.bf16.vlgmr.msra.gmra.mrb[0].mxu0 %vm272_vm1, %v15768_v14  ;;  %v11702_v14 = vld [vmem:[%s15639_s25 + $0x1b2] sm:$0xff] }
  0xd8   : > { %13416 = vmatpush3.bf16.msra.mxu0 %v1386_v19  ;;  %13690 = vmatmul.mubr.msk.bf16.vlgmr.msra.gmra.mrb[0].mxu1 %vm272_vm1, %v15805_v28  ;;  %v11262_v28 = vld [vmem:[%s15639_s25 + $0x1cb] sm:$0xff]  ;;  %v11296_v19 = vld [vmem:[%s15639_s25 + $0x114] sm:$0xff] }
  0xd9   : > { %13722 = vmatpush3.bf16.msra.mxu1 %v3945_v61  ;;  %13387 = vmatprep.mubr.msk.bf16.mxu0 %vm272_vm1, %v15801_v27  ;;  %v16218_v27 = vpack.c.bf16 %v11703_v16, %v11702_v14  ;;  %v16308_v61 = vpack.c.bf16 %v11296_v19, %v11295_v62 }
  0xda   : > { %13693 = vmatprep.mubr.msk.bf16.mxu1 %vm272_vm1, %v15809_v30  ;;  %15532 = vmatprep.subr.msk.bf16.mxu0 %vm321_vm0, %v11362_v54  ;;  %v11704_v30 = vld [vmem:[%s15639_s25 + $0x1ca] sm:$0xff] }
  0xdb   : > { %15541 = vmatprep.subr.msk.bf16.mxu1 %vm321_vm0, %v11772_v9  ;;  %18675 = vst [vmem:[#allocation20_spill] sm:$0xff] %v16308_v61 }
  0xdf   : > { %13388 = vmatmul.mubr.msk.bf16.gmra.mrb[4].mxu0 %vm272_vm1, %v15807_v29  ;;  %v11263_v29 = vld [vmem:[%s15639_s25 + $0x1d3] sm:$0xff] }
  0xe0   : > { %13694 = vmatmul.mubr.msk.bf16.gmra.mrb[4].mxu1 %vm272_vm1, %v15829_v40  ;;  %13391 = vmatprep.mubr.msk.bf16.mxu0 %vm272_vm1, %v15827_v39  ;;  %v11705_v39 = vld [vmem:[%s15639_s25 + $0x1d2] sm:$0xff]  ;;  %v11281_v40 = vld [vmem:[%s15639_s25 + $0x64] sm:$0xff] }
  0xe1   : > { %13697 = vmatprep.mubr.msk.bf16.mxu1 %vm272_vm1, %v15833_v42  ;;  %v16234_v42 = vpack.c.bf16 %v11263_v29, %v11262_v28  ;;  %v11460_v29 = vld [vmem:[%s18614_s1 + $0xe] sm:$0x3] }
  0xe2   : > { %v2269_v31 = vsel %vm321_vm0, %v11460_v29, 0 }
  0xe7   : > { %13392 = vmatmul.mubr.msk.bf16.gmra.mrb[8].mxu0 %vm272_vm1, %v15831_v41  ;;  %v11282_v41 = vld [vmem:[%s15639_s25 + $0x6c] sm:$0xff] }
  0xe8   : > { %13698 = vmatmul.mubr.msk.bf16.gmra.mrb[8].mxu1 %vm272_vm1, %v15853_v58  ;;  %13395 = vmatprep.mubr.msk.bf16.mxu0 %vm272_vm1, %v15851_v55  ;;  %v16236_v55 = vpack.c.bf16 %v11705_v39, %v11704_v30  ;;  %v16238_v58 = vpack.c.bf16 %v11282_v41, %v11281_v40  ;;  %v11768_v30 = vld [vmem:[%s15639_s25 + $0x1b6] sm:$0xff]  ;;  %v11769_v39 = vld [vmem:[%s15639_s25 + $0x1be] sm:$0xff]  ;;  %v11770_v41 = vld [vmem:[%s15639_s25 + $0x1ce] sm:$0xff] }
  0xe9   : > { %13701 = vmatprep.mubr.msk.bf16.mxu1 %vm272_vm1, %v15857_v60  ;;  %v11284_v60 = vld [vmem:[%s15639_s25 + $0x84] sm:$0xff]  ;;  %v16414_v40 = vpack.c.bf16 %v11769_v39, %v11768_v30  ;;  %v11800_v39 = vld [vmem:[%s15639_s25 + $0x112] sm:$0xff] }
  0xea   : > { %v11799_v30 = vld [vmem:[%s15639_s25 + $0x10a] sm:$0xff] }
  0xef   : > { %13396 = vmatmul.mubr.msk.bf16.gmra.mrb[12].mxu0 %vm272_vm1, %v15855_v59  ;;  %v11283_v59 = vld [vmem:[%s15639_s25 + $0x7c] sm:$0xff] }
  0xf0   : > { %13702 = vmatmul.mubr.msk.bf16.gmra.mrb[12].mxu1 %vm272_vm1, %v15877_v7  ;;  %13399 = vmatprep.mubr.msk.bf16.mxu0 %vm272_vm1, %v15875_v6  ;;  %v11285_v6 = vld [vmem:[%s15639_s25 + $0x94] sm:$0xff]  ;;  %v11286_v7 = vld [vmem:[%s15639_s25 + $0x9c] sm:$0xff] }
  0xf1   : > { %13705 = vmatprep.mubr.msk.bf16.mxu1 %vm272_vm1, %v15881_v10  ;;  %v1680_v10 = vsel %vm321_vm0, %v11362_v54, 0  ;;  %v11311_v54 = vld [vmem:[%s15639_s25 + $0x1cc] sm:$0xff] }
  0xf7   : > { %13400 = vmatmul.mubr.msk.bf16.gmra.mrb[16].mxu0 %vm272_vm1, %v15879_v8  ;;  %v16252_v8 = vpack.c.bf16 %v11284_v60, %v11283_v59  ;;  %v11379_v59 = vld [vmem:[%s15639_s25 + $0x7b] sm:$0xff]  ;;  %v11789_v60 = vld [vmem:[%s15639_s25 + $0x92] sm:$0xff] }
  0xf8   : > { %13706 = vmatmul.mubr.msk.bf16.gmra.mrb[16].mxu1 %vm272_vm1, %v15901_v24  ;;  %13403 = vmatprep.mubr.msk.bf16.mxu0 %vm272_vm1, %v15899_v23  ;;  %v16255_v23 = vpack.c.bf16 %v11286_v7, %v11285_v6  ;;  %v4239_v24 = vsel %vm321_vm0, %v11772_v9, 0  ;;  %v11312_v9 = vld [vmem:[%s15639_s25 + $0x1d4] sm:$0xff] }
  0xf9   : > { %13709 = vmatprep.mubr.msk.bf16.mxu1 %vm272_vm1, %v15905_v26  ;;  %v11287_v26 = vld [vmem:[%s15639_s25 + $0xac] sm:$0xff]  ;;  %v16344_v14 = vpack.c.bf16 %v11312_v9, %v11311_v54  ;;  %v4469_v54 = vpack.c.bf16 %v11794_v21, %v11793_v38  ;;  %v11385_v9 = vld [vmem:[%s15639_s25 + $0xc3] sm:$0xff] }
  0xfb   : > { %18676 = vst [vmem:[#allocation21_spill] sm:$0xff] %v16344_v14 }
  0xff   : > { %13404 = vmatmul.mubr.msk.bf16.gmra.mrb[20].mxu0 %vm272_vm1, %v15903_v25  ;;  %v11411_v25 = vld [vmem:[%s18614_s1 + $0xc] sm:$0x3] }
 0x100   : > { %13710 = vmatmul.mubr.msk.bf16.gmra.mrb[20].mxu1 %vm272_vm1, %v15925_v46  ;;  %13407 = vmatprep.mubr.msk.bf16.mxu0 %vm272_vm1, %v15923_v43  ;;  %v11288_v43 = vld [vmem:[%s15639_s25 + $0xb4] sm:$0xff]  ;;  %v11821_v46 = vld [vmem:[%s18614_s1 + $0x1e] sm:$0x3]  ;;  %v1975_v16 = vsel %vm321_vm0, %v11411_v25, 0 }
 0x101   : > { %13713 = vmatprep.mubr.msk.bf16.mxu1 %vm272_vm1, %v15929_v48  ;;  %v11290_v48 = vld [vmem:[%s15639_s25 + $0xcc] sm:$0xff]  ;;  %v4534_v28 = vsel %vm321_vm0, %v11821_v46, 0 }
 0x107   : > { %13408 = vmatmul.mubr.msk.bf16.gmra.mrb[24].mxu0 %vm272_vm1, %v15927_v47  ;;  %v11289_v47 = vld [vmem:[%s15639_s25 + $0xc4] sm:$0xff] }
 0x108   : > { %13714 = vmatmul.mubr.msk.bf16.gmra.mrb[24].mxu1 %vm272_vm1, %v15949_v3  ;;  %13411 = vmatprep.mubr.msk.bf16.mxu0 %vm272_vm1, %v15947_v2  ;;  %v16277_v2 = vpack.c.bf16 %v11288_v43, %v11287_v26  ;;  %v16280_v3 = vpack.c.bf16 %v11290_v48, %v11289_v47  ;;  %v11791_v26 = vld [vmem:[%s15639_s25 + $0xaa] sm:$0xff]  ;;  %v11792_v43 = vld [vmem:[%s15639_s25 + $0xb2] sm:$0xff] }
 0x109   : > { %13717 = vmatprep.mubr.msk.bf16.mxu1 %vm272_vm1, %v16218_v27  ;;  %v11384_v47 = vld [vmem:[%s15639_s25 + $0xb3] sm:$0xff]  ;;  %v4468_v22 = vpack.c.bf16 %v11792_v43, %v11791_v26  ;;  %v11395_v26 = vld [vmem:[%s15639_s25 + $0x13b] sm:$0xff]  ;;  %v11396_v43 = vld [vmem:[%s15639_s25 + $0x143] sm:$0xff] }
 0x10a   : > { %v1916_v21 = vpack.c.bf16 %v11396_v43, %v11395_v26  ;;  %v16558_v26 = vld [vmem:[%s18614_s1 + $0x26] sm:$0x3]  ;;  %v11851_v43 = vld [vmem:[%s15639_s25 + $0x12c] sm:$0xff] }
 0x10f   : > { %13412 = vmatmul.mubr.msk.bf16.gmra.mrb[28].mxu0 %vm272_vm1, %v16234_v42 }
 0x110   : > { %13718 = vmatmul.mubr.msk.bf16.gmra.mrb[28].mxu1 %vm272_vm1, %v16236_v55  ;;  %13417 = vmatprep.mubr.msk.bf16.mxu0 %vm272_vm1, %v16238_v58 }
 0x111   : > { %13723 = vmatprep.mubr.msk.bf16.mxu1 %vm272_vm1, %v16238_v58 }
 0x117   : > { %13418 = vmatmul.mubr.msk.bf16.vlgmr.msra.gmra.mrb[0].mxu0 %vm272_vm1, %v16252_v8 }
 0x118   : > { %13450 = vmatpush3.bf16.msra.mxu0 %v1680_v10  ;;  %13724 = vmatmul.mubr.msk.bf16.vlgmr.msra.gmra.mrb[0].mxu1 %vm272_vm1, %v16252_v8 }
 0x119   : > { %13756 = vmatpush3.bf16.msra.mxu1 %v4239_v24  ;;  %13421 = vmatprep.mubr.msk.bf16.mxu0 %vm272_vm1, %v16255_v23  ;;  %v11381_v24 = vld [vmem:[%s15639_s25 + $0x93] sm:$0xff] }
 0x11a   : > { %13727 = vmatprep.mubr.msk.bf16.mxu1 %vm272_vm1, %v16255_v23  ;;  %15533 = vmatprep.subr.msk.bf16.mxu0 %vm321_vm0, %v11411_v25  ;;  %v11382_v25 = vld [vmem:[%s15639_s25 + $0x9b] sm:$0xff] }
 0x11b   : > { %15542 = vmatprep.subr.msk.bf16.mxu1 %vm321_vm0, %v11821_v46  ;;  %v11383_v46 = vld [vmem:[%s15639_s25 + $0xab] sm:$0xff]  ;;  %v1909_v48 = vpack.c.bf16 %v11382_v25, %v11381_v24  ;;  %v11803_v24 = vld [vmem:[%s15639_s25 + $0x13a] sm:$0xff]  ;;  %v11804_v25 = vld [vmem:[%s15639_s25 + $0x142] sm:$0xff] }
 0x11c   : > { %v1910_v62 = vpack.c.bf16 %v11384_v47, %v11383_v46  ;;  %v11805_v46 = vld [vmem:[%s15639_s25 + $0x152] sm:$0xff]  ;;  %v11806_v47 = vld [vmem:[%s15639_s25 + $0x15a] sm:$0xff]  ;;  %v4474_v38 = vpack.c.bf16 %v11804_v25, %v11803_v24  ;;  %v11820_v24 = vld [vmem:[%s15639_s25 + $0x202] sm:$0xff] }
 0x11f   : > { %13422 = vmatmul.mubr.msk.bf16.gmra.mrb[4].mxu0 %vm272_vm1, %v16277_v2 }
 0x120   : > { %13728 = vmatmul.mubr.msk.bf16.gmra.mrb[4].mxu1 %vm272_vm1, %v16277_v2  ;;  %13425 = vmatprep.mubr.msk.bf16.mxu0 %vm272_vm1, %v16280_v3 }
 0x121   : > { %13731 = vmatprep.mubr.msk.bf16.mxu1 %vm272_vm1, %v16280_v3 }
 0x127   : > { %13426 = vmatmul.mubr.msk.bf16.gmra.mrb[8].mxu0 %vm272_vm1, %v16294_v18 }
 0x128   : > { %13732 = vmatmul.mubr.msk.bf16.gmra.mrb[8].mxu1 %vm272_vm1, %v16294_v18  ;;  %13429 = vmatprep.mubr.msk.bf16.mxu0 %vm272_vm1, %v16296_v15 }
 0x129   : > { %13735 = vmatprep.mubr.msk.bf16.mxu1 %vm272_vm1, %v16296_v15 }
 0x12f   : > { %13430 = vmatmul.mubr.msk.bf16.gmra.mrb[12].mxu0 %vm272_vm1, %v16308_v61 }
 0x130   : > { %13736 = vmatmul.mubr.msk.bf16.gmra.mrb[12].mxu1 %vm272_vm1, %v16308_v61  ;;  %13433 = vmatprep.mubr.msk.bf16.mxu0 %vm272_vm1, %v15699_v44 }
 0x131   : > { %13739 = vmatprep.mubr.msk.bf16.mxu1 %vm272_vm1, %v15699_v44 }
 0x137   : > { %13434 = vmatmul.mubr.msk.bf16.gmra.mrb[16].mxu0 %vm272_vm1, %v15701_v45 }
 0x138   : > { %13740 = vmatmul.mubr.msk.bf16.gmra.mrb[16].mxu1 %vm272_vm1, %v15701_v45  ;;  %13437 = vmatprep.mubr.msk.bf16.mxu0 %vm272_vm1, %v15714_v50 }
 0x139   : > { %13743 = vmatprep.mubr.msk.bf16.mxu1 %vm272_vm1, %v15714_v50 }
 0x13f   : > { %13438 = vmatmul.mubr.msk.bf16.gmra.mrb[20].mxu0 %vm272_vm1, %v15716_v51 }
 0x140   : > { %13744 = vmatmul.mubr.msk.bf16.gmra.mrb[20].mxu1 %vm272_vm1, %v15716_v51  ;;  %13441 = vmatprep.mubr.msk.bf16.mxu0 %vm272_vm1, %v15730_v56  ;;  %v12039_v51 = vld [vmem:[%s15639_s25 + $0x3f] sm:$0xff] }
 0x141   : > { %13747 = vmatprep.mubr.msk.bf16.mxu1 %vm272_vm1, %v15730_v56  ;;  %v12038_v56 = vld [vmem:[%s15639_s25 + $0x37] sm:$0xff] }
 0x147   : > { %13442 = vmatmul.mubr.msk.bf16.gmra.mrb[24].mxu0 %vm272_vm1, %v15732_v57 }
 0x148   : > { %13748 = vmatmul.mubr.msk.bf16.gmra.mrb[24].mxu1 %vm272_vm1, %v15732_v57  ;;  %13445 = vmatprep.mubr.msk.bf16.mxu0 %vm272_vm1, %v15748_v0 }
 0x149   : > { %13751 = vmatprep.mubr.msk.bf16.mxu1 %vm272_vm1, %v15748_v0 }
 0x14f   : > { %13446 = vmatmul.mubr.msk.bf16.gmra.mrb[28].mxu0 %vm272_vm1, %v16344_v14 }
 0x150   : > { %13752 = vmatmul.mubr.msk.bf16.gmra.mrb[28].mxu1 %vm272_vm1, %v16344_v14  ;;  %13451 = vmatprep.mubr.msk.bf16.mxu0 %vm272_vm1, %v15963_v20  ;;  %v11870_v20 = vld [vmem:[%s18614_s1 + $0x20] sm:$0x3] }
 0x151   : > { %13757 = vmatprep.mubr.msk.bf16.mxu1 %vm272_vm1, %v15973_v36  ;;  %v18678_v36 = vld [vmem:[#allocation11_spill] sm:$0xff]  ;;  %v4828_v19 = vsel %vm321_vm0, %v11870_v20, 0 }
 0x157   : > { %13452 = vmatmul.mubr.msk.bf16.vlgmr.msra.gmra.mrb[0].mxu0 %vm272_vm1, %v15969_v34  ;;  %v18677_v34 = vld [vmem:[#allocation9_spill] sm:$0xff] }
 0x158   : > { %13484 = vmatpush3.bf16.msra.mxu0 %v1975_v16  ;;  %13758 = vmatmul.mubr.msk.bf16.vlgmr.msra.gmra.mrb[0].mxu1 %vm272_vm1, %v16006_v1  ;;  %v18680_v1 = vld [vmem:[#allocation13_spill] sm:$0xff]  ;;  %v16457_v16 = vld [vmem:[%s18614_s1 + $0x10] sm:$0x3] }
 0x159   : > { %13790 = vmatpush3.bf16.msra.mxu1 %v4534_v28  ;;  %13455 = vmatprep.mubr.msk.bf16.mxu0 %vm272_vm1, %v16002_v63  ;;  %v18679_v63 = vld [vmem:[#allocation10_spill] sm:$0xff]  ;;  %v11386_v28 = vld [vmem:[%s15639_s25 + $0xcb] sm:$0xff] }
 0x15a   : > { %13761 = vmatprep.mubr.msk.bf16.mxu1 %vm272_vm1, %v16010_v5  ;;  %15534 = vmatprep.subr.msk.bf16.mxu0 %vm321_vm0, %v11460_v29  ;;  %v18682_v5 = vld [vmem:[#allocation15_spill] sm:$0xff]  ;;  %v11795_v29 = vld [vmem:[%s15639_s25 + $0xda] sm:$0xff] }
 0x15b   : > { %15543 = vmatprep.subr.msk.bf16.mxu1 %vm321_vm0, %v11870_v20  ;;  %v16465_v20 = vld [vmem:[%s18614_s1 + $0x22] sm:$0x3] }
 0x15f   : > { %13456 = vmatmul.mubr.msk.bf16.gmra.mrb[4].mxu0 %vm272_vm1, %v16008_v4  ;;  %v18681_v4 = vld [vmem:[#allocation12_spill] sm:$0xff] }
 0x160   : > { %13762 = vmatmul.mubr.msk.bf16.gmra.mrb[4].mxu1 %vm272_vm1, %v16030_v33  ;;  %13459 = vmatprep.mubr.msk.bf16.mxu0 %vm272_vm1, %v16028_v32  ;;  %v18683_v32 = vld [vmem:[#allocation14_spill] sm:$0xff]  ;;  %v18684_v33 = vld [vmem:[#allocation17_spill] sm:$0xff] }
 0x161   : > { %13765 = vmatprep.mubr.msk.bf16.mxu1 %vm272_vm1, %v16034_v37  ;;  %v18686_v37 = vld [vmem:[#allocation19_spill] sm:$0xff] }
 0x167   : > { %13460 = vmatmul.mubr.msk.bf16.gmra.mrb[8].mxu0 %vm272_vm1, %v16032_v35  ;;  %v18685_v35 = vld [vmem:[#allocation16_spill] sm:$0xff] }
 0x168   : > { %13766 = vmatmul.mubr.msk.bf16.gmra.mrb[8].mxu1 %vm272_vm1, %v16054_v13  ;;  %13463 = vmatprep.mubr.msk.bf16.mxu0 %vm272_vm1, %v18677_v34  ;;  %v18687_v13 = vld [vmem:[#allocation18_spill] sm:$0xff] }
 0x169   : > { %13769 = vmatprep.mubr.msk.bf16.mxu1 %vm272_vm1, %v18678_v36  ;;  %v11796_v34 = vld [vmem:[%s15639_s25 + $0xe2] sm:$0xff] }
 0x16a   : > { %v11387_v36 = vld [vmem:[%s15639_s25 + $0xdb] sm:$0xff] }
 0x16f   : > { %13464 = vmatmul.mubr.msk.bf16.gmra.mrb[12].mxu0 %vm272_vm1, %v18679_v63  ;;  %v11388_v63 = vld [vmem:[%s15639_s25 + $0xe3] sm:$0xff] }
 0x170   : > { %13770 = vmatmul.mubr.msk.bf16.gmra.mrb[12].mxu1 %vm272_vm1, %v18680_v1  ;;  %13467 = vmatprep.mubr.msk.bf16.mxu0 %vm272_vm1, %v18681_v4  ;;  %v11797_v1 = vld [vmem:[%s15639_s25 + $0xf2] sm:$0xff]  ;;  %v11798_v4 = vld [vmem:[%s15639_s25 + $0xfa] sm:$0xff] }
 0x171   : > { %13773 = vmatprep.mubr.msk.bf16.mxu1 %vm272_vm1, %v18682_v5  ;;  %v1911_v5 = vpack.c.bf16 %v11386_v28, %v11385_v9  ;;  %v11399_v9 = vld [vmem:[%s15639_s25 + $0x16b] sm:$0xff]  ;;  %v11400_v28 = vld [vmem:[%s15639_s25 + $0x173] sm:$0xff] }
 0x177   : > { %13468 = vmatmul.mubr.msk.bf16.gmra.mrb[16].mxu0 %vm272_vm1, %v18683_v32  ;;  %v4470_v32 = vpack.c.bf16 %v11796_v34, %v11795_v29  ;;  %v11809_v29 = vld [vmem:[%s15639_s25 + $0x182] sm:$0xff]  ;;  %v11810_v34 = vld [vmem:[%s15639_s25 + $0x18a] sm:$0xff] }
 0x178   : > { %13774 = vmatmul.mubr.msk.bf16.gmra.mrb[16].mxu1 %vm272_vm1, %v18684_v33  ;;  %13471 = vmatprep.mubr.msk.bf16.mxu0 %vm272_vm1, %v18685_v35  ;;  %v1912_v33 = vpack.c.bf16 %v11388_v63, %v11387_v36  ;;  %v4471_v35 = vpack.c.bf16 %v11798_v4, %v11797_v1  ;;  %v1918_v1 = vpack.c.bf16 %v11400_v28, %v11399_v9  ;;  %v11859_v9 = vld [vmem:[%s15639_s25 + $0x18c] sm:$0xff] }
 0x179   : > { %13777 = vmatprep.mubr.msk.bf16.mxu1 %vm272_vm1, %v18686_v37  ;;  %v11389_v37 = vld [vmem:[%s15639_s25 + $0xf3] sm:$0xff]  ;;  %v4477_v4 = vpack.c.bf16 %v11810_v34, %v11809_v29  ;;  %v11860_v34 = vld [vmem:[%s15639_s25 + $0x19c] sm:$0xff] }
 0x17f   : > { %13472 = vmatmul.mubr.msk.bf16.gmra.mrb[20].mxu0 %vm272_vm1, %v18687_v13  ;;  %v11390_v13 = vld [vmem:[%s15639_s25 + $0xfb] sm:$0xff] }
 0x180   : > { %13778 = vmatmul.mubr.msk.bf16.gmra.mrb[20].mxu1 %vm272_vm1, %v16126_v52  ;;  %13475 = vmatprep.mubr.msk.bf16.mxu0 %vm272_vm1, %v16124_v49  ;;  %v11360_v52 = vld [vmem:[%s15639_s25 + $0x1cd] sm:$0xff]  ;;  %v11361_v49 = vld [vmem:[%s15639_s25 + $0x1d5] sm:$0xff] }
 0x181   : > { %13781 = vmatprep.mubr.msk.bf16.mxu1 %vm272_vm1, %v16130_v53  ;;  %v11771_v53 = vld [vmem:[%s15639_s25 + $0x1d6] sm:$0xff]  ;;  %v16432_v6 = vpack.c.bf16 %v11361_v49, %v11360_v52  ;;  %v11391_v52 = vld [vmem:[%s15639_s25 + $0x10b] sm:$0xff] }
 0x182   : > { %v11392_v49 = vld [vmem:[%s15639_s25 + $0x113] sm:$0xff] }
 0x187   : > { %13476 = vmatmul.mubr.msk.bf16.gmra.mrb[24].mxu0 %vm272_vm1, %v16128_v11  ;;  %v11380_v11 = vld [vmem:[%s15639_s25 + $0x83] sm:$0xff] }
 0x188   : > { %13782 = vmatmul.mubr.msk.bf16.gmra.mrb[24].mxu1 %vm272_vm1, %v16146_v17  ;;  %13479 = vmatprep.mubr.msk.bf16.mxu0 %vm272_vm1, %v16144_v12  ;;  %v11790_v17 = vld [vmem:[%s15639_s25 + $0x9a] sm:$0xff]  ;;  %v16434_v12 = vpack.c.bf16 %v11771_v53, %v11770_v41  ;;  %v1908_v7 = vpack.c.bf16 %v11380_v11, %v11379_v59  ;;  %v11801_v41 = vld [vmem:[%s15639_s25 + $0x122] sm:$0xff]  ;;  %v11802_v53 = vld [vmem:[%s15639_s25 + $0x12a] sm:$0xff]  ;;  %v1913_v59 = vpack.c.bf16 %v11390_v13, %v11389_v37 }
 0x189   : > { %13785 = vmatprep.mubr.msk.bf16.mxu1 %vm272_vm1, %v16414_v40  ;;  %v4467_v10 = vpack.c.bf16 %v11790_v17, %v11789_v60  ;;  %v4472_v11 = vpack.c.bf16 %v11800_v39, %v11799_v30  ;;  %v1914_v60 = vpack.c.bf16 %v11392_v49, %v11391_v52  ;;  %v4473_v17 = vpack.c.bf16 %v11802_v53, %v11801_v41  ;;  %v11403_v37 = vld [vmem:[%s15639_s25 + $0x19b] sm:$0xff]  ;;  %v11404_v13 = vld [vmem:[%s15639_s25 + $0x1a3] sm:$0xff]  ;;  %v11405_v49 = vld [vmem:[%s15639_s25 + $0x1b3] sm:$0xff] }
 0x18a   : > { %v1920_v52 = vpack.c.bf16 %v11404_v13, %v11403_v37  ;;  %v11406_v41 = vld [vmem:[%s15639_s25 + $0x1bb] sm:$0xff]  ;;  %v11869_v13 = vld [vmem:[%s15639_s25 + $0x204] sm:$0xff] }
 0x18b   : > { %v11817_v53 = vld [vmem:[%s15639_s25 + $0x1e2] sm:$0xff] }
 0x18c   : > { %v11868_v37 = vld [vmem:[%s15639_s25 + $0x1fc] sm:$0xff] }
 0x18f   : > { %13480 = vmatmul.mubr.msk.bf16.gmra.mrb[28].mxu0 %vm272_vm1, %v16432_v6 }
 0x190   : > { %13786 = vmatmul.mubr.msk.bf16.gmra.mrb[28].mxu1 %vm272_vm1, %v16434_v12  ;;  %13485 = vmatprep.mubr.msk.bf16.mxu0 %vm272_vm1, %v1908_v7  ;;  %v11393_v7 = vld [vmem:[%s15639_s25 + $0x123] sm:$0xff] }
 0x191   : > { %13791 = vmatprep.mubr.msk.bf16.mxu1 %vm272_vm1, %v4467_v10  ;;  %v11394_v10 = vld [vmem:[%s15639_s25 + $0x12b] sm:$0xff] }
 0x197   : > { %13486 = vmatmul.mubr.msk.bf16.vlgmr.msra.gmra.mrb[0].mxu0 %vm272_vm1, %v1909_v48  ;;  %v1915_v48 = vpack.c.bf16 %v11394_v10, %v11393_v7  ;;  %v11410_v7 = vld [vmem:[%s15639_s25 + $0x1eb] sm:$0xff]  ;;  %v11819_v10 = vld [vmem:[%s15639_s25 + $0x1fa] sm:$0xff] }
 0x198   : > { %13518 = vmatpush3.bf16.msra.mxu0 %v2269_v31  ;;  %13792 = vmatmul.mubr.msk.bf16.vlgmr.msra.gmra.mrb[0].mxu1 %vm272_vm1, %v4468_v22  ;;  %v4475_v22 = vpack.c.bf16 %v11806_v47, %v11805_v46  ;;  %v11397_v31 = vld [vmem:[%s15639_s25 + $0x153] sm:$0xff]  ;;  %v11852_v47 = vld [vmem:[%s15639_s25 + $0x13c] sm:$0xff] }
 0x199   : > { %13824 = vmatpush3.bf16.msra.mxu1 %v4828_v19  ;;  %13489 = vmatprep.mubr.msk.bf16.mxu0 %vm272_vm1, %v1910_v62  ;;  %v11398_v62 = vld [vmem:[%s15639_s25 + $0x15b] sm:$0xff]  ;;  %v11807_v19 = vld [vmem:[%s15639_s25 + $0x16a] sm:$0xff] }
 0x19a   : > { %13795 = vmatprep.mubr.msk.bf16.mxu1 %vm272_vm1, %v4469_v54  ;;  %15535 = vmatprep.subr.msk.bf16.mxu0 %vm321_vm0, %v16457_v16  ;;  %v11808_v54 = vld [vmem:[%s15639_s25 + $0x172] sm:$0xff]  ;;  %v1917_v36 = vpack.c.bf16 %v11398_v62, %v11397_v31 }
 0x19b   : > { %15544 = vmatprep.subr.msk.bf16.mxu1 %vm321_vm0, %v16465_v20  ;;  %v4476_v63 = vpack.c.bf16 %v11808_v54, %v11807_v19  ;;  %v11856_v62 = vld [vmem:[%s15639_s25 + $0x16c] sm:$0xff]  ;;  %v11857_v19 = vld [vmem:[%s15639_s25 + $0x174] sm:$0xff]  ;;  %v11858_v54 = vld [vmem:[%s15639_s25 + $0x184] sm:$0xff] }
 0x19c   : > { %v16615_v28 = vpack.c.bf16 %v11857_v19, %v11856_v62  ;;  %v16617_v29 = vpack.c.bf16 %v11859_v9, %v11858_v54  ;;  %v11893_v62 = vld [vmem:[%s15639_s25 + $0xde] sm:$0xff]  ;;  %v11894_v19 = vld [vmem:[%s15639_s25 + $0xe6] sm:$0xff] }
 0x19d   : > { %v11485_v54 = vld [vmem:[%s15639_s25 + $0xdd] sm:$0xff]  ;;  %v11486_v9 = vld [vmem:[%s15639_s25 + $0xe5] sm:$0xff] }
 0x19f   : > { %13490 = vmatmul.mubr.msk.bf16.gmra.mrb[4].mxu0 %vm272_vm1, %v1911_v5  ;;  %v11401_v5 = vld [vmem:[%s15639_s25 + $0x183] sm:$0xff] }
 0x1a0   : > { %13796 = vmatmul.mubr.msk.bf16.gmra.mrb[4].mxu1 %vm272_vm1, %v4470_v32  ;;  %13493 = vmatprep.mubr.msk.bf16.mxu0 %vm272_vm1, %v1912_v33  ;;  %v11402_v32 = vld [vmem:[%s15639_s25 + $0x18b] sm:$0xff]  ;;  %v11811_v33 = vld [vmem:[%s15639_s25 + $0x19a] sm:$0xff] }
 0x1a1   : > { %13799 = vmatprep.mubr.msk.bf16.mxu1 %vm272_vm1, %v4471_v35  ;;  %v11812_v35 = vld [vmem:[%s15639_s25 + $0x1a2] sm:$0xff]  ;;  %v1919_v30 = vpack.c.bf16 %v11402_v32, %v11401_v5 }
 0x1a2   : > { %v4478_v39 = vpack.c.bf16 %v11812_v35, %v11811_v33  ;;  %v11866_v32 = vld [vmem:[%s15639_s25 + $0x1e4] sm:$0xff]  ;;  %v11867_v33 = vld [vmem:[%s15639_s25 + $0x1ec] sm:$0xff] }
 0x1a3   : > { %v4775_v35 = vpack.c.bf16 %v11867_v33, %v11866_v32  ;;  %v11487_v32 = vld [vmem:[%s15639_s25 + $0xf5] sm:$0xff]  ;;  %v11488_v33 = vld [vmem:[%s15639_s25 + $0xfd] sm:$0xff] }
 0x1a7   : > { %13494 = vmatmul.mubr.msk.bf16.gmra.mrb[8].mxu0 %vm272_vm1, %v1913_v59  ;;  %v11818_v59 = vld [vmem:[%s15639_s25 + $0x1ea] sm:$0xff] }
 0x1a8   : > { %13800 = vmatmul.mubr.msk.bf16.gmra.mrb[8].mxu1 %vm272_vm1, %v4472_v11  ;;  %13497 = vmatprep.mubr.msk.bf16.mxu0 %vm272_vm1, %v1914_v60  ;;  %v1921_v11 = vpack.c.bf16 %v11406_v41, %v11405_v49  ;;  %v4481_v60 = vpack.c.bf16 %v11818_v59, %v11817_v53  ;;  %v11888_v49 = vld [vmem:[%s15639_s25 + $0x9e] sm:$0xff]  ;;  %v4776_v41 = vpack.c.bf16 %v11869_v13, %v11868_v37  ;;  %v11898_v37 = vld [vmem:[%s15639_s25 + $0x116] sm:$0xff]  ;;  %v11489_v13 = vld [vmem:[%s15639_s25 + $0x10d] sm:$0xff] }
 0x1a9   : > { %13803 = vmatprep.mubr.msk.bf16.mxu1 %vm272_vm1, %v4473_v17  ;;  %v11409_v17 = vld [vmem:[%s15639_s25 + $0x1e3] sm:$0xff] }
 0x1aa   : > { %v1923_v25 = vpack.c.bf16 %v11410_v7, %v11409_v17  ;;  %v11889_v17 = vld [vmem:[%s15639_s25 + $0xae] sm:$0xff]  ;;  %v11890_v7 = vld [vmem:[%s15639_s25 + $0xb6] sm:$0xff] }
 0x1af   : > { %13498 = vmatmul.mubr.msk.bf16.gmra.mrb[12].mxu0 %vm272_vm1, %v1915_v48  ;;  %v11853_v48 = vld [vmem:[%s15639_s25 + $0x144] sm:$0xff] }
 0x1b0   : > { %13804 = vmatmul.mubr.msk.bf16.gmra.mrb[12].mxu1 %vm272_vm1, %v4474_v38  ;;  %13501 = vmatprep.mubr.msk.bf16.mxu0 %vm272_vm1, %v1916_v21  ;;  %v11854_v38 = vld [vmem:[%s15639_s25 + $0x154] sm:$0xff]  ;;  %v11855_v21 = vld [vmem:[%s15639_s25 + $0x15c] sm:$0xff] }
 0x1b1   : > { %13807 = vmatprep.mubr.msk.bf16.mxu1 %vm272_vm1, %v4475_v22  ;;  %v16599_v22 = vpack.c.bf16 %v11853_v48, %v11852_v47  ;;  %v16601_v31 = vpack.c.bf16 %v11855_v21, %v11854_v38  ;;  %v11483_v38 = vld [vmem:[%s15639_s25 + $0xc5] sm:$0xff] }
 0x1b2   : > { %v16671_v21 = vld [vmem:[%s18614_s1 + $0x24] sm:$0x3] }
 0x1b7   : > { %13502 = vmatmul.mubr.msk.bf16.gmra.mrb[16].mxu0 %vm272_vm1, %v1917_v36  ;;  %v11861_v36 = vld [vmem:[%s15639_s25 + $0x1a4] sm:$0xff] }
 0x1b8   : > { %13808 = vmatmul.mubr.msk.bf16.gmra.mrb[16].mxu1 %vm272_vm1, %v4476_v63  ;;  %13505 = vmatprep.mubr.msk.bf16.mxu0 %vm272_vm1, %v1918_v1  ;;  %v11862_v63 = vld [vmem:[%s15639_s25 + $0x1b4] sm:$0xff]  ;;  %v11863_v1 = vld [vmem:[%s15639_s25 + $0x1bc] sm:$0xff] }
 0x1b9   : > { %13811 = vmatprep.mubr.msk.bf16.mxu1 %vm272_vm1, %v4477_v4  ;;  %v4772_v4 = vpack.c.bf16 %v11861_v36, %v11860_v34  ;;  %v4773_v5 = vpack.c.bf16 %v11863_v1, %v11862_v63  ;;  %v11895_v34 = vld [vmem:[%s15639_s25 + $0xf6] sm:$0xff]  ;;  %v11896_v36 = vld [vmem:[%s15639_s25 + $0xfe] sm:$0xff]  ;;  %v5058_v1 = vpack.c.bf16 %v11894_v19, %v11893_v62  ;;  %v11497_v62 = vld [vmem:[%s15639_s25 + $0x16d] sm:$0xff] }
 0x1ba   : > { %v11498_v19 = vld [vmem:[%s15639_s25 + $0x175] sm:$0xff] }
 0x1bf   : > { %13506 = vmatmul.mubr.msk.bf16.gmra.mrb[20].mxu0 %vm272_vm1, %v1919_v30  ;;  %v11477_v30 = vld [vmem:[%s15639_s25 + $0x7d] sm:$0xff] }
 0x1c0   : > { %13812 = vmatmul.mubr.msk.bf16.gmra.mrb[20].mxu1 %vm272_vm1, %v4478_v39  ;;  %13509 = vmatprep.mubr.msk.bf16.mxu0 %vm272_vm1, %v1920_v52  ;;  %v11478_v39 = vld [vmem:[%s15639_s25 + $0x85] sm:$0xff]  ;;  %v11887_v52 = vld [vmem:[%s15639_s25 + $0x96] sm:$0xff] }
 0x1c1   : > { %13815 = vmatprep.mubr.msk.bf16.mxu1 %vm272_vm1, %v16218_v27  ;;  %v4482_v27 = vpack.c.bf16 %v11820_v24, %v11819_v10  ;;  %v2496_v53 = vpack.c.bf16 %v11478_v39, %v11477_v30  ;;  %v5055_v59 = vpack.c.bf16 %v11888_v49, %v11887_v52  ;;  %v11481_v10 = vld [vmem:[%s15639_s25 + $0xad] sm:$0xff]  ;;  %v11482_v24 = vld [vmem:[%s15639_s25 + $0xb5] sm:$0xff]  ;;  %v2501_v49 = vpack.c.bf16 %v11488_v33, %v11487_v32  ;;  %v11909_v32 = vld [vmem:[%s15639_s25 + $0x19e] sm:$0xff] }
 0x1c2   : > { %v11490_v30 = vld [vmem:[%s15639_s25 + $0x115] sm:$0xff]  ;;  %v11899_v39 = vld [vmem:[%s15639_s25 + $0x126] sm:$0xff] }
 0x1c3   : > { %v11900_v52 = vld [vmem:[%s15639_s25 + $0x12e] sm:$0xff]  ;;  %v11910_v33 = vld [vmem:[%s15639_s25 + $0x1a6] sm:$0xff] }
 0x1c7   : > { %13510 = vmatmul.mubr.msk.bf16.gmra.mrb[24].mxu0 %vm272_vm1, %v1921_v11  ;;  %v11479_v11 = vld [vmem:[%s15639_s25 + $0x95] sm:$0xff] }
 0x1c8   : > { %13816 = vmatmul.mubr.msk.bf16.gmra.mrb[24].mxu1 %vm272_vm1, %v16236_v55  ;;  %13513 = vmatprep.mubr.msk.bf16.mxu0 %vm272_vm1, %v16234_v42  ;;  %v2563_v42 = vsel %vm321_vm0, %v16457_v16, 0  ;;  %v5122_v55 = vsel %vm321_vm0, %v16465_v20, 0  ;;  %v16565_v16 = vld [vmem:[%s18614_s1 + $0x38] sm:$0x3]  ;;  %v11850_v20 = vld [vmem:[%s15639_s25 + $0x124] sm:$0xff] }
 0x1c9   : > { %13819 = vmatprep.mubr.msk.bf16.mxu1 %vm272_vm1, %v4481_v60  ;;  %v16585_v46 = vpack.c.bf16 %v11851_v43, %v11850_v20  ;;  %v11480_v60 = vld [vmem:[%s15639_s25 + $0x9d] sm:$0xff]  ;;  %v5539_v20 = vsel %vm321_vm0, %v16558_v26, 0  ;;  %v2498_v43 = vpack.c.bf16 %v11482_v24, %v11481_v10  ;;  %v8098_v47 = vsel %vm321_vm0, %v16565_v16, 0  ;;  %v11494_v24 = vld [vmem:[%s15639_s25 + $0x145] sm:$0xff] }
 0x1ca   : > { %v11493_v10 = vld [vmem:[%s15639_s25 + $0x13d] sm:$0xff] }
 0x1cf   : > { %13514 = vmatmul.mubr.msk.bf16.gmra.mrb[28].mxu0 %vm272_vm1, %v1923_v25  ;;  %v2497_v25 = vpack.c.bf16 %v11480_v60, %v11479_v11  ;;  %v11491_v11 = vld [vmem:[%s15639_s25 + $0x125] sm:$0xff]  ;;  %v11492_v60 = vld [vmem:[%s15639_s25 + $0x12d] sm:$0xff] }
 0x1d0   : > { %13820 = vmatmul.mubr.msk.bf16.gmra.mrb[28].mxu1 %vm272_vm1, %v4482_v27  ;;  %13519 = vmatprep.mubr.msk.bf16.mxu0 %vm272_vm1, %v16252_v8  ;;  %v11891_v27 = vld [vmem:[%s15639_s25 + $0xc6] sm:$0xff] }
 0x1d1   : > { %13825 = vmatprep.mubr.msk.bf16.mxu1 %vm272_vm1, %v16255_v23 }
 0x1d7   : > { %13520 = vmatmul.mubr.msk.bf16.vlgmr.msra.gmra.mrb[0].mxu0 %vm272_vm1, %v16255_v23 }
 0x1d8   : > { %13552 = vmatpush3.bf16.msra.mxu0 %v2563_v42  ;;  %13826 = vmatmul.mubr.msk.bf16.vlgmr.msra.gmra.mrb[0].mxu1 %vm272_vm1, %v16277_v2  ;;  %v11892_v42 = vld [vmem:[%s15639_s25 + $0xce] sm:$0xff] }
 0x1d9   : > { %13858 = vmatpush3.bf16.msra.mxu1 %v5122_v55  ;;  %13523 = vmatprep.mubr.msk.bf16.mxu0 %vm272_vm1, %v16277_v2  ;;  %v5056_v55 = vpack.c.bf16 %v11890_v7, %v11889_v17  ;;  %v5057_v48 = vpack.c.bf16 %v11892_v42, %v11891_v27  ;;  %v11901_v17 = vld [vmem:[%s15639_s25 + $0x13e] sm:$0xff]  ;;  %v11902_v7 = vld [vmem:[%s15639_s25 + $0x146] sm:$0xff]  ;;  %v2503_v42 = vpack.c.bf16 %v11492_v60, %v11491_v11 }
 0x1da   : > { %13829 = vmatprep.mubr.msk.bf16.mxu1 %vm272_vm1, %v16280_v3  ;;  %15545 = vmatprep.subr.msk.bf16.mxu0 %vm321_vm0, %v16558_v26  ;;  %v11484_v26 = vld [vmem:[%s15639_s25 + $0xcd] sm:$0xff]  ;;  %v11904_v27 = vld [vmem:[%s15639_s25 + $0x15e] sm:$0xff] }
 0x1db   : > { %15554 = vmatprep.subr.msk.bf16.mxu1 %vm321_vm0, %v16565_v16  ;;  %v16679_v16 = vld [vmem:[%s18614_s1 + $0x36] sm:$0x3]  ;;  %v2499_v63 = vpack.c.bf16 %v11484_v26, %v11483_v38  ;;  %v11905_v38 = vld [vmem:[%s15639_s25 + $0x16e] sm:$0xff]  ;;  %v11507_v60 = vld [vmem:[%s15639_s25 + $0x1e5] sm:$0xff] }
 0x1dc   : > { %v11906_v26 = vld [vmem:[%s15639_s25 + $0x176] sm:$0xff] }
 0x1df   : > { %13524 = vmatmul.mubr.msk.bf16.gmra.mrb[4].mxu0 %vm272_vm1, %v16280_v3 }
 0x1e0   : > { %13830 = vmatmul.mubr.msk.bf16.gmra.mrb[4].mxu1 %vm272_vm1, %v16294_v18  ;;  %13527 = vmatprep.mubr.msk.bf16.mxu0 %vm272_vm1, %v16294_v18 }
 0x1e1   : > { %13833 = vmatprep.mubr.msk.bf16.mxu1 %vm272_vm1, %v16296_v15 }
 0x1e7   : > { %13528 = vmatmul.mubr.msk.bf16.gmra.mrb[8].mxu0 %vm272_vm1, %v16296_v15 }
 0x1e8   : > { %13834 = vmatmul.mubr.msk.bf16.gmra.mrb[8].mxu1 %vm272_vm1, %v16308_v61  ;;  %13531 = vmatprep.mubr.msk.bf16.mxu0 %vm272_vm1, %v16308_v61 }
 0x1e9   : > { %13837 = vmatprep.mubr.msk.bf16.mxu1 %vm272_vm1, %v16585_v46 }
 0x1ef   : > { %13532 = vmatmul.mubr.msk.bf16.gmra.mrb[12].mxu0 %vm272_vm1, %v16585_v46 }
 0x1f0   : > { %13838 = vmatmul.mubr.msk.bf16.gmra.mrb[12].mxu1 %vm272_vm1, %v16599_v22  ;;  %13535 = vmatprep.mubr.msk.bf16.mxu0 %vm272_vm1, %v16599_v22 }
 0x1f1   : > { %13841 = vmatprep.mubr.msk.bf16.mxu1 %vm272_vm1, %v16601_v31 }
 0x1f7   : > { %13536 = vmatmul.mubr.msk.bf16.gmra.mrb[16].mxu0 %vm272_vm1, %v16601_v31 }
 0x1f8   : > { %13842 = vmatmul.mubr.msk.bf16.gmra.mrb[16].mxu1 %vm272_vm1, %v16615_v28  ;;  %13539 = vmatprep.mubr.msk.bf16.mxu0 %vm272_vm1, %v16615_v28 }
 0x1f9   : > { %13845 = vmatprep.mubr.msk.bf16.mxu1 %vm272_vm1, %v16617_v29 }
 0x1ff   : > { %13540 = vmatmul.mubr.msk.bf16.gmra.mrb[20].mxu0 %vm272_vm1, %v16617_v29 }
 0x200   : > { %13846 = vmatmul.mubr.msk.bf16.gmra.mrb[20].mxu1 %vm272_vm1, %v4772_v4  ;;  %13543 = vmatprep.mubr.msk.bf16.mxu0 %vm272_vm1, %v4772_v4  ;;  %v2500_v4 = vpack.c.bf16 %v11486_v9, %v11485_v54  ;;  %v11907_v54 = vld [vmem:[%s15639_s25 + $0x186] sm:$0xff]  ;;  %v11908_v9 = vld [vmem:[%s15639_s25 + $0x18e] sm:$0xff] }
 0x201   : > { %13849 = vmatprep.mubr.msk.bf16.mxu1 %vm272_vm1, %v4773_v5 }
 0x207   : > { %13544 = vmatmul.mubr.msk.bf16.gmra.mrb[24].mxu0 %vm272_vm1, %v4773_v5  ;;  %v5059_v5 = vpack.c.bf16 %v11896_v36, %v11895_v34  ;;  %v5064_v36 = vpack.c.bf16 %v11906_v26, %v11905_v38  ;;  %v5751_v26 = vsel %vm321_vm0, %v16671_v21, 0 }
 0x208   : > { %13850 = vmatmul.mubr.msk.bf16.gmra.mrb[24].mxu1 %vm272_vm1, %v16344_v14  ;;  %13547 = vmatprep.mubr.msk.bf16.mxu0 %vm272_vm1, %v16344_v14 }
 0x209   : > { %13853 = vmatprep.mubr.msk.bf16.mxu1 %vm272_vm1, %v4775_v35 }
 0x20f   : > { %13548 = vmatmul.mubr.msk.bf16.gmra.mrb[28].mxu0 %vm272_vm1, %v4775_v35  ;;  %v11897_v35 = vld [vmem:[%s15639_s25 + $0x10e] sm:$0xff] }
 0x210   : > { %13854 = vmatmul.mubr.msk.bf16.gmra.mrb[28].mxu1 %vm272_vm1, %v4776_v41  ;;  %13553 = vmatprep.mubr.msk.bf16.mxu0 %vm272_vm1, %v2496_v53  ;;  %v5060_v41 = vpack.c.bf16 %v11898_v37, %v11897_v35  ;;  %v2502_v53 = vpack.c.bf16 %v11490_v30, %v11489_v13  ;;  %v11501_v35 = vld [vmem:[%s15639_s25 + $0x19d] sm:$0xff]  ;;  %v11502_v37 = vld [vmem:[%s15639_s25 + $0x1a5] sm:$0xff]  ;;  %v5066_v30 = vpack.c.bf16 %v11910_v33, %v11909_v32  ;;  %v11984_v33 = vld [vmem:[%s15639_s25 + $0xb4] sm:$0xff] }
 0x211   : > { %13859 = vmatprep.mubr.msk.bf16.mxu1 %vm272_vm1, %v5055_v59  ;;  %v5061_v59 = vpack.c.bf16 %v11900_v52, %v11899_v39  ;;  %v2508_v39 = vpack.c.bf16 %v11502_v37, %v11501_v35  ;;  %v11503_v52 = vld [vmem:[%s15639_s25 + $0x1b5] sm:$0xff]  ;;  %v11983_v32 = vld [vmem:[%s15639_s25 + $0xac] sm:$0xff] }
 0x212   : > { %v5478_v37 = vpack.c.bf16 %v11984_v33, %v11983_v32 }
 0x217   : > { %13554 = vmatmul.mubr.msk.bf16.vlgmr.msra.gmra.mrb[0].mxu0 %vm272_vm1, %v2497_v25  ;;  %v11903_v25 = vld [vmem:[%s15639_s25 + $0x156] sm:$0xff] }
 0x218   : > { %13860 = vmatmul.mubr.msk.bf16.vlgmr.msra.gmra.mrb[0].mxu1 %vm272_vm1, %v5056_v55  ;;  %13892 = vmatpush3.bf16.msra.mxu0 %v5539_v20  ;;  %v5062_v55 = vpack.c.bf16 %v11902_v7, %v11901_v17  ;;  %v2504_v20 = vpack.c.bf16 %v11494_v24, %v11493_v10  ;;  %v11508_v17 = vld [vmem:[%s15639_s25 + $0x1ed] sm:$0xff]  ;;  %v11917_v7 = vld [vmem:[%s15639_s25 + $0x1fe] sm:$0xff] }
 0x219   : > { %14198 = vmatpush3.bf16.msra.mxu1 %v8098_v47  ;;  %13557 = vmatprep.mubr.msk.bf16.mxu0 %vm272_vm1, %v2498_v43  ;;  %v5063_v43 = vpack.c.bf16 %v11904_v27, %v11903_v25  ;;  %v11495_v47 = vld [vmem:[%s15639_s25 + $0x155] sm:$0xff]  ;;  %v11972_v24 = vld [vmem:[%s15639_s25 + $0x24] sm:$0xff]  ;;  %v8000_v27 = vld [vmem:[%s15639_s25 + $0xc] sm:$0xff] }
 0x21a   : > { %13863 = vmatprep.mubr.msk.bf16.mxu1 %vm272_vm1, %v5057_v48  ;;  %15546 = vmatprep.subr.msk.bf16.mxu0 %vm321_vm0, %v16671_v21  ;;  %v11496_v48 = vld [vmem:[%s15639_s25 + $0x15d] sm:$0xff]  ;;  %v16785_v21 = vld [vmem:[%s18614_s1 + $0x3a] sm:$0x3] }
 0x21b   : > { %15555 = vmatprep.subr.msk.bf16.mxu1 %vm321_vm0, %v16679_v16  ;;  %v2505_v34 = vpack.c.bf16 %v11496_v48, %v11495_v47  ;;  %v11971_v10 = vld [vmem:[%s15639_s25 + $0x1c] sm:$0xff]  ;;  %v7999_v25 = vld [vmem:[%s15639_s25 + $0x4] sm:$0xff]  ;;  %v11975_v47 = vld [vmem:[%s15639_s25 + $0x4c] sm:$0xff] }
 0x21c   : > { %v11976_v48 = vld [vmem:[%s15639_s25 + $0x54] sm:$0xff] }
 0x21f   : > { %13558 = vmatmul.mubr.msk.bf16.gmra.mrb[4].mxu0 %vm272_vm1, %v2499_v63  ;;  %v2506_v63 = vpack.c.bf16 %v11498_v19, %v11497_v62  ;;  %v5474_v62 = vpack.c.bf16 %v11976_v48, %v11975_v47  ;;  %v8310_v19 = vsel %vm321_vm0, %v16679_v16, 0  ;;  %v11979_v16 = vld [vmem:[%s15639_s25 + $0x7c] sm:$0xff] }
 0x220   : > { %13864 = vmatmul.mubr.msk.bf16.gmra.mrb[4].mxu1 %vm272_vm1, %v5058_v1  ;;  %13561 = vmatprep.mubr.msk.bf16.mxu0 %vm272_vm1, %v2500_v4  ;;  %v5065_v1 = vpack.c.bf16 %v11908_v9, %v11907_v54  ;;  %v11499_v4 = vld [vmem:[%s15639_s25 + $0x185] sm:$0xff] }
 0x221   : > { %13867 = vmatprep.mubr.msk.bf16.mxu1 %vm272_vm1, %v5059_v5  ;;  %v11500_v5 = vld [vmem:[%s15639_s25 + $0x18d] sm:$0xff]  ;;  %v16777_v54 = vld [vmem:[%s18614_s1 + $0x28] sm:$0x3] }
 0x222   : > { %v2507_v13 = vpack.c.bf16 %v11500_v5, %v11499_v4  ;;  %v11977_v9 = vld [vmem:[%s15639_s25 + $0x64] sm:$0xff]  ;;  %v11981_v4 = vld [vmem:[%s15639_s25 + $0x94] sm:$0xff]  ;;  %v11982_v5 = vld [vmem:[%s15639_s25 + $0x9c] sm:$0xff]  ;;  %v6013_v47 = vsel %vm321_vm0, %v16777_v54, 0 }
 0x223   : > { %v5477_v35 = vpack.c.bf16 %v11982_v5, %v11981_v4 }
 0x227   : > { %13562 = vmatmul.mubr.msk.bf16.gmra.mrb[8].mxu0 %vm272_vm1, %v2501_v49  ;;  %v11504_v49 = vld [vmem:[%s15639_s25 + $0x1bd] sm:$0xff] }
 0x228   : > { %13868 = vmatmul.mubr.msk.bf16.gmra.mrb[8].mxu1 %vm272_vm1, %v5060_v41  ;;  %13565 = vmatprep.mubr.msk.bf16.mxu0 %vm272_vm1, %v2502_v53  ;;  %v11915_v41 = vld [vmem:[%s15639_s25 + $0x1e6] sm:$0xff]  ;;  %v11916_v53 = vld [vmem:[%s15639_s25 + $0x1ee] sm:$0xff] }
 0x229   : > { %13871 = vmatprep.mubr.msk.bf16.mxu1 %vm272_vm1, %v5061_v59  ;;  %v2509_v59 = vpack.c.bf16 %v11504_v49, %v11503_v52  ;;  %v5069_v11 = vpack.c.bf16 %v11916_v53, %v11915_v41  ;;  %v11988_v52 = vld [vmem:[%s15639_s25 + $0xe4] sm:$0xff]  ;;  %v11989_v53 = vld [vmem:[%s15639_s25 + $0xf4] sm:$0xff] }
 0x22f   : > { %13566 = vmatmul.mubr.msk.bf16.gmra.mrb[12].mxu0 %vm272_vm1, %v2503_v42  ;;  %v2511_v42 = vpack.c.bf16 %v11508_v17, %v11507_v60  ;;  %v11992_v60 = vld [vmem:[%s15639_s25 + $0x114] sm:$0xff] }
 0x230   : > { %13872 = vmatmul.mubr.msk.bf16.gmra.mrb[12].mxu1 %vm272_vm1, %v5062_v55  ;;  %13569 = vmatprep.mubr.msk.bf16.mxu0 %vm272_vm1, %v2504_v20  ;;  %v8031_v20 = vpack.c.bf16 %v8000_v27, %v7999_v25 }
 0x231   : > { %13875 = vmatprep.mubr.msk.bf16.mxu1 %vm272_vm1, %v5063_v43  ;;  %v11974_v43 = vld [vmem:[%s15639_s25 + $0x3c] sm:$0xff] }
 0x237   : > { %13570 = vmatmul.mubr.msk.bf16.gmra.mrb[16].mxu0 %vm272_vm1, %v2505_v34  ;;  %v11978_v34 = vld [vmem:[%s15639_s25 + $0x6c] sm:$0xff] }
 0x238   : > { %13876 = vmatmul.mubr.msk.bf16.gmra.mrb[16].mxu1 %vm272_vm1, %v5064_v36  ;;  %13573 = vmatprep.mubr.msk.bf16.mxu0 %vm272_vm1, %v2506_v63  ;;  %v11980_v36 = vld [vmem:[%s15639_s25 + $0x84] sm:$0xff]  ;;  %v5475_v63 = vpack.c.bf16 %v11978_v34, %v11977_v9  ;;  %v16882_v34 = vld [vmem:[%s18614_s1 + $0x3c] sm:$0x3] }
 0x239   : > { %13879 = vmatprep.mubr.msk.bf16.mxu1 %vm272_vm1, %v5065_v1  ;;  %v5476_v1 = vpack.c.bf16 %v11980_v36, %v11979_v16  ;;  %v7955_v9 = vld [vmem:[%s15639_s25 + $0x48] sm:$0xff]  ;;  %v11946_v16 = vld [vmem:[%s15639_s25 + $0x79] sm:$0xff]  ;;  %v8866_v50 = vsel %vm321_vm0, %v16882_v34, 0 }
 0x23a   : > { %v11947_v36 = vld [vmem:[%s15639_s25 + $0x81] sm:$0xff] }
 0x23b   : > { %v16902_v32 = vpack.c.bf16 %v11947_v36, %v11946_v16 }
 0x23f   : > { %13574 = vmatmul.mubr.msk.bf16.gmra.mrb[20].mxu0 %vm272_vm1, %v2507_v13  ;;  %v11985_v13 = vld [vmem:[%s15639_s25 + $0xc4] sm:$0xff] }
 0x240   : > { %13880 = vmatmul.mubr.msk.bf16.gmra.mrb[20].mxu1 %vm272_vm1, %v5066_v30  ;;  %13577 = vmatprep.mubr.msk.bf16.mxu0 %vm272_vm1, %v2508_v39  ;;  %v11986_v30 = vld [vmem:[%s15639_s25 + $0xcc] sm:$0xff]  ;;  %v11987_v39 = vld [vmem:[%s15639_s25 + $0xdc] sm:$0xff] }
 0x241   : > { %13883 = vmatprep.mubr.msk.bf16.mxu1 %vm272_vm1, %v16414_v40  ;;  %v11918_v40 = vld [vmem:[%s15639_s25 + $0x206] sm:$0xff]  ;;  %v5479_v49 = vpack.c.bf16 %v11986_v30, %v11985_v13  ;;  %v5480_v41 = vpack.c.bf16 %v11988_v52, %v11987_v39  ;;  %v7959_v13 = vld [vmem:[%s15639_s25 + $0x78] sm:$0xff] }
 0x242   : > { %v5070_v55 = vpack.c.bf16 %v11918_v40, %v11917_v7  ;;  %v11938_v40 = vld [vmem:[%s15639_s25 + $0x19] sm:$0xff]  ;;  %v11950_v39 = vld [vmem:[%s15639_s25 + $0xa9] sm:$0xff]  ;;  %v11951_v52 = vld [vmem:[%s15639_s25 + $0xb1] sm:$0xff] }
 0x243   : > { %v16918_v30 = vld [vmem:[%s15639_s25 + $0x80] sm:$0xff] }
 0x247   : > { %13578 = vmatmul.mubr.msk.bf16.gmra.mrb[24].mxu0 %vm272_vm1, %v2509_v59  ;;  %v11990_v59 = vld [vmem:[%s15639_s25 + $0xfc] sm:$0xff] }
 0x248   : > { %13884 = vmatmul.mubr.msk.bf16.gmra.mrb[24].mxu1 %vm272_vm1, %v16434_v12  ;;  %13581 = vmatprep.mubr.msk.bf16.mxu0 %vm272_vm1, %v16432_v6  ;;  %v5472_v12 = vpack.c.bf16 %v11972_v24, %v11971_v10  ;;  %v11973_v6 = vld [vmem:[%s15639_s25 + $0x34] sm:$0xff]  ;;  %v5481_v17 = vpack.c.bf16 %v11990_v59, %v11989_v53  ;;  %v11939_v10 = vld [vmem:[%s15639_s25 + $0x21] sm:$0xff]  ;;  %v16929_v59 = vpack.c.bf16 %v16918_v30, %v7959_v13 }
 0x249   : > { %13887 = vmatprep.mubr.msk.bf16.mxu1 %vm272_vm1, %v5069_v11  ;;  %v5473_v38 = vpack.c.bf16 %v11974_v43, %v11973_v6  ;;  %v11991_v11 = vld [vmem:[%s15639_s25 + $0x10c] sm:$0xff]  ;;  %v5422_v25 = vpack.c.bf16 %v11939_v10, %v11938_v40  ;;  %v11962_v13 = vld [vmem:[%s15639_s25 + $0x139] sm:$0xff] }
 0x24a   : > { %v5482_v7 = vpack.c.bf16 %v11992_v60, %v11991_v11  ;;  %v16842_v24 = vld [vmem:[%s15639_s25 + $0x8] sm:$0xff]  ;;  %v7953_v43 = vld [vmem:[%s15639_s25 + $0x30] sm:$0xff]  ;;  %v16931_v11 = vpack.c.bf16 %v11951_v52, %v11950_v39  ;;  %v7973_v52 = vld [vmem:[%s15639_s25 + $0x120] sm:$0xff] }
 0x24b   : > { %v7963_v40 = vld [vmem:[%s15639_s25 + $0xa8] sm:$0xff]  ;;  %v16948_v10 = vld [vmem:[%s15639_s25 + $0xb0] sm:$0xff] }
 0x24c   : > { %v11963_v39 = vld [vmem:[%s15639_s25 + $0x141] sm:$0xff] }
 0x24f   : > { %13582 = vmatmul.mubr.msk.bf16.gmra.mrb[28].mxu0 %vm272_vm1, %v2511_v42  ;;  %v7951_v42 = vld [vmem:[%s15639_s25 + $0x18] sm:$0xff] }
 0x250   : > { %13888 = vmatmul.mubr.msk.bf16.gmra.mrb[28].mxu1 %vm272_vm1, %v5070_v55  ;;  %13893 = vmatprep.mubr.msk.bf16.mxu0 %vm272_vm1, %v5472_v12  ;;  %v16855_v55 = vld [vmem:[%s15639_s25 + $0x20] sm:$0xff] }
 0x251   : > { %14199 = vmatprep.mubr.msk.bf16.mxu1 %vm272_vm1, %v8031_v20  ;;  %v11943_v20 = vld [vmem:[%s15639_s25 + $0x51] sm:$0xff] }
 0x257   : > { %13894 = vmatmul.mubr.msk.bf16.vlgmr.msra.gmra.mrb[32].mxu0 %vm272_vm1, %v5473_v38 }
 0x258   : > { %13926 = vmatpush3.bf16.msra.mxu0 %v5751_v26  ;;  %14200 = vmatmul.mubr.msk.bf16.vlgmr.msra.gmra.mrb[32].mxu1 %vm272_vm1, %v5472_v12  ;;  %v11942_v12 = vld [vmem:[%s15639_s25 + $0x49] sm:$0xff] }
 0x259   : > { %14232 = vmatpush3.bf16.msra.mxu1 %v8310_v19  ;;  %13897 = vmatprep.mubr.msk.bf16.mxu0 %vm272_vm1, %v5474_v62  ;;  %v5424_v48 = vpack.c.bf16 %v11943_v20, %v11942_v12  ;;  %v16874_v19 = vld [vmem:[%s18614_s1 + $0x2a] sm:$0x3] }
 0x25a   : > { %14203 = vmatprep.mubr.msk.bf16.mxu1 %vm272_vm1, %v5473_v38  ;;  %15547 = vmatprep.subr.msk.bf16.mxu0 %vm321_vm0, %v16777_v54  ;;  %v8572_v38 = vsel %vm321_vm0, %v16785_v21, 0  ;;  %v11945_v54 = vld [vmem:[%s15639_s25 + $0x69] sm:$0xff] }
 0x25b   : > { %15556 = vmatprep.subr.msk.bf16.mxu1 %vm321_vm0, %v16785_v21  ;;  %v16886_v21 = vld [vmem:[%s15639_s25 + $0x50] sm:$0xff] }
 0x25c   : > { %v7984_v5 = vpack.c.bf16 %v16886_v21, %v7955_v9 }
 0x25f   : > { %13898 = vmatmul.mubr.msk.bf16.gmra.mrb[36].mxu0 %vm272_vm1, %v5475_v63 }
 0x260   : > { %14204 = vmatmul.mubr.msk.bf16.gmra.mrb[36].mxu1 %vm272_vm1, %v5474_v62  ;;  %13901 = vmatprep.mubr.msk.bf16.mxu0 %vm272_vm1, %v5476_v1  ;;  %v11944_v62 = vld [vmem:[%s15639_s25 + $0x61] sm:$0xff] }
 0x261   : > { %14207 = vmatprep.mubr.msk.bf16.mxu1 %vm272_vm1, %v5475_v63  ;;  %v7957_v63 = vld [vmem:[%s15639_s25 + $0x60] sm:$0xff]  ;;  %v16897_v4 = vpack.c.bf16 %v11945_v54, %v11944_v62  ;;  %v16984_v62 = vld [vmem:[%s15639_s25 + $0xf8] sm:$0xff] }
 0x267   : > { %13902 = vmatmul.mubr.msk.bf16.gmra.mrb[40].mxu0 %vm272_vm1, %v5477_v35 }
 0x268   : > { %14208 = vmatmul.mubr.msk.bf16.gmra.mrb[40].mxu1 %vm272_vm1, %v5476_v1  ;;  %13905 = vmatprep.mubr.msk.bf16.mxu0 %vm272_vm1, %v5478_v37  ;;  %v16893_v1 = vld [vmem:[%s15639_s25 + $0x68] sm:$0xff] }
 0x269   : > { %14211 = vmatprep.mubr.msk.bf16.mxu1 %vm272_vm1, %v5477_v35  ;;  %v16905_v33 = vpack.c.bf16 %v16893_v1, %v7957_v63  ;;  %v11948_v35 = vld [vmem:[%s15639_s25 + $0x91] sm:$0xff]  ;;  %v11960_v63 = vld [vmem:[%s15639_s25 + $0x121] sm:$0xff] }
 0x26f   : > { %13906 = vmatmul.mubr.msk.bf16.gmra.mrb[44].mxu0 %vm272_vm1, %v5479_v49 }
 0x270   : > { %14212 = vmatmul.mubr.msk.bf16.gmra.mrb[44].mxu1 %vm272_vm1, %v5478_v37  ;;  %13909 = vmatprep.mubr.msk.bf16.mxu0 %vm272_vm1, %v5480_v41  ;;  %v11949_v37 = vld [vmem:[%s15639_s25 + $0x99] sm:$0xff] }
 0x271   : > { %14215 = vmatprep.mubr.msk.bf16.mxu1 %vm272_vm1, %v5479_v49  ;;  %v7961_v49 = vld [vmem:[%s15639_s25 + $0x90] sm:$0xff]  ;;  %v16926_v53 = vpack.c.bf16 %v11949_v37, %v11948_v35  ;;  %v7971_v35 = vld [vmem:[%s15639_s25 + $0x108] sm:$0xff] }
 0x272   : > { %v17008_v37 = vld [vmem:[%s15639_s25 + $0x110] sm:$0xff] }
 0x277   : > { %13910 = vmatmul.mubr.msk.bf16.gmra.mrb[48].mxu0 %vm272_vm1, %v5481_v17 }
 0x278   : > { %14216 = vmatmul.mubr.msk.bf16.gmra.mrb[48].mxu1 %vm272_vm1, %v5480_v41  ;;  %13913 = vmatprep.mubr.msk.bf16.mxu0 %vm272_vm1, %v5482_v7  ;;  %v16924_v41 = vld [vmem:[%s15639_s25 + $0x98] sm:$0xff] }
 0x279   : > { %14219 = vmatprep.mubr.msk.bf16.mxu1 %vm272_vm1, %v5481_v17  ;;  %v16934_v60 = vpack.c.bf16 %v16924_v41, %v7961_v49  ;;  %v11952_v17 = vld [vmem:[%s15639_s25 + $0xc1] sm:$0xff] }
 0x27a   : > { %v17014_v49 = vld [vmem:[%s15639_s25 + $0x128] sm:$0xff] }
 0x27f   : > { %13914 = vmatmul.mubr.msk.bf16.gmra.mrb[52].mxu0 %vm272_vm1, %v16585_v46 }
 0x280   : > { %14220 = vmatmul.mubr.msk.bf16.gmra.mrb[52].mxu1 %vm272_vm1, %v5482_v7  ;;  %13917 = vmatprep.mubr.msk.bf16.mxu0 %vm272_vm1, %v16599_v22  ;;  %v11953_v7 = vld [vmem:[%s15639_s25 + $0xc9] sm:$0xff] }
 0x281   : > { %14223 = vmatprep.mubr.msk.bf16.mxu1 %vm272_vm1, %v16585_v46  ;;  %v7949_v46 = vld [vmem:[%s15639_s25] sm:$0xff] }
 0x282   : > { %v7981_v27 = vpack.c.bf16 %v16842_v24, %v7949_v46  ;;  %v11954_v46 = vld [vmem:[%s15639_s25 + $0xd9] sm:$0xff] }
 0x287   : > { %13918 = vmatmul.mubr.msk.bf16.gmra.mrb[56].mxu0 %vm272_vm1, %v16601_v31 }
 0x288   : > { %14224 = vmatmul.mubr.msk.bf16.gmra.mrb[56].mxu1 %vm272_vm1, %v16599_v22  ;;  %13921 = vmatprep.mubr.msk.bf16.mxu0 %vm272_vm1, %v16615_v28  ;;  %v11940_v22 = vld [vmem:[%s15639_s25 + $0x31] sm:$0xff] }
 0x289   : > { %14227 = vmatprep.mubr.msk.bf16.mxu1 %vm272_vm1, %v16601_v31  ;;  %v11941_v31 = vld [vmem:[%s15639_s25 + $0x39] sm:$0xff] }
 0x28a   : > { %v5423_v6 = vpack.c.bf16 %v11941_v31, %v11940_v22  ;;  %v16954_v22 = vld [vmem:[%s15639_s25 + $0xc8] sm:$0xff]  ;;  %v16956_v31 = vpack.c.bf16 %v11953_v7, %v11952_v17  ;;  %v17019_v7 = vpack.c.bf16 %v17008_v37, %v7971_v35 }
 0x28f   : > { %13922 = vmatmul.mubr.msk.bf16.gmra.mrb[60].mxu0 %vm272_vm1, %v16617_v29  ;;  %v16861_v29 = vld [vmem:[%s15639_s25 + $0x38] sm:$0xff] }
 0x290   : > { %14228 = vmatmul.mubr.msk.bf16.gmra.mrb[60].mxu1 %vm272_vm1, %v16615_v28  ;;  %13927 = vmatprep.mubr.msk.bf16.mxu0 %vm272_vm1, %v5422_v25  ;;  %v7982_v28 = vpack.c.bf16 %v16855_v55, %v7951_v42  ;;  %v7983_v26 = vpack.c.bf16 %v16861_v29, %v7953_v43  ;;  %v11955_v25 = vld [vmem:[%s15639_s25 + $0xe1] sm:$0xff]  ;;  %v16959_v42 = vpack.c.bf16 %v16948_v10, %v7963_v40  ;;  %v11957_v43 = vld [vmem:[%s15639_s25 + $0xf9] sm:$0xff] }
 0x291   : > { %14233 = vmatprep.mubr.msk.bf16.mxu1 %vm272_vm1, %v7981_v27  ;;  %v7965_v27 = vld [vmem:[%s15639_s25 + $0xc0] sm:$0xff]  ;;  %v16961_v12 = vpack.c.bf16 %v11955_v25, %v11954_v46  ;;  %v17021_v40 = vpack.c.bf16 %v11963_v39, %v11962_v13  ;;  %v17024_v46 = vpack.c.bf16 %v17014_v49, %v7973_v52  ;;  %v11964_v25 = vld [vmem:[%s15639_s25 + $0x151] sm:$0xff]  ;;  %v11969_v52 = vld [vmem:[%s15639_s25 + $0x189] sm:$0xff] }
 0x292   : > { %v16964_v20 = vpack.c.bf16 %v16954_v22, %v7965_v27  ;;  %v11965_v27 = vld [vmem:[%s15639_s25 + $0x159] sm:$0xff]  ;;  %v11968_v39 = vld [vmem:[%s15639_s25 + $0x181] sm:$0xff] }
 0x297   : > { %13928 = vmatmul.mubr.msk.bf16.vlgmr.msra.gmra.mrb[32].mxu0 %vm272_vm1, %v5423_v6  ;;  %v11956_v6 = vld [vmem:[%s15639_s25 + $0xf1] sm:$0xff] }
 0x298   : > { %13960 = vmatpush3.bf16.msra.mxu0 %v6013_v47  ;;  %14234 = vmatmul.mubr.msk.bf16.vlgmr.msra.gmra.mrb[32].mxu1 %vm272_vm1, %v7982_v28  ;;  %v7967_v28 = vld [vmem:[%s15639_s25 + $0xd8] sm:$0xff]  ;;  %v16978_v47 = vld [vmem:[%s15639_s25 + $0xe0] sm:$0xff]  ;;  %v16986_v54 = vpack.c.bf16 %v11957_v43, %v11956_v6 }
 0x299   : > { %14266 = vmatpush3.bf16.msra.mxu1 %v8572_v38  ;;  %13931 = vmatprep.mubr.msk.bf16.mxu0 %vm272_vm1, %v5424_v48  ;;  %v11958_v48 = vld [vmem:[%s15639_s25 + $0x109] sm:$0xff]  ;;  %v11959_v38 = vld [vmem:[%s15639_s25 + $0x111] sm:$0xff]  ;;  %v16989_v9 = vpack.c.bf16 %v16978_v47, %v7967_v28  ;;  %v17038_v43 = vld [vmem:[%s15639_s25 + $0x140] sm:$0xff] }
 0x29a   : > { %14237 = vmatprep.mubr.msk.bf16.mxu1 %vm272_vm1, %v7983_v26  ;;  %15548 = vmatprep.subr.msk.bf16.mxu0 %vm321_vm0, %v16874_v19  ;;  %v7969_v26 = vld [vmem:[%s15639_s25 + $0xf0] sm:$0xff]  ;;  %v16991_v16 = vpack.c.bf16 %v11959_v38, %v11958_v48  ;;  %v7975_v6 = vld [vmem:[%s15639_s25 + $0x138] sm:$0xff] }
 0x29b   : > { %15557 = vmatprep.subr.msk.bf16.mxu1 %vm321_vm0, %v16882_v34  ;;  %v16994_v36 = vpack.c.bf16 %v16984_v62, %v7969_v26  ;;  %v11966_v28 = vld [vmem:[%s15639_s25 + $0x169] sm:$0xff]  ;;  %v11967_v48 = vld [vmem:[%s15639_s25 + $0x171] sm:$0xff]  ;;  %v12044_v34 = vld [vmem:[%s15639_s25 + $0x7f] sm:$0xff] }
 0x29c   : > { %v7977_v38 = vld [vmem:[%s15639_s25 + $0x150] sm:$0xff]  ;;  %v17044_v26 = vld [vmem:[%s15639_s25 + $0x158] sm:$0xff]  ;;  %v17051_v35 = vpack.c.bf16 %v11967_v48, %v11966_v28  ;;  %v12037_v28 = vld [vmem:[%s15639_s25 + $0x27] sm:$0xff] }
 0x29d   : > { %v17054_v13 = vpack.c.bf16 %v17044_v26, %v7977_v38  ;;  %v8474_v48 = vld [vmem:[%s15639_s25 + $0x10] sm:$0xff]  ;;  %v17073_v38 = vpack.c.bf16 %v11969_v52, %v11968_v39  ;;  %v8476_v39 = vld [vmem:[%s15639_s25 + $0x28] sm:$0xff] }
 0x29e   : > { %v8505_v57 = vpack.c.bf16 %v8474_v48, %v16842_v24  ;;  %v12040_v52 = vld [vmem:[%s15639_s25 + $0x4f] sm:$0xff]  ;;  %v8478_v24 = vld [vmem:[%s15639_s25 + $0x40] sm:$0xff]  ;;  %v6307_v48 = vsel %vm321_vm0, %v16874_v19, 0  ;;  %v17109_v19 = vld [vmem:[%s18614_s1 + $0x3e] sm:$0x3] }
 0x29f   : > { %13932 = vmatmul.mubr.msk.bf16.gmra.mrb[36].mxu0 %vm272_vm1, %v16897_v4 }
 0x2a0   : > { %14238 = vmatmul.mubr.msk.bf16.gmra.mrb[36].mxu1 %vm272_vm1, %v7984_v5  ;;  %13935 = vmatprep.mubr.msk.bf16.mxu0 %vm272_vm1, %v16902_v32  ;;  %v11961_v5 = vld [vmem:[%s15639_s25 + $0x129] sm:$0xff] }
 0x2a1   : > { %14241 = vmatprep.mubr.msk.bf16.mxu1 %vm272_vm1, %v16905_v33  ;;  %v17016_v17 = vpack.c.bf16 %v11961_v5, %v11960_v63  ;;  %v17046_v63 = vpack.c.bf16 %v11965_v27, %v11964_v25  ;;  %v17049_v5 = vpack.c.bf16 %v17038_v43, %v7975_v6  ;;  %v7979_v25 = vld [vmem:[%s15639_s25 + $0x168] sm:$0xff]  ;;  %v17068_v27 = vld [vmem:[%s15639_s25 + $0x170] sm:$0xff]  ;;  %v12036_v6 = vld [vmem:[%s15639_s25 + $0x1f] sm:$0xff] }
 0x2a2   : > { %v17076_v14 = vpack.c.bf16 %v17068_v27, %v7979_v25  ;;  %v5946_v0 = vpack.c.bf16 %v12037_v28, %v12036_v6  ;;  %v12041_v25 = vld [vmem:[%s15639_s25 + $0x57] sm:$0xff]  ;;  %v5947_v6 = vpack.c.bf16 %v12039_v51, %v12038_v56  ;;  %v8506_v28 = vpack.c.bf16 %v8476_v39, %v16855_v55  ;;  %v17101_v51 = vld [vmem:[%s18614_s1 + $0x2c] sm:$0x3]  ;;  %v12043_v55 = vld [vmem:[%s15639_s25 + $0x6f] sm:$0xff] }
 0x2a3   : > { %v12042_v56 = vld [vmem:[%s15639_s25 + $0x67] sm:$0xff] }
 0x2a4   : > { %v12045_v39 = vld [vmem:[%s15639_s25 + $0x87] sm:$0xff] }
 0x2a7   : > { %13936 = vmatmul.mubr.msk.bf16.gmra.mrb[40].mxu0 %vm272_vm1, %v16926_v53 }
 0x2a8   : > { %14242 = vmatmul.mubr.msk.bf16.gmra.mrb[40].mxu1 %vm272_vm1, %v16929_v59  ;;  %13939 = vmatprep.mubr.msk.bf16.mxu0 %vm272_vm1, %v16931_v11 }
 0x2a9   : > { %14245 = vmatprep.mubr.msk.bf16.mxu1 %vm272_vm1, %v16934_v60 }
 0x2af   : > { %13940 = vmatmul.mubr.msk.bf16.gmra.mrb[44].mxu0 %vm272_vm1, %v16956_v31 }
 0x2b0   : > { %14246 = vmatmul.mubr.msk.bf16.gmra.mrb[44].mxu1 %vm272_vm1, %v16959_v42  ;;  %13943 = vmatprep.mubr.msk.bf16.mxu0 %vm272_vm1, %v16961_v12 }
 0x2b1   : > { %14249 = vmatprep.mubr.msk.bf16.mxu1 %vm272_vm1, %v16964_v20 }
 0x2b7   : > { %13944 = vmatmul.mubr.msk.bf16.gmra.mrb[48].mxu0 %vm272_vm1, %v16986_v54 }
 0x2b8   : > { %14250 = vmatmul.mubr.msk.bf16.gmra.mrb[48].mxu1 %vm272_vm1, %v16989_v9  ;;  %13947 = vmatprep.mubr.msk.bf16.mxu0 %vm272_vm1, %v16991_v16 }
 0x2b9   : > { %14253 = vmatprep.mubr.msk.bf16.mxu1 %vm272_vm1, %v16994_v36 }
 0x2bf   : > { %13948 = vmatmul.mubr.msk.bf16.gmra.mrb[52].mxu0 %vm272_vm1, %v17016_v17 }
 0x2c0   : > { %14254 = vmatmul.mubr.msk.bf16.gmra.mrb[52].mxu1 %vm272_vm1, %v17019_v7  ;;  %13951 = vmatprep.mubr.msk.bf16.mxu0 %vm272_vm1, %v17021_v40 }
 0x2c1   : > { %14257 = vmatprep.mubr.msk.bf16.mxu1 %vm272_vm1, %v17024_v46 }
 0x2c7   : > { %13952 = vmatmul.mubr.msk.bf16.gmra.mrb[56].mxu0 %vm272_vm1, %v17046_v63 }
 0x2c8   : > { %14258 = vmatmul.mubr.msk.bf16.gmra.mrb[56].mxu1 %vm272_vm1, %v17049_v5  ;;  %13955 = vmatprep.mubr.msk.bf16.mxu0 %vm272_vm1, %v17051_v35 }
 0x2c9   : > { %14261 = vmatprep.mubr.msk.bf16.mxu1 %vm272_vm1, %v17054_v13 }
 0x2cf   : > { %13956 = vmatmul.mubr.msk.bf16.gmra.mrb[60].mxu0 %vm272_vm1, %v17073_v38 }
 0x2d0   : > { %14262 = vmatmul.mubr.msk.bf16.gmra.mrb[60].mxu1 %vm272_vm1, %v17076_v14  ;;  %13961 = vmatprep.mubr.msk.bf16.mxu0 %vm272_vm1, %v5946_v0  ;;  %v5948_v0 = vpack.c.bf16 %v12041_v25, %v12040_v52  ;;  %v8482_v52 = vld [vmem:[%s15639_s25 + $0x70] sm:$0xff]  ;;  %v5949_v25 = vpack.c.bf16 %v12043_v55, %v12042_v56  ;;  %v8486_v56 = vld [vmem:[%s15639_s25 + $0xa0] sm:$0xff] }
 0x2d1   : > { %14267 = vmatprep.mubr.msk.bf16.mxu1 %vm272_vm1, %v8505_v57  ;;  %v8507_v57 = vpack.c.bf16 %v8478_v24, %v16861_v29  ;;  %v8480_v29 = vld [vmem:[%s15639_s25 + $0x58] sm:$0xff]  ;;  %v8509_v24 = vpack.c.bf16 %v8482_v52, %v16893_v1  ;;  %v12051_v52 = vld [vmem:[%s15639_s25 + $0xcf] sm:$0xff] }
 0x2d7   : > { %13962 = vmatmul.mubr.msk.bf16.vlgmr.msra.gmra.mrb[32].mxu0 %vm272_vm1, %v5947_v6  ;;  %v5950_v6 = vpack.c.bf16 %v12045_v39, %v12044_v34  ;;  %v8511_v34 = vpack.c.bf16 %v8486_v56, %v16924_v41  ;;  %v12050_v39 = vld [vmem:[%s15639_s25 + $0xc7] sm:$0xff] }
 0x2d8   : > { %13994 = vmatpush3.bf16.msra.mxu0 %v6307_v48  ;;  %14268 = vmatmul.mubr.msk.bf16.vlgmr.msra.gmra.mrb[32].mxu1 %vm272_vm1, %v8506_v28  ;;  %v12046_v28 = vld [vmem:[%s15639_s25 + $0x97] sm:$0xff]  ;;  %v12047_v48 = vld [vmem:[%s15639_s25 + $0x9f] sm:$0xff]  ;;  %v12053_v41 = vld [vmem:[%s15639_s25 + $0xe7] sm:$0xff] }
 0x2d9   : > { %14300 = vmatpush3.bf16.msra.mxu1 %v8866_v50  ;;  %13965 = vmatprep.mubr.msk.bf16.mxu0 %vm272_vm1, %v5948_v0  ;;  %v8508_v50 = vpack.c.bf16 %v8480_v29, %v16886_v21  ;;  %v8484_v0 = vld [vmem:[%s15639_s25 + $0x88] sm:$0xff]  ;;  %v12049_v21 = vld [vmem:[%s15639_s25 + $0xb7] sm:$0xff]  ;;  %v5951_v1 = vpack.c.bf16 %v12047_v48, %v12046_v28  ;;  %v5953_v48 = vpack.c.bf16 %v12051_v52, %v12050_v39 }
 0x2da   : > { %14271 = vmatprep.mubr.msk.bf16.mxu1 %vm272_vm1, %v8507_v57  ;;  %15549 = vmatprep.subr.msk.bf16.mxu0 %vm321_vm0, %v17101_v51  ;;  %v12048_v57 = vld [vmem:[%s15639_s25 + $0xaf] sm:$0xff]  ;;  %v8510_v55 = vpack.c.bf16 %v8484_v0, %v16918_v30  ;;  %v8488_v30 = vld [vmem:[%s15639_s25 + $0xb8] sm:$0xff] }
 0x2db   : > { %15558 = vmatprep.subr.msk.bf16.mxu1 %vm321_vm0, %v17109_v19  ;;  %v5952_v29 = vpack.c.bf16 %v12049_v21, %v12048_v57  ;;  %v8490_v0 = vld [vmem:[%s15639_s25 + $0xd0] sm:$0xff] }
 0x2df   : > { %13966 = vmatmul.mubr.msk.bf16.gmra.mrb[36].mxu0 %vm272_vm1, %v5949_v25  ;;  %v17143_v25 = vld [vmem:[%s18615_s2 + $0x1] ss:$0 sm:$0xff] }
 0x2e0   : > { %14272 = vmatmul.mubr.msk.bf16.gmra.mrb[36].mxu1 %vm272_vm1, %v8508_v50  ;;  %13969 = vmatprep.mubr.msk.bf16.mxu0 %vm272_vm1, %v5950_v6  ;;  %v12052_v6 = vld [vmem:[%s15639_s25 + $0xdf] sm:$0xff] }
 0x2e1   : > { %14275 = vmatprep.mubr.msk.bf16.mxu1 %vm272_vm1, %v8509_v24  ;;  %v5954_v45 = vpack.c.bf16 %v12053_v41, %v12052_v6  ;;  %v12055_v6 = vld [vmem:[%s15639_s25 + $0xff] sm:$0xff]  ;;  %v8492_v41 = vld [vmem:[%s15639_s25 + $0xe8] sm:$0xff] }
 0x2e7   : > { %13970 = vmatmul.mubr.msk.bf16.gmra.mrb[40].mxu0 %vm272_vm1, %v5951_v1  ;;  %v8512_v1 = vpack.c.bf16 %v8488_v30, %v16948_v10  ;;  %v12054_v30 = vld [vmem:[%s15639_s25 + $0xf7] sm:$0xff] }
 0x2e8   : > { %14276 = vmatmul.mubr.msk.bf16.gmra.mrb[40].mxu1 %vm272_vm1, %v8510_v55  ;;  %13973 = vmatprep.mubr.msk.bf16.mxu0 %vm272_vm1, %v5952_v29 }
 0x2e9   : > { %14279 = vmatprep.mubr.msk.bf16.mxu1 %vm272_vm1, %v8511_v34 }
 0x2ea   : > { %v17147_v50 = vpop.f32.mrb[0].mxu0 }
 0x2eb   : > { %v13861_v24 = vpop.f32.mrb[0].mxu1  ;;  %v17151_v28 = vpop.f32.mrb[1].mxu0 }
 0x2ec   : > { %v5327_v57 = vadd.f32 %v13861_v24, %v17143_v25  ;;  %v5158_v21 = vpop.f32.mrb[1].mxu1  ;;  %v17155_v56 = vpop.f32.mrb[2].mxu0  ;;  %v8513_v24 = vpack.c.bf16 %v8490_v0, %v16954_v22  ;;  %v12057_v22 = vld [vmem:[%s15639_s25 + $0x117] sm:$0xff] }
 0x2ed   : > { %18688 = vst [vmem:[#allocation9_spill] sm:$0xff] %v17155_v56  ;;  %v5325_v55 = vadd.f32 %v17143_v25, %v5158_v21  ;;  %v13862_v29 = vpop.f32.mrb[2].mxu1  ;;  %v17159_v34 = vpop.f32.mrb[3].mxu0 }
 0x2ee   : > { %v5359_v44 = vmax.f32 %v5327_v57, 0.0  ;;  %v5328_v39 = vadd.f32 %v13862_v29, %v17143_v25  ;;  %v5161_v52 = vpop.f32.mrb[3].mxu1  ;;  %v12056_v57 = vld [vmem:[%s15639_s25 + $0x10f] sm:$0xff] }
 0x2ef   : > { %v5357_v56 = vmax.f32 %v5325_v55, 0.0  ;;  %v5326_v10 = vadd.f32 %v17143_v25, %v5161_v52  ;;  %13974 = vmatmul.mubr.msk.bf16.gmra.mrb[44].mxu0 %vm272_vm1, %v5953_v48  ;;  %v17178_v48 = vld [vmem:[%s15639_s25 + $0x100] sm:$0xff]  ;;  %v17187_v61 = vpack.c.bf16 %v12057_v22, %v12056_v57 }
 0x2f0   : > { %14280 = vmatmul.mubr.msk.bf16.gmra.mrb[44].mxu1 %vm272_vm1, %v8512_v1  ;;  %10544 = vrot.lane.b32.xlu1 %v5359_v44, %s15584_s28  ;;  %v5360_v0 = vmax.f32 %v5328_v39, 0.0  ;;  %18689 = vst [vmem:[#allocation11_spill] sm:$0xff] %v17178_v48  ;;  %v5955_v44 = vpack.c.bf16 %v12055_v6, %v12054_v30  ;;  %v8514_v39 = vpack.c.bf16 %v8492_v41, %v16978_v47  ;;  %v12058_v22 = vld [vmem:[%s15639_s25 + $0x127] sm:$0xff] }
 0x2f1   : > { %10540 = vrot.lane.b32.xlu0 %v5357_v56, %s15584_s28  ;;  %13977 = vmatprep.mubr.msk.bf16.mxu0 %vm272_vm1, %v5954_v45  ;;  %v5358_v1 = vmax.f32 %v5326_v10, 0.0  ;;  %18691 = vst [vmem:[#allocation13_spill] sm:$0xff] %v17187_v61  ;;  %v8515_v30 = vpack.c.bf16 %v17178_v48, %v16984_v62  ;;  %v12059_v62 = vld [vmem:[%s15639_s25 + $0x12f] sm:$0xff] }
 0x2f2   : > { %v17174_v21 = vpop.f32.mrb[4].mxu0  ;;  %14283 = vmatprep.mubr.msk.bf16.mxu1 %vm272_vm1, %v8513_v24 }
 0x2f3   : > { %v13865_v55 = vpop.f32.mrb[4].mxu1  ;;  %v17180_v29 = vpop.f32.mrb[5].mxu0 }
 0x2f4   : > { %18690 = vst [vmem:[#allocation10_spill] sm:$0xff] %v17180_v29  ;;  %v5331_v52 = vadd.f32 %v13865_v55, %v17143_v25  ;;  %10546 = vrot.lane.b32.xlu1 %v5360_v0, %s15584_s28  ;;  %v5174_v45 = vpop.f32.mrb[5].mxu1  ;;  %v17184_v56 = vpop.f32.mrb[6].mxu0 }
 0x2f5   : > { %10542 = vrot.lane.b32.xlu0 %v5358_v1, %s15584_s28  ;;  %v13866_v24 = vpop.f32.mrb[6].mxu1  ;;  %v17190_v10 = vpop.f32.mrb[7].mxu0  ;;  %v5329_v47 = vadd.f32 %v17143_v25, %v5174_v45  ;;  %v17206_v1 = vld [vmem:[%s15639_s25 + $0x118] sm:$0xff]  ;;  %v12061_v45 = vld [vmem:[%s15639_s25 + $0x147] sm:$0xff] }
 0x2f6   : > { %18692 = vst [vmem:[#allocation12_spill] sm:$0xff] %v17190_v10  ;;  %v5363_v6 = vmax.f32 %v5331_v52, 0.0  ;;  %v5332_v0 = vadd.f32 %v13866_v24, %v17143_v25  ;;  %v5177_v55 = vpop.f32.mrb[7].mxu1  ;;  %18693 = vst [vmem:[#allocation15_spill] sm:$0xff] %v17206_v1  ;;  %v12060_v52 = vld [vmem:[%s15639_s25 + $0x13f] sm:$0xff]  ;;  %v17214_v24 = vld [vmem:[%s15639_s25 + $0x130] sm:$0xff]  ;;  %v8516_v29 = vpack.c.bf16 %v17206_v1, %v17008_v37 }
 0x2f7   : > { %13978 = vmatmul.mubr.msk.bf16.gmra.mrb[48].mxu0 %vm272_vm1, %v5955_v44  ;;  %v5330_v57 = vadd.f32 %v17143_v25, %v5177_v55  ;;  %18695 = vst [vmem:[#allocation17_spill] sm:$0xff] %v17214_v24 }
 0x2f8   : > { %v5364_v41 = vmax.f32 %v5332_v0, 0.0  ;;  %14284 = vmatmul.mubr.msk.bf16.gmra.mrb[48].mxu1 %vm272_vm1, %v8514_v39  ;;  %13981 = vmatprep.mubr.msk.bf16.mxu0 %vm272_vm1, %v17187_v61  ;;  %v5361_v39 = vmax.f32 %v5329_v47, 0.0  ;;  %v17218_v61 = vpack.c.bf16 %v12059_v62, %v12058_v22 }
 0x2f9   : > { %10552 = vrot.lane.b32.xlu0 %v5363_v6, %s15584_s28  ;;  %14287 = vmatprep.mubr.msk.bf16.mxu1 %vm272_vm1, %v8515_v30  ;;  %v5362_v48 = vmax.f32 %v5330_v57, 0.0  ;;  %v8517_v57 = vpack.c.bf16 %v17214_v24, %v17014_v49  ;;  %v12062_v49 = vld [vmem:[%s15639_s25 + $0x157] sm:$0xff] }
 0x2fa   : > { %10554 = vrot.lane.b32.xlu1 %v5364_v41, %s15584_s28  ;;  %v17211_v44 = vpop.f32.mrb[8].mxu0  ;;  %18696 = vst [vmem:[#allocation16_spill] sm:$0xff] %v17218_v61  ;;  %v17225_v41 = vpack.c.bf16 %v12061_v45, %v12060_v52 }
 0x2fb   : > { %18694 = vst [vmem:[#allocation14_spill] sm:$0xff] %v17211_v44  ;;  %v13869_v0 = vpop.f32.mrb[8].mxu1  ;;  %v17216_v55 = vpop.f32.mrb[9].mxu0 }
 0x2fc   : > { %v5335_v6 = vadd.f32 %v13869_v0, %v17143_v25  ;;  %v5190_v30 = vpop.f32.mrb[9].mxu1  ;;  %v17221_v10 = vpop.f32.mrb[10].mxu0  ;;  %18697 = vst [vmem:[#allocation19_spill] sm:$0xff] %v17225_v41  ;;  %v12063_v0 = vld [vmem:[%s15639_s25 + $0x15f] sm:$0xff] }
 0x2fd   : > { %10548 = vrot.lane.b32.xlu0 %v5361_v39, %s15584_s28  ;;  %v13870_v47 = vpop.f32.mrb[10].mxu1  ;;  %v17228_v44 = vpop.f32.mrb[11].mxu0  ;;  %v5333_v52 = vadd.f32 %v17143_v25, %v5190_v30  ;;  %v12065_v30 = vld [vmem:[%s15639_s25 + $0x177] sm:$0xff] }
 0x2fe   : > { %18698 = vst [vmem:[#allocation18_spill] sm:$0xff] %v17228_v44  ;;  %v5367_v22 = vmax.f32 %v5335_v6, 0.0  ;;  %v5336_v62 = vadd.f32 %v13870_v47, %v17143_v25  ;;  %10550 = vrot.lane.b32.xlu1 %v5362_v48, %s15584_s28  ;;  %v5193_v37 = vpop.f32.mrb[11].mxu1  ;;  %v17246_v48 = vld [vmem:[%s15639_s25 + $0x148] sm:$0xff] }
 0x2ff   : > { %13982 = vmatmul.mubr.msk.bf16.gmra.mrb[52].mxu0 %vm272_vm1, %v17218_v61  ;;  %v5334_v39 = vadd.f32 %v17143_v25, %v5193_v37  ;;  %18699 = vst [vmem:[#allocation22_spill] sm:$0xff] %v17246_v48  ;;  %v12064_v6 = vld [vmem:[%s15639_s25 + $0x16f] sm:$0xff]  ;;  %v8518_v44 = vpack.c.bf16 %v17246_v48, %v17038_v43 }
 0x300   : > { %v5368_v45 = vmax.f32 %v5336_v62, 0.0  ;;  %14288 = vmatmul.mubr.msk.bf16.gmra.mrb[52].mxu1 %vm272_vm1, %v8516_v29  ;;  %13985 = vmatprep.mubr.msk.bf16.mxu0 %vm272_vm1, %v17225_v41  ;;  %v17254_v62 = vld [vmem:[%s15639_s25 + $0x160] sm:$0xff]  ;;  %v5365_v29 = vmax.f32 %v5333_v52, 0.0  ;;  %v17258_v41 = vpack.c.bf16 %v12063_v0, %v12062_v49 }
 0x301   : > { %10560 = vrot.lane.b32.xlu0 %v5367_v22, %s15584_s28  ;;  %14291 = vmatprep.mubr.msk.bf16.mxu1 %vm272_vm1, %v8517_v57  ;;  %18701 = vst [vmem:[#allocation24_spill] sm:$0xff] %v17254_v62  ;;  %v5366_v24 = vmax.f32 %v5334_v39, 0.0  ;;  %v8519_v39 = vpack.c.bf16 %v17254_v62, %v17044_v26  ;;  %v12066_v26 = vld [vmem:[%s15639_s25 + $0x187] sm:$0xff] }
 0x302   : > { %10562 = vrot.lane.b32.xlu1 %v5368_v45, %s15584_s28  ;;  %v17251_v47 = vpop.f32.mrb[12].mxu0  ;;  %18702 = vst [vmem:[#allocation25_spill] sm:$0xff] %v17258_v41  ;;  %v17265_v45 = vpack.c.bf16 %v12065_v30, %v12064_v6 }
 0x303   : > { %18700 = vst [vmem:[#allocation23_spill] sm:$0xff] %v17251_v47  ;;  %v13873_v37 = vpop.f32.mrb[12].mxu1  ;;  %v17256_v61 = vpop.f32.mrb[13].mxu0 }
 0x304   : > { %v5339_v22 = vadd.f32 %v13873_v37, %v17143_v25  ;;  %v5206_v57 = vpop.f32.mrb[13].mxu1  ;;  %v17261_v1 = vpop.f32.mrb[14].mxu0  ;;  %18703 = vst [vmem:[#allocation26_spill] sm:$0xff] %v17265_v45 }
 0x305   : > { %10556 = vrot.lane.b32.xlu0 %v5365_v29, %s15584_s28  ;;  %v13874_v52 = vpop.f32.mrb[14].mxu1  ;;  %v17268_v47 = vpop.f32.mrb[15].mxu0  ;;  %v5337_v43 = vadd.f32 %v17143_v25, %v5206_v57  ;;  %v12067_v29 = vld [vmem:[%s15639_s25 + $0x18f] sm:$0xff] }
 0x306   : > { %v5371_v49 = vmax.f32 %v5339_v22, 0.0  ;;  %v5340_v0 = vadd.f32 %v13874_v52, %v17143_v25  ;;  %10558 = vrot.lane.b32.xlu1 %v5366_v24, %s15584_s28  ;;  %v5209_v37 = vpop.f32.mrb[15].mxu1  ;;  %v17286_v24 = vld [vmem:[%s15639_s25 + $0x178] sm:$0xff]  ;;  %v17291_v22 = vld [vmem:[%s18615_s2] ss:$0 sm:$0xff] }
 0x307   : > { %13986 = vmatmul.mubr.msk.bf16.gmra.mrb[56].mxu0 %vm272_vm1, %v17258_v41  ;;  %v5338_v30 = vadd.f32 %v17143_v25, %v5209_v37 }
 0x308   : > { %v5372_v6 = vmax.f32 %v5340_v0, 0.0  ;;  %14292 = vmatmul.mubr.msk.bf16.gmra.mrb[56].mxu1 %vm272_vm1, %v8518_v44  ;;  %13989 = vmatprep.mubr.msk.bf16.mxu0 %vm272_vm1, %v17265_v45  ;;  %v5369_v44 = vmax.f32 %v5337_v43, 0.0  ;;  %v17297_v45 = vpack.c.bf16 %v12067_v29, %v12066_v26 }
 0x309   : > { %10568 = vrot.lane.b32.xlu0 %v5371_v49, %s15584_s28  ;;  %14295 = vmatprep.mubr.msk.bf16.mxu1 %vm272_vm1, %v8519_v39  ;;  %v5370_v49 = vmax.f32 %v5338_v30, 0.0 }
 0x30a   : > { %10570 = vrot.lane.b32.xlu1 %v5372_v6, %s15584_s28  ;;  %v13571_v57 = vpop.f32.mrb[16].mxu0  ;;  %18705 = vst [vmem:[#allocation28_spill] sm:$0xff] %v17297_v45  ;;  %v8520_v6 = vpack.c.bf16 %v17286_v24, %v17068_v27 }
 0x30b   : > { %v17295_v52 = vadd.f32 %v13571_v57, %v17291_v22  ;;  %v13877_v0 = vpop.f32.mrb[16].mxu1  ;;  %v2663_v37 = vpop.f32.mrb[17].mxu0 }
 0x30c   : > { %v5343_v39 = vadd.f32 %v13877_v0, %v17143_v25  ;;  %v17301_v41 = vadd.f32 %v17291_v22, %v2663_v37  ;;  %v5222_v62 = vpop.f32.mrb[17].mxu1  ;;  %v13572_v48 = vpop.f32.mrb[18].mxu0 }
 0x30d   : > { %18704 = vst [vmem:[#allocation27_spill] sm:$0xff] %v17295_v52  ;;  %10564 = vrot.lane.b32.xlu0 %v5369_v44, %s15584_s28  ;;  %v17307_v43 = vadd.f32 %v13572_v48, %v17291_v22  ;;  %v13878_v57 = vpop.f32.mrb[18].mxu1  ;;  %v2666_v52 = vpop.f32.mrb[19].mxu0  ;;  %v5341_v37 = vadd.f32 %v17143_v25, %v5222_v62 }
 0x30e   : > { %v5375_v26 = vmax.f32 %v5343_v39, 0.0  ;;  %v5344_v30 = vadd.f32 %v13878_v57, %v17143_v25  ;;  %10566 = vrot.lane.b32.xlu1 %v5370_v49, %s15584_s28  ;;  %v17312_v29 = vadd.f32 %v17291_v22, %v2666_v52  ;;  %v5225_v0 = vpop.f32.mrb[19].mxu1 }
 0x30f   : > { %13990 = vmatmul.mubr.msk.bf16.gmra.mrb[60].mxu0 %vm272_vm1, %v17297_v45  ;;  %v5342_v48 = vadd.f32 %v17143_v25, %v5225_v0  ;;  %v5373_v62 = vmax.f32 %v5341_v37, 0.0 }
 0x310   : > { %v5376_v27 = vmax.f32 %v5344_v30, 0.0  ;;  %14296 = vmatmul.mubr.msk.bf16.gmra.mrb[60].mxu1 %vm272_vm1, %v8520_v6  ;;  %13995 = vmatprep.mubr.msk.bf16.mxu0 %vm272_vm1, %v16897_v4 }
 0x311   : > { %10576 = vrot.lane.b32.xlu0 %v5375_v26, %s15584_s28  ;;  %14301 = vmatprep.mubr.msk.bf16.mxu1 %vm272_vm1, %v16905_v33  ;;  %v5374_v57 = vmax.f32 %v5342_v48, 0.0 }
 0x312   : > { %10578 = vrot.lane.b32.xlu1 %v5376_v27, %s15584_s28  ;;  %v13575_v44 = vpop.f32.mrb[20].mxu0  ;;  %v6505_v27 = vsel %vm321_vm0, %v17101_v51, 0 }
 0x313   : > { %v17326_v52 = vadd.f32 %v13575_v44, %v17291_v22  ;;  %v13881_v49 = vpop.f32.mrb[20].mxu1  ;;  %v2679_v39 = vpop.f32.mrb[21].mxu0 }
 0x314   : > { %v5347_v6 = vadd.f32 %v13881_v49, %v17143_v25  ;;  %v17330_v30 = vadd.f32 %v17291_v22, %v2679_v39  ;;  %v5238_v4 = vpop.f32.mrb[21].mxu1  ;;  %v13576_v26 = vpop.f32.mrb[22].mxu0 }
 0x315   : > { %10572 = vrot.lane.b32.xlu0 %v5373_v62, %s15584_s28  ;;  %v17334_v33 = vadd.f32 %v13576_v26, %v17291_v22  ;;  %v13882_v0 = vpop.f32.mrb[22].mxu1  ;;  %v2682_v37 = vpop.f32.mrb[23].mxu0  ;;  %v9064_v62 = vsel %vm321_vm0, %v17109_v19, 0  ;;  %v5345_v26 = vadd.f32 %v17143_v25, %v5238_v4  ;;  %v17360_v19 = vld [vmem:[%s18614_s1 + $0x40] sm:$0x3] }
 0x316   : > { %v5379_v44 = vmax.f32 %v5347_v6, 0.0  ;;  %v5348_v48 = vadd.f32 %v13882_v0, %v17143_v25  ;;  %10574 = vrot.lane.b32.xlu1 %v5374_v57, %s15584_s28  ;;  %v17341_v49 = vadd.f32 %v17291_v22, %v2682_v37  ;;  %v5241_v39 = vpop.f32.mrb[23].mxu1  ;;  %v17354_v57 = vld [vmem:[%s18614_s1 + $0x2e] sm:$0x3] }
 0x317   : > { %13996 = vmatmul.mubr.msk.bf16.vlgmr.msra.gmra.mrb[32].mxu0 %vm272_vm1, %v16902_v32  ;;  %v5346_v51 = vadd.f32 %v17143_v25, %v5241_v39 }
 0x318   : > { %v5380_v45 = vmax.f32 %v5348_v48, 0.0  ;;  %14028 = vmatpush3.bf16.msra.mxu0 %v6505_v27  ;;  %14302 = vmatmul.mubr.msk.bf16.vlgmr.msra.gmra.mrb[32].mxu1 %vm272_vm1, %v16929_v59  ;;  %v5377_v59 = vmax.f32 %v5345_v26, 0.0 }
 0x319   : > { %10584 = vrot.lane.b32.xlu0 %v5379_v44, %s15584_s28  ;;  %14334 = vmatpush3.bf16.msra.mxu1 %v9064_v62  ;;  %v5378_v37 = vmax.f32 %v5346_v51, 0.0 }
 0x31a   : > { %10586 = vrot.lane.b32.xlu1 %v5380_v45, %s15584_s28  ;;  %v13579_v32 = vpop.f32.mrb[24].mxu0  ;;  %13999 = vmatprep.mubr.msk.bf16.mxu0 %vm272_vm1, %v16926_v53 }
 0x31b   : > { %v17366_v6 = vadd.f32 %v13579_v32, %v17291_v22  ;;  %v13885_v4 = vpop.f32.mrb[24].mxu1  ;;  %v2695_v0 = vpop.f32.mrb[25].mxu0  ;;  %14305 = vmatprep.mubr.msk.bf16.mxu1 %vm272_vm1, %v16934_v60  ;;  %15550 = vmatprep.subr.msk.bf16.mxu0 %vm321_vm0, %v17354_v57 }
 0x31c   : > { %v5351_v27 = vadd.f32 %v13885_v4, %v17143_v25  ;;  %v17374_v45 = vadd.f32 %v17291_v22, %v2695_v0  ;;  %v5254_v44 = vpop.f32.mrb[25].mxu1  ;;  %v13580_v53 = vpop.f32.mrb[26].mxu0  ;;  %15559 = vmatprep.subr.msk.bf16.mxu1 %vm321_vm0, %v17360_v19 }
 0x31d   : > { %10580 = vrot.lane.b32.xlu0 %v5377_v59, %s15584_s28  ;;  %v17380_v48 = vadd.f32 %v13580_v53, %v17291_v22  ;;  %v13886_v60 = vpop.f32.mrb[26].mxu1  ;;  %v2698_v39 = vpop.f32.mrb[27].mxu0  ;;  %v5349_v4 = vadd.f32 %v17143_v25, %v5254_v44 }
 0x31e   : > { %v5383_v62 = vmax.f32 %v5351_v27, 0.0  ;;  %v5352_v26 = vadd.f32 %v13886_v60, %v17143_v25  ;;  %10582 = vrot.lane.b32.xlu1 %v5378_v37, %s15584_s28  ;;  %v17385_v51 = vadd.f32 %v17291_v22, %v2698_v39  ;;  %v5257_v32 = vpop.f32.mrb[27].mxu1 }
 0x31f   : > { %14000 = vmatmul.mubr.msk.bf16.gmra.mrb[36].mxu0 %vm272_vm1, %v16931_v11  ;;  %v5350_v0 = vadd.f32 %v17143_v25, %v5257_v32  ;;  %v5381_v27 = vmax.f32 %v5349_v4, 0.0 }
 0x320   : > { %v5384_v59 = vmax.f32 %v5352_v26, 0.0  ;;  %14306 = vmatmul.mubr.msk.bf16.gmra.mrb[36].mxu1 %vm272_vm1, %v16959_v42  ;;  %14003 = vmatprep.mubr.msk.bf16.mxu0 %vm272_vm1, %v16956_v31 }
 0x321   : > { %10592 = vrot.lane.b32.xlu0 %v5383_v62, %s15584_s28  ;;  %14309 = vmatprep.mubr.msk.bf16.mxu1 %vm272_vm1, %v16964_v20  ;;  %v5382_v60 = vmax.f32 %v5350_v0, 0.0 }
 0x322   : > { %10594 = vrot.lane.b32.xlu1 %v5384_v59, %s15584_s28  ;;  %v13583_v37 = vpop.f32.mrb[28].mxu0 }
 0x323   : > { %v17400_v11 = vadd.f32 %v13583_v37, %v17291_v22  ;;  %v13889_v44 = vpop.f32.mrb[28].mxu1  ;;  %v2711_v53 = vpop.f32.mrb[29].mxu0 }
 0x324   : > { %v5355_v42 = vadd.f32 %v13889_v44, %v17143_v25  ;;  %v17404_v39 = vadd.f32 %v17291_v22, %v2711_v53  ;;  %v5270_v31 = vpop.f32.mrb[29].mxu1  ;;  %v13584_v62 = vpop.f32.mrb[30].mxu0 }
 0x325   : > { %10588 = vrot.lane.b32.xlu0 %v5381_v27, %s15584_s28  ;;  %v17408_v20 = vadd.f32 %v13584_v62, %v17291_v22  ;;  %v13890_v26 = vpop.f32.mrb[30].mxu1  ;;  %v2714_v32 = vpop.f32.mrb[31].mxu0  ;;  %v5353_v44 = vadd.f32 %v17143_v25, %v5270_v31  ;;  %v12116_v31 = vld [vmem:[%s15639_s25 + $0x1d1] sm:$0xff]  ;;  %v12430_v62 = vld [vmem:[%s15639_s25 + $0x1c8] sm:$0xff] }
 0x326   : > { %18706 = vst [vmem:[#allocation29_spill] sm:$0xff] %v17404_v39  ;;  %v5387_v4 = vmax.f32 %v5355_v42, 0.0  ;;  %v5356_v59 = vadd.f32 %v13890_v26, %v17143_v25  ;;  %10590 = vrot.lane.b32.xlu1 %v5382_v60, %s15584_s28  ;;  %v17413_v0 = vadd.f32 %v17291_v22, %v2714_v32  ;;  %v5273_v37 = vpop.f32.mrb[31].mxu1  ;;  %v12115_v42 = vld [vmem:[%s15639_s25 + $0x1c9] sm:$0xff]  ;;  %v12180_v39 = vld [vmem:[%s15639_s25 + $0x1bf] sm:$0xff] }
 0x327   : > { %14004 = vmatmul.mubr.msk.bf16.gmra.mrb[40].mxu0 %vm272_vm1, %v16961_v12  ;;  %v5354_v53 = vadd.f32 %v17143_v25, %v5273_v37  ;;  %v5385_v60 = vmax.f32 %v5353_v44, 0.0  ;;  %v17494_v26 = vld [vmem:[%s15639_s25 + $0x1d0] sm:$0xff]  ;;  %v17496_v32 = vpack.c.bf16 %v12116_v31, %v12115_v42  ;;  %v9358_v37 = vsel %vm321_vm0, %v17360_v19, 0 }
 0x328   : > { %18707 = vst [vmem:[#allocation30_spill] sm:$0xff] %v17413_v0  ;;  %v5388_v27 = vmax.f32 %v5356_v59, 0.0  ;;  %14310 = vmatmul.mubr.msk.bf16.gmra.mrb[40].mxu1 %vm272_vm1, %v16989_v9  ;;  %14007 = vmatprep.mubr.msk.bf16.mxu0 %vm272_vm1, %v16986_v54  ;;  %v12424_v54 = vld [vmem:[%s15639_s25 + $0x180] sm:$0xff]  ;;  %v17447_v9 = vld [vmem:[%s15639_s25 + $0x188] sm:$0xff]  ;;  %v6799_v59 = vsel %vm321_vm0, %v17354_v57, 0  ;;  %v2765_v57 = vadd.f32 %v17291_v22, %v17151_v28 }
 0x329   : > { %10600 = vrot.lane.b32.xlu0 %v5387_v4, %s15584_s28  ;;  %14313 = vmatprep.mubr.msk.bf16.mxu1 %vm272_vm1, %v16994_v36  ;;  %v5386_v12 = vmax.f32 %v5354_v53, 0.0  ;;  %v12111_v36 = vld [vmem:[%s15639_s25 + $0x199] sm:$0xff]  ;;  %v17499_v4 = vpack.c.bf16 %v17494_v26, %v12430_v62  ;;  %v17518_v44 = vld [vmem:[%s18614_s1 + $0x30] sm:$0x3]  ;;  %v18741_v0 = vld [vmem:[#allocation19_spill] sm:$0xff] }
 0x32a   : > { %10602 = vrot.lane.b32.xlu1 %v5388_v27, %s15584_s28  ;;  %v2797_v19 = vmax.f32 %v2765_v57, 0.0 }
 0x32d   : > { %10596 = vrot.lane.b32.xlu0 %v5385_v60, %s15584_s28 }
 0x32e   : > { %10598 = vrot.lane.b32.xlu1 %v5386_v12, %s15584_s28  ;;  %v2771_v12 = vadd.f32 %v17174_v21, %v17291_v22 }
 0x32f   : > { %14008 = vmatmul.mubr.msk.bf16.gmra.mrb[44].mxu0 %vm272_vm1, %v16991_v16  ;;  %v17450_v16 = vpack.c.bf16 %v17447_v9, %v12424_v54  ;;  %v2772_v54 = vadd.f32 %v17184_v56, %v17291_v22  ;;  %v18708_v56 = vld [vmem:[#allocation10_spill] sm:$0xff] }
 0x330   : > { %14314 = vmatmul.mubr.msk.bf16.gmra.mrb[44].mxu1 %vm272_vm1, %v17019_v7  ;;  %14011 = vmatprep.mubr.msk.bf16.mxu0 %vm272_vm1, %v17016_v17  ;;  %v12112_v17 = vld [vmem:[%s15639_s25 + $0x1a1] sm:$0xff]  ;;  %v12426_v7 = vld [vmem:[%s15639_s25 + $0x198] sm:$0xff]  ;;  %v2803_v21 = vmax.f32 %v2771_v12, 0.0 }
 0x331   : > { %14317 = vmatprep.mubr.msk.bf16.mxu1 %vm272_vm1, %v17024_v46  ;;  %v12113_v46 = vld [vmem:[%s15639_s25 + $0x1b1] sm:$0xff] }
 0x337   : > { %14012 = vmatmul.mubr.msk.bf16.gmra.mrb[48].mxu0 %vm272_vm1, %v17021_v40  ;;  %v17464_v40 = vld [vmem:[%s15639_s25 + $0x1a0] sm:$0xff] }
 0x338   : > { %14318 = vmatmul.mubr.msk.bf16.gmra.mrb[48].mxu1 %vm272_vm1, %v17049_v5  ;;  %14015 = vmatprep.mubr.msk.bf16.mxu0 %vm272_vm1, %v17046_v63  ;;  %v12114_v63 = vld [vmem:[%s15639_s25 + $0x1b9] sm:$0xff]  ;;  %v12428_v5 = vld [vmem:[%s15639_s25 + $0x1b0] sm:$0xff] }
 0x339   : > { %14321 = vmatprep.mubr.msk.bf16.mxu1 %vm272_vm1, %v17054_v13  ;;  %v17475_v13 = vpack.c.bf16 %v17464_v40, %v12426_v7  ;;  %v2804_v7 = vmax.f32 %v2772_v54, 0.0  ;;  %v18713_v54 = vld [vmem:[#allocation18_spill] sm:$0xff] }
 0x33f   : > { %14016 = vmatmul.mubr.msk.bf16.gmra.mrb[52].mxu0 %vm272_vm1, %v17051_v35  ;;  %v17470_v35 = vld [vmem:[%s15639_s25 + $0x1b8] sm:$0xff] }
 0x340   : > { %14322 = vmatmul.mubr.msk.bf16.gmra.mrb[52].mxu1 %vm272_vm1, %v17076_v14  ;;  %14019 = vmatprep.mubr.msk.bf16.mxu0 %vm272_vm1, %v17073_v38  ;;  %v17472_v14 = vpack.c.bf16 %v12112_v17, %v12111_v36  ;;  %v17477_v38 = vpack.c.bf16 %v12114_v63, %v12113_v46  ;;  %v17480_v25 = vpack.c.bf16 %v17470_v35, %v12428_v5  ;;  %v18709_v46 = vld [vmem:[#allocation12_spill] sm:$0xff] }
 0x341   : > { %14325 = vmatprep.mubr.msk.bf16.mxu1 %vm272_vm1, %v17450_v16  ;;  %v2769_v17 = vadd.f32 %v17291_v22, %v18708_v56  ;;  %v2770_v63 = vadd.f32 %v17291_v22, %v18709_v46 }
 0x343   : > { %v2801_v62 = vmax.f32 %v2769_v17, 0.0 }
 0x347   : > { %14020 = vmatmul.mubr.msk.bf16.gmra.mrb[56].mxu0 %vm272_vm1, %v17472_v14 }
 0x348   : > { %14326 = vmatmul.mubr.msk.bf16.gmra.mrb[56].mxu1 %vm272_vm1, %v17475_v13  ;;  %14023 = vmatprep.mubr.msk.bf16.mxu0 %vm272_vm1, %v17477_v38 }
 0x349   : > { %14329 = vmatprep.mubr.msk.bf16.mxu1 %vm272_vm1, %v17480_v25 }
 0x34f   : > { %14024 = vmatmul.mubr.msk.bf16.gmra.mrb[60].mxu0 %vm272_vm1, %v17496_v32 }
 0x350   : > { %14330 = vmatmul.mubr.msk.bf16.gmra.mrb[60].mxu1 %vm272_vm1, %v17499_v4  ;;  %14029 = vmatprep.mubr.msk.bf16.mxu0 %vm272_vm1, %v16238_v58 }
 0x351   : > { %14335 = vmatprep.mubr.msk.bf16.mxu1 %vm272_vm1, %v16238_v58  ;;  %v17525_v58 = vld [vmem:[%s18614_s1 + $0x42] sm:$0x3] }
 0x357   : > { %14030 = vmatmul.mubr.msk.bf16.vlgmr.msra.gmra.mrb[32].mxu0 %vm272_vm1, %v16252_v8 }
 0x358   : > { %14062 = vmatpush3.bf16.msra.mxu0 %v6799_v59  ;;  %14336 = vmatmul.mubr.msk.bf16.vlgmr.msra.gmra.mrb[32].mxu1 %vm272_vm1, %v16252_v8  ;;  %v2767_v8 = vadd.f32 %v17147_v50, %v17291_v22  ;;  %v2766_v50 = vadd.f32 %v17291_v22, %v17159_v34  ;;  %v18710_v59 = vld [vmem:[#allocation14_spill] sm:$0xff] }
 0x359   : > { %14368 = vmatpush3.bf16.msra.mxu1 %v9358_v37  ;;  %14033 = vmatprep.mubr.msk.bf16.mxu0 %vm272_vm1, %v16255_v23  ;;  %v2802_v37 = vmax.f32 %v2770_v63, 0.0  ;;  %v18714_v63 = vld [vmem:[#allocation23_spill] sm:$0xff] }
 0x35a   : > { %14339 = vmatprep.mubr.msk.bf16.mxu1 %vm272_vm1, %v16255_v23  ;;  %15551 = vmatprep.subr.msk.bf16.mxu0 %vm321_vm0, %v17518_v44  ;;  %v2799_v23 = vmax.f32 %v2767_v8, 0.0  ;;  %v2776_v8 = vadd.f32 %v17221_v10, %v17291_v22 }
 0x35b   : > { %15560 = vmatprep.subr.msk.bf16.mxu1 %vm321_vm0, %v17525_v58 }
 0x35c   : > { %v2808_v12 = vmax.f32 %v2776_v8, 0.0  ;;  %v18716_v8 = vld [vmem:[#allocation4_spill] sm:$0xff] }
 0x35f   : > { %14034 = vmatmul.mubr.msk.bf16.gmra.mrb[36].mxu0 %vm272_vm1, %v16277_v2 }
 0x360   : > { %14340 = vmatmul.mubr.msk.bf16.gmra.mrb[36].mxu1 %vm272_vm1, %v16277_v2  ;;  %14037 = vmatprep.mubr.msk.bf16.mxu0 %vm272_vm1, %v16280_v3  ;;  %v2798_v2 = vmax.f32 %v2766_v50, 0.0 }
 0x361   : > { %14343 = vmatprep.mubr.msk.bf16.mxu1 %vm272_vm1, %v16280_v3 }
 0x362   : > { %v10545_v27 = vpop.permute.xlu1 %10544 }
 0x363   : > { %v17550_v28 = vsel %vm272_vm1, %v2799_v23, %v10545_v27  ;;  %v10541_v53 = vpop.permute.xlu0 %10540  ;;  %v18711_v23 = vld [vmem:[#allocation20_spill] sm:$0xff]  ;;  %v18712_v27 = vld [vmem:[#allocation2_spill] sm:$0xff] }
 0x364   : > { %v17553_v60 = vsel %vm272_vm1, %v2797_v19, %v10541_v53 }
 0x366   : > { %v17561_v34 = vpop.permute.xlu1 %10546 }
 0x367   : > { %v10543_v3 = vpop.permute.xlu0 %10542  ;;  %14038 = vmatmul.mubr.msk.bf16.gmra.mrb[40].mxu0 %vm272_vm1, %v16294_v18 }
 0x368   : > { %v17564_v36 = vsel %vm272_vm1, %v2798_v2, %v10543_v3  ;;  %14344 = vmatmul.mubr.msk.bf16.gmra.mrb[40].mxu1 %vm272_vm1, %v16294_v18  ;;  %14041 = vmatprep.mubr.msk.bf16.mxu0 %vm272_vm1, %v16296_v15  ;;  %v2773_v2 = vadd.f32 %v17291_v22, %v17216_v55  ;;  %v2774_v3 = vadd.f32 %v17291_v22, %v18713_v54 }
 0x369   : > { %14347 = vmatprep.mubr.msk.bf16.mxu1 %vm272_vm1, %v16296_v15  ;;  %v2775_v15 = vadd.f32 %v18710_v59, %v17291_v22  ;;  %v2780_v55 = vadd.f32 %v17261_v1, %v17291_v22  ;;  %v18715_v59 = vld [vmem:[#allocation3_spill] sm:$0xff] }
 0x36a   : > { %v2805_v46 = vmax.f32 %v2773_v2, 0.0 }
 0x36b   : > { %v10553_v5 = vpop.permute.xlu0 %10552  ;;  %v2807_v10 = vmax.f32 %v2775_v15, 0.0 }
 0x36c   : > { %v17577_v42 = vsel %vm272_vm1, %v2803_v21, %v10553_v5  ;;  %v10555_v31 = vpop.permute.xlu1 %10554  ;;  %v2779_v5 = vadd.f32 %v18714_v63, %v17291_v22 }
 0x36d   : > { %v17580_v18 = vsel %vm272_vm1, %v2804_v7, %v10555_v31  ;;  %v2806_v31 = vmax.f32 %v2774_v3, 0.0 }
 0x36e   : > { %v2811_v1 = vmax.f32 %v2779_v5, 0.0  ;;  %v18719_v5 = vld [vmem:[#allocation27_spill] sm:$0xff] }
 0x36f   : > { %v10549_v57 = vpop.permute.xlu0 %10548  ;;  %14042 = vmatmul.mubr.msk.bf16.gmra.mrb[44].mxu0 %vm272_vm1, %v18711_v23 }
 0x370   : > { %v17589_v19 = vsel %vm272_vm1, %v2801_v62, %v10549_v57  ;;  %14348 = vmatmul.mubr.msk.bf16.gmra.mrb[44].mxu1 %vm272_vm1, %v18711_v23  ;;  %v10551_v50 = vpop.permute.xlu1 %10550  ;;  %14045 = vmatprep.mubr.msk.bf16.mxu0 %vm272_vm1, %v18712_v27  ;;  %v2777_v23 = vadd.f32 %v17291_v22, %v17256_v61 }
 0x371   : > { %v17596_v53 = vsel %vm272_vm1, %v2802_v37, %v10551_v50  ;;  %14351 = vmatprep.mubr.msk.bf16.mxu1 %vm272_vm1, %v18712_v27  ;;  %v2812_v50 = vmax.f32 %v2780_v55, 0.0  ;;  %v2778_v27 = vadd.f32 %v17291_v22, %v17268_v47  ;;  %v18718_v22 = vld [vmem:[#allocation6_spill] sm:$0xff]  ;;  %v2816_v55 = vmax.f32 %v17307_v43, 0.0 }
 0x372   : > { %v2809_v3 = vmax.f32 %v2777_v23, 0.0  ;;  %v2814_v23 = vmax.f32 %v17312_v29, 0.0  ;;  %v12152_v29 = vld [vmem:[%s15639_s25 + $0x6f] sm:$0xff] }
 0x373   : > { %v10561_v21 = vpop.permute.xlu0 %10560 }
 0x374   : > { %v17605_v56 = vsel %vm272_vm1, %v2807_v10, %v10561_v21  ;;  %v10563_v17 = vpop.permute.xlu1 %10562  ;;  %v2810_v21 = vmax.f32 %v2778_v27, 0.0  ;;  %v18720_v27 = vld [vmem:[#allocation7_spill] sm:$0xff] }
 0x375   : > { %v17608_v7 = vsel %vm272_vm1, %v2808_v12, %v10563_v17 }
 0x377   : > { %v10557_v62 = vpop.permute.xlu0 %10556  ;;  %14046 = vmatmul.mubr.msk.bf16.gmra.mrb[48].mxu0 %vm272_vm1, %v18715_v59 }
 0x378   : > { %v17617_v15 = vsel %vm272_vm1, %v2805_v46, %v10557_v62  ;;  %14352 = vmatmul.mubr.msk.bf16.gmra.mrb[48].mxu1 %vm272_vm1, %v18715_v59  ;;  %v10559_v37 = vpop.permute.xlu1 %10558  ;;  %14049 = vmatprep.mubr.msk.bf16.mxu0 %vm272_vm1, %v18716_v8  ;;  %v18717_v46 = vld [vmem:[#allocation5_spill] sm:$0xff] }
 0x379   : > { %v17624_v57 = vsel %vm272_vm1, %v2806_v31, %v10559_v37  ;;  %14355 = vmatprep.mubr.msk.bf16.mxu1 %vm272_vm1, %v18716_v8  ;;  %v2815_v31 = vmax.f32 %v18719_v5, 0.0 }
 0x37b   : > { %v10569_v10 = vpop.permute.xlu0 %10568 }
 0x37c   : > { %v17633_v2 = vsel %vm272_vm1, %v2811_v1, %v10569_v10  ;;  %v10571_v12 = vpop.permute.xlu1 %10570  ;;  %v2813_v1 = vmax.f32 %v17301_v41, 0.0  ;;  %v12151_v41 = vld [vmem:[%s15639_s25 + $0x67] sm:$0xff] }
 0x37d   : > { %v17636_v54 = vsel %vm272_vm1, %v2812_v50, %v10571_v12  ;;  %v18721_v12 = vld [vmem:[#allocation8_spill] sm:$0xff] }
 0x37f   : > { %v10565_v17 = vpop.permute.xlu0 %10564  ;;  %14050 = vmatmul.mubr.msk.bf16.gmra.mrb[52].mxu0 %vm272_vm1, %v18717_v46 }
 0x380   : > { %v17641_v61 = vsel %vm272_vm1, %v2809_v3, %v10565_v17  ;;  %14356 = vmatmul.mubr.msk.bf16.gmra.mrb[52].mxu1 %vm272_vm1, %v18717_v46  ;;  %v10567_v47 = vpop.permute.xlu1 %10566  ;;  %14053 = vmatprep.mubr.msk.bf16.mxu0 %vm272_vm1, %v18718_v22  ;;  %v12466_v17 = vld [vmem:[%s15639_s25 + $0x68] sm:$0xff]  ;;  %v12467_v46 = vld [vmem:[%s15639_s25 + $0x70] sm:$0xff] }
 0x381   : > { %v17648_v63 = vsel %vm272_vm1, %v2810_v21, %v10567_v47  ;;  %14359 = vmatprep.mubr.msk.bf16.mxu1 %vm272_vm1, %v18718_v22  ;;  %v2819_v21 = vmax.f32 %v17326_v52, 0.0  ;;  %v2820_v47 = vmax.f32 %v17334_v33, 0.0  ;;  %v2817_v52 = vmax.f32 %v17330_v30, 0.0  ;;  %v12154_v30 = vld [vmem:[%s15639_s25 + $0x87] sm:$0xff] }
 0x383   : > { %v10577_v62 = vpop.permute.xlu0 %10576 }
 0x384   : > { %v17655_v59 = vsel %vm272_vm1, %v2815_v31, %v10577_v62  ;;  %v10579_v37 = vpop.permute.xlu1 %10578 }
 0x385   : > { %v17658_v8 = vsel %vm272_vm1, %v2816_v55, %v10579_v37  ;;  %v6732_v55 = vpack.c.bf16 %v12152_v29, %v12151_v41  ;;  %v9291_v37 = vpack.c.bf16 %v12467_v46, %v12466_v17  ;;  %v12469_v41 = vld [vmem:[%s15639_s25 + $0x88] sm:$0xff]  ;;  %v2823_v29 = vmax.f32 %v17366_v6, 0.0  ;;  %v12471_v17 = vld [vmem:[%s15639_s25 + $0xa0] sm:$0xff] }
 0x386   : > { %v2824_v46 = vmax.f32 %v17380_v48, 0.0  ;;  %v7094_v6 = vsel %vm321_vm0, %v17518_v44, 0  ;;  %v2821_v48 = vmax.f32 %v17374_v45, 0.0  ;;  %v17729_v44 = vld [vmem:[%s18614_s1 + $0x32] sm:$0x3] }
 0x387   : > { %v10573_v50 = vpop.permute.xlu0 %10572  ;;  %14054 = vmatmul.mubr.msk.bf16.gmra.mrb[56].mxu0 %vm272_vm1, %v18720_v27 }
 0x388   : > { %v17665_v43 = vsel %vm272_vm1, %v2813_v1, %v10573_v50  ;;  %14360 = vmatmul.mubr.msk.bf16.gmra.mrb[56].mxu1 %vm272_vm1, %v18720_v27  ;;  %v10575_v10 = vpop.permute.xlu1 %10574  ;;  %14057 = vmatprep.mubr.msk.bf16.mxu0 %vm272_vm1, %v18721_v12  ;;  %v2818_v1 = vmax.f32 %v17341_v49, 0.0  ;;  %v12468_v49 = vld [vmem:[%s15639_s25 + $0x80] sm:$0xff] }
 0x389   : > { %v17672_v3 = vsel %vm272_vm1, %v2814_v23, %v10575_v10  ;;  %14363 = vmatprep.mubr.msk.bf16.mxu1 %vm272_vm1, %v18721_v12  ;;  %v18725_v23 = vld [vmem:[#allocation21_spill] sm:$0xff] }
 0x38a   : > { %18722 = vst [vmem:[#allocation10_spill] sm:$0xff] %v17672_v3  ;;  %v12153_v10 = vld [vmem:[%s15639_s25 + $0x7f] sm:$0xff] }
 0x38b   : > { %v10585_v22 = vpop.permute.xlu0 %10584 }
 0x38c   : > { %v17683_v5 = vsel %vm272_vm1, %v2819_v21, %v10585_v22  ;;  %v10587_v31 = vpop.permute.xlu1 %10586  ;;  %v12470_v21 = vld [vmem:[%s15639_s25 + $0x98] sm:$0xff]  ;;  %v6733_v22 = vpack.c.bf16 %v12154_v30, %v12153_v10  ;;  %v2822_v30 = vmax.f32 %v17385_v51, 0.0  ;;  %v12157_v51 = vld [vmem:[%s15639_s25 + $0xaf] sm:$0xff] }
 0x38d   : > { %18723 = vst [vmem:[#allocation12_spill] sm:$0xff] %v17683_v5  ;;  %v17686_v62 = vsel %vm272_vm1, %v2820_v47, %v10587_v31  ;;  %v12155_v31 = vld [vmem:[%s15639_s25 + $0x97] sm:$0xff] }
 0x38e   : > { %18724 = vst [vmem:[#allocation14_spill] sm:$0xff] %v17686_v62 }
 0x38f   : > { %v10581_v33 = vpop.permute.xlu0 %10580  ;;  %14058 = vmatmul.mubr.msk.bf16.gmra.mrb[60].mxu0 %vm272_vm1, %v18725_v23 }
 0x390   : > { %v17693_v50 = vsel %vm272_vm1, %v2817_v52, %v10581_v33  ;;  %14364 = vmatmul.mubr.msk.bf16.gmra.mrb[60].mxu1 %vm272_vm1, %v18725_v23  ;;  %v10583_v27 = vpop.permute.xlu1 %10582  ;;  %14063 = vmatprep.mubr.msk.bf16.mxu0 %vm272_vm1, %v6732_v55  ;;  %v12156_v55 = vld [vmem:[%s15639_s25 + $0x9f] sm:$0xff]  ;;  %v9292_v33 = vpack.c.bf16 %v12469_v41, %v12468_v49  ;;  %v9293_v23 = vpack.c.bf16 %v12471_v17, %v12470_v21  ;;  %v12472_v41 = vld [vmem:[%s15639_s25 + $0xb0] sm:$0xff] }
 0x391   : > { %18726 = vst [vmem:[#allocation20_spill] sm:$0xff] %v17693_v50  ;;  %v17701_v12 = vsel %vm272_vm1, %v2818_v1, %v10583_v27  ;;  %14369 = vmatprep.mubr.msk.bf16.mxu1 %vm272_vm1, %v9291_v37  ;;  %v9653_v27 = vsel %vm321_vm0, %v17525_v58, 0  ;;  %v6734_v10 = vpack.c.bf16 %v12156_v55, %v12155_v31  ;;  %v17740_v21 = vld [vmem:[%s18614_s1 + $0x44] sm:$0x3]  ;;  %v2827_v31 = vmax.f32 %v17400_v11, 0.0  ;;  %v17752_v55 = vld [vmem:[%s15639_s25 + $0xc8] sm:$0xff] }
 0x392   : > { %18727 = vst [vmem:[#allocation2_spill] sm:$0xff] %v17701_v12  ;;  %v12203_v12 = vld [vmem:[%s15639_s25 + $0xc9] sm:$0xff]  ;;  %v12205_v50 = vld [vmem:[%s15639_s25 + $0xe1] sm:$0xff] }
 0x393   : > { %v10593_v47 = vpop.permute.xlu0 %10592 }
 0x394   : > { %v17713_v52 = vsel %vm272_vm1, %v2823_v29, %v10593_v47  ;;  %v10595_v1 = vpop.permute.xlu1 %10594  ;;  %v12158_v29 = vld [vmem:[%s15639_s25 + $0xb7] sm:$0xff]  ;;  %v12159_v47 = vld [vmem:[%s15639_s25 + $0xc7] sm:$0xff] }
 0x395   : > { %18728 = vst [vmem:[#allocation18_spill] sm:$0xff] %v17713_v52  ;;  %v17716_v37 = vsel %vm272_vm1, %v2824_v46, %v10595_v1  ;;  %v12473_v46 = vld [vmem:[%s15639_s25 + $0xb8] sm:$0xff]  ;;  %v12475_v1 = vld [vmem:[%s15639_s25 + $0xd0] sm:$0xff] }
 0x396   : > { %18729 = vst [vmem:[#allocation23_spill] sm:$0xff] %v17716_v37 }
 0x397   : > { %v10589_v49 = vpop.permute.xlu0 %10588  ;;  %14064 = vmatmul.mubr.msk.bf16.vlgmr.msra.gmra.mrb[32].mxu0 %vm272_vm1, %v6733_v22  ;;  %v12160_v22 = vld [vmem:[%s15639_s25 + $0xcf] sm:$0xff] }
 0x398   : > { %v17732_v45 = vsel %vm272_vm1, %v2821_v48, %v10589_v49  ;;  %14370 = vmatmul.mubr.msk.bf16.vlgmr.msra.gmra.mrb[32].mxu1 %vm272_vm1, %v9292_v33  ;;  %v10591_v58 = vpop.permute.xlu1 %10590  ;;  %14096 = vmatpush3.bf16.msra.mxu0 %v7094_v6  ;;  %v2828_v33 = vmax.f32 %v17408_v20, 0.0  ;;  %v17771_v20 = vpack.c.bf16 %v12475_v1, %v17752_v55  ;;  %v12161_v49 = vld [vmem:[%s15639_s25 + $0xdf] sm:$0xff] }
 0x399   : > { %18730 = vst [vmem:[#allocation3_spill] sm:$0xff] %v17732_v45  ;;  %v17743_v17 = vsel %vm272_vm1, %v2822_v30, %v10591_v58  ;;  %14402 = vmatpush3.bf16.msra.mxu1 %v9653_v27  ;;  %14373 = vmatprep.mubr.msk.bf16.mxu1 %vm272_vm1, %v9293_v23  ;;  %v17758_v23 = vpack.c.bf16 %v12158_v29, %v12157_v51  ;;  %v12162_v58 = vld [vmem:[%s15639_s25 + $0xe7] sm:$0xff]  ;;  %v12163_v29 = vld [vmem:[%s15639_s25 + $0xf7] sm:$0xff] }
 0x39a   : > { %18731 = vst [vmem:[#allocation4_spill] sm:$0xff] %v17743_v17  ;;  %14067 = vmatprep.mubr.msk.bf16.mxu0 %vm272_vm1, %v6734_v10  ;;  %15552 = vmatprep.subr.msk.bf16.mxu0 %vm321_vm0, %v17729_v44  ;;  %v9294_v27 = vpack.c.bf16 %v12473_v46, %v12472_v41  ;;  %v17765_v10 = vpack.c.bf16 %v12160_v22, %v12159_v47  ;;  %v17781_v41 = vld [vmem:[%s15639_s25 + $0xe0] sm:$0xff]  ;;  %v12477_v51 = vld [vmem:[%s15639_s25 + $0xe8] sm:$0xff]  ;;  %v17789_v47 = vld [vmem:[%s15639_s25 + $0xf8] sm:$0xff] }
 0x39b   : > { %v10601_v6 = vpop.permute.xlu0 %10600  ;;  %15561 = vmatprep.subr.msk.bf16.mxu1 %vm321_vm0, %v17740_v21  ;;  %v12164_v46 = vld [vmem:[%s15639_s25 + $0xff] sm:$0xff]  ;;  %v17791_v22 = vpack.c.bf16 %v12162_v58, %v12161_v49  ;;  %v18735_v49 = vld [vmem:[#allocation15_spill] sm:$0xff] }
 0x39c   : > { %v17763_v11 = vsel %vm272_vm1, %v2827_v31, %v10601_v6  ;;  %v10603_v48 = vpop.permute.xlu1 %10602  ;;  %v17794_v31 = vpack.c.bf16 %v12477_v51, %v17781_v41  ;;  %v17796_v1 = vpack.c.bf16 %v12164_v46, %v12163_v29  ;;  %v18736_v51 = vld [vmem:[#allocation17_spill] sm:$0xff] }
 0x39d   : > { %18732 = vst [vmem:[#allocation5_spill] sm:$0xff] %v17763_v11  ;;  %v17768_v30 = vsel %vm272_vm1, %v2828_v33, %v10603_v48  ;;  %v18734_v33 = vld [vmem:[#allocation11_spill] sm:$0xff]  ;;  %v17808_v48 = vld [vmem:[%s15639_s25 + $0x110] sm:$0xff]  ;;  %v18737_v46 = vld [vmem:[#allocation13_spill] sm:$0xff] }
 0x39e   : > { %18733 = vst [vmem:[#allocation6_spill] sm:$0xff] %v17768_v30  ;;  %v9297_v6 = vpack.c.bf16 %v18734_v33, %v17789_v47  ;;  %v9298_v58 = vpack.c.bf16 %v18735_v49, %v17808_v48  ;;  %v18738_v33 = vld [vmem:[#allocation16_spill] sm:$0xff]  ;;  %v17827_v30 = vld [vmem:[%s15639_s25 + $0x158] sm:$0xff]  ;;  %v18739_v49 = vld [vmem:[#allocation22_spill] sm:$0xff] }
 0x39f   : > { %14068 = vmatmul.mubr.msk.bf16.gmra.mrb[36].mxu0 %vm272_vm1, %v17758_v23 }
 0x3a0   : > { %14374 = vmatmul.mubr.msk.bf16.gmra.mrb[36].mxu1 %vm272_vm1, %v9294_v27  ;;  %14071 = vmatprep.mubr.msk.bf16.mxu0 %vm272_vm1, %v17765_v10  ;;  %v17811_v27 = vld [vmem:[%s15639_s25 + $0x128] sm:$0xff] }
 0x3a1   : > { %14377 = vmatprep.mubr.msk.bf16.mxu1 %vm272_vm1, %v17771_v20  ;;  %v9299_v29 = vpack.c.bf16 %v18736_v51, %v17811_v27  ;;  %v18740_v51 = vld [vmem:[#allocation24_spill] sm:$0xff] }
 0x3a7   : > { %14072 = vmatmul.mubr.msk.bf16.gmra.mrb[40].mxu0 %vm272_vm1, %v17791_v22 }
 0x3a8   : > { %14378 = vmatmul.mubr.msk.bf16.gmra.mrb[40].mxu1 %vm272_vm1, %v17794_v31  ;;  %14075 = vmatprep.mubr.msk.bf16.mxu0 %vm272_vm1, %v17796_v1 }
 0x3a9   : > { %14381 = vmatprep.mubr.msk.bf16.mxu1 %vm272_vm1, %v9297_v6  ;;  %v17824_v6 = vld [vmem:[%s15639_s25 + $0x140] sm:$0xff] }
 0x3aa   : > { %v9300_v11 = vpack.c.bf16 %v18739_v49, %v17824_v6 }
 0x3af   : > { %14076 = vmatmul.mubr.msk.bf16.gmra.mrb[44].mxu0 %vm272_vm1, %v18737_v46  ;;  %v9301_v46 = vpack.c.bf16 %v18740_v51, %v17827_v30 }
 0x3b0   : > { %14382 = vmatmul.mubr.msk.bf16.gmra.mrb[44].mxu1 %vm272_vm1, %v9298_v58  ;;  %14079 = vmatprep.mubr.msk.bf16.mxu0 %vm272_vm1, %v18738_v33  ;;  %v18742_v58 = vld [vmem:[#allocation25_spill] sm:$0xff]  ;;  %v17843_v33 = vld [vmem:[%s15639_s25 + $0x190] sm:$0xff] }
 0x3b1   : > { %14385 = vmatprep.mubr.msk.bf16.mxu1 %vm272_vm1, %v9299_v29  ;;  %v17840_v29 = vld [vmem:[%s15639_s25 + $0x170] sm:$0xff]  ;;  %v9303_v51 = vpack.c.bf16 %v17843_v33, %v17447_v9 }
 0x3b2   : > { %v9302_v49 = vpack.c.bf16 %v17286_v24, %v17840_v29  ;;  %v17858_v24 = vld [vmem:[%s15639_s25 + $0x1a8] sm:$0xff]  ;;  %v12179_v9 = vld [vmem:[%s15639_s25 + $0x1b7] sm:$0xff] }
 0x3b3   : > { %v17869_v17 = vpack.c.bf16 %v12180_v39, %v12179_v9  ;;  %v17882_v39 = vld [vmem:[%s15639_s25 + $0x1d8] sm:$0xff] }
 0x3b7   : > { %14080 = vmatmul.mubr.msk.bf16.gmra.mrb[48].mxu0 %vm272_vm1, %v18741_v0  ;;  %v18743_v0 = vld [vmem:[#allocation26_spill] sm:$0xff] }
 0x3b8   : > { %14386 = vmatmul.mubr.msk.bf16.gmra.mrb[48].mxu1 %vm272_vm1, %v9300_v11  ;;  %14083 = vmatprep.mubr.msk.bf16.mxu0 %vm272_vm1, %v18742_v58  ;;  %v18744_v11 = vld [vmem:[#allocation28_spill] sm:$0xff]  ;;  %v12178_v58 = vld [vmem:[%s15639_s25 + $0x1a7] sm:$0xff] }
 0x3b9   : > { %14389 = vmatprep.mubr.msk.bf16.mxu1 %vm272_vm1, %v9301_v46  ;;  %v12177_v46 = vld [vmem:[%s15639_s25 + $0x19f] sm:$0xff] }
 0x3bf   : > { %14084 = vmatmul.mubr.msk.bf16.gmra.mrb[52].mxu0 %vm272_vm1, %v18743_v0  ;;  %v17863_v0 = vld [vmem:[%s15639_s25 + $0x1c0] sm:$0xff] }
 0x3c0   : > { %14390 = vmatmul.mubr.msk.bf16.gmra.mrb[52].mxu1 %vm272_vm1, %v9302_v49  ;;  %14087 = vmatprep.mubr.msk.bf16.mxu0 %vm272_vm1, %v18744_v11  ;;  %v17865_v49 = vpack.c.bf16 %v12178_v58, %v12177_v46  ;;  %v9304_v11 = vpack.c.bf16 %v17858_v24, %v17464_v40  ;;  %v9305_v45 = vpack.c.bf16 %v17863_v0, %v17470_v35  ;;  %v12182_v46 = vld [vmem:[%s15639_s25 + $0x1d7] sm:$0xff]  ;;  %v12200_v40 = vld [vmem:[%s15639_s25 + $0xa9] sm:$0xff]  ;;  %v12515_v58 = vld [vmem:[%s15639_s25 + $0xc0] sm:$0xff] }
 0x3c1   : > { %14393 = vmatprep.mubr.msk.bf16.mxu1 %vm272_vm1, %v9303_v51  ;;  %v12181_v51 = vld [vmem:[%s15639_s25 + $0x1cf] sm:$0xff]  ;;  %v9586_v52 = vpack.c.bf16 %v17752_v55, %v12515_v58  ;;  %v9947_v58 = vsel %vm321_vm0, %v17740_v21, 0 }
 0x3c2   : > { %v12201_v35 = vld [vmem:[%s15639_s25 + $0xb1] sm:$0xff]  ;;  %v17887_v9 = vpack.c.bf16 %v12182_v46, %v12181_v51  ;;  %v12204_v46 = vld [vmem:[%s15639_s25 + $0xd9] sm:$0xff]  ;;  %v12208_v21 = vld [vmem:[%s15639_s25 + $0x109] sm:$0xff] }
 0x3c3   : > { %v7027_v37 = vpack.c.bf16 %v12201_v35, %v12200_v40  ;;  %v12517_v51 = vld [vmem:[%s15639_s25 + $0xd8] sm:$0xff]  ;;  %v12519_v40 = vld [vmem:[%s15639_s25 + $0xf0] sm:$0xff]  ;;  %v7388_v35 = vsel %vm321_vm0, %v17729_v44, 0  ;;  %v12521_v44 = vld [vmem:[%s15639_s25 + $0x108] sm:$0xff] }
 0x3c4   : > { %v9587_v55 = vpack.c.bf16 %v17781_v41, %v12517_v51  ;;  %v12206_v41 = vld [vmem:[%s15639_s25 + $0xf1] sm:$0xff]  ;;  %v12523_v51 = vld [vmem:[%s15639_s25 + $0x120] sm:$0xff] }
 0x3c7   : > { %14088 = vmatmul.mubr.msk.bf16.gmra.mrb[56].mxu0 %vm272_vm1, %v17865_v49 }
 0x3c8   : > { %14394 = vmatmul.mubr.msk.bf16.gmra.mrb[56].mxu1 %vm272_vm1, %v9304_v11  ;;  %14091 = vmatprep.mubr.msk.bf16.mxu0 %vm272_vm1, %v17869_v17  ;;  %v9306_v11 = vpack.c.bf16 %v17882_v39, %v17494_v26 }
 0x3c9   : > { %14397 = vmatprep.mubr.msk.bf16.mxu1 %vm272_vm1, %v9305_v45  ;;  %v12202_v45 = vld [vmem:[%s15639_s25 + $0xc1] sm:$0xff] }
 0x3ca   : > { %v7028_v26 = vpack.c.bf16 %v12203_v12, %v12202_v45  ;;  %v17913_v12 = vld [vmem:[%s18614_s1 + $0x34] sm:$0x3] }
 0x3cb   : > { %v12209_v45 = vld [vmem:[%s15639_s25 + $0x111] sm:$0xff] }
 0x3cf   : > { %14092 = vmatmul.mubr.msk.bf16.gmra.mrb[60].mxu0 %vm272_vm1, %v17887_v9 }
 0x3d0   : > { %14398 = vmatmul.mubr.msk.bf16.gmra.mrb[60].mxu1 %vm272_vm1, %v9306_v11  ;;  %14097 = vmatprep.mubr.msk.bf16.mxu0 %vm272_vm1, %v7027_v37  ;;  %v7029_v37 = vpack.c.bf16 %v12205_v50, %v12204_v46  ;;  %v12207_v11 = vld [vmem:[%s15639_s25 + $0xf9] sm:$0xff]  ;;  %v17921_v50 = vld [vmem:[%s18614_s1 + $0x46] sm:$0x3] }
 0x3d1   : > { %14403 = vmatprep.mubr.msk.bf16.mxu1 %vm272_vm1, %v9586_v52  ;;  %v9588_v52 = vpack.c.bf16 %v17789_v47, %v12519_v40  ;;  %v7030_v46 = vpack.c.bf16 %v12207_v11, %v12206_v41  ;;  %v7031_v40 = vpack.c.bf16 %v12209_v45, %v12208_v21  ;;  %v12213_v41 = vld [vmem:[%s15639_s25 + $0x141] sm:$0xff]  ;;  %v12527_v11 = vld [vmem:[%s15639_s25 + $0x150] sm:$0xff] }
 0x3d7   : > { %14098 = vmatmul.mubr.msk.bf16.vlgmr.msra.gmra.mrb[32].mxu0 %vm272_vm1, %v7028_v26  ;;  %v9589_v26 = vpack.c.bf16 %v17808_v48, %v12521_v44 }
 0x3d8   : > { %14130 = vmatpush3.bf16.msra.mxu0 %v7388_v35  ;;  %14404 = vmatmul.mubr.msk.bf16.vlgmr.msra.gmra.mrb[32].mxu1 %vm272_vm1, %v9587_v55  ;;  %v9590_v55 = vpack.c.bf16 %v17811_v27, %v12523_v51  ;;  %v12210_v35 = vld [vmem:[%s15639_s25 + $0x121] sm:$0xff]  ;;  %v9592_v51 = vpack.c.bf16 %v17827_v30, %v12527_v11  ;;  %v12219_v11 = vld [vmem:[%s15639_s25 + $0x189] sm:$0xff] }
 0x3d9   : > { %14436 = vmatpush3.bf16.msra.mxu1 %v9947_v58  ;;  %14101 = vmatprep.mubr.msk.bf16.mxu0 %vm272_vm1, %v7029_v37  ;;  %v12211_v37 = vld [vmem:[%s15639_s25 + $0x129] sm:$0xff]  ;;  %v12525_v58 = vld [vmem:[%s15639_s25 + $0x138] sm:$0xff] }
 0x3da   : > { %14407 = vmatprep.mubr.msk.bf16.mxu1 %vm272_vm1, %v9588_v52  ;;  %15553 = vmatprep.subr.msk.bf16.mxu0 %vm321_vm0, %v17913_v12  ;;  %v12212_v52 = vld [vmem:[%s15639_s25 + $0x139] sm:$0xff]  ;;  %v7032_v44 = vpack.c.bf16 %v12211_v37, %v12210_v35  ;;  %v9591_v21 = vpack.c.bf16 %v17824_v6, %v12525_v58  ;;  %v12217_v35 = vld [vmem:[%s15639_s25 + $0x171] sm:$0xff] }
 0x3db   : > { %15562 = vmatprep.subr.msk.bf16.mxu1 %vm321_vm0, %v17921_v50  ;;  %v7033_v45 = vpack.c.bf16 %v12213_v41, %v12212_v52  ;;  %v12218_v41 = vld [vmem:[%s15639_s25 + $0x181] sm:$0xff] }
 0x3df   : > { %14102 = vmatmul.mubr.msk.bf16.gmra.mrb[36].mxu0 %vm272_vm1, %v7030_v46  ;;  %v12214_v46 = vld [vmem:[%s15639_s25 + $0x151] sm:$0xff] }
 0x3e0   : > { %14408 = vmatmul.mubr.msk.bf16.gmra.mrb[36].mxu1 %vm272_vm1, %v9589_v26  ;;  %14105 = vmatprep.mubr.msk.bf16.mxu0 %vm272_vm1, %v7031_v40  ;;  %v12215_v26 = vld [vmem:[%s15639_s25 + $0x159] sm:$0xff]  ;;  %v12529_v40 = vld [vmem:[%s15639_s25 + $0x168] sm:$0xff] }
 0x3e1   : > { %14411 = vmatprep.mubr.msk.bf16.mxu1 %vm272_vm1, %v9590_v55  ;;  %v12216_v55 = vld [vmem:[%s15639_s25 + $0x169] sm:$0xff]  ;;  %v7034_v37 = vpack.c.bf16 %v12215_v26, %v12214_v46  ;;  %v9593_v58 = vpack.c.bf16 %v17840_v29, %v12529_v40  ;;  %v12228_v46 = vld [vmem:[%s15639_s25 + $0x1f9] sm:$0xff] }
 0x3e2   : > { %v7035_v52 = vpack.c.bf16 %v12217_v35, %v12216_v55  ;;  %v12543_v26 = vld [vmem:[%s15639_s25 + $0x210] sm:$0xff] }
 0x3e7   : > { %14106 = vmatmul.mubr.msk.bf16.gmra.mrb[40].mxu0 %vm272_vm1, %v7032_v44  ;;  %v7036_v44 = vpack.c.bf16 %v12219_v11, %v12218_v41  ;;  %v18005_v41 = vld [vmem:[%s15639_s25 + $0x230] sm:$0xff] }
 0x3e8   : > { %14412 = vmatmul.mubr.msk.bf16.gmra.mrb[40].mxu1 %vm272_vm1, %v9591_v21  ;;  %14109 = vmatprep.mubr.msk.bf16.mxu0 %vm272_vm1, %v7033_v45  ;;  %v12539_v21 = vld [vmem:[%s15639_s25 + $0x1e0] sm:$0xff]  ;;  %v17973_v45 = vld [vmem:[%s15639_s25 + $0x1e8] sm:$0xff] }
 0x3e9   : > { %14415 = vmatprep.mubr.msk.bf16.mxu1 %vm272_vm1, %v9592_v51  ;;  %v12541_v51 = vld [vmem:[%s15639_s25 + $0x1f8] sm:$0xff]  ;;  %v12249_v11 = vld [vmem:[%s15639_s25 + $0xac] sm:$0xff] }
 0x3ef   : > { %14110 = vmatmul.mubr.msk.bf16.gmra.mrb[44].mxu0 %vm272_vm1, %v7034_v37  ;;  %v12230_v37 = vld [vmem:[%s15639_s25 + $0x211] sm:$0xff] }
 0x3f0   : > { %14416 = vmatmul.mubr.msk.bf16.gmra.mrb[44].mxu1 %vm272_vm1, %v9593_v58  ;;  %14113 = vmatprep.mubr.msk.bf16.mxu0 %vm272_vm1, %v7035_v52  ;;  %v12231_v58 = vld [vmem:[%s15639_s25 + $0x219] sm:$0xff]  ;;  %v12545_v52 = vld [vmem:[%s15639_s25 + $0x228] sm:$0xff] }
 0x3f1   : > { %14419 = vmatprep.mubr.msk.bf16.mxu1 %vm272_vm1, %v17450_v16  ;;  %v9598_v16 = vpack.c.bf16 %v17973_v45, %v12539_v21  ;;  %v12564_v21 = vld [vmem:[%s15639_s25 + $0xc4] sm:$0xff] }
 0x3f7   : > { %14114 = vmatmul.mubr.msk.bf16.gmra.mrb[48].mxu0 %vm272_vm1, %v7036_v44  ;;  %v12250_v44 = vld [vmem:[%s15639_s25 + $0xb4] sm:$0xff] }
 0x3f8   : > { %14420 = vmatmul.mubr.msk.bf16.gmra.mrb[48].mxu1 %vm272_vm1, %v17475_v13  ;;  %14117 = vmatprep.mubr.msk.bf16.mxu0 %vm272_vm1, %v17472_v14  ;;  %v12226_v13 = vld [vmem:[%s15639_s25 + $0x1e1] sm:$0xff]  ;;  %v12227_v14 = vld [vmem:[%s15639_s25 + $0x1e9] sm:$0xff] }
 0x3f9   : > { %14423 = vmatprep.mubr.msk.bf16.mxu1 %vm272_vm1, %v17480_v25  ;;  %v17987_v25 = vld [vmem:[%s15639_s25 + $0x200] sm:$0xff] }
 0x3fa   : > { %v9599_v40 = vpack.c.bf16 %v17987_v25, %v12541_v51  ;;  %v7321_v51 = vpack.c.bf16 %v12250_v44, %v12249_v11  ;;  %v12571_v11 = vld [vmem:[%s15639_s25 + $0x114] sm:$0xff]  ;;  %v12573_v44 = vld [vmem:[%s15639_s25 + $0x12c] sm:$0xff] }
 0x3ff   : > { %14118 = vmatmul.mubr.msk.bf16.gmra.mrb[52].mxu0 %vm272_vm1, %v17477_v38  ;;  %v12229_v38 = vld [vmem:[%s15639_s25 + $0x201] sm:$0xff] }
 0x400   : > { %14424 = vmatmul.mubr.msk.bf16.gmra.mrb[52].mxu1 %vm272_vm1, %v17499_v4  ;;  %14121 = vmatprep.mubr.msk.bf16.mxu0 %vm272_vm1, %v17496_v32  ;;  %v17993_v4 = vld [vmem:[%s15639_s25 + $0x218] sm:$0xff]  ;;  %v7040_v32 = vpack.c.bf16 %v12227_v14, %v12226_v13  ;;  %v7041_v55 = vpack.c.bf16 %v12229_v38, %v12228_v46  ;;  %v7042_v13 = vpack.c.bf16 %v12231_v58, %v12230_v37  ;;  %v10241_v37 = vsel %vm321_vm0, %v17921_v50, 0 }
 0x401   : > { %14427 = vmatprep.mubr.msk.bf16.mxu1 %vm272_vm1, %v9598_v16  ;;  %v9600_v35 = vpack.c.bf16 %v17993_v4, %v12543_v26  ;;  %v12565_v16 = vld [vmem:[%s15639_s25 + $0xcc] sm:$0xff]  ;;  %v9601_v14 = vpack.c.bf16 %v18005_v41, %v12545_v52  ;;  %v12566_v38 = vld [vmem:[%s15639_s25 + $0xdc] sm:$0xff]  ;;  %v12567_v26 = vld [vmem:[%s15639_s25 + $0xe4] sm:$0xff] }
 0x402   : > { %v9880_v46 = vpack.c.bf16 %v12565_v16, %v12564_v21  ;;  %v12570_v52 = vld [vmem:[%s15639_s25 + $0x10c] sm:$0xff]  ;;  %v12574_v16 = vld [vmem:[%s15639_s25 + $0x13c] sm:$0xff] }
 0x403   : > { %v9883_v50 = vpack.c.bf16 %v12571_v11, %v12570_v52  ;;  %v12583_v52 = vld [vmem:[%s15639_s25 + $0x1a4] sm:$0xff]  ;;  %v12584_v11 = vld [vmem:[%s15639_s25 + $0x1b4] sm:$0xff] }
 0x407   : > { %14122 = vmatmul.mubr.msk.bf16.gmra.mrb[56].mxu0 %vm272_vm1, %v7040_v32  ;;  %v12568_v32 = vld [vmem:[%s15639_s25 + $0xf4] sm:$0xff] }
 0x408   : > { %14428 = vmatmul.mubr.msk.bf16.gmra.mrb[56].mxu1 %vm272_vm1, %v9599_v40  ;;  %14125 = vmatprep.mubr.msk.bf16.mxu0 %vm272_vm1, %v7041_v55  ;;  %v12569_v40 = vld [vmem:[%s15639_s25 + $0xfc] sm:$0xff]  ;;  %v9881_v55 = vpack.c.bf16 %v12567_v26, %v12566_v38  ;;  %v12578_v26 = vld [vmem:[%s15639_s25 + $0x16c] sm:$0xff] }
 0x409   : > { %14431 = vmatprep.mubr.msk.bf16.mxu1 %vm272_vm1, %v9600_v35  ;;  %v7682_v35 = vsel %vm321_vm0, %v17913_v12, 0  ;;  %v9882_v58 = vpack.c.bf16 %v12569_v40, %v12568_v32  ;;  %v12572_v12 = vld [vmem:[%s15639_s25 + $0x124] sm:$0xff]  ;;  %v12579_v32 = vld [vmem:[%s15639_s25 + $0x174] sm:$0xff] }
 0x40a   : > { %v9884_v21 = vpack.c.bf16 %v12573_v44, %v12572_v12  ;;  %v12580_v40 = vld [vmem:[%s15639_s25 + $0x184] sm:$0xff]  ;;  %v12585_v12 = vld [vmem:[%s15639_s25 + $0x1bc] sm:$0xff] }
 0x40f   : > { %14126 = vmatmul.mubr.msk.bf16.gmra.mrb[60].mxu0 %vm272_vm1, %v7042_v13  ;;  %v12575_v13 = vld [vmem:[%s15639_s25 + $0x144] sm:$0xff] }
 0x410   : > { %14432 = vmatmul.mubr.msk.bf16.gmra.mrb[60].mxu1 %vm272_vm1, %v9601_v14  ;;  %14131 = vmatprep.mubr.msk.bf16.mxu0 %vm272_vm1, %v7321_v51  ;;  %v12576_v14 = vld [vmem:[%s15639_s25 + $0x154] sm:$0xff]  ;;  %v12577_v51 = vld [vmem:[%s15639_s25 + $0x15c] sm:$0xff] }
 0x411   : > { %14437 = vmatprep.mubr.msk.bf16.mxu1 %vm272_vm1, %v9880_v46  ;;  %v9886_v38 = vpack.c.bf16 %v12577_v51, %v12576_v14  ;;  %v12589_v14 = vld [vmem:[%s15639_s25 + $0x1ec] sm:$0xff] }
 0x417   : > { %14132 = vmatmul.mubr.msk.bf16.vlgmr.msra.gmra.mrb[32].mxu0 %vm272_vm1, %v9880_v46  ;;  %v9885_v46 = vpack.c.bf16 %v12575_v13, %v12574_v16  ;;  %v12587_v16 = vld [vmem:[%s15639_s25 + $0x1d4] sm:$0xff]  ;;  %v12588_v13 = vld [vmem:[%s15639_s25 + $0x1e4] sm:$0xff] }
 0x418   : > { %14164 = vmatpush3.bf16.msra.mxu0 %v7682_v35  ;;  %14438 = vmatmul.mubr.msk.bf16.vlgmr.msra.gmra.mrb[32].mxu1 %vm272_vm1, %v9881_v55  ;;  %v9887_v35 = vpack.c.bf16 %v12579_v32, %v12578_v26  ;;  %v12591_v26 = vld [vmem:[%s15639_s25 + $0x204] sm:$0xff]  ;;  %v12592_v32 = vld [vmem:[%s15639_s25 + $0x214] sm:$0xff] }
 0x419   : > { %14470 = vmatpush3.bf16.msra.mxu1 %v10241_v37  ;;  %14135 = vmatprep.mubr.msk.bf16.mxu0 %vm272_vm1, %v9881_v55  ;;  %v12581_v55 = vld [vmem:[%s15639_s25 + $0x18c] sm:$0xff] }
 0x41a   : > { %14441 = vmatprep.mubr.msk.bf16.mxu1 %vm272_vm1, %v9882_v58  ;;  %v9888_v37 = vpack.c.bf16 %v12581_v55, %v12580_v40  ;;  %v12593_v40 = vld [vmem:[%s15639_s25 + $0x21c] sm:$0xff] }
 0x41f   : > { %14136 = vmatmul.mubr.msk.bf16.gmra.mrb[36].mxu0 %vm272_vm1, %v9882_v58  ;;  %v12582_v58 = vld [vmem:[%s15639_s25 + $0x19c] sm:$0xff] }
 0x420   : > { %14442 = vmatmul.mubr.msk.bf16.gmra.mrb[36].mxu1 %vm272_vm1, %v9883_v50  ;;  %14139 = vmatprep.mubr.msk.bf16.mxu0 %vm272_vm1, %v9883_v50  ;;  %v9889_v44 = vpack.c.bf16 %v12583_v52, %v12582_v58  ;;  %v9890_v50 = vpack.c.bf16 %v12585_v12, %v12584_v11  ;;  %v12595_v58 = vld [vmem:[%s15639_s25 + $0x234] sm:$0xff]  ;;  %v12618_v11 = vld [vmem:[%s15639_s25 + $0x100] sm:$0xff] }
 0x421   : > { %14445 = vmatprep.mubr.msk.bf16.mxu1 %vm272_vm1, %v9884_v21  ;;  %v10176_v12 = vpack.c.bf16 %v12618_v11, %v17789_v47  ;;  %v12622_v47 = vld [vmem:[%s15639_s25 + $0x130] sm:$0xff] }
 0x422   : > { %v12317_v11 = vld [vmem:[%s15639_s25 + $0x18f] sm:$0xff] }
 0x427   : > { %14140 = vmatmul.mubr.msk.bf16.gmra.mrb[40].mxu0 %vm272_vm1, %v9884_v21  ;;  %v12586_v21 = vld [vmem:[%s15639_s25 + $0x1cc] sm:$0xff] }
 0x428   : > { %14446 = vmatmul.mubr.msk.bf16.gmra.mrb[40].mxu1 %vm272_vm1, %v9885_v46  ;;  %14143 = vmatprep.mubr.msk.bf16.mxu0 %vm272_vm1, %v9885_v46  ;;  %v9891_v51 = vpack.c.bf16 %v12587_v16, %v12586_v21  ;;  %v9892_v46 = vpack.c.bf16 %v12589_v14, %v12588_v13  ;;  %v12624_v16 = vld [vmem:[%s15639_s25 + $0x148] sm:$0xff]  ;;  %v12626_v13 = vld [vmem:[%s15639_s25 + $0x160] sm:$0xff] }
 0x429   : > { %14449 = vmatprep.mubr.msk.bf16.mxu1 %vm272_vm1, %v9886_v38 }
 0x42f   : > { %14144 = vmatmul.mubr.msk.bf16.gmra.mrb[44].mxu0 %vm272_vm1, %v9886_v38  ;;  %v12590_v38 = vld [vmem:[%s15639_s25 + $0x1fc] sm:$0xff] }
 0x430   : > { %14450 = vmatmul.mubr.msk.bf16.gmra.mrb[44].mxu1 %vm272_vm1, %v9887_v35  ;;  %14147 = vmatprep.mubr.msk.bf16.mxu0 %vm272_vm1, %v9887_v35  ;;  %v9893_v55 = vpack.c.bf16 %v12591_v26, %v12590_v38  ;;  %v9894_v35 = vpack.c.bf16 %v12593_v40, %v12592_v32  ;;  %v12312_v38 = vld [vmem:[%s15639_s25 + $0x157] sm:$0xff]  ;;  %v12313_v26 = vld [vmem:[%s15639_s25 + $0x15f] sm:$0xff]  ;;  %v12314_v40 = vld [vmem:[%s15639_s25 + $0x16f] sm:$0xff] }
 0x431   : > { %14453 = vmatprep.mubr.msk.bf16.mxu1 %vm272_vm1, %v9888_v37  ;;  %v12628_v32 = vld [vmem:[%s15639_s25 + $0x178] sm:$0xff] }
 0x437   : > { %14148 = vmatmul.mubr.msk.bf16.gmra.mrb[48].mxu0 %vm272_vm1, %v9888_v37  ;;  %v12594_v37 = vld [vmem:[%s15639_s25 + $0x22c] sm:$0xff] }
 0x438   : > { %14454 = vmatmul.mubr.msk.bf16.gmra.mrb[48].mxu1 %vm272_vm1, %v9889_v44  ;;  %14151 = vmatprep.mubr.msk.bf16.mxu0 %vm272_vm1, %v9889_v44  ;;  %v9895_v52 = vpack.c.bf16 %v12595_v58, %v12594_v37  ;;  %v12307_v44 = vld [vmem:[%s15639_s25 + $0x117] sm:$0xff] }
 0x439   : > { %14457 = vmatprep.mubr.msk.bf16.mxu1 %vm272_vm1, %v9890_v50 }
 0x43f   : > { %14152 = vmatmul.mubr.msk.bf16.gmra.mrb[52].mxu0 %vm272_vm1, %v9890_v50 }
 0x440   : > { %14458 = vmatmul.mubr.msk.bf16.gmra.mrb[52].mxu1 %vm272_vm1, %v9891_v51  ;;  %14155 = vmatprep.mubr.msk.bf16.mxu0 %vm272_vm1, %v9891_v51 }
 0x441   : > { %14461 = vmatprep.mubr.msk.bf16.mxu1 %vm272_vm1, %v9892_v46 }
 0x447   : > { %14156 = vmatmul.mubr.msk.bf16.gmra.mrb[56].mxu0 %vm272_vm1, %v9892_v46  ;;  %v10180_v46 = vpack.c.bf16 %v12626_v13, %v17827_v30  ;;  %v10181_v30 = vpack.c.bf16 %v12628_v32, %v17840_v29 }
 0x448   : > { %14462 = vmatmul.mubr.msk.bf16.gmra.mrb[56].mxu1 %vm272_vm1, %v9893_v55  ;;  %14159 = vmatprep.mubr.msk.bf16.mxu0 %vm272_vm1, %v9893_v55  ;;  %v12629_v55 = vld [vmem:[%s15639_s25 + $0x188] sm:$0xff] }
 0x449   : > { %14465 = vmatprep.mubr.msk.bf16.mxu1 %vm272_vm1, %v9894_v35  ;;  %v10182_v58 = vpack.c.bf16 %v17843_v33, %v12629_v55 }
 0x44f   : > { %14160 = vmatmul.mubr.msk.bf16.gmra.mrb[60].mxu0 %vm272_vm1, %v9894_v35  ;;  %v7622_v35 = vpack.c.bf16 %v12313_v26, %v12312_v38 }
 0x450   : > { %14466 = vmatmul.mubr.msk.bf16.gmra.mrb[60].mxu1 %vm272_vm1, %v9895_v52  ;;  %14165 = vmatprep.mubr.msk.bf16.mxu0 %vm272_vm1, %v17758_v23  ;;  %v12620_v23 = vld [vmem:[%s15639_s25 + $0x118] sm:$0xff]  ;;  %v12316_v52 = vld [vmem:[%s15639_s25 + $0x187] sm:$0xff] }
 0x451   : > { %14471 = vmatprep.mubr.msk.bf16.mxu1 %vm272_vm1, %v17771_v20  ;;  %v12306_v20 = vld [vmem:[%s15639_s25 + $0x10f] sm:$0xff]  ;;  %v10177_v50 = vpack.c.bf16 %v12620_v23, %v17808_v48  ;;  %v12310_v48 = vld [vmem:[%s15639_s25 + $0x13f] sm:$0xff]  ;;  %v7624_v29 = vpack.c.bf16 %v12317_v11, %v12316_v52 }
 0x452   : > { %v7619_v21 = vpack.c.bf16 %v12307_v44, %v12306_v20  ;;  %v12633_v23 = vld [vmem:[%s15639_s25 + $0x1b8] sm:$0xff]  ;;  %v12635_v44 = vld [vmem:[%s15639_s25 + $0x1d0] sm:$0xff] }
 0x453   : > { %v10184_v33 = vpack.c.bf16 %v17863_v0, %v12633_v23  ;;  %v12324_v0 = vld [vmem:[%s15639_s25 + $0x1e7] sm:$0xff] }
 0x457   : > { %14166 = vmatmul.mubr.msk.bf16.vlgmr.msra.gmra.mrb[32].mxu0 %vm272_vm1, %v17765_v10  ;;  %v10178_v10 = vpack.c.bf16 %v12622_v47, %v17811_v27  ;;  %v12311_v27 = vld [vmem:[%s15639_s25 + $0x147] sm:$0xff]  ;;  %v12638_v47 = vld [vmem:[%s15639_s25 + $0x1f0] sm:$0xff] }
 0x458   : > { %14472 = vmatmul.mubr.msk.bf16.vlgmr.msra.gmra.mrb[32].mxu1 %vm272_vm1, %v17794_v31  ;;  %14169 = vmatprep.mubr.msk.bf16.mxu0 %vm272_vm1, %v17791_v22  ;;  %v12308_v22 = vld [vmem:[%s15639_s25 + $0x127] sm:$0xff]  ;;  %v12309_v31 = vld [vmem:[%s15639_s25 + $0x12f] sm:$0xff]  ;;  %v7621_v51 = vpack.c.bf16 %v12311_v27, %v12310_v48  ;;  %v12329_v48 = vld [vmem:[%s15639_s25 + $0x21f] sm:$0xff] }
 0x459   : > { %14475 = vmatprep.mubr.msk.bf16.mxu1 %vm272_vm1, %v10176_v12  ;;  %v7620_v14 = vpack.c.bf16 %v12309_v31, %v12308_v22  ;;  %v12631_v12 = vld [vmem:[%s15639_s25 + $0x1a0] sm:$0xff]  ;;  %v12644_v27 = vld [vmem:[%s15639_s25 + $0x238] sm:$0xff] }
 0x45a   : > { %v10183_v20 = vpack.c.bf16 %v17858_v24, %v12631_v12  ;;  %v10186_v24 = vpack.c.bf16 %v12638_v47, %v17973_v45  ;;  %v12642_v22 = vld [vmem:[%s15639_s25 + $0x220] sm:$0xff] }
 0x45f   : > { %14170 = vmatmul.mubr.msk.bf16.gmra.mrb[36].mxu0 %vm272_vm1, %v17796_v1  ;;  %v10179_v1 = vpack.c.bf16 %v12624_v16, %v17824_v6  ;;  %v12315_v6 = vld [vmem:[%s15639_s25 + $0x177] sm:$0xff]  ;;  %v10188_v16 = vpack.c.bf16 %v12642_v22, %v17993_v4 }
 0x460   : > { %14476 = vmatmul.mubr.msk.bf16.gmra.mrb[36].mxu1 %vm272_vm1, %v10177_v50  ;;  %14173 = vmatprep.mubr.msk.bf16.mxu0 %vm272_vm1, %v7619_v21  ;;  %v7623_v37 = vpack.c.bf16 %v12315_v6, %v12314_v40  ;;  %v10185_v50 = vpack.c.bf16 %v17882_v39, %v12635_v44  ;;  %v12640_v21 = vld [vmem:[%s15639_s25 + $0x208] sm:$0xff] }
 0x461   : > { %14479 = vmatprep.mubr.msk.bf16.mxu1 %vm272_vm1, %v10178_v10  ;;  %v12326_v10 = vld [vmem:[%s15639_s25 + $0x1ff] sm:$0xff]  ;;  %v12327_v39 = vld [vmem:[%s15639_s25 + $0x207] sm:$0xff]  ;;  %v10187_v31 = vpack.c.bf16 %v12640_v21, %v17987_v25 }
 0x462   : > { %v18170_v25 = vld [vmem:[%s18615_s2 + $0x2] ss:$0 sm:$0xff] }
 0x467   : > { %14174 = vmatmul.mubr.msk.bf16.gmra.mrb[40].mxu0 %vm272_vm1, %v7620_v14  ;;  %v10189_v14 = vpack.c.bf16 %v12644_v27, %v18005_v41 }
 0x468   : > { %14480 = vmatmul.mubr.msk.bf16.gmra.mrb[40].mxu1 %vm272_vm1, %v10179_v1  ;;  %14177 = vmatprep.mubr.msk.bf16.mxu0 %vm272_vm1, %v7621_v51  ;;  %v18175_v1 = vld [vmem:[%s18615_s2 + $0x3] ss:$0 sm:$0xff] }
 0x469   : > { %14483 = vmatprep.mubr.msk.bf16.mxu1 %vm272_vm1, %v10180_v46 }
 0x46f   : > { %14178 = vmatmul.mubr.msk.bf16.gmra.mrb[44].mxu0 %vm272_vm1, %v7622_v35 }
 0x470   : > { %14484 = vmatmul.mubr.msk.bf16.gmra.mrb[44].mxu1 %vm272_vm1, %v10181_v30  ;;  %14181 = vmatprep.mubr.msk.bf16.mxu0 %vm272_vm1, %v7623_v37 }
 0x471   : > { %14487 = vmatprep.mubr.msk.bf16.mxu1 %vm272_vm1, %v10182_v58 }
 0x477   : > { %14182 = vmatmul.mubr.msk.bf16.gmra.mrb[48].mxu0 %vm272_vm1, %v7624_v29 }
 0x478   : > { %14488 = vmatmul.mubr.msk.bf16.gmra.mrb[48].mxu1 %vm272_vm1, %v10183_v20  ;;  %14185 = vmatprep.mubr.msk.bf16.mxu0 %vm272_vm1, %v17865_v49  ;;  %v12325_v49 = vld [vmem:[%s15639_s25 + $0x1ef] sm:$0xff] }
 0x479   : > { %14491 = vmatprep.mubr.msk.bf16.mxu1 %vm272_vm1, %v10184_v33  ;;  %v7628_v45 = vpack.c.bf16 %v12325_v49, %v12324_v0 }
 0x47f   : > { %14186 = vmatmul.mubr.msk.bf16.gmra.mrb[52].mxu0 %vm272_vm1, %v17869_v17  ;;  %v7629_v17 = vpack.c.bf16 %v12327_v39, %v12326_v10 }
 0x480   : > { %14492 = vmatmul.mubr.msk.bf16.gmra.mrb[52].mxu1 %vm272_vm1, %v10185_v50  ;;  %14189 = vmatprep.mubr.msk.bf16.mxu0 %vm272_vm1, %v17887_v9  ;;  %v12328_v9 = vld [vmem:[%s15639_s25 + $0x217] sm:$0xff]  ;;  %s15585_s25 = smov 8  }
 0x481   : > { %14495 = vmatprep.mubr.msk.bf16.mxu1 %vm272_vm1, %v10186_v24  ;;  %v7630_v13 = vpack.c.bf16 %v12329_v48, %v12328_v9 }
 0x487   : > { %14190 = vmatmul.mubr.msk.bf16.gmra.mrb[56].mxu0 %vm272_vm1, %v7628_v45 }
 0x488   : > { %14496 = vmatmul.mubr.msk.bf16.gmra.mrb[56].mxu1 %vm272_vm1, %v10187_v31  ;;  %14193 = vmatprep.mubr.msk.bf16.mxu0 %vm272_vm1, %v7629_v17 }
 0x489   : > { %14499 = vmatprep.mubr.msk.bf16.mxu1 %vm272_vm1, %v10188_v16 }
 0x48f   : > { %14194 = vmatmul.mubr.msk.bf16.gmra.mrb[60].mxu0 %vm272_vm1, %v7630_v13 }
 0x490   : > { %14500 = vmatmul.mubr.msk.bf16.gmra.mrb[60].mxu1 %vm272_vm1, %v10189_v14 }
 0x52a   : > { %v14167_v4 = vpop.f32.mrb[32].mxu0 }
 0x52b   : > { %v7887_v51 = vadd.f32 %v14167_v4, %v18170_v25  ;;  %v14473_v46 = vpop.f32.mrb[32].mxu1  ;;  %v7718_v38 = vpop.f32.mrb[33].mxu0 }
 0x52c   : > { %v10277_v41 = vpop.f32.mrb[33].mxu1  ;;  %v14168_v26 = vpop.f32.mrb[34].mxu0  ;;  %v10446_v40 = vadd.f32 %v14473_v46, %v18175_v1  ;;  %v7885_v11 = vadd.f32 %v18170_v25, %v7718_v38 }
 0x52d   : > { %v7919_v32 = vmax.f32 %v7887_v51, 0.0  ;;  %v7888_v6 = vadd.f32 %v14168_v26, %v18170_v25  ;;  %v14474_v55 = vpop.f32.mrb[34].mxu1  ;;  %v7721_v35 = vpop.f32.mrb[35].mxu0  ;;  %v10444_v24 = vadd.f32 %v18175_v1, %v10277_v41 }
 0x52e   : > { %v10280_v30 = vpop.f32.mrb[35].mxu1  ;;  %v10447_v58 = vadd.f32 %v14474_v55, %v18175_v1  ;;  %v10478_v52 = vmax.f32 %v10446_v40, 0.0  ;;  %v7886_v29 = vadd.f32 %v18170_v25, %v7721_v35  ;;  %v7917_v50 = vmax.f32 %v7885_v11, 0.0 }
 0x52f   : > { %v7920_v37 = vmax.f32 %v7888_v6, 0.0  ;;  %10672 = vrot.lane.b32.xlu0 %v7919_v32, %s15585_s25  ;;  %v10445_v39 = vadd.f32 %v18175_v1, %v10280_v30  ;;  %v10476_v22 = vmax.f32 %v10444_v24, 0.0 }
 0x530   : > { %v10479_v23 = vmax.f32 %v10447_v58, 0.0  ;;  %v7918_v10 = vmax.f32 %v7886_v29, 0.0 }
 0x531   : > { %10674 = vrot.lane.b32.xlu1 %v7920_v37, %s15585_s25  ;;  %v10477_v17 = vmax.f32 %v10445_v39, 0.0 }
 0x532   : > { %v14171_v12 = vpop.f32.mrb[36].mxu0 }
 0x533   : > { %v14477_v20 = vpop.f32.mrb[36].mxu1  ;;  %10800 = vrot.lane.b32.xlu0 %v10478_v52, %s15586_s27  ;;  %v7734_v33 = vpop.f32.mrb[37].mxu0  ;;  %v7891_v45 = vadd.f32 %v14171_v12, %v18170_v25 }
 0x534   : > { %v10293_v44 = vpop.f32.mrb[37].mxu1  ;;  %v14172_v47 = vpop.f32.mrb[38].mxu0  ;;  %v10450_v4 = vadd.f32 %v14477_v20, %v18175_v1  ;;  %v7889_v40 = vadd.f32 %v18170_v25, %v7734_v33 }
 0x535   : > { %v14478_v0 = vpop.f32.mrb[38].mxu1  ;;  %10802 = vrot.lane.b32.xlu1 %v10479_v23, %s15586_s27  ;;  %v7737_v49 = vpop.f32.mrb[39].mxu0  ;;  %v7892_v16 = vadd.f32 %v14172_v47, %v18170_v25  ;;  %v7923_v14 = vmax.f32 %v7891_v45, 0.0  ;;  %v10448_v11 = vadd.f32 %v18175_v1, %v10293_v44 }
 0x536   : > { %v10296_v21 = vpop.f32.mrb[39].mxu1  ;;  %v10451_v26 = vadd.f32 %v14478_v0, %v18175_v1  ;;  %v10482_v32 = vmax.f32 %v10450_v4, 0.0  ;;  %v7890_v35 = vadd.f32 %v18170_v25, %v7737_v49  ;;  %v7921_v12 = vmax.f32 %v7889_v40, 0.0 }
 0x537   : > { %10668 = vrot.lane.b32.xlu0 %v7917_v50, %s15585_s25  ;;  %v7924_v41 = vmax.f32 %v7892_v16, 0.0  ;;  %v10449_v33 = vadd.f32 %v18175_v1, %v10296_v21  ;;  %v10480_v50 = vmax.f32 %v10448_v11, 0.0 }
 0x538   : > { %v10483_v55 = vmax.f32 %v10451_v26, 0.0  ;;  %v7922_v47 = vmax.f32 %v7890_v35, 0.0 }
 0x539   : > { %10670 = vrot.lane.b32.xlu1 %v7918_v10, %s15585_s25  ;;  %v10481_v0 = vmax.f32 %v10449_v33, 0.0 }
 0x53a   : > { %v14175_v31 = vpop.f32.mrb[40].mxu0 }
 0x53b   : > { %v14481_v9 = vpop.f32.mrb[40].mxu1  ;;  %10796 = vrot.lane.b32.xlu0 %v10476_v22, %s15586_s27  ;;  %v7750_v48 = vpop.f32.mrb[41].mxu0  ;;  %v7895_v24 = vadd.f32 %v14175_v31, %v18170_v25 }
 0x53c   : > { %v18194_v27 = vpop.f32.mrb[41].mxu1  ;;  %v14176_v13 = vpop.f32.mrb[42].mxu0  ;;  %v7893_v33 = vadd.f32 %v18170_v25, %v7750_v48 }
 0x53d   : > { %v14482_v51 = vpop.f32.mrb[42].mxu1  ;;  %10798 = vrot.lane.b32.xlu1 %v10477_v17, %s15586_s27  ;;  %v7753_v46 = vpop.f32.mrb[43].mxu0  ;;  %v7896_v49 = vadd.f32 %v14176_v13, %v18170_v25  ;;  %v7927_v16 = vmax.f32 %v7895_v24, 0.0 }
 0x53e   : > { %v18198_v38 = vpop.f32.mrb[43].mxu1  ;;  %v7894_v24 = vadd.f32 %v18170_v25, %v7753_v46 }
 0x53f   : > { %10680 = vrot.lane.b32.xlu0 %v7923_v14, %s15585_s25  ;;  %v10454_v14 = vadd.f32 %v14481_v9, %v18175_v1  ;;  %v7928_v35 = vmax.f32 %v7896_v49, 0.0  ;;  %v10455_v9 = vadd.f32 %v14482_v51, %v18175_v1 }
 0x541   : > { %10682 = vrot.lane.b32.xlu1 %v7924_v41, %s15585_s25 }
 0x542   : > { %v18204_v6 = vpop.f32.mrb[44].mxu0 }
 0x543   : > { %v18207_v30 = vpop.f32.mrb[44].mxu1  ;;  %10808 = vrot.lane.b32.xlu0 %v10482_v32, %s15586_s27  ;;  %v18210_v37 = vpop.f32.mrb[45].mxu0 }
 0x544   : > { %v18212_v58 = vpop.f32.mrb[45].mxu1  ;;  %v18214_v52 = vpop.f32.mrb[46].mxu0 }
 0x545   : > { %v18217_v23 = vpop.f32.mrb[46].mxu1  ;;  %10810 = vrot.lane.b32.xlu1 %v10483_v55, %s15586_s27  ;;  %v18220_v29 = vpop.f32.mrb[47].mxu0 }
 0x546   : > { %v18222_v20 = vpop.f32.mrb[47].mxu1 }
 0x547   : > { %10676 = vrot.lane.b32.xlu0 %v7921_v12, %s15585_s25  ;;  %v10486_v12 = vmax.f32 %v10454_v14, 0.0 }
 0x549   : > { %10678 = vrot.lane.b32.xlu1 %v7922_v47, %s15585_s25 }
 0x54a   : > { %v14183_v44 = vpop.f32.mrb[48].mxu0 }
 0x54b   : > { %v18230_v10 = vadd.f32 %v14183_v44, %v18170_v25  ;;  %v14489_v39 = vpop.f32.mrb[48].mxu1  ;;  %10804 = vrot.lane.b32.xlu0 %v10480_v50, %s15586_s27  ;;  %v7782_v22 = vpop.f32.mrb[49].mxu0  ;;  %v10487_v50 = vmax.f32 %v10455_v9, 0.0  ;;  %v7926_v9 = vmax.f32 %v7894_v24, 0.0 }
 0x54c   : > { %v18234_v21 = vadd.f32 %v14489_v39, %v18175_v1  ;;  %v10341_v45 = vpop.f32.mrb[49].mxu1  ;;  %v18237_v17 = vadd.f32 %v18170_v25, %v7782_v22  ;;  %v14184_v31 = vpop.f32.mrb[50].mxu0 }
 0x54d   : > { %v18241_v13 = vadd.f32 %v18175_v1, %v10341_v45  ;;  %v18244_v4 = vadd.f32 %v14184_v31, %v18170_v25  ;;  %v14490_v41 = vpop.f32.mrb[50].mxu1  ;;  %10806 = vrot.lane.b32.xlu1 %v10481_v0, %s15586_s27  ;;  %v7785_v26 = vpop.f32.mrb[51].mxu0  ;;  %v10452_v45 = vadd.f32 %v18175_v1, %v18194_v27  ;;  %v7925_v31 = vmax.f32 %v7893_v33, 0.0 }
 0x54e   : > { %v18248_v32 = vadd.f32 %v14490_v41, %v18175_v1  ;;  %v10344_v40 = vpop.f32.mrb[51].mxu1  ;;  %v18251_v55 = vadd.f32 %v18170_v25, %v7785_v26  ;;  %v10453_v27 = vadd.f32 %v18175_v1, %v18198_v38 }
 0x54f   : > { %v18255_v11 = vadd.f32 %v18175_v1, %v10344_v40  ;;  %10688 = vrot.lane.b32.xlu0 %v7927_v16, %s15585_s25  ;;  %v10484_v33 = vmax.f32 %v10452_v45, 0.0 }
 0x551   : > { %10690 = vrot.lane.b32.xlu1 %v7928_v35, %s15585_s25 }
 0x552   : > { %v14187_v47 = vpop.f32.mrb[52].mxu0 }
 0x553   : > { %v18262_v44 = vadd.f32 %v14187_v47, %v18170_v25  ;;  %v14493_v0 = vpop.f32.mrb[52].mxu1  ;;  %10816 = vrot.lane.b32.xlu0 %v10486_v12, %s15586_s27  ;;  %v7798_v51 = vpop.f32.mrb[53].mxu0  ;;  %v7899_v47 = vadd.f32 %v18204_v6, %v18170_v25 }
 0x554   : > { %v18266_v49 = vadd.f32 %v14493_v0, %v18175_v1  ;;  %v10357_v39 = vpop.f32.mrb[53].mxu1  ;;  %v18269_v22 = vadd.f32 %v18170_v25, %v7798_v51  ;;  %v14188_v48 = vpop.f32.mrb[54].mxu0  ;;  %v10485_v0 = vmax.f32 %v10453_v27, 0.0  ;;  %v7900_v51 = vadd.f32 %v18214_v52, %v18170_v25 }
 0x555   : > { %v18274_v46 = vadd.f32 %v18175_v1, %v10357_v39  ;;  %v18277_v16 = vadd.f32 %v14188_v48, %v18170_v25  ;;  %v14494_v14 = vpop.f32.mrb[54].mxu1  ;;  %10818 = vrot.lane.b32.xlu1 %v10487_v50, %s15586_s27  ;;  %v7801_v41 = vpop.f32.mrb[55].mxu0 }
 0x556   : > { %v18281_v26 = vadd.f32 %v14494_v14, %v18175_v1  ;;  %v10360_v40 = vpop.f32.mrb[55].mxu1  ;;  %v18284_v35 = vadd.f32 %v18170_v25, %v7801_v41  ;;  %v7931_v14 = vmax.f32 %v7899_v47, 0.0  ;;  %v10458_v41 = vadd.f32 %v18207_v30, %v18175_v1 }
 0x557   : > { %v18289_v12 = vadd.f32 %v18175_v1, %v10360_v40  ;;  %10684 = vrot.lane.b32.xlu0 %v7925_v31, %s15585_s25  ;;  %v7932_v47 = vmax.f32 %v7900_v51, 0.0  ;;  %v10459_v30 = vadd.f32 %v18217_v23, %v18175_v1 }
 0x559   : > { %10686 = vrot.lane.b32.xlu1 %v7926_v9, %s15585_s25 }
 0x55a   : > { %v14191_v50 = vpop.f32.mrb[56].mxu0 }
 0x55b   : > { %v18298_v39 = vadd.f32 %v14191_v50, %v18170_v25  ;;  %v14497_v38 = vpop.f32.mrb[56].mxu1  ;;  %10812 = vrot.lane.b32.xlu0 %v10484_v33, %s15586_s27  ;;  %v7814_v24 = vpop.f32.mrb[57].mxu0 }
 0x55c   : > { %v18302_v48 = vadd.f32 %v14497_v38, %v18175_v1  ;;  %v10373_v45 = vpop.f32.mrb[57].mxu1  ;;  %v18305_v6 = vadd.f32 %v18170_v25, %v7814_v24  ;;  %v14192_v31 = vpop.f32.mrb[58].mxu0 }
 0x55d   : > { %v18310_v52 = vadd.f32 %v18175_v1, %v10373_v45  ;;  %v18313_v40 = vadd.f32 %v14192_v31, %v18170_v25  ;;  %v14498_v27 = vpop.f32.mrb[58].mxu1  ;;  %10814 = vrot.lane.b32.xlu1 %v10485_v0, %s15586_s27  ;;  %v7817_v9 = vpop.f32.mrb[59].mxu0  ;;  %v10490_v45 = vmax.f32 %v10458_v41, 0.0  ;;  %v7897_v0 = vadd.f32 %v18170_v25, %v18210_v37 }
 0x55e   : > { %v18317_v33 = vadd.f32 %v14498_v27, %v18175_v1  ;;  %v10376_v50 = vpop.f32.mrb[59].mxu1  ;;  %v18320_v38 = vadd.f32 %v18170_v25, %v7817_v9  ;;  %v10491_v27 = vmax.f32 %v10459_v30, 0.0  ;;  %v7898_v9 = vadd.f32 %v18170_v25, %v18220_v29 }
 0x55f   : > { %v18325_v24 = vadd.f32 %v18175_v1, %v10376_v50  ;;  %10696 = vrot.lane.b32.xlu0 %v7931_v14, %s15585_s25  ;;  %v10456_v30 = vadd.f32 %v18175_v1, %v18212_v58  ;;  %v7929_v62 = vmax.f32 %v7897_v0, 0.0  ;;  %v10457_v58 = vadd.f32 %v18175_v1, %v18222_v20 }
 0x560   : > { %v7930_v0 = vmax.f32 %v7898_v9, 0.0  ;;  %v10494_v20 = vmax.f32 %v18234_v21, 0.0  ;;  %v10493_v21 = vmax.f32 %v18255_v11, 0.0  ;;  %v7937_v11 = vmax.f32 %v18269_v22, 0.0 }
 0x561   : > { %10698 = vrot.lane.b32.xlu1 %v7932_v47, %s15585_s25  ;;  %v7944_v22 = vmax.f32 %v18313_v40, 0.0  ;;  %v10500_v40 = vmax.f32 %v18310_v52, 0.0  ;;  %v15575_v52 = vld [vmem:[%s18615_s2] ss:$0 sm:$0xff] }
 0x562   : > { %v14195_v31 = vpop.f32.mrb[60].mxu0 }
 0x563   : > { %v18334_v51 = vadd.f32 %v14195_v31, %v18170_v25  ;;  %v14501_v23 = vpop.f32.mrb[60].mxu1  ;;  %10824 = vrot.lane.b32.xlu0 %v10490_v45, %s15586_s27  ;;  %v7830_v50 = vpop.f32.mrb[61].mxu0 }
 0x564   : > { %v18338_v14 = vadd.f32 %v14501_v23, %v18175_v1  ;;  %v10389_v41 = vpop.f32.mrb[61].mxu1  ;;  %v18341_v37 = vadd.f32 %v18170_v25, %v7830_v50  ;;  %v14196_v47 = vpop.f32.mrb[62].mxu0 }
 0x565   : > { %v18346_v29 = vadd.f32 %v18175_v1, %v10389_v41  ;;  %v18349_v31 = vadd.f32 %v14196_v47, %v18170_v25  ;;  %v14502_v45 = vpop.f32.mrb[62].mxu1  ;;  %10826 = vrot.lane.b32.xlu1 %v10491_v27, %s15586_s27  ;;  %v7833_v23 = vpop.f32.mrb[63].mxu0  ;;  %v10488_v47 = vmax.f32 %v10456_v30, 0.0  ;;  %v10489_v27 = vmax.f32 %v10457_v58, 0.0  ;;  %v18745_v30 = vld [vmem:[#allocation9_spill] sm:$0xff] }
 0x566   : > { %v18353_v5 = vadd.f32 %v14502_v45, %v18175_v1  ;;  %v10392_v50 = vpop.f32.mrb[63].mxu1  ;;  %v18356_v3 = vadd.f32 %v18170_v25, %v7833_v23  ;;  %v7935_v45 = vmax.f32 %v18230_v10, 0.0  ;;  %v7936_v25 = vmax.f32 %v18244_v4, 0.0 }
 0x567   : > { %v18361_v41 = vadd.f32 %v18175_v1, %v10392_v50  ;;  %10692 = vrot.lane.b32.xlu0 %v7929_v62, %s15585_s25  ;;  %v10495_v62 = vmax.f32 %v18248_v32, 0.0  ;;  %v7933_v1 = vmax.f32 %v18237_v17, 0.0  ;;  %v7934_v10 = vmax.f32 %v18251_v55, 0.0 }
 0x568   : > { %v10492_v4 = vmax.f32 %v18241_v13, 0.0  ;;  %v7939_v32 = vmax.f32 %v18262_v44, 0.0  ;;  %v7940_v17 = vmax.f32 %v18277_v16, 0.0  ;;  %v10498_v55 = vmax.f32 %v18266_v49, 0.0 }
 0x569   : > { %10694 = vrot.lane.b32.xlu1 %v7930_v0, %s15585_s25  ;;  %v10499_v13 = vmax.f32 %v18281_v26, 0.0  ;;  %v7938_v44 = vmax.f32 %v18284_v35, 0.0  ;;  %v10496_v16 = vmax.f32 %v18274_v46, 0.0  ;;  %v10497_v49 = vmax.f32 %v18289_v12, 0.0 }
 0x56a   : > { %v7943_v26 = vmax.f32 %v18298_v39, 0.0  ;;  %v10502_v35 = vmax.f32 %v18302_v48, 0.0  ;;  %v10503_v46 = vmax.f32 %v18317_v33, 0.0  ;;  %v7941_v12 = vmax.f32 %v18305_v6, 0.0  ;;  %v18414_v33 = vpop.permute.xlu0 %10596  ;;  %v18418_v6 = vpop.permute.xlu1 %10598 }
 0x56b   : > { %10820 = vrot.lane.b32.xlu0 %v10488_v47, %s15586_s27  ;;  %v7942_v39 = vmax.f32 %v18320_v38, 0.0  ;;  %v10501_v48 = vmax.f32 %v18325_v24, 0.0  ;;  %v7947_v9 = vmax.f32 %v18334_v51, 0.0  ;;  %v7948_v38 = vmax.f32 %v18349_v31, 0.0 }
 0x56c   : > { %v2768_v24 = vadd.f32 %v15575_v52, %v18745_v30  ;;  %v7945_v23 = vmax.f32 %v18341_v37, 0.0  ;;  %v7946_v51 = vmax.f32 %v18356_v3, 0.0  ;;  %v10504_v37 = vmax.f32 %v18346_v29, 0.0 }
 0x56d   : > { %10822 = vrot.lane.b32.xlu1 %v10489_v27, %s15586_s27  ;;  %v10506_v29 = vmax.f32 %v18338_v14, 0.0 }
 0x56e   : > { %v2800_v31 = vmax.f32 %v2768_v24, 0.0 }
 0x56f   : > { %10704 = vrot.lane.b32.xlu0 %v7935_v45, %s15585_s25  ;;  %v10505_v45 = vmax.f32 %v18361_v41, 0.0  ;;  %v10507_v41 = vmax.f32 %v18353_v5, 0.0 }
 0x570   : > { %v10895_v3 = vsel %vm272_vm1, %v2800_v31, %v17561_v34 }
 0x571   : > { %10706 = vrot.lane.b32.xlu1 %v7936_v25, %s15585_s25 }
 0x573   : > { %10832 = vrot.lane.b32.xlu0 %v10494_v20, %s15586_s27 }
 0x575   : > { %10834 = vrot.lane.b32.xlu1 %v10495_v62, %s15586_s27 }
 0x577   : > { %10700 = vrot.lane.b32.xlu0 %v7933_v1, %s15585_s25 }
 0x579   : > { %10702 = vrot.lane.b32.xlu1 %v7934_v10, %s15585_s25 }
 0x57b   : > { %10828 = vrot.lane.b32.xlu0 %v10492_v4, %s15586_s27 }
 0x57d   : > { %10830 = vrot.lane.b32.xlu1 %v10493_v21, %s15586_s27 }
 0x57f   : > { %10712 = vrot.lane.b32.xlu0 %v7939_v32, %s15585_s25 }
 0x581   : > { %10714 = vrot.lane.b32.xlu1 %v7940_v17, %s15585_s25 }
 0x583   : > { %10840 = vrot.lane.b32.xlu0 %v10498_v55, %s15586_s27 }
 0x585   : > { %10842 = vrot.lane.b32.xlu1 %v10499_v13, %s15586_s27 }
 0x587   : > { %10708 = vrot.lane.b32.xlu0 %v7937_v11, %s15585_s25 }
 0x589   : > { %10710 = vrot.lane.b32.xlu1 %v7938_v44, %s15585_s25 }
 0x58b   : > { %10836 = vrot.lane.b32.xlu0 %v10496_v16, %s15586_s27 }
 0x58d   : > { %10838 = vrot.lane.b32.xlu1 %v10497_v49, %s15586_s27 }
 0x58f   : > { %10720 = vrot.lane.b32.xlu0 %v7943_v26, %s15585_s25 }
 0x591   : > { %10722 = vrot.lane.b32.xlu1 %v7944_v22, %s15585_s25 }
 0x593   : > { %10848 = vrot.lane.b32.xlu0 %v10502_v35, %s15586_s27 }
 0x595   : > { %10850 = vrot.lane.b32.xlu1 %v10503_v46, %s15586_s27 }
 0x597   : > { %10716 = vrot.lane.b32.xlu0 %v7941_v12, %s15585_s25 }
 0x599   : > { %10718 = vrot.lane.b32.xlu1 %v7942_v39, %s15585_s25 }
 0x59b   : > { %10844 = vrot.lane.b32.xlu0 %v10500_v40, %s15586_s27 }
 0x59d   : > { %10846 = vrot.lane.b32.xlu1 %v10501_v48, %s15586_s27 }
 0x59f   : > { %10728 = vrot.lane.b32.xlu0 %v7947_v9, %s15585_s25 }
 0x5a1   : > { %v10673_v50 = vpop.permute.xlu0 %10672  ;;  %10730 = vrot.lane.b32.xlu1 %v7948_v38, %s15585_s25 }
 0x5a2   : > { %v10927_v0 = vsel %vm10924_vm2, %v17550_v28, %v10673_v50 }
 0x5a3   : > { %v10675_v58 = vpop.permute.xlu1 %10674  ;;  %10724 = vrot.lane.b32.xlu0 %v7945_v23, %s15585_s25 }
 0x5a4   : > { %v10928_v25 = vsel %vm10924_vm2, %v10895_v3, %v10675_v58 }
 0x5a5   : > { %v10801_v47 = vpop.permute.xlu0 %10800  ;;  %10726 = vrot.lane.b32.xlu1 %v7946_v51, %s15585_s25 }
 0x5a6   : > { %v10960_v27 = vsel %vm10957_vm3, %v10927_v0, %v10801_v47 }
 0x5a7   : > { %10993 = vst.msk [vmem:[%s18434_s6 + $0x10] sm:$0xff] %vm10990_vm4, %v10960_v27  ;;  %v10803_v20 = vpop.permute.xlu1 %10802  ;;  %10852 = vrot.lane.b32.xlu0 %v10504_v37, %s15586_s27 }
 0x5a8   : > { %v10961_v28 = vsel %vm10957_vm3, %v10928_v25, %v10803_v20 }
 0x5a9   : > { %10994 = vst.msk [vmem:[%s18434_s6 + $0x18] sm:$0xff] %vm10990_vm4, %v10961_v28  ;;  %v10669_v34 = vpop.permute.xlu0 %10668  ;;  %10854 = vrot.lane.b32.xlu1 %v10505_v45, %s15586_s27 }
 0x5aa   : > { %v10925_v1 = vsel %vm10924_vm2, %v17553_v60, %v10669_v34 }
 0x5ab   : > { %v10671_v62 = vpop.permute.xlu1 %10670  ;;  %10856 = vrot.lane.b32.xlu0 %v10506_v29, %s15586_s27 }
 0x5ac   : > { %v10926_v4 = vsel %vm10924_vm2, %v17564_v36, %v10671_v62 }
 0x5ad   : > { %v10797_v10 = vpop.permute.xlu0 %10796  ;;  %10858 = vrot.lane.b32.xlu1 %v10507_v41, %s15586_s27 }
 0x5ae   : > { %v10958_v14 = vsel %vm10957_vm3, %v10925_v1, %v10797_v10 }
 0x5af   : > { %10991 = vst.msk [vmem:[%s18434_s6] sm:$0xff] %vm10990_vm4, %v10958_v14  ;;  %v10799_v21 = vpop.permute.xlu1 %10798 }
 0x5b0   : > { %v10959_v5 = vsel %vm10957_vm3, %v10926_v4, %v10799_v21 }
 0x5b1   : > { %10992 = vst.msk [vmem:[%s18434_s6 + $0x8] sm:$0xff] %vm10990_vm4, %v10959_v5  ;;  %v10681_v32 = vpop.permute.xlu0 %10680 }
 0x5b2   : > { %v10931_v60 = vsel %vm10924_vm2, %v17577_v42, %v10681_v32 }
 0x5b3   : > { %v10683_v17 = vpop.permute.xlu1 %10682 }
 0x5b4   : > { %v10932_v36 = vsel %vm10924_vm2, %v17580_v18, %v10683_v17  ;;  %v18746_v17 = vld [vmem:[#allocation10_spill] sm:$0xff] }
 0x5b5   : > { %v10809_v55 = vpop.permute.xlu0 %10808 }
 0x5b6   : > { %v10964_v13 = vsel %vm10957_vm3, %v10931_v60, %v10809_v55 }
 0x5b7   : > { %10997 = vst.msk [vmem:[%s18434_s6 + $0x30] sm:$0xff] %vm10990_vm4, %v10964_v13  ;;  %v10811_v11 = vpop.permute.xlu1 %10810 }
 0x5b8   : > { %v10965_v44 = vsel %vm10957_vm3, %v10932_v36, %v10811_v11  ;;  %v18747_v11 = vld [vmem:[#allocation12_spill] sm:$0xff] }
 0x5b9   : > { %10998 = vst.msk [vmem:[%s18434_s6 + $0x38] sm:$0xff] %vm10990_vm4, %v10965_v44  ;;  %v10677_v16 = vpop.permute.xlu0 %10676 }
 0x5ba   : > { %v10929_v42 = vsel %vm10924_vm2, %v17589_v19, %v10677_v16 }
 0x5bb   : > { %v10679_v49 = vpop.permute.xlu1 %10678 }
 0x5bc   : > { %v10930_v18 = vsel %vm10924_vm2, %v17596_v53, %v10679_v49  ;;  %v18748_v49 = vld [vmem:[#allocation14_spill] sm:$0xff] }
 0x5bd   : > { %v10805_v26 = vpop.permute.xlu0 %10804 }
 0x5be   : > { %v10962_v22 = vsel %vm10957_vm3, %v10929_v42, %v10805_v26 }
 0x5bf   : > { %10995 = vst.msk [vmem:[%s18434_s6 + $0x20] sm:$0xff] %vm10990_vm4, %v10962_v22  ;;  %v10807_v35 = vpop.permute.xlu1 %10806 }
 0x5c0   : > { %v10963_v46 = vsel %vm10957_vm3, %v10930_v18, %v10807_v35 }
 0x5c1   : > { %10996 = vst.msk [vmem:[%s18434_s6 + $0x28] sm:$0xff] %vm10990_vm4, %v10963_v46  ;;  %v10689_v12 = vpop.permute.xlu0 %10688  ;;  %v18749_v46 = vld [vmem:[#allocation20_spill] sm:$0xff] }
 0x5c2   : > { %v10935_v19 = vsel %vm10924_vm2, %v17605_v56, %v10689_v12 }
 0x5c3   : > { %v10691_v39 = vpop.permute.xlu1 %10690 }
 0x5c4   : > { %v10936_v53 = vsel %vm10924_vm2, %v17608_v7, %v10691_v39 }
 0x5c5   : > { %v10817_v40 = vpop.permute.xlu0 %10816 }
 0x5c6   : > { %v10968_v48 = vsel %vm10957_vm3, %v10935_v19, %v10817_v40  ;;  %v18750_v40 = vld [vmem:[#allocation2_spill] sm:$0xff] }
 0x5c7   : > { %11001 = vst.msk [vmem:[%s18434_s6 + $0x50] sm:$0xff] %vm10990_vm4, %v10968_v48  ;;  %v10819_v9 = vpop.permute.xlu1 %10818 }
 0x5c8   : > { %v10969_v38 = vsel %vm10957_vm3, %v10936_v53, %v10819_v9 }
 0x5c9   : > { %11002 = vst.msk [vmem:[%s18434_s6 + $0x58] sm:$0xff] %vm10990_vm4, %v10969_v38  ;;  %v10685_v52 = vpop.permute.xlu0 %10684 }
 0x5ca   : > { %v10933_v56 = vsel %vm10924_vm2, %v17617_v15, %v10685_v52 }
 0x5cb   : > { %v10687_v30 = vpop.permute.xlu1 %10686 }
 0x5cc   : > { %v10934_v7 = vsel %vm10924_vm2, %v17624_v57, %v10687_v30  ;;  %v18751_v30 = vld [vmem:[#allocation18_spill] sm:$0xff] }
 0x5cd   : > { %v10813_v24 = vpop.permute.xlu0 %10812 }
 0x5ce   : > { %v10966_v23 = vsel %vm10957_vm3, %v10933_v56, %v10813_v24 }
 0x5cf   : > { %10999 = vst.msk [vmem:[%s18434_s6 + $0x40] sm:$0xff] %vm10990_vm4, %v10966_v23  ;;  %v10815_v50 = vpop.permute.xlu1 %10814 }
 0x5d0   : > { %v10967_v51 = vsel %vm10957_vm3, %v10934_v7, %v10815_v50  ;;  %v18752_v7 = vld [vmem:[#allocation23_spill] sm:$0xff] }
 0x5d1   : > { %11000 = vst.msk [vmem:[%s18434_s6 + $0x48] sm:$0xff] %vm10990_vm4, %v10967_v51  ;;  %v10697_v58 = vpop.permute.xlu0 %10696 }
 0x5d2   : > { %v10939_v15 = vsel %vm10924_vm2, %v17633_v2, %v10697_v58 }
 0x5d3   : > { %v10699_v31 = vpop.permute.xlu1 %10698 }
 0x5d4   : > { %v10940_v57 = vsel %vm10924_vm2, %v17636_v54, %v10699_v31 }
 0x5d5   : > { %v10825_v37 = vpop.permute.xlu0 %10824 }
 0x5d6   : > { %v10972_v0 = vsel %vm10957_vm3, %v10939_v15, %v10825_v37  ;;  %v18753_v37 = vld [vmem:[#allocation3_spill] sm:$0xff] }
 0x5d7   : > { %11005 = vst.msk [vmem:[%s18434_s6 + $0x70] sm:$0xff] %vm10990_vm4, %v10972_v0  ;;  %v10827_v47 = vpop.permute.xlu1 %10826 }
 0x5d8   : > { %v10973_v3 = vsel %vm10957_vm3, %v10940_v57, %v10827_v47 }
 0x5d9   : > { %11006 = vst.msk [vmem:[%s18434_s6 + $0x78] sm:$0xff] %vm10990_vm4, %v10973_v3  ;;  %v10693_v27 = vpop.permute.xlu0 %10692  ;;  %v18754_v3 = vld [vmem:[#allocation4_spill] sm:$0xff] }
 0x5da   : > { %v10937_v2 = vsel %vm10924_vm2, %v17641_v61, %v10693_v27 }
 0x5db   : > { %v10695_v45 = vpop.permute.xlu1 %10694 }
 0x5dc   : > { %v10938_v54 = vsel %vm10924_vm2, %v17648_v63, %v10695_v45 }
 0x5dd   : > { %v10821_v25 = vpop.permute.xlu0 %10820 }
 0x5de   : > { %v10970_v20 = vsel %vm10957_vm3, %v10937_v2, %v10821_v25 }
 0x5df   : > { %11003 = vst.msk [vmem:[%s18434_s6 + $0x60] sm:$0xff] %vm10990_vm4, %v10970_v20  ;;  %v10823_v28 = vpop.permute.xlu1 %10822 }
 0x5e0   : > { %v10971_v29 = vsel %vm10957_vm3, %v10938_v54, %v10823_v28  ;;  %v18755_v28 = vld [vmem:[#allocation29_spill] sm:$0xff] }
 0x5e1   : > { %11004 = vst.msk [vmem:[%s18434_s6 + $0x68] sm:$0xff] %vm10990_vm4, %v10971_v29  ;;  %v10705_v34 = vpop.permute.xlu0 %10704  ;;  %v2825_v29 = vmax.f32 %v18755_v28, 0.0 }
 0x5e2   : > { %v10943_v61 = vsel %vm10924_vm2, %v17655_v59, %v10705_v34 }
 0x5e3   : > { %v10707_v41 = vpop.permute.xlu1 %10706 }
 0x5e4   : > { %v10944_v63 = vsel %vm10924_vm2, %v17658_v8, %v10707_v41  ;;  %v18756_v41 = vld [vmem:[#allocation30_spill] sm:$0xff] }
 0x5e5   : > { %v10833_v62 = vpop.permute.xlu0 %10832 }
 0x5e6   : > { %v10976_v1 = vsel %vm10957_vm3, %v10943_v61, %v10833_v62  ;;  %v2826_v61 = vmax.f32 %v18756_v41, 0.0  ;;  %v10920_v62 = vsel %vm272_vm1, %v2825_v29, %v18414_v33 }
 0x5e7   : > { %11009 = vst.msk [vmem:[%s18434_s6 + $0x90] sm:$0xff] %vm10990_vm4, %v10976_v1  ;;  %v10835_v10 = vpop.permute.xlu1 %10834 }
 0x5e8   : > { %v10977_v14 = vsel %vm10957_vm3, %v10944_v63, %v10835_v10  ;;  %v10921_v10 = vsel %vm272_vm1, %v2826_v61, %v18418_v6 }
 0x5e9   : > { %11010 = vst.msk [vmem:[%s18434_s6 + $0x98] sm:$0xff] %vm10990_vm4, %v10977_v14  ;;  %v10701_v4 = vpop.permute.xlu0 %10700 }
 0x5ea   : > { %v10941_v59 = vsel %vm10924_vm2, %v17665_v43, %v10701_v4 }
 0x5eb   : > { %v10703_v21 = vpop.permute.xlu1 %10702 }
 0x5ec   : > { %v10942_v8 = vsel %vm10924_vm2, %v18746_v17, %v10703_v21 }
 0x5ed   : > { %v10829_v5 = vpop.permute.xlu0 %10828 }
 0x5ee   : > { %v10974_v32 = vsel %vm10957_vm3, %v10941_v59, %v10829_v5  ;;  %v18757_v5 = vld [vmem:[#allocation5_spill] sm:$0xff] }
 0x5ef   : > { %11007 = vst.msk [vmem:[%s18434_s6 + $0x80] sm:$0xff] %vm10990_vm4, %v10974_v32  ;;  %v10831_v60 = vpop.permute.xlu1 %10830 }
 0x5f0   : > { %v10975_v55 = vsel %vm10957_vm3, %v10942_v8, %v10831_v60  ;;  %v18758_v8 = vld [vmem:[#allocation6_spill] sm:$0xff] }
 0x5f1   : > { %11008 = vst.msk [vmem:[%s18434_s6 + $0x88] sm:$0xff] %vm10990_vm4, %v10975_v55  ;;  %v10713_v13 = vpop.permute.xlu0 %10712 }
 0x5f2   : > { %v10947_v43 = vsel %vm10924_vm2, %v18747_v11, %v10713_v13 }
 0x5f3   : > { %v10715_v36 = vpop.permute.xlu1 %10714 }
 0x5f4   : > { %v10948_v42 = vsel %vm10924_vm2, %v18748_v49, %v10715_v36 }
 0x5f5   : > { %v10841_v44 = vpop.permute.xlu0 %10840 }
 0x5f6   : > { %v10980_v16 = vsel %vm10957_vm3, %v10947_v43, %v10841_v44 }
 0x5f7   : > { %11013 = vst.msk [vmem:[%s18434_s6 + $0xb0] sm:$0xff] %vm10990_vm4, %v10980_v16  ;;  %v10843_v26 = vpop.permute.xlu1 %10842 }
 0x5f8   : > { %v10981_v22 = vsel %vm10957_vm3, %v10948_v42, %v10843_v26 }
 0x5f9   : > { %11014 = vst.msk [vmem:[%s18434_s6 + $0xb8] sm:$0xff] %vm10990_vm4, %v10981_v22  ;;  %v10709_v18 = vpop.permute.xlu0 %10708 }
 0x5fa   : > { %v10945_v12 = vsel %vm10924_vm2, %v18749_v46, %v10709_v18 }
 0x5fb   : > { %v10711_v35 = vpop.permute.xlu1 %10710 }
 0x5fc   : > { %v10946_v48 = vsel %vm10924_vm2, %v18750_v40, %v10711_v35 }
 0x5fd   : > { %v10837_v39 = vpop.permute.xlu0 %10836 }
 0x5fe   : > { %v10978_v19 = vsel %vm10957_vm3, %v10945_v12, %v10837_v39 }
 0x5ff   : > { %11011 = vst.msk [vmem:[%s18434_s6 + $0xa0] sm:$0xff] %vm10990_vm4, %v10978_v19  ;;  %v10839_v53 = vpop.permute.xlu1 %10838 }
 0x600   : > { %v10979_v9 = vsel %vm10957_vm3, %v10946_v48, %v10839_v53 }
 0x601   : > { %11012 = vst.msk [vmem:[%s18434_s6 + $0xa8] sm:$0xff] %vm10990_vm4, %v10979_v9  ;;  %v10721_v38 = vpop.permute.xlu0 %10720 }
 0x602   : > { %v10951_v56 = vsel %vm10924_vm2, %v18751_v30, %v10721_v38 }
 0x603   : > { %v10723_v52 = vpop.permute.xlu1 %10722 }
 0x604   : > { %v10952_v50 = vsel %vm10924_vm2, %v18752_v7, %v10723_v52 }
 0x605   : > { %v10849_v24 = vpop.permute.xlu0 %10848 }
 0x606   : > { %v10984_v23 = vsel %vm10957_vm3, %v10951_v56, %v10849_v24 }
 0x607   : > { %11017 = vst.msk [vmem:[%s18434_s6 + $0xd0] sm:$0xff] %vm10990_vm4, %v10984_v23  ;;  %v10851_v51 = vpop.permute.xlu1 %10850 }
 0x608   : > { %v10985_v58 = vsel %vm10957_vm3, %v10952_v50, %v10851_v51 }
 0x609   : > { %11018 = vst.msk [vmem:[%s18434_s6 + $0xd8] sm:$0xff] %vm10990_vm4, %v10985_v58  ;;  %v10717_v31 = vpop.permute.xlu0 %10716 }
 0x60a   : > { %v10949_v0 = vsel %vm10924_vm2, %v18753_v37, %v10717_v31 }
 0x60b   : > { %v10719_v15 = vpop.permute.xlu1 %10718 }
 0x60c   : > { %v10950_v27 = vsel %vm10924_vm2, %v18754_v3, %v10719_v15 }
 0x60d   : > { %v10845_v57 = vpop.permute.xlu0 %10844 }
 0x60e   : > { %v10982_v47 = vsel %vm10957_vm3, %v10949_v0, %v10845_v57 }
 0x60f   : > { %11015 = vst.msk [vmem:[%s18434_s6 + $0xc0] sm:$0xff] %vm10990_vm4, %v10982_v47  ;;  %v10847_v45 = vpop.permute.xlu1 %10846 }
 0x610   : > { %v10983_v2 = vsel %vm10957_vm3, %v10950_v27, %v10847_v45 }
 0x611   : > { %11016 = vst.msk [vmem:[%s18434_s6 + $0xc8] sm:$0xff] %vm10990_vm4, %v10983_v2  ;;  %v10729_v25 = vpop.permute.xlu0 %10728 }
 0x612   : > { %v10955_v32 = vsel %vm10924_vm2, %v18757_v5, %v10729_v25 }
 0x613   : > { %v10731_v20 = vpop.permute.xlu1 %10730 }
 0x614   : > { %v10956_v6 = vsel %vm10924_vm2, %v18758_v8, %v10731_v20 }
 0x615   : > { %v10725_v54 = vpop.permute.xlu0 %10724 }
 0x616   : > { %v10953_v1 = vsel %vm10924_vm2, %v10920_v62, %v10725_v54 }
 0x617   : > { %v10727_v34 = vpop.permute.xlu1 %10726 }
 0x618   : > { %v10954_v4 = vsel %vm10924_vm2, %v10921_v10, %v10727_v34 }
 0x619   : > { %v10853_v63 = vpop.permute.xlu0 %10852 }
 0x61a   : > { %v10986_v14 = vsel %vm10957_vm3, %v10953_v1, %v10853_v63 }
 0x61b   : > { %11019 = vst.msk [vmem:[%s18434_s6 + $0xe0] sm:$0xff] %vm10990_vm4, %v10986_v14  ;;  %v10855_v21 = vpop.permute.xlu1 %10854 }
 0x61c   : > { %v10987_v59 = vsel %vm10957_vm3, %v10954_v4, %v10855_v21 }
 0x61d   : > { %11020 = vst.msk [vmem:[%s18434_s6 + $0xe8] sm:$0xff] %vm10990_vm4, %v10987_v59  ;;  %v10857_v33 = vpop.permute.xlu0 %10856 }
 0x61e   : > { %v10988_v17 = vsel %vm10957_vm3, %v10955_v32, %v10857_v33 }
 0x61f   : > { %11021 = vst.msk [vmem:[%s18434_s6 + $0xf0] sm:$0xff] %vm10990_vm4, %v10988_v17  ;;  %v10859_v60 = vpop.permute.xlu1 %10858 }
 0x620   : > { %v10989_v55 = vsel %vm10957_vm3, %v10956_v6, %v10859_v60 }
 0x621   : > { %11022 = vst.msk [vmem:[%s18434_s6 + $0xf8] sm:$0xff] %vm10990_vm4, %v10989_v55 }
 0x622 PF: > { %s13_s12 = sadd.s32 1, %s15582_s12  }
 0x623   : > { %p10_p4 = scmp.ge.s32.totalorder %s13_s12, 4  }
 0x625   :  { %12 = sbr.rel (!%p10_p4) target bundleno = 1 (0x1), region = 108 }

</bundles_post_ra>
